<compile_context>
chip_gen: v6e
topology: v6e:2x2x1
jax: 0.10.0
libtpu: 0.0.40
codegen_flags: <defaults>
</compile_context>

<pallas_src>
import functools

import jax
import jax.numpy as jnp
from jax.experimental import pallas as pl
from jax.experimental.pallas import tpu as pltpu

EPS = 1e-3                      # nn.BatchNorm2d(eps=0.001), training-mode batch stats
_VMEM_LIMIT = 32 * 1024 * 1024  # explicit scoped-VMEM limit (safe on v5e/v6e/v7x)


def _cparams(ndims):
    return pltpu.CompilerParams(
        dimension_semantics=("parallel",) * ndims,
        vmem_limit_bytes=_VMEM_LIMIT)


# --------------------------------------------------------------------------- #
# Kernels
# --------------------------------------------------------------------------- #
def _dual_conv_stats_kernel(x_ref, w0_ref, w1_ref, c0_ref, c1_ref,
                            st0_ref, st1_ref, *, inv_tm):
    """Two 1x1 convs sharing one activation tile read + per-tile BN partials.

    x_ref:  (tm, K)  bf16 activation tile (read once, used by both dots)
    w*_ref: (K, C*)  bf16 resident weight matrices
    c*_ref: (tm, C*) bf16 raw conv tiles (streamed back to HBM)
    st*_ref:(1, 2, C*) f32 packed per-tile [sum, centered sum-of-squares]
    """
    x = x_ref[...]

    acc0 = jnp.dot(x, w0_ref[...], preferred_element_type=jnp.float32)
    c0_ref[...] = acc0.astype(c0_ref.dtype)
    s0 = jnp.sum(acc0, axis=0, keepdims=True)
    d0 = acc0 - s0 * inv_tm
    st0_ref[:, 0:1, :] = s0[None]
    st0_ref[:, 1:2, :] = jnp.sum(d0 * d0, axis=0, keepdims=True)[None]

    acc1 = jnp.dot(x, w1_ref[...], preferred_element_type=jnp.float32)
    c1_ref[...] = acc1.astype(c1_ref.dtype)
    s1 = jnp.sum(acc1, axis=0, keepdims=True)
    d1 = acc1 - s1 * inv_tm
    st1_ref[:, 0:1, :] = s1[None]
    st1_ref[:, 1:2, :] = jnp.sum(d1 * d1, axis=0, keepdims=True)[None]


def _conv_stats_kernel(p_ref, w_ref, conv_ref, stats_ref, *, inv_tm):
    """Conv-as-matmul over an (already activated) patch tile + per-tile BN partials."""
    acc = jnp.dot(p_ref[...], w_ref[...], preferred_element_type=jnp.float32)
    conv_ref[...] = acc.astype(conv_ref.dtype)
    s = jnp.sum(acc, axis=0, keepdims=True)
    d = acc - s * inv_tm
    stats_ref[:, 0:1, :] = s[None]
    stats_ref[:, 1:2, :] = jnp.sum(d * d, axis=0, keepdims=True)[None]


def _tail_kernel(c0_ref, sc0_ref, sh0_ref, c1_ref, sc1_ref, sh1_ref,
                 w0_ref, w1_ref, b_ref, x_ref, o_ref, *, res_scale, need_relu):
    """Fused Block8 tail, 2-D tiled over (M, C_out).

    The BN+ReLU of Branch0 / Branch1[2] is applied here on the loaded raw-conv
    tiles (no separate activation round-trip through HBM); the channel concat is
    folded into two dots against the two weight slices.
    """
    a0 = jnp.maximum(c0_ref[...].astype(jnp.float32) * sc0_ref[...] + sh0_ref[...], 0.0)
    a1 = jnp.maximum(c1_ref[...].astype(jnp.float32) * sc1_ref[...] + sh1_ref[...], 0.0)
    acc = jnp.dot(a0.astype(jnp.bfloat16), w0_ref[...], preferred_element_type=jnp.float32)
    acc = acc + jnp.dot(a1.astype(jnp.bfloat16), w1_ref[...], preferred_element_type=jnp.float32)
    y = (acc + b_ref[...]) * res_scale + x_ref[...].astype(jnp.float32)
    if need_relu:
        y = jnp.maximum(y, 0.0)
    o_ref[...] = y.astype(o_ref.dtype)


# --------------------------------------------------------------------------- #
# pallas_call wrappers
# --------------------------------------------------------------------------- #
def _pick_tm(m, target=1024):
    """Largest divisor of m that is a multiple of 8 and <= target, preferring a
    choice with >= 2 grid steps (keeps both v7x TensorCores and the DMA pipeline
    busy)."""
    best = None
    limit = min(target, m)
    for t in range(limit - limit % 8, 7, -8):
        if m % t == 0:
            if best is None:
                best = t
            if m // t >= 2:
                return t
    if best is not None:
        return best
    # TODO(synk): cdiv + masked last M tile for awkward / non-multiple-of-8 M.
    return m


def _dual_conv1x1_stats(x_bf, w0m, w1m):
    m, k = x_bf.shape
    c0 = w0m.shape[1]
    c1 = w1m.shape[1]
    tm = _pick_tm(m)
    gm = m // tm
    kernel = functools.partial(_dual_conv_stats_kernel, inv_tm=1.0 / tm)
    return pl.pallas_call(
        kernel,
        out_shape=(jax.ShapeDtypeStruct((m, c0), jnp.bfloat16),
                   jax.ShapeDtypeStruct((m, c1), jnp.bfloat16),
                   jax.ShapeDtypeStruct((gm, 2, c0), jnp.float32),
                   jax.ShapeDtypeStruct((gm, 2, c1), jnp.float32)),
        grid_spec=pltpu.PrefetchScalarGridSpec(
            num_scalar_prefetch=0,
            grid=(gm,),
            in_specs=[
                pl.BlockSpec((tm, k), lambda i: (i, 0)),   # activation tiles stream in
                pl.BlockSpec((k, c0), lambda i: (0, 0)),   # weights resident
                pl.BlockSpec((k, c1), lambda i: (0, 0)),
            ],
            out_specs=[
                pl.BlockSpec((tm, c0), lambda i: (i, 0)),
                pl.BlockSpec((tm, c1), lambda i: (i, 0)),
                pl.BlockSpec((1, 2, c0), lambda i: (i, 0, 0)),
                pl.BlockSpec((1, 2, c1), lambda i: (i, 0, 0)),
            ],
        ),
        compiler_params=_cparams(1),
    )(x_bf, w0m, w1m)


def _conv_matmul_stats(p, w_mat):
    m, k = p.shape
    c = w_mat.shape[1]
    tm = _pick_tm(m)
    gm = m // tm
    kernel = functools.partial(_conv_stats_kernel, inv_tm=1.0 / tm)
    return pl.pallas_call(
        kernel,
        out_shape=(jax.ShapeDtypeStruct((m, c), jnp.bfloat16),
                   jax.ShapeDtypeStruct((gm, 2, c), jnp.float32)),
        grid_spec=pltpu.PrefetchScalarGridSpec(
            num_scalar_prefetch=0,
            grid=(gm,),
            in_specs=[pl.BlockSpec((tm, k), lambda i: (i, 0)),
                      pl.BlockSpec((k, c), lambda i: (0, 0))],
            out_specs=[pl.BlockSpec((tm, c), lambda i: (i, 0)),
                       pl.BlockSpec((1, 2, c), lambda i: (i, 0, 0))],
        ),
        compiler_params=_cparams(1),
    )(p, w_mat)


def _fused_tail(c0, sc0, sh0, c1, sc1, sh1, w0, w1, bias, x_res_bf,
                *, res_scale, need_relu, tn_target=512):
    m, ch0 = c0.shape
    ch1 = c1.shape[1]
    c_out = w0.shape[1]
    tm = _pick_tm(m)
    gm = m // tm
    tn = c_out if c_out <= tn_target else tn_target
    gn = pl.cdiv(c_out, tn)            # partial last column block handled by Pallas masking
    kernel = functools.partial(_tail_kernel, res_scale=res_scale, need_relu=need_relu)
    return pl.pallas_call(
        kernel,
        out_shape=jax.ShapeDtypeStruct((m, c_out), jnp.float32),
        grid_spec=pltpu.PrefetchScalarGridSpec(
            num_scalar_prefetch=0,
            grid=(gm, gn),
            in_specs=[
                pl.BlockSpec((tm, ch0), lambda i, j: (i, 0)),    # branch0 raw conv (bf16)
                pl.BlockSpec((1, ch0), lambda i, j: (0, 0)),     # BN scale / shift
                pl.BlockSpec((1, ch0), lambda i, j: (0, 0)),
                pl.BlockSpec((tm, ch1), lambda i, j: (i, 0)),    # branch1 raw conv (bf16)
                pl.BlockSpec((1, ch1), lambda i, j: (0, 0)),
                pl.BlockSpec((1, ch1), lambda i, j: (0, 0)),
                pl.BlockSpec((ch0, tn), lambda i, j: (0, j)),    # weight slice (branch0)
                pl.BlockSpec((ch1, tn), lambda i, j: (0, j)),    # weight slice (branch1)
                pl.BlockSpec((1, tn), lambda i, j: (0, j)),      # bias
                pl.BlockSpec((tm, tn), lambda i, j: (i, j)),     # residual (bf16)
            ],
            out_specs=pl.BlockSpec((tm, tn), lambda i, j: (i, j)),
        ),
        compiler_params=_cparams(2),
    )(c0, sc0, sh0, c1, sc1, sh1, w0, w1, bias, x_res_bf)


# --------------------------------------------------------------------------- #
# JAX glue (tiny per-channel combines + patch extraction + layout)
# --------------------------------------------------------------------------- #
def _w_to_mat(w_oihw):
    co, ci, kh, kw = w_oihw.shape
    return jnp.transpose(w_oihw, (2, 3, 1, 0)).reshape(kh * kw * ci, co).astype(jnp.bfloat16)


def _fold_bn(stats, gamma, beta, m_total):
    """Parallel-Welford merge of per-tile (sum, centered-M2) partials into batch
    mean/var, folded into one scale/shift FMA.  Matches PyTorch BatchNorm2d
    training-mode forward (biased variance, eps=1e-3)."""
    gm = stats.shape[0]
    tm = m_total // gm
    s = stats[:, 0, :]
    m2 = stats[:, 1, :]
    mean = jnp.sum(s, axis=0) / m_total
    tile_mean = s / tm
    var = (jnp.sum(m2, axis=0) + tm * jnp.sum((tile_mean - mean) ** 2, axis=0)) / m_total
    inv = jax.lax.rsqrt(var + EPS)
    scale = gamma.astype(jnp.float32) * inv
    shift = beta.astype(jnp.float32) - mean * scale
    return scale.reshape(1, -1), shift.reshape(1, -1)


def _bn_relu_im2col(conv_flat, scale, shift, spatial, c_in, kh, kw, ph, pw):
    """Producer BN affine + ReLU fused (by XLA) into the stride-1 'same' im2col
    for the following (1,3)/(3,1) conv.  The spatial zero-padding must be applied
    AFTER the ReLU (it pads the activated tensor), so it cannot be folded onto
    the patch columns inside the consumer kernel without a halo formulation."""
    # TODO(synk): in-kernel 3-tap (halo) formulation with pl.ds/pltpu.roll to
    # remove the kh*kw HBM patch inflation and keep BN+ReLU inside the kernel.
    n, h, w = spatial
    act = jnp.maximum(conv_flat.astype(jnp.float32) * scale + shift, 0.0)
    act = act.astype(jnp.bfloat16).reshape(n, h, w, c_in)
    xp = jnp.pad(act, ((0, 0), (ph, ph), (pw, pw), (0, 0)))
    cols = [jax.lax.slice(xp, (0, di, dj, 0), (n, di + h, dj + w, c_in))
            for di in range(kh) for dj in range(kw)]
    return jnp.stack(cols, axis=3).reshape(n * h * w, kh * kw * c_in)


def block8_forward_nhwc(x_flat, spatial, params, *, block_scale=1.0, need_relu=True):
    """Block8 forward on an NHWC-flattened (N*H*W, 2080) activation."""
    n, h, w = spatial
    m = n * h * w
    x_bf = x_flat.astype(jnp.bfloat16)   # cast once; reused by conv + residual read

    # ---- Branch0 (2080->192) and Branch1[0] (2080->192): one fused kernel ----
    w_b0 = _w_to_mat(params["b0_w"])
    w_b10 = _w_to_mat(params["b1_0_w"])
    c_b0, c_b10, st0, st10 = _dual_conv1x1_stats(x_bf, w_b0, w_b10)
    sc0, sh0 = _fold_bn(st0, params["b0_g"], params["b0_b"], m)
    sc10, sh10 = _fold_bn(st10, params["b1_0_g"], params["b1_0_b"], m)

    # ---- Branch1[1]: 1x3 conv 192->224 (BN+ReLU of previous layer fused into im2col) ----
    p11 = _bn_relu_im2col(c_b10, sc10, sh10, spatial, c_b10.shape[1], 1, 3, 0, 1)
    c_b11, st11 = _conv_matmul_stats(p11, _w_to_mat(params["b1_1_w"]))
    sc11, sh11 = _fold_bn(st11, params["b1_1_g"], params["b1_1_b"], m)

    # ---- Branch1[2]: 3x1 conv 224->256 ----
    p12 = _bn_relu_im2col(c_b11, sc11, sh11, spatial, c_b11.shape[1], 3, 1, 1, 0)
    c_b12, st12 = _conv_matmul_stats(p12, _w_to_mat(params["b1_2_w"]))
    sc12, sh12 = _fold_bn(st12, params["b1_2_g"], params["b1_2_b"], m)

    # ---- Fused tail: BN+ReLU of both branches + concat->1x1 conv + bias
    #      -> *scale -> +residual -> optional ReLU, 2-D tiled over (M, 2080) ----
    w_full = _w_to_mat(params["conv_w"])            # (448, 2080) bf16
    ch0 = c_b0.shape[1]
    w_t0 = w_full[:ch0]
    w_t1 = w_full[ch0:]
    bias = params["conv_b"].astype(jnp.float32).reshape(1, -1)
    return _fused_tail(c_b0, sc0, sh0, c_b12, sc12, sh12, w_t0, w_t1, bias, x_bf,
                       res_scale=block_scale, need_relu=need_relu)


def block8_forward(x_nchw, params, *, block_scale=1.0, need_relu=True):
    """NCHW wrapper (matches the PyTorch module interface).
    NOTE: the NCHW<->NHWC boundary transposes are XLA-side; if the surrounding
    model can stay NHWC, call block8_forward_nhwc directly and skip them."""
    n, c, h, w = x_nchw.shape
    x_flat = jnp.transpose(x_nchw, (0, 2, 3, 1)).reshape(n * h * w, c)
    out_flat = block8_forward_nhwc(x_flat, (n, h, w), params,
                                   block_scale=block_scale, need_relu=need_relu)
    return jnp.transpose(out_flat.reshape(n, h, w, c), (0, 3, 1, 2))


# --------------------------------------------------------------------------- #
# Pure-JAX reference (all-f32), matching the PyTorch forward
# --------------------------------------------------------------------------- #
def _ref_basic_conv(x, w, g, b, pad):
    y = jax.lax.conv_general_dilated(
        x, w, window_strides=(1, 1),
        padding=[(pad[0], pad[0]), (pad[1], pad[1])],
        dimension_numbers=("NCHW", "OIHW", "NCHW"))
    mean = jnp.mean(y, axis=(0, 2, 3), keepdims=True)
    var = jnp.mean((y - mean) ** 2, axis=(0, 2, 3), keepdims=True)
    yn = (y - mean) * jax.lax.rsqrt(var + EPS) * g.reshape(1, -1, 1, 1) \
        + b.reshape(1, -1, 1, 1)
    return jnp.maximum(yn, 0.0)


def _reference_block8(x, p, scale, need_relu):
    x0 = _ref_basic_conv(x, p["b0_w"], p["b0_g"], p["b0_b"], (0, 0))
    x1 = _ref_basic_conv(x, p["b1_0_w"], p["b1_0_g"], p["b1_0_b"], (0, 0))
    x1 = _ref_basic_conv(x1, p["b1_1_w"], p["b1_1_g"], p["b1_1_b"], (0, 1))
    x1 = _ref_basic_conv(x1, p["b1_2_w"], p["b1_2_g"], p["b1_2_b"], (1, 0))
    cat = jnp.concatenate([x0, x1], axis=1)
    y = jax.lax.conv_general_dilated(
        cat, p["conv_w"], (1, 1), [(0, 0), (0, 0)],
        dimension_numbers=("NCHW", "OIHW", "NCHW")) + p["conv_b"].reshape(1, -1, 1, 1)
    out = y * scale + x
    if need_relu:
        out = jnp.maximum(out, 0.0)
    return out


if __name__ == "__main__":
    # Block8 requires 2080 input channels; keep batch/spatial small.
    N, C_IN, H, W = 2, 2080, 8, 8
    SCALE, NEED_RELU = 0.2, True

    key = jax.random.PRNGKey(0)
    ks = jax.random.split(key, 16)

    def _w(k, co, ci, kh, kw, s):
        return s * jax.random.normal(k, (co, ci, kh, kw), dtype=jnp.float32)

    params = {
        "b0_w": _w(ks[0], 192, 2080, 1, 1, 0.02),
        "b0_g": 0.5 + jax.random.uniform(ks[1], (192,), dtype=jnp.float32),
        "b0_b": 0.1 * jax.random.normal(ks[2], (192,), dtype=jnp.float32),
        "b1_0_w": _w(ks[3], 192, 2080, 1, 1, 0.02),
        "b1_0_g": 0.5 + jax.random.uniform(ks[4], (192,), dtype=jnp.float32),
        "b1_0_b": 0.1 * jax.random.normal(ks[5], (192,), dtype=jnp.float32),
        "b1_1_w": _w(ks[6], 224, 192, 1, 3, 0.04),
        "b1_1_g": 0.5 + jax.random.uniform(ks[7], (224,), dtype=jnp.float32),
        "b1_1_b": 0.1 * jax.random.normal(ks[8], (224,), dtype=jnp.float32),
        "b1_2_w": _w(ks[9], 256, 224, 3, 1, 0.04),
        "b1_2_g": 0.5 + jax.random.uniform(ks[10], (256,), dtype=jnp.float32),
        "b1_2_b": 0.1 * jax.random.normal(ks[11], (256,), dtype=jnp.float32),
        "conv_w": _w(ks[12], 2080, 448, 1, 1, 0.05),
        "conv_b": 0.1 * jax.random.normal(ks[13], (2080,), dtype=jnp.float32),
    }
    x = jax.random.normal(ks[14], (N, C_IN, H, W), dtype=jnp.float32)

    fwd = jax.jit(functools.partial(block8_forward, block_scale=SCALE, need_relu=NEED_RELU))
    out = jax.block_until_ready(fwd(x, params))

    ref = _reference_block8(x, params, SCALE, NEED_RELU)
    if out.shape != ref.shape:
        raise AssertionError(f"shape mismatch {out.shape} vs {ref.shape}")
    # bf16 matmul operands AND bf16 intermediate storage across the 5-conv chain
    # (f32 MXU accumulation, f32 BN statistics) -> modest tolerance.
    if not jnp.allclose(out, ref, atol=4e-2, rtol=4e-2):
        max_err = float(jnp.max(jnp.abs(out - ref)))
        raise AssertionError(f"Pallas Block8 output mismatch vs reference (max abs err {max_err})")
    print("KERNEL_OK")
</pallas_src>

<mosaic_0001>
module attributes {stable_mosaic.version = 11 : i64} {
  func.func @_dual_conv_stats_kernel(%arg0: i32, %arg1: memref<64x2080xbf16, #tpu.memory_space<vmem>>, %arg2: memref<2080x192xbf16, #tpu.memory_space<vmem>>, %arg3: memref<2080x192xbf16, #tpu.memory_space<vmem>>, %arg4: memref<64x192xbf16, #tpu.memory_space<vmem>>, %arg5: memref<64x192xbf16, #tpu.memory_space<vmem>>, %arg6: memref<1x2x192xf32, #tpu.memory_space<vmem>>, %arg7: memref<1x2x192xf32, #tpu.memory_space<vmem>>) attributes {dimension_semantics = [#tpu.dimension_semantics<parallel>], iteration_bounds = array<i64: 2>, scalar_prefetch = 0 : i64, scratch_operands = 0 : i64, tpu.core_type = #tpu.core_type<tc>, window_params = [{transform_indices = @transform_0, window_bounds = array<i64: 64, 2080>}, {pipeline_mode = #tpu.pipeline_mode<synchronous>, transform_indices = @transform_1, window_bounds = array<i64: 2080, 192>}, {pipeline_mode = #tpu.pipeline_mode<synchronous>, transform_indices = @transform_2, window_bounds = array<i64: 2080, 192>}, {transform_indices = @transform_3, window_bounds = array<i64: 64, 192>}, {transform_indices = @transform_4, window_bounds = array<i64: 64, 192>}, {transform_indices = @transform_5, window_bounds = array<i64: 1, 2, 192>}, {transform_indices = @transform_6, window_bounds = array<i64: 1, 2, 192>}]} {
    %c0 = arith.constant 0 : index
    %c0_0 = arith.constant 0 : index
    %0 = vector.load %arg1[%c0, %c0_0] : memref<64x2080xbf16, #tpu.memory_space<vmem>>, vector<64x2080xbf16>
    %c0_1 = arith.constant 0 : index
    %c0_2 = arith.constant 0 : index
    %1 = vector.load %arg2[%c0_1, %c0_2] : memref<2080x192xbf16, #tpu.memory_space<vmem>>, vector<2080x192xbf16>
    %cst = arith.constant dense<0.000000e+00> : vector<64x192xf32>
    %2 = tpu.matmul %0, %1, %cst {dimension_numbers = #tpu.dot_dimension_numbers<[1], [0], [0], [1], [0, 0, 1, 1], [], []>} : vector<64x2080xbf16>, vector<2080x192xbf16>, vector<64x192xf32> -> vector<64x192xf32>
    %3 = arith.truncf %2 : vector<64x192xf32> to vector<64x192xbf16>
    %c0_3 = arith.constant 0 : index
    %c0_4 = arith.constant 0 : index
    %4 = vector.load %arg4[%c0_3, %c0_4] : memref<64x192xbf16, #tpu.memory_space<vmem>>, vector<64x192xbf16>
    tpu.vector_store %arg4[%c0_3, %c0_4], %3 {strides = array<i32>} : memref<64x192xbf16, #tpu.memory_space<vmem>>, vector<64x192xbf16>,
    %cst_5 = arith.constant dense<0.000000e+00> : vector<192xf32>
    %5 = vector.multi_reduction <add>, %2, %cst_5 [0] : vector<64x192xf32> to vector<192xf32>
    %6 = vector.shape_cast %5 : vector<192xf32> to vector<1x192xf32>
    %cst_6 = arith.constant 1.562500e-02 : f32
    %7 = vector.broadcast %cst_6 : f32 to vector<1x192xf32>
    %8 = arith.mulf %6, %7 : vector<1x192xf32>
    %9 = vector.broadcast %8 : vector<1x192xf32> to vector<64x192xf32>
    %10 = arith.subf %2, %9 : vector<64x192xf32>
    %11 = vector.shape_cast %6 : vector<1x192xf32> to vector<1x1x192xf32>
    %c0_7 = arith.constant 0 : index
    %c0_8 = arith.constant 0 : index
    %c0_9 = arith.constant 0 : index
    %12 = vector.load %arg6[%c0_7, %c0_8, %c0_9] : memref<1x2x192xf32, #tpu.memory_space<vmem>>, vector<1x1x192xf32>
    tpu.vector_store %arg6[%c0_7, %c0_8, %c0_9], %11 {strides = array<i32>} : memref<1x2x192xf32, #tpu.memory_space<vmem>>, vector<1x1x192xf32>,
    %13 = arith.mulf %10, %10 : vector<64x192xf32>
    %cst_10 = arith.constant dense<0.000000e+00> : vector<192xf32>
    %14 = vector.multi_reduction <add>, %13, %cst_10 [0] : vector<64x192xf32> to vector<192xf32>
    %15 = vector.shape_cast %14 : vector<192xf32> to vector<1x192xf32>
    %16 = vector.shape_cast %15 : vector<1x192xf32> to vector<1x1x192xf32>
    %c0_11 = arith.constant 0 : index
    %c1 = arith.constant 1 : index
    %c0_12 = arith.constant 0 : index
    %17 = vector.load %arg6[%c0_11, %c1, %c0_12] : memref<1x2x192xf32, #tpu.memory_space<vmem>>, vector<1x1x192xf32>
    tpu.vector_store %arg6[%c0_11, %c1, %c0_12], %16 {strides = array<i32>} : memref<1x2x192xf32, #tpu.memory_space<vmem>>, vector<1x1x192xf32>,
    %c0_13 = arith.constant 0 : index
    %c0_14 = arith.constant 0 : index
    %18 = vector.load %arg3[%c0_13, %c0_14] : memref<2080x192xbf16, #tpu.memory_space<vmem>>, vector<2080x192xbf16>
    %cst_15 = arith.constant dense<0.000000e+00> : vector<64x192xf32>
    %19 = tpu.matmul %0, %18, %cst_15 {dimension_numbers = #tpu.dot_dimension_numbers<[1], [0], [0], [1], [0, 0, 1, 1], [], []>} : vector<64x2080xbf16>, vector<2080x192xbf16>, vector<64x192xf32> -> vector<64x192xf32>
    %20 = arith.truncf %19 : vector<64x192xf32> to vector<64x192xbf16>
    %c0_16 = arith.constant 0 : index
    %c0_17 = arith.constant 0 : index
    %21 = vector.load %arg5[%c0_16, %c0_17] : memref<64x192xbf16, #tpu.memory_space<vmem>>, vector<64x192xbf16>
    tpu.vector_store %arg5[%c0_16, %c0_17], %20 {strides = array<i32>} : memref<64x192xbf16, #tpu.memory_space<vmem>>, vector<64x192xbf16>,
    %cst_18 = arith.constant dense<0.000000e+00> : vector<192xf32>
    %22 = vector.multi_reduction <add>, %19, %cst_18 [0] : vector<64x192xf32> to vector<192xf32>
    %23 = vector.shape_cast %22 : vector<192xf32> to vector<1x192xf32>
    %cst_19 = arith.constant 1.562500e-02 : f32
    %24 = vector.broadcast %cst_19 : f32 to vector<1x192xf32>
    %25 = arith.mulf %23, %24 : vector<1x192xf32>
    %26 = vector.broadcast %25 : vector<1x192xf32> to vector<64x192xf32>
    %27 = arith.subf %19, %26 : vector<64x192xf32>
    %28 = vector.shape_cast %23 : vector<1x192xf32> to vector<1x1x192xf32>
    %c0_20 = arith.constant 0 : index
    %c0_21 = arith.constant 0 : index
    %c0_22 = arith.constant 0 : index
    %29 = vector.load %arg7[%c0_20, %c0_21, %c0_22] : memref<1x2x192xf32, #tpu.memory_space<vmem>>, vector<1x1x192xf32>
    tpu.vector_store %arg7[%c0_20, %c0_21, %c0_22], %28 {strides = array<i32>} : memref<1x2x192xf32, #tpu.memory_space<vmem>>, vector<1x1x192xf32>,
    %30 = arith.mulf %27, %27 : vector<64x192xf32>
    %cst_23 = arith.constant dense<0.000000e+00> : vector<192xf32>
    %31 = vector.multi_reduction <add>, %30, %cst_23 [0] : vector<64x192xf32> to vector<192xf32>
    %32 = vector.shape_cast %31 : vector<192xf32> to vector<1x192xf32>
    %33 = vector.shape_cast %32 : vector<1x192xf32> to vector<1x1x192xf32>
    %c0_24 = arith.constant 0 : index
    %c1_25 = arith.constant 1 : index
    %c0_26 = arith.constant 0 : index
    %34 = vector.load %arg7[%c0_24, %c1_25, %c0_26] : memref<1x2x192xf32, #tpu.memory_space<vmem>>, vector<1x1x192xf32>
    tpu.vector_store %arg7[%c0_24, %c1_25, %c0_26], %33 {strides = array<i32>} : memref<1x2x192xf32, #tpu.memory_space<vmem>>, vector<1x1x192xf32>,
    return
  }
  func.func @transform_0(%arg0: i32) -> (i32, i32) {
    %c0_i32 = arith.constant 0 : i32
    %c0_i32_0 = arith.constant 0 : i32
    return %arg0, %c0_i32 : i32, i32
  }
  func.func @transform_1(%arg0: i32) -> (i32, i32) {
    %c0_i32 = arith.constant 0 : i32
    %c0_i32_0 = arith.constant 0 : i32
    %c0_i32_1 = arith.constant 0 : i32
    return %c0_i32, %c0_i32_0 : i32, i32
  }
  func.func @transform_2(%arg0: i32) -> (i32, i32) {
    %c0_i32 = arith.constant 0 : i32
    %c0_i32_0 = arith.constant 0 : i32
    %c0_i32_1 = arith.constant 0 : i32
    return %c0_i32, %c0_i32_0 : i32, i32
  }
  func.func @transform_3(%arg0: i32) -> (i32, i32) {
    %c0_i32 = arith.constant 0 : i32
    %c0_i32_0 = arith.constant 0 : i32
    return %arg0, %c0_i32 : i32, i32
  }
  func.func @transform_4(%arg0: i32) -> (i32, i32) {
    %c0_i32 = arith.constant 0 : i32
    %c0_i32_0 = arith.constant 0 : i32
    return %arg0, %c0_i32 : i32, i32
  }
  func.func @transform_5(%arg0: i32) -> (i32, i32, i32) {
    %c0_i32 = arith.constant 0 : i32
    %c0_i32_0 = arith.constant 0 : i32
    %c0_i32_1 = arith.constant 0 : i32
    return %arg0, %c0_i32, %c0_i32_0 : i32, i32, i32
  }
  func.func @transform_6(%arg0: i32) -> (i32, i32, i32) {
    %c0_i32 = arith.constant 0 : i32
    %c0_i32_0 = arith.constant 0 : i32
    %c0_i32_1 = arith.constant 0 : i32
    return %arg0, %c0_i32, %c0_i32_0 : i32, i32, i32
  }
}

module attributes {stable_mosaic.version = 11 : i64} {
  func.func @_conv_stats_kernel(%arg0: i32, %arg1: memref<64x576xbf16, #tpu.memory_space<vmem>>, %arg2: memref<576x224xbf16, #tpu.memory_space<vmem>>, %arg3: memref<64x224xbf16, #tpu.memory_space<vmem>>, %arg4: memref<1x2x224xf32, #tpu.memory_space<vmem>>) attributes {dimension_semantics = [#tpu.dimension_semantics<parallel>], iteration_bounds = array<i64: 2>, scalar_prefetch = 0 : i64, scratch_operands = 0 : i64, tpu.core_type = #tpu.core_type<tc>, window_params = [{transform_indices = @transform_0, window_bounds = array<i64: 64, 576>}, {pipeline_mode = #tpu.pipeline_mode<synchronous>, transform_indices = @transform_1, window_bounds = array<i64: 576, 224>}, {transform_indices = @transform_2, window_bounds = array<i64: 64, 224>}, {transform_indices = @transform_3, window_bounds = array<i64: 1, 2, 224>}]} {
    %c0 = arith.constant 0 : index
    %c0_0 = arith.constant 0 : index
    %0 = vector.load %arg1[%c0, %c0_0] : memref<64x576xbf16, #tpu.memory_space<vmem>>, vector<64x576xbf16>
    %c0_1 = arith.constant 0 : index
    %c0_2 = arith.constant 0 : index
    %1 = vector.load %arg2[%c0_1, %c0_2] : memref<576x224xbf16, #tpu.memory_space<vmem>>, vector<576x224xbf16>
    %cst = arith.constant dense<0.000000e+00> : vector<64x224xf32>
    %2 = tpu.matmul %0, %1, %cst {dimension_numbers = #tpu.dot_dimension_numbers<[1], [0], [0], [1], [0, 0, 1, 1], [], []>} : vector<64x576xbf16>, vector<576x224xbf16>, vector<64x224xf32> -> vector<64x224xf32>
    %3 = arith.truncf %2 : vector<64x224xf32> to vector<64x224xbf16>
    %c0_3 = arith.constant 0 : index
    %c0_4 = arith.constant 0 : index
    %4 = vector.load %arg3[%c0_3, %c0_4] : memref<64x224xbf16, #tpu.memory_space<vmem>>, vector<64x224xbf16>
    tpu.vector_store %arg3[%c0_3, %c0_4], %3 {strides = array<i32>} : memref<64x224xbf16, #tpu.memory_space<vmem>>, vector<64x224xbf16>,
    %cst_5 = arith.constant dense<0.000000e+00> : vector<224xf32>
    %5 = vector.multi_reduction <add>, %2, %cst_5 [0] : vector<64x224xf32> to vector<224xf32>
    %6 = vector.shape_cast %5 : vector<224xf32> to vector<1x224xf32>
    %cst_6 = arith.constant 1.562500e-02 : f32
    %7 = vector.broadcast %cst_6 : f32 to vector<1x224xf32>
    %8 = arith.mulf %6, %7 : vector<1x224xf32>
    %9 = vector.broadcast %8 : vector<1x224xf32> to vector<64x224xf32>
    %10 = arith.subf %2, %9 : vector<64x224xf32>
    %11 = vector.shape_cast %6 : vector<1x224xf32> to vector<1x1x224xf32>
    %c0_7 = arith.constant 0 : index
    %c0_8 = arith.constant 0 : index
    %c0_9 = arith.constant 0 : index
    %12 = vector.load %arg4[%c0_7, %c0_8, %c0_9] : memref<1x2x224xf32, #tpu.memory_space<vmem>>, vector<1x1x224xf32>
    tpu.vector_store %arg4[%c0_7, %c0_8, %c0_9], %11 {strides = array<i32>} : memref<1x2x224xf32, #tpu.memory_space<vmem>>, vector<1x1x224xf32>,
    %13 = arith.mulf %10, %10 : vector<64x224xf32>
    %cst_10 = arith.constant dense<0.000000e+00> : vector<224xf32>
    %14 = vector.multi_reduction <add>, %13, %cst_10 [0] : vector<64x224xf32> to vector<224xf32>
    %15 = vector.shape_cast %14 : vector<224xf32> to vector<1x224xf32>
    %16 = vector.shape_cast %15 : vector<1x224xf32> to vector<1x1x224xf32>
    %c0_11 = arith.constant 0 : index
    %c1 = arith.constant 1 : index
    %c0_12 = arith.constant 0 : index
    %17 = vector.load %arg4[%c0_11, %c1, %c0_12] : memref<1x2x224xf32, #tpu.memory_space<vmem>>, vector<1x1x224xf32>
    tpu.vector_store %arg4[%c0_11, %c1, %c0_12], %16 {strides = array<i32>} : memref<1x2x224xf32, #tpu.memory_space<vmem>>, vector<1x1x224xf32>,
    return
  }
  func.func @transform_0(%arg0: i32) -> (i32, i32) {
    %c0_i32 = arith.constant 0 : i32
    %c0_i32_0 = arith.constant 0 : i32
    return %arg0, %c0_i32 : i32, i32
  }
  func.func @transform_1(%arg0: i32) -> (i32, i32) {
    %c0_i32 = arith.constant 0 : i32
    %c0_i32_0 = arith.constant 0 : i32
    %c0_i32_1 = arith.constant 0 : i32
    return %c0_i32, %c0_i32_0 : i32, i32
  }
  func.func @transform_2(%arg0: i32) -> (i32, i32) {
    %c0_i32 = arith.constant 0 : i32
    %c0_i32_0 = arith.constant 0 : i32
    return %arg0, %c0_i32 : i32, i32
  }
  func.func @transform_3(%arg0: i32) -> (i32, i32, i32) {
    %c0_i32 = arith.constant 0 : i32
    %c0_i32_0 = arith.constant 0 : i32
    %c0_i32_1 = arith.constant 0 : i32
    return %arg0, %c0_i32, %c0_i32_0 : i32, i32, i32
  }
}

module attributes {stable_mosaic.version = 11 : i64} {
  func.func @_conv_stats_kernel(%arg0: i32, %arg1: memref<64x672xbf16, #tpu.memory_space<vmem>>, %arg2: memref<672x256xbf16, #tpu.memory_space<vmem>>, %arg3: memref<64x256xbf16, #tpu.memory_space<vmem>>, %arg4: memref<1x2x256xf32, #tpu.memory_space<vmem>>) attributes {dimension_semantics = [#tpu.dimension_semantics<parallel>], iteration_bounds = array<i64: 2>, scalar_prefetch = 0 : i64, scratch_operands = 0 : i64, tpu.core_type = #tpu.core_type<tc>, window_params = [{transform_indices = @transform_0, window_bounds = array<i64: 64, 672>}, {pipeline_mode = #tpu.pipeline_mode<synchronous>, transform_indices = @transform_1, window_bounds = array<i64: 672, 256>}, {transform_indices = @transform_2, window_bounds = array<i64: 64, 256>}, {transform_indices = @transform_3, window_bounds = array<i64: 1, 2, 256>}]} {
    %c0 = arith.constant 0 : index
    %c0_0 = arith.constant 0 : index
    %0 = vector.load %arg1[%c0, %c0_0] : memref<64x672xbf16, #tpu.memory_space<vmem>>, vector<64x672xbf16>
    %c0_1 = arith.constant 0 : index
    %c0_2 = arith.constant 0 : index
    %1 = vector.load %arg2[%c0_1, %c0_2] : memref<672x256xbf16, #tpu.memory_space<vmem>>, vector<672x256xbf16>
    %cst = arith.constant dense<0.000000e+00> : vector<64x256xf32>
    %2 = tpu.matmul %0, %1, %cst {dimension_numbers = #tpu.dot_dimension_numbers<[1], [0], [0], [1], [0, 0, 1, 1], [], []>} : vector<64x672xbf16>, vector<672x256xbf16>, vector<64x256xf32> -> vector<64x256xf32>
    %3 = arith.truncf %2 : vector<64x256xf32> to vector<64x256xbf16>
    %c0_3 = arith.constant 0 : index
    %c0_4 = arith.constant 0 : index
    %4 = vector.load %arg3[%c0_3, %c0_4] : memref<64x256xbf16, #tpu.memory_space<vmem>>, vector<64x256xbf16>
    tpu.vector_store %arg3[%c0_3, %c0_4], %3 {strides = array<i32>} : memref<64x256xbf16, #tpu.memory_space<vmem>>, vector<64x256xbf16>,
    %cst_5 = arith.constant dense<0.000000e+00> : vector<256xf32>
    %5 = vector.multi_reduction <add>, %2, %cst_5 [0] : vector<64x256xf32> to vector<256xf32>
    %6 = vector.shape_cast %5 : vector<256xf32> to vector<1x256xf32>
    %cst_6 = arith.constant 1.562500e-02 : f32
    %7 = vector.broadcast %cst_6 : f32 to vector<1x256xf32>
    %8 = arith.mulf %6, %7 : vector<1x256xf32>
    %9 = vector.broadcast %8 : vector<1x256xf32> to vector<64x256xf32>
    %10 = arith.subf %2, %9 : vector<64x256xf32>
    %11 = vector.shape_cast %6 : vector<1x256xf32> to vector<1x1x256xf32>
    %c0_7 = arith.constant 0 : index
    %c0_8 = arith.constant 0 : index
    %c0_9 = arith.constant 0 : index
    %12 = vector.load %arg4[%c0_7, %c0_8, %c0_9] : memref<1x2x256xf32, #tpu.memory_space<vmem>>, vector<1x1x256xf32>
    tpu.vector_store %arg4[%c0_7, %c0_8, %c0_9], %11 {strides = array<i32>} : memref<1x2x256xf32, #tpu.memory_space<vmem>>, vector<1x1x256xf32>,
    %13 = arith.mulf %10, %10 : vector<64x256xf32>
    %cst_10 = arith.constant dense<0.000000e+00> : vector<256xf32>
    %14 = vector.multi_reduction <add>, %13, %cst_10 [0] : vector<64x256xf32> to vector<256xf32>
    %15 = vector.shape_cast %14 : vector<256xf32> to vector<1x256xf32>
    %16 = vector.shape_cast %15 : vector<1x256xf32> to vector<1x1x256xf32>
    %c0_11 = arith.constant 0 : index
    %c1 = arith.constant 1 : index
    %c0_12 = arith.constant 0 : index
    %17 = vector.load %arg4[%c0_11, %c1, %c0_12] : memref<1x2x256xf32, #tpu.memory_space<vmem>>, vector<1x1x256xf32>
    tpu.vector_store %arg4[%c0_11, %c1, %c0_12], %16 {strides = array<i32>} : memref<1x2x256xf32, #tpu.memory_space<vmem>>, vector<1x1x256xf32>,
    return
  }
  func.func @transform_0(%arg0: i32) -> (i32, i32) {
    %c0_i32 = arith.constant 0 : i32
    %c0_i32_0 = arith.constant 0 : i32
    return %arg0, %c0_i32 : i32, i32
  }
  func.func @transform_1(%arg0: i32) -> (i32, i32) {
    %c0_i32 = arith.constant 0 : i32
    %c0_i32_0 = arith.constant 0 : i32
    %c0_i32_1 = arith.constant 0 : i32
    return %c0_i32, %c0_i32_0 : i32, i32
  }
  func.func @transform_2(%arg0: i32) -> (i32, i32) {
    %c0_i32 = arith.constant 0 : i32
    %c0_i32_0 = arith.constant 0 : i32
    return %arg0, %c0_i32 : i32, i32
  }
  func.func @transform_3(%arg0: i32) -> (i32, i32, i32) {
    %c0_i32 = arith.constant 0 : i32
    %c0_i32_0 = arith.constant 0 : i32
    %c0_i32_1 = arith.constant 0 : i32
    return %arg0, %c0_i32, %c0_i32_0 : i32, i32, i32
  }
}

module attributes {stable_mosaic.version = 11 : i64} {
  func.func @_tail_kernel(%arg0: i32, %arg1: i32, %arg2: memref<64x192xbf16, #tpu.memory_space<vmem>>, %arg3: memref<1x192xf32, #tpu.memory_space<vmem>>, %arg4: memref<1x192xf32, #tpu.memory_space<vmem>>, %arg5: memref<64x256xbf16, #tpu.memory_space<vmem>>, %arg6: memref<1x256xf32, #tpu.memory_space<vmem>>, %arg7: memref<1x256xf32, #tpu.memory_space<vmem>>, %arg8: memref<192x512xbf16, #tpu.memory_space<vmem>>, %arg9: memref<256x512xbf16, #tpu.memory_space<vmem>>, %arg10: memref<1x512xf32, #tpu.memory_space<vmem>>, %arg11: memref<64x512xbf16, #tpu.memory_space<vmem>>, %arg12: memref<64x512xf32, #tpu.memory_space<vmem>>) attributes {dimension_semantics = [#tpu.dimension_semantics<parallel>, #tpu.dimension_semantics<parallel>], iteration_bounds = array<i64: 2, 5>, scalar_prefetch = 0 : i64, scratch_operands = 0 : i64, tpu.core_type = #tpu.core_type<tc>, window_params = [{transform_indices = @transform_0, window_bounds = array<i64: 64, 192>}, {pipeline_mode = #tpu.pipeline_mode<synchronous>, transform_indices = @transform_1, window_bounds = array<i64: 1, 192>}, {pipeline_mode = #tpu.pipeline_mode<synchronous>, transform_indices = @transform_2, window_bounds = array<i64: 1, 192>}, {transform_indices = @transform_3, window_bounds = array<i64: 64, 256>}, {pipeline_mode = #tpu.pipeline_mode<synchronous>, transform_indices = @transform_4, window_bounds = array<i64: 1, 256>}, {pipeline_mode = #tpu.pipeline_mode<synchronous>, transform_indices = @transform_5, window_bounds = array<i64: 1, 256>}, {transform_indices = @transform_6, window_bounds = array<i64: 192, 512>}, {transform_indices = @transform_7, window_bounds = array<i64: 256, 512>}, {transform_indices = @transform_8, window_bounds = array<i64: 1, 512>}, {transform_indices = @transform_9, window_bounds = array<i64: 64, 512>}, {transform_indices = @transform_10, window_bounds = array<i64: 64, 512>}]} {
    %c0 = arith.constant 0 : index
    %c0_0 = arith.constant 0 : index
    %0 = vector.load %arg2[%c0, %c0_0] : memref<64x192xbf16, #tpu.memory_space<vmem>>, vector<64x192xbf16>
    %1 = arith.extf %0 : vector<64x192xbf16> to vector<64x192xf32>
    %c0_1 = arith.constant 0 : index
    %c0_2 = arith.constant 0 : index
    %2 = vector.load %arg3[%c0_1, %c0_2] : memref<1x192xf32, #tpu.memory_space<vmem>>, vector<1x192xf32>
    %3 = vector.broadcast %2 : vector<1x192xf32> to vector<64x192xf32>
    %4 = arith.mulf %1, %3 : vector<64x192xf32>
    %c0_3 = arith.constant 0 : index
    %c0_4 = arith.constant 0 : index
    %5 = vector.load %arg4[%c0_3, %c0_4] : memref<1x192xf32, #tpu.memory_space<vmem>>, vector<1x192xf32>
    %6 = vector.broadcast %5 : vector<1x192xf32> to vector<64x192xf32>
    %7 = arith.addf %4, %6 : vector<64x192xf32>
    %cst = arith.constant 0.000000e+00 : f32
    %8 = vector.broadcast %cst : f32 to vector<64x192xf32>
    %9 = arith.maximumf %7, %8 : vector<64x192xf32>
    %c0_5 = arith.constant 0 : index
    %c0_6 = arith.constant 0 : index
    %10 = vector.load %arg5[%c0_5, %c0_6] : memref<64x256xbf16, #tpu.memory_space<vmem>>, vector<64x256xbf16>
    %11 = arith.extf %10 : vector<64x256xbf16> to vector<64x256xf32>
    %c0_7 = arith.constant 0 : index
    %c0_8 = arith.constant 0 : index
    %12 = vector.load %arg6[%c0_7, %c0_8] : memref<1x256xf32, #tpu.memory_space<vmem>>, vector<1x256xf32>
    %13 = vector.broadcast %12 : vector<1x256xf32> to vector<64x256xf32>
    %14 = arith.mulf %11, %13 : vector<64x256xf32>
    %c0_9 = arith.constant 0 : index
    %c0_10 = arith.constant 0 : index
    %15 = vector.load %arg7[%c0_9, %c0_10] : memref<1x256xf32, #tpu.memory_space<vmem>>, vector<1x256xf32>
    %16 = vector.broadcast %15 : vector<1x256xf32> to vector<64x256xf32>
    %17 = arith.addf %14, %16 : vector<64x256xf32>
    %cst_11 = arith.constant 0.000000e+00 : f32
    %18 = vector.broadcast %cst_11 : f32 to vector<64x256xf32>
    %19 = arith.maximumf %17, %18 : vector<64x256xf32>
    %20 = arith.truncf %9 : vector<64x192xf32> to vector<64x192xbf16>
    %c0_12 = arith.constant 0 : index
    %c0_13 = arith.constant 0 : index
    %21 = vector.load %arg8[%c0_12, %c0_13] : memref<192x512xbf16, #tpu.memory_space<vmem>>, vector<192x512xbf16>
    %cst_14 = arith.constant dense<0.000000e+00> : vector<64x512xf32>
    %22 = tpu.matmul %20, %21, %cst_14 {dimension_numbers = #tpu.dot_dimension_numbers<[1], [0], [0], [1], [0, 0, 1, 1], [], []>} : vector<64x192xbf16>, vector<192x512xbf16>, vector<64x512xf32> -> vector<64x512xf32>
    %23 = arith.truncf %19 : vector<64x256xf32> to vector<64x256xbf16>
    %c0_15 = arith.constant 0 : index
    %c0_16 = arith.constant 0 : index
    %24 = vector.load %arg9[%c0_15, %c0_16] : memref<256x512xbf16, #tpu.memory_space<vmem>>, vector<256x512xbf16>
    %cst_17 = arith.constant dense<0.000000e+00> : vector<64x512xf32>
    %25 = tpu.matmul %23, %24, %cst_17 {dimension_numbers = #tpu.dot_dimension_numbers<[1], [0], [0], [1], [0, 0, 1, 1], [], []>} : vector<64x256xbf16>, vector<256x512xbf16>, vector<64x512xf32> -> vector<64x512xf32>
    %26 = arith.addf %22, %25 : vector<64x512xf32>
    %c0_18 = arith.constant 0 : index
    %c0_19 = arith.constant 0 : index
    %27 = vector.load %arg10[%c0_18, %c0_19] : memref<1x512xf32, #tpu.memory_space<vmem>>, vector<1x512xf32>
    %28 = vector.broadcast %27 : vector<1x512xf32> to vector<64x512xf32>
    %29 = arith.addf %26, %28 : vector<64x512xf32>
    %cst_20 = arith.constant 2.000000e-01 : f32
    %30 = vector.broadcast %cst_20 : f32 to vector<64x512xf32>
    %31 = arith.mulf %29, %30 : vector<64x512xf32>
    %c0_21 = arith.constant 0 : index
    %c0_22 = arith.constant 0 : index
    %32 = vector.load %arg11[%c0_21, %c0_22] : memref<64x512xbf16, #tpu.memory_space<vmem>>, vector<64x512xbf16>
    %33 = arith.extf %32 : vector<64x512xbf16> to vector<64x512xf32>
    %34 = arith.addf %31, %33 : vector<64x512xf32>
    %cst_23 = arith.constant 0.000000e+00 : f32
    %35 = vector.broadcast %cst_23 : f32 to vector<64x512xf32>
    %36 = arith.maximumf %34, %35 : vector<64x512xf32>
    %c0_24 = arith.constant 0 : index
    %c0_25 = arith.constant 0 : index
    %37 = vector.load %arg12[%c0_24, %c0_25] : memref<64x512xf32, #tpu.memory_space<vmem>>, vector<64x512xf32>
    tpu.vector_store %arg12[%c0_24, %c0_25], %36 {strides = array<i32>} : memref<64x512xf32, #tpu.memory_space<vmem>>, vector<64x512xf32>,
    return
  }
  func.func @transform_0(%arg0: i32, %arg1: i32) -> (i32, i32) {
    %c0_i32 = arith.constant 0 : i32
    %c0_i32_0 = arith.constant 0 : i32
    return %arg0, %c0_i32 : i32, i32
  }
  func.func @transform_1(%arg0: i32, %arg1: i32) -> (i32, i32) {
    %c0_i32 = arith.constant 0 : i32
    %c0_i32_0 = arith.constant 0 : i32
    %c0_i32_1 = arith.constant 0 : i32
    return %c0_i32, %c0_i32_0 : i32, i32
  }
  func.func @transform_2(%arg0: i32, %arg1: i32) -> (i32, i32) {
    %c0_i32 = arith.constant 0 : i32
    %c0_i32_0 = arith.constant 0 : i32
    %c0_i32_1 = arith.constant 0 : i32
    return %c0_i32, %c0_i32_0 : i32, i32
  }
  func.func @transform_3(%arg0: i32, %arg1: i32) -> (i32, i32) {
    %c0_i32 = arith.constant 0 : i32
    %c0_i32_0 = arith.constant 0 : i32
    return %arg0, %c0_i32 : i32, i32
  }
  func.func @transform_4(%arg0: i32, %arg1: i32) -> (i32, i32) {
    %c0_i32 = arith.constant 0 : i32
    %c0_i32_0 = arith.constant 0 : i32
    %c0_i32_1 = arith.constant 0 : i32
    return %c0_i32, %c0_i32_0 : i32, i32
  }
  func.func @transform_5(%arg0: i32, %arg1: i32) -> (i32, i32) {
    %c0_i32 = arith.constant 0 : i32
    %c0_i32_0 = arith.constant 0 : i32
    %c0_i32_1 = arith.constant 0 : i32
    return %c0_i32, %c0_i32_0 : i32, i32
  }
  func.func @transform_6(%arg0: i32, %arg1: i32) -> (i32, i32) {
    %c0_i32 = arith.constant 0 : i32
    %c0_i32_0 = arith.constant 0 : i32
    return %c0_i32, %arg1 : i32, i32
  }
  func.func @transform_7(%arg0: i32, %arg1: i32) -> (i32, i32) {
    %c0_i32 = arith.constant 0 : i32
    %c0_i32_0 = arith.constant 0 : i32
    return %c0_i32, %arg1 : i32, i32
  }
  func.func @transform_8(%arg0: i32, %arg1: i32) -> (i32, i32) {
    %c0_i32 = arith.constant 0 : i32
    %c0_i32_0 = arith.constant 0 : i32
    return %c0_i32, %arg1 : i32, i32
  }
  func.func @transform_9(%arg0: i32, %arg1: i32) -> (i32, i32) {
    %c0_i32 = arith.constant 0 : i32
    return %arg0, %arg1 : i32, i32
  }
  func.func @transform_10(%arg0: i32, %arg1: i32) -> (i32, i32) {
    %c0_i32 = arith.constant 0 : i32
    return %arg0, %arg1 : i32, i32
  }
}

</mosaic_0001>

<bundles_post_ra>
// kernel: block8_forward.5
= control target key start
LH: loop header
LB: loop body
LE: loop exit
PB: predicated region body
PF: predicated region fallthrough
CT: control target
= control target key end

     0   :  { %s1591_s12 = smov 0   ;;  %s2000_s0 = inlined_call_operand.vmem [shape: bf16[128,576], index: 0, kind: input, shape index: {}]   ;;  %s2001_s1 = inlined_call_operand.vmem [shape: bf16[576,224], index: 1, kind: input, shape index: {}]   ;;  %s2002_s2 = inlined_call_operand.vmem [shape: bf16[128,224], index: 2, kind: output, shape index: {0}]   ;;  %s2003_s3 = inlined_call_operand.vmem [shape: f32[2,2,224], index: 3, kind: output, shape index: {1}]  }
   0x1 LB: > { %s1597_s13 = sadd.s32 4294967295, %s1567_s12   ;;  %p1281_p0 = scmp.ge.s32.totalorder %s1567_s12, 1  ;;  %s1567_s12 = sphi %s1591_s12, %s14_s12  }
   0x2   : > { %p142_p1 = scmp.lt.s32.totalorder %s1567_s12, 3 }
   0x4   : > { %p143_p2 = pnand %p1281_p0, %p142_p1 }
   0x5   : > { %s1282_s24 = sshll.u32 (!%p143_p2), %s1597_s13, 3  ;;  %p187_p4 = scmp.lt.s32.totalorder (!%p143_p2), %s1597_s13, 1 }
   0x6   : > { %146 = sbr.rel (%p143_p2) target bundleno = 380 (0x17c), region = 28  ;;  %p174_p3 = scmp.lt.s32.totalorder (!%p143_p2), %s1282_s24, 15 }
   0xb   : > { %v1425_v0 = vld [vmem:[%s2001_s1 + $0x74] ss:$8 sps:$4 sm:$0xff]   ;;  %v1429_v2 = vld [vmem:[%s2001_s1 + $0x70] ss:$8 sps:$4 sm:$0xff]   ;;  %v1431_v4 = vld [vmem:[%s2001_s1 + $0x64] ss:$8 sps:$4 sm:$0xff]  }
   0xc   : > { %v1427_v1 = vld [vmem:[%s2001_s1 + $0x174] ss:$8 sps:$4 sm:$0xff]   ;;  %762 = vmatprep.subr.bf16.mxu0 %v1425_v0  ;;  %v1430_v3 = vld [vmem:[%s2001_s1 + $0x170] ss:$8 sps:$4 sm:$0xff]   ;;  %v1433_v5 = vld [vmem:[%s2001_s1 + $0x164] ss:$8 sps:$4 sm:$0xff]  }
   0xd   : > { %835 = vmatprep.subr.bf16.mxu1 %v1427_v1  ;;  %763 = vmatpush1.bf16.msra.mxu0 %v1429_v2  ;;  %v1435_v6 = vld [vmem:[%s2001_s1 + $0x60] ss:$8 sps:$4 sm:$0xff]   ;;  %v1437_v8 = vld [vmem:[%s2001_s1 + $0x54] ss:$8 sps:$4 sm:$0xff]   ;;  %v1441_v10 = vld [vmem:[%s2001_s1 + $0x50] ss:$8 sps:$4 sm:$0xff]  }
   0xe   : > { %836 = vmatpush1.bf16.msra.mxu1 %v1430_v3  ;;  %764 = vmatprep.subr.bf16.mxu0 %v1431_v4  ;;  %v1436_v7 = vld [vmem:[%s2001_s1 + $0x160] ss:$8 sps:$4 sm:$0xff]   ;;  %v1439_v9 = vld [vmem:[%s2001_s1 + $0x154] ss:$8 sps:$4 sm:$0xff]   ;;  %v1442_v11 = vld [vmem:[%s2001_s1 + $0x150] ss:$8 sps:$4 sm:$0xff]  }
   0xf   : > { %837 = vmatprep.subr.bf16.mxu1 %v1433_v5  ;;  %v1443_v12 = vld [vmem:[%s2001_s1 + $0x44] ss:$8 sps:$4 sm:$0xff]   ;;  %v1447_v14 = vld [vmem:[%s2001_s1 + $0x40] ss:$8 sps:$4 sm:$0xff]   ;;  %v1449_v16 = vld [vmem:[%s2001_s1 + $0x34] ss:$8 sps:$4 sm:$0xff]  }
  0x10   : > { %v1445_v13 = vld [vmem:[%s2001_s1 + $0x144] ss:$8 sps:$4 sm:$0xff]   ;;  %v1448_v15 = vld [vmem:[%s2001_s1 + $0x140] ss:$8 sps:$4 sm:$0xff]   ;;  %v1451_v17 = vld [vmem:[%s2001_s1 + $0x134] ss:$8 sps:$4 sm:$0xff]  }
  0x11   : > { %765 = vmatpush1.bf16.msra.mxu0 %v1435_v6  ;;  %v1453_v18 = vld [vmem:[%s2001_s1 + $0x30] ss:$8 sps:$4 sm:$0xff]   ;;  %v1455_v20 = vld [vmem:[%s2001_s1 + $0x24] ss:$8 sps:$4 sm:$0xff]   ;;  %v1459_v22 = vld [vmem:[%s2001_s1 + $0x20] ss:$8 sps:$4 sm:$0xff]  }
  0x12   : > { %838 = vmatpush1.bf16.msra.mxu1 %v1436_v7  ;;  %766 = vmatprep.subr.bf16.mxu0 %v1437_v8  ;;  %v1454_v19 = vld [vmem:[%s2001_s1 + $0x130] ss:$8 sps:$4 sm:$0xff]   ;;  %v1457_v21 = vld [vmem:[%s2001_s1 + $0x124] ss:$8 sps:$4 sm:$0xff]   ;;  %v1460_v23 = vld [vmem:[%s2001_s1 + $0x120] ss:$8 sps:$4 sm:$0xff]  }
  0x13   : > { %839 = vmatprep.subr.bf16.mxu1 %v1439_v9  ;;  %v1461_v24 = vld [vmem:[%s2001_s1 + $0x14] ss:$8 sps:$4 sm:$0xff]   ;;  %v1465_v26 = vld [vmem:[%s2001_s1 + $0x10] ss:$8 sps:$4 sm:$0xff]   ;;  %v1467_v28 = vld [vmem:[%s2001_s1 + $0x4] ss:$8 sps:$4 sm:$0xff]  }
  0x14   : > { %v1463_v25 = vld [vmem:[%s2001_s1 + $0x114] ss:$8 sps:$4 sm:$0xff]   ;;  %v1466_v27 = vld [vmem:[%s2001_s1 + $0x110] ss:$8 sps:$4 sm:$0xff]   ;;  %v1469_v29 = vld [vmem:[%s2001_s1 + $0x104] ss:$8 sps:$4 sm:$0xff]  }
  0x15   : > { %767 = vmatpush1.bf16.msra.mxu0 %v1441_v10  ;;  %v1471_v30 = vld [vmem:[%s2001_s1] ss:$8 sps:$4 sm:$0xff]   ;;  %v1473_v32 = vld [vmem:[%s2001_s1 + $0xf4] ss:$8 sps:$4 sm:$0xff]   ;;  %v1477_v34 = vld [vmem:[%s2001_s1 + $0xf0] ss:$8 sps:$4 sm:$0xff]  }
  0x16   : > { %840 = vmatpush1.bf16.msra.mxu1 %v1442_v11  ;;  %768 = vmatprep.subr.bf16.mxu0 %v1443_v12  ;;  %v1472_v31 = vld [vmem:[%s2001_s1 + $0x100] ss:$8 sps:$4 sm:$0xff]   ;;  %v1475_v33 = vld [vmem:[%s2001_s1 + $0x1f4] ss:$8 sps:$4 sm:$0xff]   ;;  %v1478_v35 = vld [vmem:[%s2001_s1 + $0x1f0] ss:$8 sps:$4 sm:$0xff]  }
  0x17   : > { %841 = vmatprep.subr.bf16.mxu1 %v1445_v13  ;;  %v1479_v36 = vld [vmem:[%s2001_s1 + $0xe4] ss:$8 sps:$4 sm:$0xff]   ;;  %s2009_s24 = smov (!%p174_p3, %s1282_s24), 15  ;;  %v1483_v38 = vld [vmem:[%s2001_s1 + $0xe0] ss:$8 sps:$4 sm:$0xff]   ;;  %vm749_vm0 = vcmask 523264  }
  0x18   : > { %v1481_v37 = vld [vmem:[%s2001_s1 + $0x1e4] ss:$8 sps:$4 sm:$0xff]   ;;  %v1484_v39 = vld [vmem:[%s2001_s1 + $0x1e0] ss:$8 sps:$4 sm:$0xff]   ;;  %v1485_v40 = vld [vmem:[%s2001_s1 + $0xd4] ss:$8 sps:$4 sm:$0xff]  }
  0x19   : > { %769 = vmatpush1.bf16.msra.mxu0 %v1447_v14  ;;  %s1414_s22 = smul.u32 20, %s2009_s24  ;;  %v1487_v41 = vld [vmem:[%s2001_s1 + $0x1d4] ss:$8 sps:$4 sm:$0xff]   ;;  %v1489_v42 = vld [vmem:[%s2001_s1 + $0xd0] ss:$8 sps:$4 sm:$0xff]   ;;  %vm1029_vm1 = vcmask 1043456  }
  0x1a   : > { %842 = vmatpush1.bf16.msra.mxu1 %v1448_v15  ;;  %770 = vmatprep.subr.bf16.mxu0 %v1449_v16  ;;  %v1490_v43 = vld [vmem:[%s2001_s1 + $0x1d0] ss:$8 sps:$4 sm:$0xff]   ;;  %v1491_v44 = vld [vmem:[%s2001_s1 + $0xc4] ss:$8 sps:$4 sm:$0xff]   ;;  %v1495_v46 = vld [vmem:[%s2001_s1 + $0xc0] ss:$8 sps:$4 sm:$0xff]  }
  0x1b   : > { %843 = vmatprep.subr.bf16.mxu1 %v1451_v17  ;;  %s1743_s7 = scalar_lea.vmem %s2000_s0, %s1414_s22  ;;  %v1493_v45 = vld [vmem:[%s2001_s1 + $0x1c4] ss:$8 sps:$4 sm:$0xff]   ;;  %v1496_v47 = vld [vmem:[%s2001_s1 + $0x1c0] ss:$8 sps:$4 sm:$0xff]   ;;  %v1497_v48 = vld [vmem:[%s2001_s1 + $0xb4] ss:$8 sps:$4 sm:$0xff]  }
  0x1c   : > { %v1523_v49 = vld [vmem:[%s1743_s7 + $0x4] ss:$20 sps:$4 sm:$0xff]   ;;  %v1499_v50 = vld [vmem:[%s2001_s1 + $0x1b4] ss:$8 sps:$4 sm:$0xff]   ;;  %v1526_v51 = vld [vmem:[%s1743_s7 + $0xc] ss:$20 sps:$4 sm:$0xff]  }
  0x1d   : > { %771 = vmatpush1.bf16.msra.mxu0 %v1453_v18  ;;  %794 = vmatprep.mubr.bf16.mxu0 %v1523_v49  ;;  %v1501_v52 = vld [vmem:[%s2001_s1 + $0xb0] ss:$8 sps:$4 sm:$0xff]   ;;  %v1503_v54 = vld [vmem:[%s2001_s1 + $0xa4] ss:$8 sps:$4 sm:$0xff]   ;;  %v1507_v56 = vld [vmem:[%s2001_s1 + $0xa0] ss:$8 sps:$4 sm:$0xff]  }
  0x1e   : > { %844 = vmatpush1.bf16.msra.mxu1 %v1454_v19  ;;  %772 = vmatprep.subr.bf16.mxu0 %v1455_v20  ;;  %v1502_v53 = vld [vmem:[%s2001_s1 + $0x1b0] ss:$8 sps:$4 sm:$0xff]   ;;  %v1505_v55 = vld [vmem:[%s2001_s1 + $0x1a4] ss:$8 sps:$4 sm:$0xff]   ;;  %v1508_v57 = vld [vmem:[%s2001_s1 + $0x1a0] ss:$8 sps:$4 sm:$0xff]  }
  0x1f   : > { %845 = vmatprep.subr.bf16.mxu1 %v1457_v21  ;;  %867 = vmatprep.mubr.bf16.mxu1 %v1526_v51  ;;  %v1509_v58 = vld [vmem:[%s2001_s1 + $0x94] ss:$8 sps:$4 sm:$0xff]   ;;  %v1513_v60 = vld [vmem:[%s2001_s1 + $0x90] ss:$8 sps:$4 sm:$0xff]   ;;  %v1515_v62 = vld [vmem:[%s2001_s1 + $0x84] ss:$8 sps:$4 sm:$0xff]  }
  0x20   : > { %v1511_v59 = vld [vmem:[%s2001_s1 + $0x194] ss:$8 sps:$4 sm:$0xff]   ;;  %v1514_v61 = vld [vmem:[%s2001_s1 + $0x190] ss:$8 sps:$4 sm:$0xff]   ;;  %v1517_v63 = vld [vmem:[%s2001_s1 + $0x184] ss:$8 sps:$4 sm:$0xff]  }
  0x21   : > { %773 = vmatpush1.bf16.msra.mxu0 %v1459_v22  ;;  %v1519_v0 = vld [vmem:[%s2001_s1 + $0x80] ss:$8 sps:$4 sm:$0xff]   ;;  %v1529_v2 = vld [vmem:[%s2001_s1 + $0x234] ss:$8 sps:$4 sm:$0xff]   ;;  %v1527_v5 = vld [vmem:[%s2001_s1 + $0x230] ss:$8 sps:$4 sm:$0xff]  }
  0x22   : > { %846 = vmatpush1.bf16.msra.mxu1 %v1460_v23  ;;  %774 = vmatprep.subr.bf16.mxu0 %v1461_v24  ;;  %v1520_v1 = vld [vmem:[%s2001_s1 + $0x180] ss:$8 sps:$4 sm:$0xff]   ;;  %v1538_v8 = vld [vmem:[%s2001_s1 + $0x224] ss:$8 sps:$4 sm:$0xff]   ;;  %v1547_v10 = vld [vmem:[%s2001_s1 + $0x214] ss:$8 sps:$4 sm:$0xff]  }
  0x23   : > { %847 = vmatprep.subr.bf16.mxu1 %v1463_v25  ;;  %v1521_v3 = vld [vmem:[%s1743_s7] ss:$20 sps:$4 sm:$0xff]   ;;  %v1524_v4 = vld [vmem:[%s1743_s7 + $0x8] ss:$20 sps:$4 sm:$0xff]   ;;  %v1535_v12 = vld [vmem:[%s1743_s7 + $0x30] ss:$20 sps:$4 sm:$0xff]  }
  0x24   : > { %v1530_v6 = vld [vmem:[%s1743_s7 + $0x2c] ss:$20 sps:$4 sm:$0xff]   ;;  %v1532_v7 = vld [vmem:[%s1743_s7 + $0x34] ss:$20 sps:$4 sm:$0xff]   ;;  %v1541_v14 = vld [vmem:[%s1743_s7 + $0x5c] ss:$20 sps:$4 sm:$0xff]  }
  0x25   : > { %775 = vmatpush1.bf16.msra.mxu0 %v1465_v26  ;;  %v1536_v9 = vld [vmem:[%s2001_s1 + $0x220] ss:$8 sps:$4 sm:$0xff]   ;;  %v1545_v15 = vld [vmem:[%s2001_s1 + $0x210] ss:$8 sps:$4 sm:$0xff]   ;;  %v1556_v16 = vld [vmem:[%s2001_s1 + $0x204] ss:$8 sps:$4 sm:$0xff]  }
  0x26   : > { %848 = vmatpush1.bf16.msra.mxu1 %v1466_v27  ;;  %776 = vmatprep.subr.bf16.mxu0 %v1467_v28  ;;  %v1534_v11 = vld [vmem:[%s1743_s7 + $0x28] ss:$20 sps:$4 sm:$0xff]   ;;  %v1543_v18 = vld [vmem:[%s1743_s7 + $0x50] ss:$20 sps:$4 sm:$0xff]   ;;  %v1544_v19 = vld [vmem:[%s1743_s7 + $0x58] ss:$20 sps:$4 sm:$0xff]  }
  0x27   : > { %849 = vmatprep.subr.bf16.mxu1 %v1469_v29  ;;  %v1539_v13 = vld [vmem:[%s1743_s7 + $0x54] ss:$20 sps:$4 sm:$0xff]   ;;  %v1548_v20 = vld [vmem:[%s1743_s7 + $0x7c] ss:$20 sps:$4 sm:$0xff]   ;;  %v1550_v21 = vld [vmem:[%s1743_s7 + $0x84] ss:$20 sps:$4 sm:$0xff]  }
  0x28   : > { %v1554_v17 = vld [vmem:[%s2001_s1 + $0x200] ss:$8 sps:$4 sm:$0xff]   ;;  %v1552_v22 = vld [vmem:[%s1743_s7 + $0x78] ss:$20 sps:$4 sm:$0xff]   ;;  %v1569_v24 = vmov 0   ;;  %vm1030_vm2 = vcmask 785412  }
  0x29   : > { %777 = vmatpush1.bf16.msra.mxu0 %v1471_v30  ;;  %v1553_v23 = vld [vmem:[%s1743_s7 + $0x80] ss:$20 sps:$4 sm:$0xff]   ;;  %v1557_v25 = vld [vmem:[%s1743_s7 + $0x10] ss:$20 sps:$4 sm:$0xff]   ;;  %v1559_v27 = vld [vmem:[%s1743_s7 + $0x38] ss:$20 sps:$4 sm:$0xff]  }
  0x2a   : > { %850 = vmatpush1.bf16.msra.mxu1 %v1472_v31  ;;  %778 = vmatprep.subr.bf16.mxu0 %v1473_v32  ;;  %v1558_v26 = vld [vmem:[%s1743_s7 + $0x60] ss:$20 sps:$4 sm:$0xff]   ;;  %v1560_v28 = vld [vmem:[%s1743_s7 + $0x88] ss:$20 sps:$4 sm:$0xff]   ;;  %s1396_s7 = sshll.u32 %s2009_s24, 3  ;;  %vm1866_vm3 = vmor %vm1030_vm2, %vm1029_vm1  ;;  %vm1053_vm4 = vcmask 785408  }
  0x2b   : > { %851 = vmatprep.subr.bf16.mxu1 %v1475_v33  ;;  %s1862_s20 = scalar_lea.vmem %s2002_s2, %s1396_s7  ;;  %s2011_s13 = smov (!%p187_p4, %s1597_s13), 1 }
  0x2c   : > { %s1397_s24 = sshll.u32 %s2011_s13, 2 }
  0x2d   : > { %779 = vmatpush2.bf16.msra.mxu0 %v1477_v34  ;;  %s1969_s23 = scalar_lea.vmem %s2003_s3, %s1397_s24 }
  0x2e   : > { %852 = vmatpush2.bf16.msra.mxu1 %v1478_v35  ;;  %780 = vmatprep.subr.bf16.mxu0 %v1479_v36 }
  0x2f   : > { %853 = vmatprep.subr.bf16.mxu1 %v1481_v37 }
  0x31   : > { %781 = vmatpush2.bf16.msra.mxu0 %v1483_v38 }
  0x32   : > { %854 = vmatpush2.bf16.msra.mxu1 %v1484_v39  ;;  %782 = vmatprep.subr.bf16.mxu0 %v1485_v40 }
  0x33   : > { %855 = vmatprep.subr.bf16.mxu1 %v1487_v41 }
  0x35   : > { %783 = vmatpush2.bf16.msra.mxu0 %v1489_v42 }
  0x36   : > { %856 = vmatpush2.bf16.msra.mxu1 %v1490_v43  ;;  %784 = vmatprep.subr.bf16.mxu0 %v1491_v44 }
  0x37   : > { %857 = vmatprep.subr.bf16.mxu1 %v1493_v45 }
  0x39   : > { %785 = vmatpush2.bf16.msra.mxu0 %v1495_v46 }
  0x3a   : > { %858 = vmatpush2.bf16.msra.mxu1 %v1496_v47  ;;  %786 = vmatprep.subr.bf16.mxu0 %v1497_v48 }
  0x3b   : > { %859 = vmatprep.subr.bf16.mxu1 %v1499_v50 }
  0x3d   : > { %787 = vmatpush2.bf16.msra.mxu0 %v1501_v52 }
  0x3e   : > { %860 = vmatpush2.bf16.msra.mxu1 %v1502_v53  ;;  %788 = vmatprep.subr.bf16.mxu0 %v1503_v54 }
  0x3f   : > { %861 = vmatprep.subr.bf16.mxu1 %v1505_v55 }
  0x41   : > { %789 = vmatpush2.bf16.msra.mxu0 %v1507_v56 }
  0x42   : > { %862 = vmatpush2.bf16.msra.mxu1 %v1508_v57  ;;  %790 = vmatprep.subr.bf16.mxu0 %v1509_v58 }
  0x43   : > { %863 = vmatprep.subr.bf16.mxu1 %v1511_v59 }
  0x45   : > { %791 = vmatpush2.bf16.msra.mxu0 %v1513_v60 }
  0x46   : > { %864 = vmatpush2.bf16.msra.mxu1 %v1514_v61  ;;  %792 = vmatprep.subr.bf16.mxu0 %v1515_v62 }
  0x47   : > { %865 = vmatprep.subr.bf16.mxu1 %v1517_v63 }
  0x49   : > { %793 = vmatpush2.bf16.msra.mxu0 %v1519_v0 }
  0x4a   : > { %866 = vmatpush2.bf16.msra.mxu1 %v1520_v1  ;;  %916 = vmatprep.subr.bf16.mxu0 %v1529_v2 }
  0x4b   : > { %1406 = vmatprep.subr.bf16.mxu1 %v1529_v2 }
  0x4c   : > { %795 = vmatmul.mubr.bf16.vlgmr.msra.gmra.mxu0 %v1521_v3 }
  0x4d   : > { %868 = vmatmul.mubr.bf16.vlgmr.msra.gmra.mxu1 %v1524_v4  ;;  %917 = vmatpush1.bf16.msra.mxu0 %v1527_v5 }
  0x4e   : > { %804 = vmatprep.mubr.bf16.mxu0 %v1530_v6  ;;  %877 = vmatprep.mubr.bf16.mxu1 %v1532_v7 }
  0x4f   : > { %918 = vmatprep.subr.bf16.mxu0 %v1538_v8  ;;  %1410 = vmatpush1.bf16.msra.mxu1 %v1527_v5 }
  0x50   : > { %1407 = vmatprep.subr.bf16.mxu1 %v1538_v8 }
  0x51   : > { %919 = vmatpush1.bf16.msra.mxu0 %v1536_v9 }
  0x52   : > { %920 = vmatprep.subr.bf16.mxu0 %v1547_v10 }
  0x53   : > { %1411 = vmatpush1.bf16.msra.mxu1 %v1536_v9 }
  0x54   : > { %805 = vmatmul.mubr.bf16.gmra.mxu0 %v1534_v11  ;;  %1408 = vmatprep.subr.bf16.mxu1 %v1547_v10 }
  0x55   : > { %878 = vmatmul.mubr.bf16.gmra.mxu1 %v1535_v12  ;;  %814 = vmatprep.mubr.bf16.mxu0 %v1539_v13 }
  0x56   : > { %887 = vmatprep.mubr.bf16.mxu1 %v1541_v14  ;;  %921 = vmatpush1.bf16.msra.mxu0 %v1545_v15 }
  0x57   : > { %922 = vmatprep.subr.bf16.mxu0 %v1556_v16  ;;  %1412 = vmatpush1.bf16.msra.mxu1 %v1545_v15 }
  0x58   : > { %1409 = vmatprep.subr.bf16.mxu1 %v1556_v16 }
  0x5a   : > { %923 = vmatpush1.bf16.msra.mxu0 %v1554_v17 }
  0x5b   : > { %1413 = vmatpush1.bf16.msra.mxu1 %v1554_v17 }
  0x5c   : > { %815 = vmatmul.mubr.bf16.gmra.mxu0 %v1543_v18 }
  0x5d   : > { %888 = vmatmul.mubr.bf16.gmra.mxu1 %v1544_v19  ;;  %824 = vmatprep.mubr.bf16.mxu0 %v1548_v20 }
  0x5e   : > { %897 = vmatprep.mubr.bf16.mxu1 %v1550_v21 }
  0x64   : > { %825 = vmatmul.mubr.bf16.gmra.mxu0 %v1552_v22 }
  0x65   : > { %898 = vmatmul.mubr.bf16.gmra.mxu1 %v1553_v23  ;;  %940 = vmatprep.mubr.bf16.mxu0 %v1569_v24 }
  0x66   : > { %960 = vmatprep.mubr.bf16.mxu1 %v1569_v24 }
  0x6c   : > { %1381 = vmatmul.mubr.msk.bf16.vlgmr.msra.gmra.mxu0 %vm749_vm0, %v1557_v25 }
  0x6d   : > { %1383 = vmatmul.mubr.msk.bf16.vlgmr.msra.gmra.mxu1 %vm749_vm0, %v1558_v26  ;;  %950 = vmatprep.mubr.bf16.mxu0 %v1569_v24 }
  0x6e   : > { %970 = vmatprep.mubr.bf16.mxu1 %v1569_v24 }
  0x74   : > { %1382 = vmatmul.mubr.msk.bf16.gmra.mxu0 %vm749_vm0, %v1559_v27 }
  0x75   : > { %1384 = vmatmul.mubr.msk.bf16.gmra.mxu1 %vm749_vm0, %v1560_v28 }
 0x10c   : > { %v796_v29 = vpop.f32.mrf.mxu0 }
 0x10d   : > { %v869_v30 = vpop.f32.mrf.mxu1 }
 0x10e   : > { %v798_v31 = vpop.f32.mrf.mxu0  ;;  %v870_v63 = vadd.f32 %v869_v30, %v796_v29 }
 0x10f   : > { %v871_v32 = vpop.f32.mrf.mxu1 }
 0x110   : > { %v800_v33 = vpop.f32.mrf.mxu0  ;;  %v872_v0 = vadd.f32 %v871_v32, %v798_v31 }
 0x111   : > { %v873_v34 = vpop.f32.mrf.mxu1 }
 0x112   : > { %v802_v35 = vpop.f32.mrf.mxu0  ;;  %v874_v9 = vadd.f32 %v873_v34, %v800_v33 }
 0x113   : > { %v875_v36 = vpop.f32.mrf.mxu1 }
 0x114   : > { %v806_v37 = vpop.f32.mrf.mxu0  ;;  %v876_v10 = vadd.f32 %v875_v36, %v802_v35 }
 0x115   : > { %v879_v38 = vpop.f32.mrf.mxu1 }
 0x116   : > { %v808_v39 = vpop.f32.mrf.mxu0  ;;  %v880_v24 = vadd.f32 %v879_v38, %v806_v37 }
 0x117   : > { %v881_v40 = vpop.f32.mrf.mxu1 }
 0x118   : > { %v810_v41 = vpop.f32.mrf.mxu0  ;;  %v882_v25 = vadd.f32 %v881_v40, %v808_v39 }
 0x119   : > { %v883_v42 = vpop.f32.mrf.mxu1 }
 0x11a   : > { %v1846_v43 = vpop.f32.mrf.mxu0  ;;  %v884_v32 = vadd.f32 %v883_v42, %v810_v41 }
 0x11b   : > { %v1848_v44 = vpop.f32.mrf.mxu1 }
 0x11c   : > { %v816_v45 = vpop.f32.mrf.mxu0  ;;  %v886_v40 = vadd.f32 %v1848_v44, %v1846_v43 }
 0x11d   : > { %v889_v46 = vpop.f32.mrf.mxu1 }
 0x11e   : > { %v818_v47 = vpop.f32.mrf.mxu0  ;;  %v890_v1 = vadd.f32 %v889_v46, %v816_v45 }
 0x11f   : > { %v891_v48 = vpop.f32.mrf.mxu1 }
 0x120   : > { %v820_v49 = vpop.f32.mrf.mxu0  ;;  %v892_v2 = vadd.f32 %v891_v48, %v818_v47 }
 0x121   : > { %v893_v50 = vpop.f32.mrf.mxu1 }
 0x122   : > { %v822_v51 = vpop.f32.mrf.mxu0  ;;  %v894_v14 = vadd.f32 %v893_v50, %v820_v49 }
 0x123   : > { %v895_v52 = vpop.f32.mrf.mxu1 }
 0x124   : > { %v826_v53 = vpop.f32.mrf.mxu0  ;;  %v896_v15 = vadd.f32 %v895_v52, %v822_v51 }
 0x125   : > { %v899_v54 = vpop.f32.mrf.mxu1 }
 0x126   : > { %v828_v55 = vpop.f32.mrf.mxu0  ;;  %v900_v28 = vadd.f32 %v899_v54, %v826_v53 }
 0x127   : > { %v901_v56 = vpop.f32.mrf.mxu1 }
 0x128   : > { %v830_v57 = vpop.f32.mrf.mxu0  ;;  %v902_v29 = vadd.f32 %v901_v56, %v828_v55 }
 0x129   : > { %v903_v58 = vpop.f32.mrf.mxu1 }
 0x12a   : > { %v832_v59 = vpop.f32.mrf.mxu0  ;;  %v904_v41 = vadd.f32 %v903_v58, %v830_v57 }
 0x12b   : > { %v905_v60 = vpop.f32.mrf.mxu1 }
 0x12c   : > { %v942_v61 = vpop.f32.mrf.mxu0  ;;  %v906_v42 = vadd.f32 %v905_v60, %v832_v59 }
 0x12d   : > { %v962_v62 = vpop.f32.mrf.mxu1  ;;  %v1851_v5 = vadd.f32 %v942_v61, %v870_v63 }
 0x12e   : > { %v944_v3 = vpop.f32.mrf.mxu0  ;;  %v1853_v6 = vadd.f32 %v962_v62, %v890_v1 }
 0x12f   : > { %v964_v4 = vpop.f32.mrf.mxu1  ;;  %v1855_v7 = vadd.f32 %v944_v3, %v872_v0 }
 0x130   : > { %v1857_v8 = vadd.f32 %v964_v4, %v892_v2  ;;  %v946_v12 = vpop.f32.mrf.mxu0 }
 0x131   : > { %v966_v13 = vpop.f32.mrf.mxu1  ;;  %v1398_v16 = vpack.c.bf16 %v1855_v7, %v1851_v5  ;;  %v1880_v20 = vadd.f32 %v946_v12, %v874_v9  ;;  %v1054_v48 = vsel %vm1053_vm4, %v1855_v7, 0.0 }
 0x132   : > { %v1402_v17 = vpack.c.bf16 %v1857_v8, %v1853_v6  ;;  %v948_v18 = vpop.f32.mrf.mxu0  ;;  %v1882_v21 = vadd.f32 %v966_v13, %v894_v14  ;;  %v1061_v1 = vsel %vm1053_vm4, %v1857_v8, 0.0 }
 0x133   : > { %v968_v19 = vpop.f32.mrf.mxu1  ;;  %1032 = vst.msk [vmem:[%s1862_s20] sm:$0xff] %vm1866_vm3, %v1398_v16  ;;  %v1884_v22 = vadd.f32 %v948_v18, %v876_v10  ;;  %v1040_v45 = vadd.f32 %v1880_v20, %v1851_v5 }
 0x134   : > { %1036 = vst.msk [vmem:[%s1862_s20 + $0x20] sm:$0xff] %vm1866_vm3, %v1402_v17  ;;  %v1886_v23 = vadd.f32 %v968_v19, %v896_v15  ;;  %v952_v26 = vpop.f32.mrf.mxu0 }
 0x135   : > { %v972_v27 = vpop.f32.mrf.mxu1  ;;  %v1399_v30 = vpack.c.bf16 %v1884_v22, %v1880_v20  ;;  %v1892_v33 = vadd.f32 %v952_v26, %v880_v24  ;;  %v1055_v36 = vsel %vm1053_vm4, %v1884_v22, 0.0 }
 0x136   : > { %v1403_v31 = vpack.c.bf16 %v1886_v23, %v1882_v21  ;;  %v954_v34 = vpop.f32.mrf.mxu0  ;;  %v1902_v37 = vadd.f32 %v972_v27, %v900_v28  ;;  %v1056_v44 = vadd.f32 %v1055_v36, %v1054_v48  ;;  %v1063_v4 = vsel %vm1053_vm4, %v1886_v23, 0.0 }
 0x137   : > { %v974_v35 = vpop.f32.mrf.mxu1  ;;  %1033 = vst.msk [vmem:[%s1862_s20 + $0x8] sm:$0xff] %vm1866_vm3, %v1399_v30  ;;  %v1904_v38 = vadd.f32 %v954_v34, %v882_v25  ;;  %v1041_v51 = vadd.f32 %v1040_v45, %v1892_v33 }
 0x138   : > { %1037 = vst.msk [vmem:[%s1862_s20 + $0x28] sm:$0xff] %vm1866_vm3, %v1403_v31  ;;  %v1906_v39 = vadd.f32 %v974_v35, %v902_v29  ;;  %v956_v46 = vpop.f32.mrf.mxu0  ;;  %v1570_v29 = vmov 1966171168   ;;  %v1099_v31 = vlaneseq }
 0x139   : > { %v976_v47 = vpop.f32.mrf.mxu1  ;;  %v1400_v49 = vpack.c.bf16 %v1904_v38, %v1892_v33  ;;  %v1057_v50 = vsel %vm1053_vm4, %v1904_v38, 0.0  ;;  %v957_v52 = vadd.f32 %v956_v46, %v884_v32  ;;  %v1097_v30 = vunpack.c.l.s4 %v1570_v29 }
 0x13a   : > { %v1404_v43 = vpack.c.bf16 %v1906_v39, %v1902_v37  ;;  %v958_v53 = vpop.f32.mrf.mxu0  ;;  %v1927_v55 = vadd.f32 %v976_v47, %v904_v41  ;;  %v1058_v58 = vadd.f32 %v1057_v50, %v1056_v44  ;;  %v1065_v12 = vsel %vm1053_vm4, %v1906_v39, 0.0 }
 0x13b   : > { %v978_v54 = vpop.f32.mrf.mxu1  ;;  %1034 = vst.msk [vmem:[%s1862_s20 + $0x10] sm:$0xff] %vm1866_vm3, %v1400_v49  ;;  %v959_v56 = vadd.f32 %v958_v53, %v886_v40  ;;  %v1042_v59 = vadd.f32 %v1041_v51, %v957_v52  ;;  %v1098_v36 = vunpack.c.0.s8 %v1097_v30  ;;  %v1100_v40 = vshrl.u32 %v1099_v31, 7 }
 0x13c   : > { %1038 = vst.msk [vmem:[%s1862_s20 + $0x30] sm:$0xff] %vm1866_vm3, %v1404_v43  ;;  %v1929_v57 = vadd.f32 %v978_v54, %v906_v42  ;;  %vm1972_vm5 = vcmp.lt.s32.totalorder %v1099_v31, 224 }
 0x13d   : > { %v1401_v60 = vpack.c.bf16 %v959_v56, %v957_v52  ;;  %v1059_v61 = vsel %vm1053_vm4, %v959_v56, 0.0  ;;  %v1043_v63 = vadd.f32 %v1042_v59, %v1853_v6  ;;  %v1958_v43 = vsub.s32 %v1098_v36, %v1100_v40 }
 0x13e   : > { %v1405_v62 = vpack.c.bf16 %v1929_v57, %v1927_v55  ;;  %v1060_v0 = vadd.f32 %v1059_v61, %v1058_v58  ;;  %v1067_v15 = vsel %vm1053_vm4, %v1929_v57, 0.0 }
 0x13f   : > { %1035 = vst.msk [vmem:[%s1862_s20 + $0x18] sm:$0xff] %vm1866_vm3, %v1401_v60  ;;  %v1044_v2 = vadd.f32 %v1043_v63, %v1882_v21 }
 0x140   : > { %1039 = vst.msk [vmem:[%s1862_s20 + $0x38] sm:$0xff] %vm1866_vm3, %v1405_v62  ;;  %v1062_v3 = vadd.f32 %v1061_v1, %v1060_v0 }
 0x141   : > { %v1045_v9 = vadd.f32 %v1044_v2, %v1902_v37 }
 0x142   : > { %v1064_v10 = vadd.f32 %v1063_v4, %v1062_v3 }
 0x143   : > { %v1046_v13 = vadd.f32 %v1045_v9, %v1927_v55 }
 0x144   : > { %v1066_v14 = vadd.f32 %v1065_v12, %v1064_v10 }
 0x145   : > { %v1047_v11 = vrot.slane %v1046_v13, 4 }
 0x146   : > { %v1068_v16 = vadd.f32 %v1067_v15, %v1066_v14 }
 0x147   : > { %v1048_v17 = vadd.f32 %v1047_v11, %v1046_v13 }
 0x148   : > { %v1069_v18 = vrot.slane %v1068_v16, 4 }
 0x149   : > { %v1049_v19 = vrot.slane %v1048_v17, 2 }
 0x14a   : > { %v1070_v24 = vadd.f32 %v1069_v18, %v1068_v16 }
 0x14b   : > { %v1050_v25 = vadd.f32 %v1049_v19, %v1048_v17 }
 0x14c   : > { %v1071_v26 = vrot.slane %v1070_v24, 2 }
 0x14d   : > { %v1051_v27 = vrot.slane %v1050_v25, 1 }
 0x14e   : > { %v1072_v28 = vadd.f32 %v1071_v26, %v1070_v24 }
 0x14f   : > { %v1052_v32 = vadd.f32 %v1051_v27, %v1050_v25 }
 0x150   : > { %v1073_v34 = vrot.slane %v1072_v28, 1 }
 0x151   : > { %v1075_v35 = vmul.f32 0.015625, %v1052_v32 }
 0x152   : > { %v1074_v46 = vadd.f32 %v1073_v34, %v1072_v28 }
 0x153   : > { %v1077_v41 = vsub.f32 %v1851_v5, %v1075_v35  ;;  %v1079_v42 = vsub.f32 %v1880_v20, %v1075_v35  ;;  %v1081_v45 = vsub.f32 %v1892_v33, %v1075_v35  ;;  %v1083_v47 = vsub.f32 %v957_v52, %v1075_v35 }
 0x154   : > { %v1085_v50 = vsub.f32 %v1853_v6, %v1075_v35  ;;  %v1076_v53 = vmul.f32 0.015625, %v1074_v46  ;;  %v1095_v54 = vcombine.low %v1052_v32, %v1074_v46  ;;  %v1087_v58 = vsub.f32 %v1882_v21, %v1075_v35 }
 0x155   : > { %v1116_v48 = vmul.f32 %v1077_v41, %v1077_v41  ;;  %v1118_v49 = vmul.f32 %v1079_v42, %v1079_v42  ;;  %v1120_v44 = vmul.f32 %v1081_v45, %v1081_v45  ;;  %v1122_v5 = vmul.f32 %v1083_v47, %v1083_v47 }
 0x156   : > { %v1078_v20 = vsub.f32 %v1855_v7, %v1076_v53  ;;  %v1080_v33 = vsub.f32 %v1884_v22, %v1076_v53  ;;  %v1082_v52 = vsub.f32 %v1904_v38, %v1076_v53  ;;  %v1089_v60 = vsub.f32 %v1902_v37, %v1075_v35 }
 0x157   : > { %v1132_v51 = vadd.f32 %v1118_v49, %v1116_v48  ;;  %v1084_v6 = vsub.f32 %v959_v56, %v1076_v53  ;;  %v1124_v61 = vmul.f32 %v1085_v50, %v1085_v50  ;;  %v1102_v63 = vrot.slane %v1095_v54, %v1958_v43 }
 0x158   : > { %v1117_v0 = vmul.f32 %v1078_v20, %v1078_v20  ;;  %v1086_v7 = vsub.f32 %v1857_v8, %v1076_v53  ;;  %v1119_v22 = vmul.f32 %v1080_v33, %v1080_v33  ;;  %v1121_v37 = vmul.f32 %v1082_v52, %v1082_v52 }
 0x159   : > { %v1133_v59 = vadd.f32 %v1132_v51, %v1120_v44  ;;  %v1091_v38 = vsub.f32 %v1927_v55, %v1075_v35  ;;  %v1126_v56 = vmul.f32 %v1087_v58, %v1087_v58  ;;  %v1109_v2 = vrot.slane %v1102_v63, %v1958_v43 }
 0x15a   : > { %v1088_v3 = vsub.f32 %v1886_v23, %v1076_v53  ;;  %v1123_v4 = vmul.f32 %v1084_v6, %v1084_v6  ;;  %v1145_v9 = vsel %vm1053_vm4, %v1117_v0, 0.0  ;;  %v1146_v10 = vsel %vm1053_vm4, %v1119_v22, 0.0 }
 0x15b   : > { %v1134_v62 = vadd.f32 %v1133_v59, %v1122_v5  ;;  %v1128_v8 = vmul.f32 %v1089_v60, %v1089_v60  ;;  %1115 = vst.msk [vmem:[%s1969_s23] ss:$2 sm:$0x3] %vm1972_vm5, %v1109_v2  ;;  %v1147_v13 = vadd.f32 %v1146_v10, %v1145_v9  ;;  %v1090_v14 = vsub.f32 %v1906_v39, %v1076_v53 }
 0x15c   : > { %v1125_v55 = vmul.f32 %v1086_v7, %v1086_v7  ;;  %v1148_v15 = vsel %vm1053_vm4, %v1121_v37, 0.0  ;;  %v1130_v11 = vmul.f32 %v1091_v38, %v1091_v38  ;;  %v1092_v23 = vsub.f32 %v1929_v57, %v1076_v53 }
 0x15d   : > { %v1135_v1 = vadd.f32 %v1134_v62, %v1124_v61  ;;  %v1149_v17 = vadd.f32 %v1148_v15, %v1147_v13  ;;  %v1127_v18 = vmul.f32 %v1088_v3, %v1088_v3  ;;  %v1150_v19 = vsel %vm1053_vm4, %v1123_v4, 0.0 }
 0x15e   : > { %v1129_v26 = vmul.f32 %v1090_v14, %v1090_v14  ;;  %v1152_v27 = vsel %vm1053_vm4, %v1125_v55, 0.0  ;;  %v1131_v30 = vmul.f32 %v1092_v23, %v1092_v23 }
 0x15f   : > { %v1136_v12 = vadd.f32 %v1135_v1, %v1126_v56  ;;  %v1151_v25 = vadd.f32 %v1150_v19, %v1149_v17  ;;  %v1154_v39 = vsel %vm1053_vm4, %v1127_v18, 0.0 }
 0x160   : > { %v1156_v34 = vsel %vm1053_vm4, %v1129_v26, 0.0  ;;  %v1158_v57 = vsel %vm1053_vm4, %v1131_v30, 0.0 }
 0x161   : > { %v1137_v16 = vadd.f32 %v1136_v12, %v1128_v8  ;;  %v1153_v29 = vadd.f32 %v1152_v27, %v1151_v25 }
 0x163   : > { %v1138_v24 = vadd.f32 %v1137_v16, %v1130_v11  ;;  %v1155_v32 = vadd.f32 %v1154_v39, %v1153_v29 }
 0x165   : > { %v1139_v28 = vrot.slane %v1138_v24, 4  ;;  %v1157_v35 = vadd.f32 %v1156_v34, %v1155_v32 }
 0x167   : > { %v1140_v31 = vadd.f32 %v1139_v28, %v1138_v24  ;;  %v1159_v40 = vadd.f32 %v1158_v57, %v1157_v35 }
 0x169   : > { %v1141_v36 = vrot.slane %v1140_v31, 2  ;;  %v1160_v41 = vrot.slane %v1159_v40, 4 }
 0x16b   : > { %v1142_v42 = vadd.f32 %v1141_v36, %v1140_v31  ;;  %v1161_v45 = vadd.f32 %v1160_v41, %v1159_v40 }
 0x16d   : > { %v1162_v46 = vrot.slane %v1161_v45, 2  ;;  %v1143_v47 = vrot.slane %v1142_v42, 1 }
 0x16f   : > { %v1163_v48 = vadd.f32 %v1162_v46, %v1161_v45  ;;  %v1144_v50 = vadd.f32 %v1143_v47, %v1142_v42 }
 0x171   : > { %v1164_v49 = vrot.slane %v1163_v48, 1 }
 0x173   : > { %v1165_v44 = vadd.f32 %v1164_v49, %v1163_v48 }
 0x175   : > { %v1168_v51 = vcombine.low %v1144_v50, %v1165_v44 }
 0x177   : > { %v1175_v53 = vrot.slane %v1168_v51, %v1958_v43 }
 0x179   : > { %v1182_v54 = vrot.slane %v1175_v53, %v1958_v43 }
 0x17b   : > { %1393 = vst.msk [vmem:[%s1969_s23 + $0x1] ss:$2 sm:$0x3] %vm1972_vm5, %v1182_v54 }
 0x17c PF: > { %s14_s12 = sadd.s32 1, %s1567_s12  }
 0x17d   : > { %p11_p5 = scmp.ge.s32.totalorder %s14_s12, 4  }
 0x17f   :  { %13 = sbr.rel (!%p11_p5) target bundleno = 1 (0x1), region = 71 }

// kernel: block8_forward.4
= control target key start
LH: loop header
LB: loop body
LE: loop exit
PB: predicated region body
PF: predicated region fallthrough
CT: control target
= control target key end

     0   :  { %s7379_s21 = smov 0   ;;  %s9984_s0 = inlined_call_operand.vmem [shape: bf16[128,2080], index: 0, kind: input, shape index: {}]   ;;  %s9985_s1 = inlined_call_operand.vmem [shape: bf16[2080,192], index: 1, kind: input, shape index: {}]   ;;  %s9986_s2 = inlined_call_operand.vmem [shape: bf16[2080,192], index: 2, kind: input, shape index: {}]   ;;  %s9987_s3 = inlined_call_operand.vmem [shape: bf16[128,192], index: 3, kind: output, shape index: {0}]   ;;  %s9988_s4 = inlined_call_operand.vmem [shape: bf16[128,192], index: 4, kind: output, shape index: {1}]   ;;  %s9989_s5 = inlined_call_operand.vmem [shape: f32[2,2,192], index: 5, kind: output, shape index: {2}]   ;;  %s9990_s6 = inlined_call_operand.vmem [shape: f32[2,2,192], index: 6, kind: output, shape index: {3}]  }
   0x1 LB: > { %s7385_s22 = sadd.s32 4294967295, %s7340_s21   ;;  %p5726_p0 = scmp.ge.s32.totalorder %s7340_s21, 1  ;;  %s7340_s21 = sphi %s7379_s21, %s17_s21  }
   0x2   : > { %p221_p1 = scmp.lt.s32.totalorder %s7340_s21, 3 }
   0x4   : > { %p222_p2 = pnand %p5726_p0, %p221_p1 }
   0x6   : > { %225 = sbr.rel (%p222_p2) target bundleno = 840 (0x348), region = 32 }
   0xb   : > { %v6386_v0 = vld [vmem:[%s9985_s1 + $0x74] ss:$8 sps:$4 sm:$0xff]   ;;  %v6390_v2 = vld [vmem:[%s9985_s1 + $0x70] ss:$8 sps:$4 sm:$0xff]   ;;  %v6392_v4 = vld [vmem:[%s9985_s1 + $0x64] ss:$8 sps:$4 sm:$0xff]  }
   0xc   : > { %v6388_v1 = vld [vmem:[%s9985_s1 + $0x174] ss:$8 sps:$4 sm:$0xff]   ;;  %2286 = vmatprep.subr.bf16.mxu0 %v6386_v0  ;;  %v6391_v3 = vld [vmem:[%s9985_s1 + $0x170] ss:$8 sps:$4 sm:$0xff]   ;;  %v6394_v5 = vld [vmem:[%s9985_s1 + $0x164] ss:$8 sps:$4 sm:$0xff]  }
   0xd   : > { %2359 = vmatprep.subr.bf16.mxu1 %v6388_v1  ;;  %2287 = vmatpush1.bf16.msra.mxu0 %v6390_v2  ;;  %v6396_v6 = vld [vmem:[%s9985_s1 + $0x60] ss:$8 sps:$4 sm:$0xff]   ;;  %v6398_v8 = vld [vmem:[%s9985_s1 + $0x54] ss:$8 sps:$4 sm:$0xff]   ;;  %v6402_v10 = vld [vmem:[%s9985_s1 + $0x50] ss:$8 sps:$4 sm:$0xff]  }
   0xe   : > { %2360 = vmatpush1.bf16.msra.mxu1 %v6391_v3  ;;  %2288 = vmatprep.subr.bf16.mxu0 %v6392_v4  ;;  %v6397_v7 = vld [vmem:[%s9985_s1 + $0x160] ss:$8 sps:$4 sm:$0xff]   ;;  %v6400_v9 = vld [vmem:[%s9985_s1 + $0x154] ss:$8 sps:$4 sm:$0xff]   ;;  %v6403_v11 = vld [vmem:[%s9985_s1 + $0x150] ss:$8 sps:$4 sm:$0xff]  }
   0xf   : > { %2361 = vmatprep.subr.bf16.mxu1 %v6394_v5  ;;  %v6404_v12 = vld [vmem:[%s9985_s1 + $0x44] ss:$8 sps:$4 sm:$0xff]   ;;  %v6408_v14 = vld [vmem:[%s9985_s1 + $0x40] ss:$8 sps:$4 sm:$0xff]   ;;  %v6410_v16 = vld [vmem:[%s9985_s1 + $0x34] ss:$8 sps:$4 sm:$0xff]  }
  0x10   : > { %v6406_v13 = vld [vmem:[%s9985_s1 + $0x144] ss:$8 sps:$4 sm:$0xff]   ;;  %v6409_v15 = vld [vmem:[%s9985_s1 + $0x140] ss:$8 sps:$4 sm:$0xff]   ;;  %v6412_v17 = vld [vmem:[%s9985_s1 + $0x134] ss:$8 sps:$4 sm:$0xff]  }
  0x11   : > { %2289 = vmatpush1.bf16.msra.mxu0 %v6396_v6  ;;  %v6414_v18 = vld [vmem:[%s9985_s1 + $0x30] ss:$8 sps:$4 sm:$0xff]   ;;  %v6416_v20 = vld [vmem:[%s9985_s1 + $0x24] ss:$8 sps:$4 sm:$0xff]   ;;  %v6420_v22 = vld [vmem:[%s9985_s1 + $0x20] ss:$8 sps:$4 sm:$0xff]  }
  0x12   : > { %2362 = vmatpush1.bf16.msra.mxu1 %v6397_v7  ;;  %2290 = vmatprep.subr.bf16.mxu0 %v6398_v8  ;;  %v6415_v19 = vld [vmem:[%s9985_s1 + $0x130] ss:$8 sps:$4 sm:$0xff]   ;;  %v6418_v21 = vld [vmem:[%s9985_s1 + $0x124] ss:$8 sps:$4 sm:$0xff]   ;;  %v6421_v23 = vld [vmem:[%s9985_s1 + $0x120] ss:$8 sps:$4 sm:$0xff]  }
  0x13   : > { %2363 = vmatprep.subr.bf16.mxu1 %v6400_v9  ;;  %v6422_v24 = vld [vmem:[%s9985_s1 + $0x14] ss:$8 sps:$4 sm:$0xff]   ;;  %v6426_v26 = vld [vmem:[%s9985_s1 + $0x10] ss:$8 sps:$4 sm:$0xff]   ;;  %v6428_v28 = vld [vmem:[%s9985_s1 + $0x4] ss:$8 sps:$4 sm:$0xff]  }
  0x14   : > { %v6424_v25 = vld [vmem:[%s9985_s1 + $0x114] ss:$8 sps:$4 sm:$0xff]   ;;  %v6427_v27 = vld [vmem:[%s9985_s1 + $0x110] ss:$8 sps:$4 sm:$0xff]   ;;  %v6430_v29 = vld [vmem:[%s9985_s1 + $0x104] ss:$8 sps:$4 sm:$0xff]  }
  0x15   : > { %2291 = vmatpush1.bf16.msra.mxu0 %v6402_v10  ;;  %s5727_s15 = sshll.u32 %s7385_s22, 3  ;;  %v6432_v30 = vld [vmem:[%s9985_s1] ss:$8 sps:$4 sm:$0xff]   ;;  %v6434_v32 = vld [vmem:[%s9985_s1 + $0xf4] ss:$8 sps:$4 sm:$0xff]   ;;  %vm2273_vm0 = vcmask 261120  }
  0x16   : > { %2364 = vmatpush1.bf16.msra.mxu1 %v6403_v11  ;;  %2292 = vmatprep.subr.bf16.mxu0 %v6404_v12  ;;  %v6433_v31 = vld [vmem:[%s9985_s1 + $0x100] ss:$8 sps:$4 sm:$0xff]   ;;  %p270_p3 = scmp.lt.s32.totalorder %s5727_s15, 15  ;;  %v6436_v33 = vld [vmem:[%s9985_s1 + $0x1f4] ss:$8 sps:$4 sm:$0xff]   ;;  %vm2991_vm1 = vcmask 1043456  }
  0x17   : > { %2365 = vmatprep.subr.bf16.mxu1 %v6406_v13  ;;  %v6438_v34 = vld [vmem:[%s9985_s1 + $0xf0] ss:$8 sps:$4 sm:$0xff]   ;;  %v6440_v36 = vld [vmem:[%s9985_s1 + $0xe4] ss:$8 sps:$4 sm:$0xff]   ;;  %v6444_v38 = vld [vmem:[%s9985_s1 + $0xe0] ss:$8 sps:$4 sm:$0xff]  }
  0x18   : > { %v6439_v35 = vld [vmem:[%s9985_s1 + $0x1f0] ss:$8 sps:$4 sm:$0xff]   ;;  %s10127_s15 = smov (!%p270_p3, %s5727_s15), 15  ;;  %v6442_v37 = vld [vmem:[%s9985_s1 + $0x1e4] ss:$8 sps:$4 sm:$0xff]   ;;  %vm2992_vm2 = vcmask 523268  }
  0x19   : > { %2293 = vmatpush1.bf16.msra.mxu0 %v6408_v14  ;;  %v6445_v39 = vld [vmem:[%s9985_s1 + $0x1e0] ss:$8 sps:$4 sm:$0xff]   ;;  %v6446_v40 = vld [vmem:[%s9985_s1 + $0xd4] ss:$8 sps:$4 sm:$0xff]   ;;  %s6375_s17 = smul.u32 68, %s10127_s15  ;;  %s6355_s28 = sshll.u32 %s10127_s15, 3  ;;  %vm9273_vm3 = vmor %vm2992_vm2, %vm2991_vm1 }
  0x1a   : > { %2366 = vmatpush1.bf16.msra.mxu1 %v6409_v15  ;;  %2294 = vmatprep.subr.bf16.mxu0 %v6410_v16  ;;  %v6448_v41 = vld [vmem:[%s9985_s1 + $0x1d4] ss:$8 sps:$4 sm:$0xff]   ;;  %v6450_v42 = vld [vmem:[%s9985_s1 + $0xd0] ss:$8 sps:$4 sm:$0xff]   ;;  %v6452_v44 = vld [vmem:[%s9985_s1 + $0xc4] ss:$8 sps:$4 sm:$0xff]   ;;  %s9825_s13 = scalar_lea.vmem %s9988_s4, %s6355_s28 }
  0x1b   : > { %2367 = vmatprep.subr.bf16.mxu1 %v6412_v17  ;;  %v6451_v43 = vld [vmem:[%s9985_s1 + $0x1d0] ss:$8 sps:$4 sm:$0xff]   ;;  %s7531_s30 = scalar_lea.vmem %s9984_s0, %s6375_s17  ;;  %v6454_v45 = vld [vmem:[%s9985_s1 + $0x1c4] ss:$8 sps:$4 sm:$0xff]   ;;  %v6456_v46 = vld [vmem:[%s9985_s1 + $0xc0] ss:$8 sps:$4 sm:$0xff]   ;;  %s9269_s17 = scalar_lea.vmem %s9987_s3, %s6355_s28 }
  0x1c   : > { %v6457_v47 = vld [vmem:[%s9985_s1 + $0x1c0] ss:$8 sps:$4 sm:$0xff]   ;;  %v6458_v48 = vld [vmem:[%s9985_s1 + $0xb4] ss:$8 sps:$4 sm:$0xff]   ;;  %v6487_v51 = vld [vmem:[%s7531_s30 + $0xc] ss:$68 sps:$4 sm:$0xff]  }
  0x1d   : > { %2295 = vmatpush1.bf16.msra.mxu0 %v6414_v18  ;;  %v6484_v49 = vld [vmem:[%s7531_s30 + $0x4] ss:$68 sps:$4 sm:$0xff]   ;;  %v6460_v50 = vld [vmem:[%s9985_s1 + $0x1b4] ss:$8 sps:$4 sm:$0xff]   ;;  %v6462_v52 = vld [vmem:[%s9985_s1 + $0xb0] ss:$8 sps:$4 sm:$0xff]   ;;  %2391 = vmatprep.mubr.bf16.mxu1 %v6487_v51 }
  0x1e   : > { %2368 = vmatpush1.bf16.msra.mxu1 %v6415_v19  ;;  %2296 = vmatprep.subr.bf16.mxu0 %v6416_v20  ;;  %v6463_v53 = vld [vmem:[%s9985_s1 + $0x1b0] ss:$8 sps:$4 sm:$0xff]   ;;  %v6464_v54 = vld [vmem:[%s9985_s1 + $0xa4] ss:$8 sps:$4 sm:$0xff]   ;;  %v6468_v56 = vld [vmem:[%s9985_s1 + $0xa0] ss:$8 sps:$4 sm:$0xff]  }
  0x1f   : > { %2369 = vmatprep.subr.bf16.mxu1 %v6418_v21  ;;  %2318 = vmatprep.mubr.bf16.mxu0 %v6484_v49  ;;  %v6466_v55 = vld [vmem:[%s9985_s1 + $0x1a4] ss:$8 sps:$4 sm:$0xff]   ;;  %v6469_v57 = vld [vmem:[%s9985_s1 + $0x1a0] ss:$8 sps:$4 sm:$0xff]   ;;  %v6470_v58 = vld [vmem:[%s9985_s1 + $0x94] ss:$8 sps:$4 sm:$0xff]  }
  0x20   : > { %v6472_v59 = vld [vmem:[%s9985_s1 + $0x194] ss:$8 sps:$4 sm:$0xff]   ;;  %v6474_v60 = vld [vmem:[%s9985_s1 + $0x90] ss:$8 sps:$4 sm:$0xff]   ;;  %v6476_v62 = vld [vmem:[%s9985_s1 + $0x84] ss:$8 sps:$4 sm:$0xff]  }
  0x21   : > { %2297 = vmatpush1.bf16.msra.mxu0 %v6420_v22  ;;  %v6475_v61 = vld [vmem:[%s9985_s1 + $0x190] ss:$8 sps:$4 sm:$0xff]   ;;  %v6478_v63 = vld [vmem:[%s9985_s1 + $0x184] ss:$8 sps:$4 sm:$0xff]   ;;  %v6480_v0 = vld [vmem:[%s9985_s1 + $0x80] ss:$8 sps:$4 sm:$0xff]  }
  0x22   : > { %2370 = vmatpush1.bf16.msra.mxu1 %v6421_v23  ;;  %2298 = vmatprep.subr.bf16.mxu0 %v6422_v24  ;;  %v6481_v1 = vld [vmem:[%s9985_s1 + $0x180] ss:$8 sps:$4 sm:$0xff]   ;;  %v6490_v2 = vld [vmem:[%s9985_s1 + $0x274] ss:$8 sps:$4 sm:$0xff]   ;;  %v6488_v6 = vld [vmem:[%s9985_s1 + $0x270] ss:$8 sps:$4 sm:$0xff]  }
  0x23   : > { %2371 = vmatprep.subr.bf16.mxu1 %v6424_v25  ;;  %v6493_v3 = vld [vmem:[%s9985_s1 + $0x374] ss:$8 sps:$4 sm:$0xff]   ;;  %v6482_v4 = vld [vmem:[%s7531_s30] ss:$68 sps:$4 sm:$0xff]   ;;  %v6485_v5 = vld [vmem:[%s7531_s30 + $0x8] ss:$68 sps:$4 sm:$0xff]  }
  0x24   : > { %v6491_v7 = vld [vmem:[%s9985_s1 + $0x370] ss:$8 sps:$4 sm:$0xff]   ;;  %v6496_v8 = vld [vmem:[%s9985_s1 + $0x264] ss:$8 sps:$4 sm:$0xff]   ;;  %v6494_v10 = vld [vmem:[%s9985_s1 + $0x260] ss:$8 sps:$4 sm:$0xff]  }
  0x25   : > { %2299 = vmatpush1.bf16.msra.mxu0 %v6426_v26  ;;  %v6499_v9 = vld [vmem:[%s9985_s1 + $0x364] ss:$8 sps:$4 sm:$0xff]   ;;  %v6497_v11 = vld [vmem:[%s9985_s1 + $0x360] ss:$8 sps:$4 sm:$0xff]   ;;  %v6502_v12 = vld [vmem:[%s9985_s1 + $0x254] ss:$8 sps:$4 sm:$0xff]  }
  0x26   : > { %2372 = vmatpush1.bf16.msra.mxu1 %v6427_v27  ;;  %2300 = vmatprep.subr.bf16.mxu0 %v6428_v28  ;;  %v6505_v13 = vld [vmem:[%s9985_s1 + $0x354] ss:$8 sps:$4 sm:$0xff]   ;;  %v6500_v14 = vld [vmem:[%s9985_s1 + $0x250] ss:$8 sps:$4 sm:$0xff]   ;;  %v6546_v18 = vld [vmem:[%s7531_s30 + $0x88] ss:$68 sps:$4 sm:$0xff]  }
  0x27   : > { %2373 = vmatprep.subr.bf16.mxu1 %v6430_v29  ;;  %v6503_v15 = vld [vmem:[%s9985_s1 + $0x350] ss:$8 sps:$4 sm:$0xff]   ;;  %v6508_v20 = vld [vmem:[%s9985_s1 + $0x244] ss:$8 sps:$4 sm:$0xff]   ;;  %v6506_v22 = vld [vmem:[%s9985_s1 + $0x240] ss:$8 sps:$4 sm:$0xff]  }
  0x28   : > { %v6542_v16 = vld [vmem:[%s7531_s30 + $0x8c] ss:$68 sps:$4 sm:$0xff]   ;;  %v6544_v17 = vld [vmem:[%s7531_s30 + $0x94] ss:$68 sps:$4 sm:$0xff]   ;;  %v6509_v23 = vld [vmem:[%s9985_s1 + $0x340] ss:$8 sps:$4 sm:$0xff]  }
  0x29   : > { %2301 = vmatpush1.bf16.msra.mxu0 %v6432_v30  ;;  %v6547_v19 = vld [vmem:[%s7531_s30 + $0x90] ss:$68 sps:$4 sm:$0xff]   ;;  %v6511_v21 = vld [vmem:[%s9985_s1 + $0x344] ss:$8 sps:$4 sm:$0xff]   ;;  %v6562_v29 = vld [vmem:[%s7531_s30 + $0x11c] ss:$68 sps:$4 sm:$0xff]  }
  0x2a   : > { %2374 = vmatpush1.bf16.msra.mxu1 %v6433_v31  ;;  %2302 = vmatprep.subr.bf16.mxu0 %v6434_v32  ;;  %v6514_v24 = vld [vmem:[%s9985_s1 + $0x234] ss:$8 sps:$4 sm:$0xff]   ;;  %v6512_v26 = vld [vmem:[%s9985_s1 + $0x230] ss:$8 sps:$4 sm:$0xff]   ;;  %v6520_v32 = vld [vmem:[%s9985_s1 + $0x224] ss:$8 sps:$4 sm:$0xff]  }
  0x2b   : > { %2375 = vmatprep.subr.bf16.mxu1 %v6436_v33  ;;  %v6517_v25 = vld [vmem:[%s9985_s1 + $0x334] ss:$8 sps:$4 sm:$0xff]   ;;  %v6515_v27 = vld [vmem:[%s9985_s1 + $0x330] ss:$8 sps:$4 sm:$0xff]   ;;  %v6523_v33 = vld [vmem:[%s9985_s1 + $0x324] ss:$8 sps:$4 sm:$0xff]  }
  0x2c   : > { %v6560_v28 = vld [vmem:[%s7531_s30 + $0x114] ss:$68 sps:$4 sm:$0xff]   ;;  %vm3015_vm4 = vcmask 523264   ;;  %p290_p4 = scmp.lt.s32.totalorder %s7385_s22, 1 }
  0x2d   : > { %2303 = vmatpush2.bf16.msra.mxu0 %v6438_v34  ;;  %v6564_v30 = vld [vmem:[%s7531_s30 + $0x110] ss:$68 sps:$4 sm:$0xff]   ;;  %v6565_v31 = vld [vmem:[%s7531_s30 + $0x118] ss:$68 sps:$4 sm:$0xff]   ;;  %v6518_v34 = vld [vmem:[%s9985_s1 + $0x220] ss:$8 sps:$4 sm:$0xff]  }
  0x2e   : > { %2376 = vmatpush2.bf16.msra.mxu1 %v6439_v35  ;;  %2304 = vmatprep.subr.bf16.mxu0 %v6440_v36  ;;  %v6521_v35 = vld [vmem:[%s9985_s1 + $0x320] ss:$8 sps:$4 sm:$0xff]   ;;  %v6526_v36 = vld [vmem:[%s9985_s1 + $0x214] ss:$8 sps:$4 sm:$0xff]   ;;  %v6539_v51 = vld [vmem:[%s9985_s1 + $0x3f0] ss:$8 sps:$4 sm:$0xff]  }
  0x2f   : > { %2377 = vmatprep.subr.bf16.mxu1 %v6442_v37  ;;  %v6529_v37 = vld [vmem:[%s9985_s1 + $0x314] ss:$8 sps:$4 sm:$0xff]   ;;  %s10129_s22 = smov (!%p290_p4, %s7385_s22), 1 }
  0x30   : > { %v6541_v49 = vld [vmem:[%s9985_s1 + $0x3f4] ss:$8 sps:$4 sm:$0xff]   ;;  %s6357_s25 = sshll.u32 %s10129_s22, 2 }
  0x31   : > { %2305 = vmatpush2.bf16.msra.mxu0 %v6444_v38  ;;  %v6524_v38 = vld [vmem:[%s9985_s1 + $0x210] ss:$8 sps:$4 sm:$0xff]   ;;  %s9962_s14 = scalar_lea.vmem %s9990_s6, %s6357_s25 }
  0x32   : > { %2378 = vmatpush2.bf16.msra.mxu1 %v6445_v39  ;;  %2306 = vmatprep.subr.bf16.mxu0 %v6446_v40  ;;  %v6527_v39 = vld [vmem:[%s9985_s1 + $0x310] ss:$8 sps:$4 sm:$0xff]   ;;  %v6578_v40 = vld [vmem:[%s7531_s30 + $0x19c] ss:$68 sps:$4 sm:$0xff]  }
  0x33   : > { %2379 = vmatprep.subr.bf16.mxu1 %v6448_v41  ;;  %v6580_v41 = vld [vmem:[%s7531_s30 + $0x1a4] ss:$68 sps:$4 sm:$0xff]  }
  0x35   : > { %2307 = vmatpush2.bf16.msra.mxu0 %v6450_v42  ;;  %v6582_v42 = vld [vmem:[%s7531_s30 + $0x198] ss:$68 sps:$4 sm:$0xff]  }
  0x36   : > { %2380 = vmatpush2.bf16.msra.mxu1 %v6451_v43  ;;  %2308 = vmatprep.subr.bf16.mxu0 %v6452_v44  ;;  %v6583_v43 = vld [vmem:[%s7531_s30 + $0x1a0] ss:$68 sps:$4 sm:$0xff]  }
  0x37   : > { %2381 = vmatprep.subr.bf16.mxu1 %v6454_v45  ;;  %v6532_v44 = vld [vmem:[%s9985_s1 + $0x204] ss:$8 sps:$4 sm:$0xff]  }
  0x38   : > { %v6535_v45 = vld [vmem:[%s9985_s1 + $0x304] ss:$8 sps:$4 sm:$0xff]  }
  0x39   : > { %2309 = vmatpush2.bf16.msra.mxu0 %v6456_v46  ;;  %v6530_v46 = vld [vmem:[%s9985_s1 + $0x200] ss:$8 sps:$4 sm:$0xff]  }
  0x3a   : > { %2382 = vmatpush2.bf16.msra.mxu1 %v6457_v47  ;;  %2310 = vmatprep.subr.bf16.mxu0 %v6458_v48  ;;  %v6533_v47 = vld [vmem:[%s9985_s1 + $0x300] ss:$8 sps:$4 sm:$0xff]   ;;  %v6538_v48 = vld [vmem:[%s9985_s1 + $0x2f4] ss:$8 sps:$4 sm:$0xff]  }
  0x3b   : > { %2383 = vmatprep.subr.bf16.mxu1 %v6460_v50  ;;  %v6536_v50 = vld [vmem:[%s9985_s1 + $0x2f0] ss:$8 sps:$4 sm:$0xff]  }
  0x3d   : > { %2311 = vmatpush2.bf16.msra.mxu0 %v6462_v52  ;;  %v6550_v52 = vld [vmem:[%s9985_s1 + $0x2e4] ss:$8 sps:$4 sm:$0xff]  }
  0x3e   : > { %2384 = vmatpush2.bf16.msra.mxu1 %v6463_v53  ;;  %2312 = vmatprep.subr.bf16.mxu0 %v6464_v54  ;;  %v6553_v53 = vld [vmem:[%s9985_s1 + $0x3e4] ss:$8 sps:$4 sm:$0xff]   ;;  %v6604_v54 = vld [vmem:[%s7531_s30 + $0x14] ss:$68 sps:$4 sm:$0xff]  }
  0x3f   : > { %2385 = vmatprep.subr.bf16.mxu1 %v6466_v55  ;;  %v6607_v55 = vld [vmem:[%s7531_s30 + $0x1c] ss:$68 sps:$4 sm:$0xff]  }
  0x41   : > { %2313 = vmatpush2.bf16.msra.mxu0 %v6468_v56  ;;  %v6548_v56 = vld [vmem:[%s9985_s1 + $0x2e0] ss:$8 sps:$4 sm:$0xff]  }
  0x42   : > { %2386 = vmatpush2.bf16.msra.mxu1 %v6469_v57  ;;  %2314 = vmatprep.subr.bf16.mxu0 %v6470_v58  ;;  %v6551_v57 = vld [vmem:[%s9985_s1 + $0x3e0] ss:$8 sps:$4 sm:$0xff]   ;;  %v6556_v58 = vld [vmem:[%s9985_s1 + $0x2d4] ss:$8 sps:$4 sm:$0xff]  }
  0x43   : > { %2387 = vmatprep.subr.bf16.mxu1 %v6472_v59  ;;  %v6559_v59 = vld [vmem:[%s9985_s1 + $0x3d4] ss:$8 sps:$4 sm:$0xff]  }
  0x45   : > { %2315 = vmatpush2.bf16.msra.mxu0 %v6474_v60  ;;  %v6554_v60 = vld [vmem:[%s9985_s1 + $0x2d0] ss:$8 sps:$4 sm:$0xff]  }
  0x46   : > { %2388 = vmatpush2.bf16.msra.mxu1 %v6475_v61  ;;  %2316 = vmatprep.subr.bf16.mxu0 %v6476_v62  ;;  %v6557_v61 = vld [vmem:[%s9985_s1 + $0x3d0] ss:$8 sps:$4 sm:$0xff]   ;;  %v6568_v62 = vld [vmem:[%s9985_s1 + $0x2c4] ss:$8 sps:$4 sm:$0xff]  }
  0x47   : > { %2389 = vmatprep.subr.bf16.mxu1 %v6478_v63  ;;  %v6571_v63 = vld [vmem:[%s9985_s1 + $0x3c4] ss:$8 sps:$4 sm:$0xff]  }
  0x49   : > { %2317 = vmatpush2.bf16.msra.mxu0 %v6480_v0  ;;  %v6566_v0 = vld [vmem:[%s9985_s1 + $0x2c0] ss:$8 sps:$4 sm:$0xff]  }
  0x4a   : > { %2390 = vmatpush2.bf16.msra.mxu1 %v6481_v1  ;;  %2432 = vmatprep.subr.bf16.mxu0 %v6490_v2  ;;  %v6569_v1 = vld [vmem:[%s9985_s1 + $0x3c0] ss:$8 sps:$4 sm:$0xff]   ;;  %v6574_v2 = vld [vmem:[%s9985_s1 + $0x2b4] ss:$8 sps:$4 sm:$0xff]  }
  0x4b   : > { %2505 = vmatprep.subr.bf16.mxu1 %v6493_v3  ;;  %v6577_v3 = vld [vmem:[%s9985_s1 + $0x3b4] ss:$8 sps:$4 sm:$0xff]  }
  0x4c   : > { %2319 = vmatmul.mubr.bf16.vlgmr.msra.gmra.mxu0 %v6482_v4  ;;  %v6572_v4 = vld [vmem:[%s9985_s1 + $0x2b0] ss:$8 sps:$4 sm:$0xff]  }
  0x4d   : > { %2392 = vmatmul.mubr.bf16.vlgmr.msra.gmra.mxu1 %v6485_v5  ;;  %2433 = vmatpush1.bf16.msra.mxu0 %v6488_v6  ;;  %v6575_v5 = vld [vmem:[%s9985_s1 + $0x3b0] ss:$8 sps:$4 sm:$0xff]   ;;  %v6586_v6 = vld [vmem:[%s9985_s1 + $0x2a4] ss:$8 sps:$4 sm:$0xff]  }
  0x4e   : > { %2506 = vmatpush1.bf16.msra.mxu1 %v6491_v7  ;;  %2434 = vmatprep.subr.bf16.mxu0 %v6496_v8  ;;  %v6589_v7 = vld [vmem:[%s9985_s1 + $0x3a4] ss:$8 sps:$4 sm:$0xff]   ;;  %v6584_v8 = vld [vmem:[%s9985_s1 + $0x2a0] ss:$8 sps:$4 sm:$0xff]  }
  0x4f   : > { %2507 = vmatprep.subr.bf16.mxu1 %v6499_v9  ;;  %2328 = vmatprep.mubr.bf16.mxu0 %v6542_v16  ;;  %v6587_v9 = vld [vmem:[%s9985_s1 + $0x3a0] ss:$8 sps:$4 sm:$0xff]  }
  0x50   : > { %2401 = vmatprep.mubr.bf16.mxu1 %v6544_v17  ;;  %v6596_v16 = vld [vmem:[%s9985_s1 + $0x280] ss:$8 sps:$4 sm:$0xff]  }
  0x51   : > { %2435 = vmatpush1.bf16.msra.mxu0 %v6494_v10  ;;  %v6592_v10 = vld [vmem:[%s9985_s1 + $0x294] ss:$8 sps:$4 sm:$0xff]   ;;  %v6599_v17 = vld [vmem:[%s9985_s1 + $0x380] ss:$8 sps:$4 sm:$0xff]  }
  0x52   : > { %2508 = vmatpush1.bf16.msra.mxu1 %v6497_v11  ;;  %2436 = vmatprep.subr.bf16.mxu0 %v6502_v12  ;;  %v6595_v11 = vld [vmem:[%s9985_s1 + $0x394] ss:$8 sps:$4 sm:$0xff]   ;;  %v6590_v12 = vld [vmem:[%s9985_s1 + $0x290] ss:$8 sps:$4 sm:$0xff]  }
  0x53   : > { %2509 = vmatprep.subr.bf16.mxu1 %v6505_v13  ;;  %v6593_v13 = vld [vmem:[%s9985_s1 + $0x390] ss:$8 sps:$4 sm:$0xff]  }
  0x54   : > { %2329 = vmatmul.mubr.bf16.gmra.mxu0 %v6546_v18  ;;  %v6610_v18 = vld [vmem:[%s9985_s1 + $0x474] ss:$8 sps:$4 sm:$0xff]  }
  0x55   : > { %2402 = vmatmul.mubr.bf16.gmra.mxu1 %v6547_v19  ;;  %2437 = vmatpush1.bf16.msra.mxu0 %v6500_v14  ;;  %v6598_v14 = vld [vmem:[%s9985_s1 + $0x284] ss:$8 sps:$4 sm:$0xff]   ;;  %v6613_v19 = vld [vmem:[%s9985_s1 + $0x574] ss:$8 sps:$4 sm:$0xff]  }
  0x56   : > { %2510 = vmatpush1.bf16.msra.mxu1 %v6503_v15  ;;  %2438 = vmatprep.subr.bf16.mxu0 %v6508_v20  ;;  %v6601_v15 = vld [vmem:[%s9985_s1 + $0x384] ss:$8 sps:$4 sm:$0xff]   ;;  %v6602_v20 = vld [vmem:[%s7531_s30 + $0x10] ss:$68 sps:$4 sm:$0xff]  }
  0x57   : > { %2511 = vmatprep.subr.bf16.mxu1 %v6511_v21  ;;  %2338 = vmatprep.mubr.bf16.mxu0 %v6560_v28  ;;  %v6605_v21 = vld [vmem:[%s7531_s30 + $0x18] ss:$68 sps:$4 sm:$0xff]   ;;  %v6614_v28 = vld [vmem:[%s9985_s1 + $0x460] ss:$8 sps:$4 sm:$0xff]  }
  0x58   : > { %2411 = vmatprep.mubr.bf16.mxu1 %v6562_v29  ;;  %v6617_v29 = vld [vmem:[%s9985_s1 + $0x560] ss:$8 sps:$4 sm:$0xff]  }
  0x59   : > { %2439 = vmatpush1.bf16.msra.mxu0 %v6506_v22  ;;  %v6608_v22 = vld [vmem:[%s9985_s1 + $0x470] ss:$8 sps:$4 sm:$0xff]  }
  0x5a   : > { %2512 = vmatpush1.bf16.msra.mxu1 %v6509_v23  ;;  %2440 = vmatprep.subr.bf16.mxu0 %v6514_v24  ;;  %v6611_v23 = vld [vmem:[%s9985_s1 + $0x570] ss:$8 sps:$4 sm:$0xff]   ;;  %v6616_v24 = vld [vmem:[%s9985_s1 + $0x464] ss:$8 sps:$4 sm:$0xff]  }
  0x5b   : > { %2513 = vmatprep.subr.bf16.mxu1 %v6517_v25  ;;  %v6619_v25 = vld [vmem:[%s9985_s1 + $0x564] ss:$8 sps:$4 sm:$0xff]  }
  0x5c   : > { %2339 = vmatmul.mubr.bf16.gmra.mxu0 %v6564_v30  ;;  %v6625_v30 = vld [vmem:[%s9985_s1 + $0x454] ss:$8 sps:$4 sm:$0xff]  }
  0x5d   : > { %2412 = vmatmul.mubr.bf16.gmra.mxu1 %v6565_v31  ;;  %2441 = vmatpush1.bf16.msra.mxu0 %v6512_v26  ;;  %v6620_v26 = vld [vmem:[%s7531_s30 + $0x9c] ss:$68 sps:$4 sm:$0xff]  }
  0x5e   : > { %2514 = vmatpush1.bf16.msra.mxu1 %v6515_v27  ;;  %2442 = vmatprep.subr.bf16.mxu0 %v6520_v32  ;;  %v6629_v27 = vld [vmem:[%s7531_s30 + $0xa4] ss:$68 sps:$4 sm:$0xff]   ;;  %v6628_v31 = vld [vmem:[%s9985_s1 + $0x554] ss:$8 sps:$4 sm:$0xff]  }
  0x5f   : > { %2515 = vmatprep.subr.bf16.mxu1 %v6523_v33  ;;  %2348 = vmatprep.mubr.bf16.mxu0 %v6578_v40  ;;  %v6622_v32 = vld [vmem:[%s7531_s30 + $0x98] ss:$68 sps:$4 sm:$0xff]   ;;  %v6632_v40 = vld [vmem:[%s9985_s1 + $0x440] ss:$8 sps:$4 sm:$0xff]  }
  0x60   : > { %2421 = vmatprep.mubr.bf16.mxu1 %v6580_v41  ;;  %v6623_v33 = vld [vmem:[%s9985_s1 + $0x450] ss:$8 sps:$4 sm:$0xff]   ;;  %v6635_v41 = vld [vmem:[%s9985_s1 + $0x540] ss:$8 sps:$4 sm:$0xff]  }
  0x61   : > { %2443 = vmatpush1.bf16.msra.mxu0 %v6518_v34  ;;  %v6626_v34 = vld [vmem:[%s9985_s1 + $0x550] ss:$8 sps:$4 sm:$0xff]  }
  0x62   : > { %2516 = vmatpush1.bf16.msra.mxu1 %v6521_v35  ;;  %2444 = vmatprep.subr.bf16.mxu0 %v6526_v36  ;;  %v6631_v35 = vld [vmem:[%s7531_s30 + $0xa0] ss:$68 sps:$4 sm:$0xff]  }
  0x63   : > { %2517 = vmatprep.subr.bf16.mxu1 %v6529_v37  ;;  %v6634_v36 = vld [vmem:[%s9985_s1 + $0x444] ss:$8 sps:$4 sm:$0xff]  }
  0x64   : > { %2349 = vmatmul.mubr.bf16.gmra.mxu0 %v6582_v42  ;;  %v6637_v37 = vld [vmem:[%s9985_s1 + $0x544] ss:$8 sps:$4 sm:$0xff]   ;;  %v6643_v42 = vld [vmem:[%s9985_s1 + $0x434] ss:$8 sps:$4 sm:$0xff]  }
  0x65   : > { %2422 = vmatmul.mubr.bf16.gmra.mxu1 %v6583_v43  ;;  %2445 = vmatpush1.bf16.msra.mxu0 %v6524_v38  ;;  %v6638_v38 = vld [vmem:[%s7531_s30 + $0x124] ss:$68 sps:$4 sm:$0xff]   ;;  %v6646_v43 = vld [vmem:[%s9985_s1 + $0x534] ss:$8 sps:$4 sm:$0xff]  }
  0x66   : > { %2518 = vmatpush1.bf16.msra.mxu1 %v6527_v39  ;;  %2446 = vmatprep.subr.bf16.mxu0 %v6532_v44  ;;  %v6647_v39 = vld [vmem:[%s7531_s30 + $0x12c] ss:$68 sps:$4 sm:$0xff]   ;;  %v6640_v44 = vld [vmem:[%s7531_s30 + $0x120] ss:$68 sps:$4 sm:$0xff]  }
  0x67   : > { %2519 = vmatprep.subr.bf16.mxu1 %v6535_v45  ;;  %2464 = vmatprep.mubr.bf16.mxu0 %v6604_v54  ;;  %v6641_v45 = vld [vmem:[%s9985_s1 + $0x430] ss:$8 sps:$4 sm:$0xff]   ;;  %v6661_v54 = vld [vmem:[%s9985_s1 + $0x414] ss:$8 sps:$4 sm:$0xff]  }
  0x68   : > { %2537 = vmatprep.mubr.bf16.mxu1 %v6607_v55  ;;  %v6664_v55 = vld [vmem:[%s9985_s1 + $0x514] ss:$8 sps:$4 sm:$0xff]  }
  0x69   : > { %2447 = vmatpush1.bf16.msra.mxu0 %v6530_v46  ;;  %v6644_v46 = vld [vmem:[%s9985_s1 + $0x530] ss:$8 sps:$4 sm:$0xff]  }
  0x6a   : > { %2520 = vmatpush1.bf16.msra.mxu1 %v6533_v47  ;;  %2448 = vmatprep.subr.bf16.mxu0 %v6538_v48  ;;  %v6649_v47 = vld [vmem:[%s7531_s30 + $0x128] ss:$68 sps:$4 sm:$0xff]  }
  0x6b   : > { %2521 = vmatprep.subr.bf16.mxu1 %v6541_v49  ;;  %v6652_v48 = vld [vmem:[%s9985_s1 + $0x424] ss:$8 sps:$4 sm:$0xff]  }
  0x6c   : > { %v6655_v49 = vld [vmem:[%s9985_s1 + $0x524] ss:$8 sps:$4 sm:$0xff]  }
  0x6d   : > { %2449 = vmatpush2.bf16.msra.mxu0 %v6536_v50  ;;  %v6656_v50 = vld [vmem:[%s7531_s30 + $0x1ac] ss:$68 sps:$4 sm:$0xff]  }
  0x6e   : > { %2522 = vmatpush2.bf16.msra.mxu1 %v6539_v51  ;;  %2450 = vmatprep.subr.bf16.mxu0 %v6550_v52  ;;  %v6665_v51 = vld [vmem:[%s7531_s30 + $0x1b4] ss:$68 sps:$4 sm:$0xff]   ;;  %v6650_v52 = vld [vmem:[%s9985_s1 + $0x420] ss:$8 sps:$4 sm:$0xff]  }
  0x6f   : > { %2523 = vmatprep.subr.bf16.mxu1 %v6553_v53  ;;  %v6653_v53 = vld [vmem:[%s9985_s1 + $0x520] ss:$8 sps:$4 sm:$0xff]  }
  0x71   : > { %2451 = vmatpush2.bf16.msra.mxu0 %v6548_v56  ;;  %v6658_v56 = vld [vmem:[%s7531_s30 + $0x1a8] ss:$68 sps:$4 sm:$0xff]  }
  0x72   : > { %2524 = vmatpush2.bf16.msra.mxu1 %v6551_v57  ;;  %2452 = vmatprep.subr.bf16.mxu0 %v6556_v58  ;;  %v6659_v57 = vld [vmem:[%s9985_s1 + $0x410] ss:$8 sps:$4 sm:$0xff]  }
  0x73   : > { %2525 = vmatprep.subr.bf16.mxu1 %v6559_v59  ;;  %v6662_v58 = vld [vmem:[%s9985_s1 + $0x510] ss:$8 sps:$4 sm:$0xff]  }
  0x74   : > { %v6667_v59 = vld [vmem:[%s7531_s30 + $0x1b0] ss:$68 sps:$4 sm:$0xff]  }
  0x75   : > { %2453 = vmatpush2.bf16.msra.mxu0 %v6554_v60  ;;  %v6670_v60 = vld [vmem:[%s9985_s1 + $0x404] ss:$8 sps:$4 sm:$0xff]  }
  0x76   : > { %2526 = vmatpush2.bf16.msra.mxu1 %v6557_v61  ;;  %2454 = vmatprep.subr.bf16.mxu0 %v6568_v62  ;;  %v6673_v61 = vld [vmem:[%s9985_s1 + $0x504] ss:$8 sps:$4 sm:$0xff]  }
  0x77   : > { %2527 = vmatprep.subr.bf16.mxu1 %v6571_v63  ;;  %v6724_v62 = vld [vmem:[%s7531_s30 + $0x24] ss:$68 sps:$4 sm:$0xff]   ;;  %v6727_v63 = vld [vmem:[%s7531_s30 + $0x2c] ss:$68 sps:$4 sm:$0xff]  }
  0x79   : > { %2455 = vmatpush2.bf16.msra.mxu0 %v6566_v0  ;;  %v6668_v0 = vld [vmem:[%s9985_s1 + $0x400] ss:$8 sps:$4 sm:$0xff]  }
  0x7a   : > { %2528 = vmatpush2.bf16.msra.mxu1 %v6569_v1  ;;  %2456 = vmatprep.subr.bf16.mxu0 %v6574_v2  ;;  %v6671_v1 = vld [vmem:[%s9985_s1 + $0x500] ss:$8 sps:$4 sm:$0xff]   ;;  %v6676_v2 = vld [vmem:[%s9985_s1 + $0x4f4] ss:$8 sps:$4 sm:$0xff]  }
  0x7b   : > { %2529 = vmatprep.subr.bf16.mxu1 %v6577_v3  ;;  %v6679_v3 = vld [vmem:[%s9985_s1 + $0x5f4] ss:$8 sps:$4 sm:$0xff]  }
  0x7d   : > { %2457 = vmatpush2.bf16.msra.mxu0 %v6572_v4  ;;  %v6674_v4 = vld [vmem:[%s9985_s1 + $0x4f0] ss:$8 sps:$4 sm:$0xff]  }
  0x7e   : > { %2530 = vmatpush2.bf16.msra.mxu1 %v6575_v5  ;;  %2458 = vmatprep.subr.bf16.mxu0 %v6586_v6  ;;  %v6677_v5 = vld [vmem:[%s9985_s1 + $0x5f0] ss:$8 sps:$4 sm:$0xff]   ;;  %v6682_v6 = vld [vmem:[%s9985_s1 + $0x4e4] ss:$8 sps:$4 sm:$0xff]  }
  0x7f   : > { %2531 = vmatprep.subr.bf16.mxu1 %v6589_v7  ;;  %v6685_v7 = vld [vmem:[%s9985_s1 + $0x5e4] ss:$8 sps:$4 sm:$0xff]  }
  0x81   : > { %2459 = vmatpush2.bf16.msra.mxu0 %v6584_v8  ;;  %v6680_v8 = vld [vmem:[%s9985_s1 + $0x4e0] ss:$8 sps:$4 sm:$0xff]  }
  0x82   : > { %2532 = vmatpush2.bf16.msra.mxu1 %v6587_v9  ;;  %2460 = vmatprep.subr.bf16.mxu0 %v6592_v10  ;;  %v6683_v9 = vld [vmem:[%s9985_s1 + $0x5e0] ss:$8 sps:$4 sm:$0xff]   ;;  %v6688_v10 = vld [vmem:[%s9985_s1 + $0x4d4] ss:$8 sps:$4 sm:$0xff]  }
  0x83   : > { %2533 = vmatprep.subr.bf16.mxu1 %v6595_v11  ;;  %v6691_v11 = vld [vmem:[%s9985_s1 + $0x5d4] ss:$8 sps:$4 sm:$0xff]  }
  0x85   : > { %2461 = vmatpush2.bf16.msra.mxu0 %v6590_v12  ;;  %v6686_v12 = vld [vmem:[%s9985_s1 + $0x4d0] ss:$8 sps:$4 sm:$0xff]  }
  0x86   : > { %2534 = vmatpush2.bf16.msra.mxu1 %v6593_v13  ;;  %2462 = vmatprep.subr.bf16.mxu0 %v6598_v14  ;;  %v6689_v13 = vld [vmem:[%s9985_s1 + $0x5d0] ss:$8 sps:$4 sm:$0xff]   ;;  %v6694_v14 = vld [vmem:[%s9985_s1 + $0x4c4] ss:$8 sps:$4 sm:$0xff]  }
  0x87   : > { %2535 = vmatprep.subr.bf16.mxu1 %v6601_v15  ;;  %v6697_v15 = vld [vmem:[%s9985_s1 + $0x5c4] ss:$8 sps:$4 sm:$0xff]  }
  0x89   : > { %2463 = vmatpush2.bf16.msra.mxu0 %v6596_v16  ;;  %v6692_v16 = vld [vmem:[%s9985_s1 + $0x4c0] ss:$8 sps:$4 sm:$0xff]  }
  0x8a   : > { %2536 = vmatpush2.bf16.msra.mxu1 %v6599_v17  ;;  %2578 = vmatprep.subr.bf16.mxu0 %v6610_v18  ;;  %v6695_v17 = vld [vmem:[%s9985_s1 + $0x5c0] ss:$8 sps:$4 sm:$0xff]   ;;  %v6700_v18 = vld [vmem:[%s9985_s1 + $0x4b4] ss:$8 sps:$4 sm:$0xff]  }
  0x8b   : > { %2651 = vmatprep.subr.bf16.mxu1 %v6613_v19  ;;  %v6703_v19 = vld [vmem:[%s9985_s1 + $0x5b4] ss:$8 sps:$4 sm:$0xff]  }
  0x8c   : > { %2465 = vmatmul.mubr.bf16.vlgmr.msra.gmra.mxu0 %v6602_v20  ;;  %v6698_v20 = vld [vmem:[%s9985_s1 + $0x4b0] ss:$8 sps:$4 sm:$0xff]  }
  0x8d   : > { %2538 = vmatmul.mubr.bf16.vlgmr.msra.gmra.mxu1 %v6605_v21  ;;  %2579 = vmatpush1.bf16.msra.mxu0 %v6608_v22  ;;  %v6701_v21 = vld [vmem:[%s9985_s1 + $0x5b0] ss:$8 sps:$4 sm:$0xff]   ;;  %v6706_v22 = vld [vmem:[%s9985_s1 + $0x4a4] ss:$8 sps:$4 sm:$0xff]  }
  0x8e   : > { %2652 = vmatpush1.bf16.msra.mxu1 %v6611_v23  ;;  %2580 = vmatprep.subr.bf16.mxu0 %v6616_v24  ;;  %v6709_v23 = vld [vmem:[%s9985_s1 + $0x5a4] ss:$8 sps:$4 sm:$0xff]   ;;  %v6704_v24 = vld [vmem:[%s9985_s1 + $0x4a0] ss:$8 sps:$4 sm:$0xff]  }
  0x8f   : > { %2653 = vmatprep.subr.bf16.mxu1 %v6619_v25  ;;  %2474 = vmatprep.mubr.bf16.mxu0 %v6620_v26  ;;  %v6707_v25 = vld [vmem:[%s9985_s1 + $0x5a0] ss:$8 sps:$4 sm:$0xff]   ;;  %v6712_v26 = vld [vmem:[%s9985_s1 + $0x494] ss:$8 sps:$4 sm:$0xff]  }
  0x90   : > { %2547 = vmatprep.mubr.bf16.mxu1 %v6629_v27  ;;  %v6715_v27 = vld [vmem:[%s9985_s1 + $0x594] ss:$8 sps:$4 sm:$0xff]  }
  0x91   : > { %2581 = vmatpush1.bf16.msra.mxu0 %v6614_v28  ;;  %v6710_v28 = vld [vmem:[%s9985_s1 + $0x490] ss:$8 sps:$4 sm:$0xff]  }
  0x92   : > { %2654 = vmatpush1.bf16.msra.mxu1 %v6617_v29  ;;  %2582 = vmatprep.subr.bf16.mxu0 %v6625_v30  ;;  %v6713_v29 = vld [vmem:[%s9985_s1 + $0x590] ss:$8 sps:$4 sm:$0xff]   ;;  %v6718_v30 = vld [vmem:[%s9985_s1 + $0x484] ss:$8 sps:$4 sm:$0xff]  }
  0x93   : > { %2655 = vmatprep.subr.bf16.mxu1 %v6628_v31  ;;  %v6721_v31 = vld [vmem:[%s9985_s1 + $0x584] ss:$8 sps:$4 sm:$0xff]  }
  0x94   : > { %2475 = vmatmul.mubr.bf16.gmra.mxu0 %v6622_v32  ;;  %v6716_v32 = vld [vmem:[%s9985_s1 + $0x480] ss:$8 sps:$4 sm:$0xff]  }
  0x95   : > { %2548 = vmatmul.mubr.bf16.gmra.mxu1 %v6631_v35  ;;  %2583 = vmatpush1.bf16.msra.mxu0 %v6623_v33  ;;  %v6719_v33 = vld [vmem:[%s9985_s1 + $0x580] ss:$8 sps:$4 sm:$0xff]   ;;  %v6733_v35 = vld [vmem:[%s9985_s1 + $0x774] ss:$8 sps:$4 sm:$0xff]  }
  0x96   : > { %2656 = vmatpush1.bf16.msra.mxu1 %v6626_v34  ;;  %2584 = vmatprep.subr.bf16.mxu0 %v6634_v36  ;;  %v6730_v34 = vld [vmem:[%s9985_s1 + $0x674] ss:$8 sps:$4 sm:$0xff]   ;;  %v6722_v36 = vld [vmem:[%s7531_s30 + $0x20] ss:$68 sps:$4 sm:$0xff]  }
  0x97   : > { %2657 = vmatprep.subr.bf16.mxu1 %v6637_v37  ;;  %2484 = vmatprep.mubr.bf16.mxu0 %v6638_v38  ;;  %v6725_v37 = vld [vmem:[%s7531_s30 + $0x28] ss:$68 sps:$4 sm:$0xff]   ;;  %v6728_v38 = vld [vmem:[%s9985_s1 + $0x670] ss:$8 sps:$4 sm:$0xff]  }
  0x98   : > { %2557 = vmatprep.mubr.bf16.mxu1 %v6647_v39  ;;  %v6731_v39 = vld [vmem:[%s9985_s1 + $0x770] ss:$8 sps:$4 sm:$0xff]  }
  0x99   : > { %2585 = vmatpush1.bf16.msra.mxu0 %v6632_v40  ;;  %v6736_v40 = vld [vmem:[%s9985_s1 + $0x664] ss:$8 sps:$4 sm:$0xff]  }
  0x9a   : > { %2658 = vmatpush1.bf16.msra.mxu1 %v6635_v41  ;;  %2586 = vmatprep.subr.bf16.mxu0 %v6643_v42  ;;  %v6739_v41 = vld [vmem:[%s9985_s1 + $0x764] ss:$8 sps:$4 sm:$0xff]  }
  0x9b   : > { %2659 = vmatprep.subr.bf16.mxu1 %v6646_v43  ;;  %v6740_v42 = vld [vmem:[%s7531_s30 + $0xac] ss:$68 sps:$4 sm:$0xff]   ;;  %v6749_v43 = vld [vmem:[%s7531_s30 + $0xb4] ss:$68 sps:$4 sm:$0xff]  }
  0x9c   : > { %2485 = vmatmul.mubr.bf16.gmra.mxu0 %v6640_v44  ;;  %v6734_v44 = vld [vmem:[%s9985_s1 + $0x660] ss:$8 sps:$4 sm:$0xff]  }
  0x9d   : > { %2558 = vmatmul.mubr.bf16.gmra.mxu1 %v6649_v47  ;;  %2587 = vmatpush1.bf16.msra.mxu0 %v6641_v45  ;;  %v6737_v45 = vld [vmem:[%s9985_s1 + $0x760] ss:$8 sps:$4 sm:$0xff]   ;;  %v6748_v47 = vld [vmem:[%s9985_s1 + $0x754] ss:$8 sps:$4 sm:$0xff]  }
  0x9e   : > { %2660 = vmatpush1.bf16.msra.mxu1 %v6644_v46  ;;  %2588 = vmatprep.subr.bf16.mxu0 %v6652_v48  ;;  %v6745_v46 = vld [vmem:[%s9985_s1 + $0x654] ss:$8 sps:$4 sm:$0xff]   ;;  %v6742_v48 = vld [vmem:[%s7531_s30 + $0xa8] ss:$68 sps:$4 sm:$0xff]  }
  0x9f   : > { %2661 = vmatprep.subr.bf16.mxu1 %v6655_v49  ;;  %2494 = vmatprep.mubr.bf16.mxu0 %v6656_v50  ;;  %v6743_v49 = vld [vmem:[%s9985_s1 + $0x650] ss:$8 sps:$4 sm:$0xff]  }
  0xa0   : > { %2567 = vmatprep.mubr.bf16.mxu1 %v6665_v51  ;;  %v6746_v50 = vld [vmem:[%s9985_s1 + $0x750] ss:$8 sps:$4 sm:$0xff]  }
  0xa1   : > { %2589 = vmatpush1.bf16.msra.mxu0 %v6650_v52  ;;  %v6751_v51 = vld [vmem:[%s7531_s30 + $0xb0] ss:$68 sps:$4 sm:$0xff]   ;;  %v6754_v52 = vld [vmem:[%s9985_s1 + $0x644] ss:$8 sps:$4 sm:$0xff]  }
  0xa2   : > { %2662 = vmatpush1.bf16.msra.mxu1 %v6653_v53  ;;  %2590 = vmatprep.subr.bf16.mxu0 %v6661_v54  ;;  %v6757_v53 = vld [vmem:[%s9985_s1 + $0x744] ss:$8 sps:$4 sm:$0xff]   ;;  %v6758_v54 = vld [vmem:[%s7531_s30 + $0x134] ss:$68 sps:$4 sm:$0xff]  }
  0xa3   : > { %2663 = vmatprep.subr.bf16.mxu1 %v6664_v55  ;;  %v6767_v55 = vld [vmem:[%s7531_s30 + $0x13c] ss:$68 sps:$4 sm:$0xff]  }
  0xa4   : > { %2495 = vmatmul.mubr.bf16.gmra.mxu0 %v6658_v56  ;;  %v6752_v56 = vld [vmem:[%s9985_s1 + $0x640] ss:$8 sps:$4 sm:$0xff]  }
  0xa5   : > { %2568 = vmatmul.mubr.bf16.gmra.mxu1 %v6667_v59  ;;  %2591 = vmatpush1.bf16.msra.mxu0 %v6659_v57  ;;  %v6755_v57 = vld [vmem:[%s9985_s1 + $0x740] ss:$8 sps:$4 sm:$0xff]   ;;  %v6766_v59 = vld [vmem:[%s9985_s1 + $0x734] ss:$8 sps:$4 sm:$0xff]  }
  0xa6   : > { %2664 = vmatpush1.bf16.msra.mxu1 %v6662_v58  ;;  %2592 = vmatprep.subr.bf16.mxu0 %v6670_v60  ;;  %v6763_v58 = vld [vmem:[%s9985_s1 + $0x634] ss:$8 sps:$4 sm:$0xff]  }
  0xa7   : > { %2665 = vmatprep.subr.bf16.mxu1 %v6673_v61  ;;  %2610 = vmatprep.mubr.bf16.mxu0 %v6724_v62  ;;  %v6760_v60 = vld [vmem:[%s7531_s30 + $0x130] ss:$68 sps:$4 sm:$0xff]  }
  0xa8   : > { %2683 = vmatprep.mubr.bf16.mxu1 %v6727_v63  ;;  %v6761_v61 = vld [vmem:[%s9985_s1 + $0x630] ss:$8 sps:$4 sm:$0xff]  }
  0xa9   : > { %2593 = vmatpush1.bf16.msra.mxu0 %v6668_v0  ;;  %v6764_v62 = vld [vmem:[%s9985_s1 + $0x730] ss:$8 sps:$4 sm:$0xff]   ;;  %v6772_v0 = vld [vmem:[%s9985_s1 + $0x624] ss:$8 sps:$4 sm:$0xff]  }
  0xaa   : > { %2666 = vmatpush1.bf16.msra.mxu1 %v6671_v1  ;;  %2594 = vmatprep.subr.bf16.mxu0 %v6676_v2  ;;  %v6769_v63 = vld [vmem:[%s7531_s30 + $0x138] ss:$68 sps:$4 sm:$0xff]   ;;  %v6775_v1 = vld [vmem:[%s9985_s1 + $0x724] ss:$8 sps:$4 sm:$0xff]  }
  0xab   : > { %2667 = vmatprep.subr.bf16.mxu1 %v6679_v3  ;;  %v6776_v2 = vld [vmem:[%s7531_s30 + $0x1bc] ss:$68 sps:$4 sm:$0xff]   ;;  %v6785_v3 = vld [vmem:[%s7531_s30 + $0x1c4] ss:$68 sps:$4 sm:$0xff]  }
  0xad   : > { %2595 = vmatpush2.bf16.msra.mxu0 %v6674_v4  ;;  %v6770_v4 = vld [vmem:[%s9985_s1 + $0x620] ss:$8 sps:$4 sm:$0xff]  }
  0xae   : > { %2668 = vmatpush2.bf16.msra.mxu1 %v6677_v5  ;;  %2596 = vmatprep.subr.bf16.mxu0 %v6682_v6  ;;  %v6773_v5 = vld [vmem:[%s9985_s1 + $0x720] ss:$8 sps:$4 sm:$0xff]   ;;  %v6781_v6 = vld [vmem:[%s9985_s1 + $0x614] ss:$8 sps:$4 sm:$0xff]  }
  0xaf   : > { %2669 = vmatprep.subr.bf16.mxu1 %v6685_v7  ;;  %v6784_v7 = vld [vmem:[%s9985_s1 + $0x714] ss:$8 sps:$4 sm:$0xff]  }
  0xb1   : > { %2597 = vmatpush2.bf16.msra.mxu0 %v6680_v8  ;;  %v6778_v8 = vld [vmem:[%s7531_s30 + $0x1b8] ss:$68 sps:$4 sm:$0xff]  }
  0xb2   : > { %2670 = vmatpush2.bf16.msra.mxu1 %v6683_v9  ;;  %2598 = vmatprep.subr.bf16.mxu0 %v6688_v10  ;;  %v6779_v9 = vld [vmem:[%s9985_s1 + $0x610] ss:$8 sps:$4 sm:$0xff]  }
  0xb3   : > { %2671 = vmatprep.subr.bf16.mxu1 %v6691_v11  ;;  %v6782_v10 = vld [vmem:[%s9985_s1 + $0x710] ss:$8 sps:$4 sm:$0xff]   ;;  %v6787_v11 = vld [vmem:[%s7531_s30 + $0x1c0] ss:$68 sps:$4 sm:$0xff]  }
  0xb5   : > { %2599 = vmatpush2.bf16.msra.mxu0 %v6686_v12  ;;  %v6790_v12 = vld [vmem:[%s9985_s1 + $0x604] ss:$8 sps:$4 sm:$0xff]  }
  0xb6   : > { %2672 = vmatpush2.bf16.msra.mxu1 %v6689_v13  ;;  %2600 = vmatprep.subr.bf16.mxu0 %v6694_v14  ;;  %v6793_v13 = vld [vmem:[%s9985_s1 + $0x704] ss:$8 sps:$4 sm:$0xff]   ;;  %v6844_v14 = vld [vmem:[%s7531_s30 + $0x34] ss:$68 sps:$4 sm:$0xff]  }
  0xb7   : > { %2673 = vmatprep.subr.bf16.mxu1 %v6697_v15  ;;  %v6847_v15 = vld [vmem:[%s7531_s30 + $0x3c] ss:$68 sps:$4 sm:$0xff]  }
  0xb9   : > { %2601 = vmatpush2.bf16.msra.mxu0 %v6692_v16  ;;  %v6788_v16 = vld [vmem:[%s9985_s1 + $0x600] ss:$8 sps:$4 sm:$0xff]  }
  0xba   : > { %2674 = vmatpush2.bf16.msra.mxu1 %v6695_v17  ;;  %2602 = vmatprep.subr.bf16.mxu0 %v6700_v18  ;;  %v6791_v17 = vld [vmem:[%s9985_s1 + $0x700] ss:$8 sps:$4 sm:$0xff]   ;;  %v6796_v18 = vld [vmem:[%s9985_s1 + $0x6f4] ss:$8 sps:$4 sm:$0xff]  }
  0xbb   : > { %2675 = vmatprep.subr.bf16.mxu1 %v6703_v19  ;;  %v6799_v19 = vld [vmem:[%s9985_s1 + $0x7f4] ss:$8 sps:$4 sm:$0xff]  }
  0xbd   : > { %2603 = vmatpush2.bf16.msra.mxu0 %v6698_v20  ;;  %v6794_v20 = vld [vmem:[%s9985_s1 + $0x6f0] ss:$8 sps:$4 sm:$0xff]  }
  0xbe   : > { %2676 = vmatpush2.bf16.msra.mxu1 %v6701_v21  ;;  %2604 = vmatprep.subr.bf16.mxu0 %v6706_v22  ;;  %v6797_v21 = vld [vmem:[%s9985_s1 + $0x7f0] ss:$8 sps:$4 sm:$0xff]   ;;  %v6802_v22 = vld [vmem:[%s9985_s1 + $0x6e4] ss:$8 sps:$4 sm:$0xff]  }
  0xbf   : > { %2677 = vmatprep.subr.bf16.mxu1 %v6709_v23  ;;  %v6805_v23 = vld [vmem:[%s9985_s1 + $0x7e4] ss:$8 sps:$4 sm:$0xff]  }
  0xc1   : > { %2605 = vmatpush2.bf16.msra.mxu0 %v6704_v24  ;;  %v6800_v24 = vld [vmem:[%s9985_s1 + $0x6e0] ss:$8 sps:$4 sm:$0xff]  }
  0xc2   : > { %2678 = vmatpush2.bf16.msra.mxu1 %v6707_v25  ;;  %2606 = vmatprep.subr.bf16.mxu0 %v6712_v26  ;;  %v6803_v25 = vld [vmem:[%s9985_s1 + $0x7e0] ss:$8 sps:$4 sm:$0xff]   ;;  %v6808_v26 = vld [vmem:[%s9985_s1 + $0x6d4] ss:$8 sps:$4 sm:$0xff]  }
  0xc3   : > { %2679 = vmatprep.subr.bf16.mxu1 %v6715_v27  ;;  %v6811_v27 = vld [vmem:[%s9985_s1 + $0x7d4] ss:$8 sps:$4 sm:$0xff]  }
  0xc5   : > { %2607 = vmatpush2.bf16.msra.mxu0 %v6710_v28  ;;  %v6806_v28 = vld [vmem:[%s9985_s1 + $0x6d0] ss:$8 sps:$4 sm:$0xff]  }
  0xc6   : > { %2680 = vmatpush2.bf16.msra.mxu1 %v6713_v29  ;;  %2608 = vmatprep.subr.bf16.mxu0 %v6718_v30  ;;  %v6809_v29 = vld [vmem:[%s9985_s1 + $0x7d0] ss:$8 sps:$4 sm:$0xff]   ;;  %v6814_v30 = vld [vmem:[%s9985_s1 + $0x6c4] ss:$8 sps:$4 sm:$0xff]  }
  0xc7   : > { %2681 = vmatprep.subr.bf16.mxu1 %v6721_v31  ;;  %v6817_v31 = vld [vmem:[%s9985_s1 + $0x7c4] ss:$8 sps:$4 sm:$0xff]  }
  0xc9   : > { %2609 = vmatpush2.bf16.msra.mxu0 %v6716_v32  ;;  %v6812_v32 = vld [vmem:[%s9985_s1 + $0x6c0] ss:$8 sps:$4 sm:$0xff]  }
  0xca   : > { %2682 = vmatpush2.bf16.msra.mxu1 %v6719_v33  ;;  %2724 = vmatprep.subr.bf16.mxu0 %v6730_v34  ;;  %v6815_v33 = vld [vmem:[%s9985_s1 + $0x7c0] ss:$8 sps:$4 sm:$0xff]   ;;  %v6820_v34 = vld [vmem:[%s9985_s1 + $0x6b4] ss:$8 sps:$4 sm:$0xff]  }
  0xcb   : > { %2797 = vmatprep.subr.bf16.mxu1 %v6733_v35  ;;  %v6823_v35 = vld [vmem:[%s9985_s1 + $0x7b4] ss:$8 sps:$4 sm:$0xff]  }
  0xcc   : > { %2611 = vmatmul.mubr.bf16.vlgmr.msra.gmra.mxu0 %v6722_v36  ;;  %v6818_v36 = vld [vmem:[%s9985_s1 + $0x6b0] ss:$8 sps:$4 sm:$0xff]  }
  0xcd   : > { %2684 = vmatmul.mubr.bf16.vlgmr.msra.gmra.mxu1 %v6725_v37  ;;  %2725 = vmatpush1.bf16.msra.mxu0 %v6728_v38  ;;  %v6821_v37 = vld [vmem:[%s9985_s1 + $0x7b0] ss:$8 sps:$4 sm:$0xff]   ;;  %v6826_v38 = vld [vmem:[%s9985_s1 + $0x6a4] ss:$8 sps:$4 sm:$0xff]  }
  0xce   : > { %2798 = vmatpush1.bf16.msra.mxu1 %v6731_v39  ;;  %2726 = vmatprep.subr.bf16.mxu0 %v6736_v40  ;;  %v6829_v39 = vld [vmem:[%s9985_s1 + $0x7a4] ss:$8 sps:$4 sm:$0xff]   ;;  %v6824_v40 = vld [vmem:[%s9985_s1 + $0x6a0] ss:$8 sps:$4 sm:$0xff]  }
  0xcf   : > { %2799 = vmatprep.subr.bf16.mxu1 %v6739_v41  ;;  %2620 = vmatprep.mubr.bf16.mxu0 %v6740_v42  ;;  %v6827_v41 = vld [vmem:[%s9985_s1 + $0x7a0] ss:$8 sps:$4 sm:$0xff]   ;;  %v6832_v42 = vld [vmem:[%s9985_s1 + $0x694] ss:$8 sps:$4 sm:$0xff]  }
  0xd0   : > { %2693 = vmatprep.mubr.bf16.mxu1 %v6749_v43  ;;  %v6835_v43 = vld [vmem:[%s9985_s1 + $0x794] ss:$8 sps:$4 sm:$0xff]  }
  0xd1   : > { %2727 = vmatpush1.bf16.msra.mxu0 %v6734_v44  ;;  %v6830_v44 = vld [vmem:[%s9985_s1 + $0x690] ss:$8 sps:$4 sm:$0xff]  }
  0xd2   : > { %2800 = vmatpush1.bf16.msra.mxu1 %v6737_v45  ;;  %2728 = vmatprep.subr.bf16.mxu0 %v6745_v46  ;;  %v6833_v45 = vld [vmem:[%s9985_s1 + $0x790] ss:$8 sps:$4 sm:$0xff]   ;;  %v6838_v46 = vld [vmem:[%s9985_s1 + $0x684] ss:$8 sps:$4 sm:$0xff]  }
  0xd3   : > { %2801 = vmatprep.subr.bf16.mxu1 %v6748_v47  ;;  %v6841_v47 = vld [vmem:[%s9985_s1 + $0x784] ss:$8 sps:$4 sm:$0xff]  }
  0xd4   : > { %2621 = vmatmul.mubr.bf16.gmra.mxu0 %v6742_v48  ;;  %v6836_v48 = vld [vmem:[%s9985_s1 + $0x680] ss:$8 sps:$4 sm:$0xff]  }
  0xd5   : > { %2694 = vmatmul.mubr.bf16.gmra.mxu1 %v6751_v51  ;;  %2729 = vmatpush1.bf16.msra.mxu0 %v6743_v49  ;;  %v6839_v49 = vld [vmem:[%s9985_s1 + $0x780] ss:$8 sps:$4 sm:$0xff]   ;;  %v6853_v51 = vld [vmem:[%s9986_s2 + $0x74] ss:$8 sps:$4 sm:$0xff]  }
  0xd6   : > { %2802 = vmatpush1.bf16.msra.mxu1 %v6746_v50  ;;  %2730 = vmatprep.subr.bf16.mxu0 %v6754_v52  ;;  %v6850_v50 = vld [vmem:[%s9985_s1 + $0x814] ss:$8 sps:$4 sm:$0xff]  }
  0xd7   : > { %2803 = vmatprep.subr.bf16.mxu1 %v6757_v53  ;;  %2630 = vmatprep.mubr.bf16.mxu0 %v6758_v54  ;;  %v6842_v52 = vld [vmem:[%s7531_s30 + $0x30] ss:$68 sps:$4 sm:$0xff]   ;;  %v6845_v53 = vld [vmem:[%s7531_s30 + $0x38] ss:$68 sps:$4 sm:$0xff]  }
  0xd8   : > { %2703 = vmatprep.mubr.bf16.mxu1 %v6767_v55  ;;  %v6848_v54 = vld [vmem:[%s9985_s1 + $0x810] ss:$8 sps:$4 sm:$0xff]  }
  0xd9   : > { %2731 = vmatpush1.bf16.msra.mxu0 %v6752_v56  ;;  %v6851_v55 = vld [vmem:[%s9986_s2 + $0x70] ss:$8 sps:$4 sm:$0xff]   ;;  %v6856_v56 = vld [vmem:[%s9986_s2 + $0x64] ss:$8 sps:$4 sm:$0xff]  }
  0xda   : > { %2804 = vmatpush1.bf16.msra.mxu1 %v6755_v57  ;;  %2732 = vmatprep.subr.bf16.mxu0 %v6763_v58  ;;  %v6857_v57 = vld [vmem:[%s7531_s30 + $0xbc] ss:$68 sps:$4 sm:$0xff]   ;;  %v6863_v58 = vld [vmem:[%s7531_s30 + $0xc4] ss:$68 sps:$4 sm:$0xff]  }
  0xdb   : > { %2805 = vmatprep.subr.bf16.mxu1 %v6766_v59  ;;  %v6874_v59 = vld [vmem:[%s9985_s1 + $0x804] ss:$8 sps:$4 sm:$0xff]  }
  0xdc   : > { %2631 = vmatmul.mubr.bf16.gmra.mxu0 %v6760_v60 }
  0xdd   : > { %2704 = vmatmul.mubr.bf16.gmra.mxu1 %v6769_v63  ;;  %2733 = vmatpush1.bf16.msra.mxu0 %v6761_v61  ;;  %v6862_v63 = vld [vmem:[%s9986_s2 + $0x54] ss:$8 sps:$4 sm:$0xff]  }
  0xde   : > { %2806 = vmatpush1.bf16.msra.mxu1 %v6764_v62  ;;  %2734 = vmatprep.subr.bf16.mxu0 %v6772_v0  ;;  %v6854_v62 = vld [vmem:[%s9986_s2 + $0x60] ss:$8 sps:$4 sm:$0xff]  }
  0xdf   : > { %2807 = vmatprep.subr.bf16.mxu1 %v6775_v1  ;;  %2640 = vmatprep.mubr.bf16.mxu0 %v6776_v2  ;;  %v6872_v1 = vld [vmem:[%s9985_s1 + $0x800] ss:$8 sps:$4 sm:$0xff]  }
  0xe0   : > { %2713 = vmatprep.mubr.bf16.mxu1 %v6785_v3 }
  0xe1   : > { %2735 = vmatpush1.bf16.msra.mxu0 %v6770_v4  ;;  %v6898_v4 = vld [vmem:[%s9986_s2 + $0x174] ss:$8 sps:$4 sm:$0xff]  }
  0xe2   : > { %2808 = vmatpush1.bf16.msra.mxu1 %v6773_v5  ;;  %2736 = vmatprep.subr.bf16.mxu0 %v6781_v6  ;;  %v6859_v6 = vld [vmem:[%s7531_s30 + $0xb8] ss:$68 sps:$4 sm:$0xff]  }
  0xe3   : > { %2809 = vmatprep.subr.bf16.mxu1 %v6784_v7  ;;  %v6860_v7 = vld [vmem:[%s9986_s2 + $0x50] ss:$8 sps:$4 sm:$0xff]  }
  0xe4   : > { %2641 = vmatmul.mubr.bf16.gmra.mxu0 %v6778_v8 }
  0xe5   : > { %2714 = vmatmul.mubr.bf16.gmra.mxu1 %v6787_v11  ;;  %2737 = vmatpush1.bf16.msra.mxu0 %v6779_v9  ;;  %v6868_v11 = vld [vmem:[%s9986_s2 + $0x44] ss:$8 sps:$4 sm:$0xff]  }
  0xe6   : > { %2810 = vmatpush1.bf16.msra.mxu1 %v6782_v10  ;;  %2738 = vmatprep.subr.bf16.mxu0 %v6790_v12  ;;  %v6865_v10 = vld [vmem:[%s7531_s30 + $0xc0] ss:$68 sps:$4 sm:$0xff]  }
  0xe7   : > { %2811 = vmatprep.subr.bf16.mxu1 %v6793_v13  ;;  %2756 = vmatprep.mubr.bf16.mxu0 %v6844_v14  ;;  %v6869_v13 = vld [vmem:[%s7531_s30 + $0x144] ss:$68 sps:$4 sm:$0xff]  }
  0xe8   : > { %2829 = vmatprep.mubr.bf16.mxu1 %v6847_v15 }
  0xe9   : > { %2739 = vmatpush1.bf16.msra.mxu0 %v6788_v16  ;;  %v6878_v16 = vld [vmem:[%s7531_s30 + $0x14c] ss:$68 sps:$4 sm:$0xff]  }
  0xea   : > { %2812 = vmatpush1.bf16.msra.mxu1 %v6791_v17  ;;  %2740 = vmatprep.subr.bf16.mxu0 %v6796_v18 }
  0xeb   : > { %2813 = vmatprep.subr.bf16.mxu1 %v6799_v19  ;;  %v6866_v19 = vld [vmem:[%s9986_s2 + $0x40] ss:$8 sps:$4 sm:$0xff]  }
  0xed   : > { %2741 = vmatpush2.bf16.msra.mxu0 %v6794_v20 }
  0xee   : > { %2814 = vmatpush2.bf16.msra.mxu1 %v6797_v21  ;;  %2742 = vmatprep.subr.bf16.mxu0 %v6802_v22  ;;  %v6877_v21 = vld [vmem:[%s9986_s2 + $0x34] ss:$8 sps:$4 sm:$0xff]  }
  0xef   : > { %2815 = vmatprep.subr.bf16.mxu1 %v6805_v23 }
  0xf1   : > { %2743 = vmatpush2.bf16.msra.mxu0 %v6800_v24  ;;  %v6871_v24 = vld [vmem:[%s7531_s30 + $0x140] ss:$68 sps:$4 sm:$0xff]  }
  0xf2   : > { %2816 = vmatpush2.bf16.msra.mxu1 %v6803_v25  ;;  %2744 = vmatprep.subr.bf16.mxu0 %v6808_v26  ;;  %v6875_v25 = vld [vmem:[%s9986_s2 + $0x30] ss:$8 sps:$4 sm:$0xff]  }
  0xf3   : > { %2817 = vmatprep.subr.bf16.mxu1 %v6811_v27  ;;  %v6880_v27 = vld [vmem:[%s7531_s30 + $0x148] ss:$68 sps:$4 sm:$0xff]  }
  0xf5   : > { %2745 = vmatpush2.bf16.msra.mxu0 %v6806_v28  ;;  %v6883_v28 = vld [vmem:[%s9986_s2 + $0x24] ss:$8 sps:$4 sm:$0xff]  }
  0xf6   : > { %2818 = vmatpush2.bf16.msra.mxu1 %v6809_v29  ;;  %2746 = vmatprep.subr.bf16.mxu0 %v6814_v30 }
  0xf7   : > { %2819 = vmatprep.subr.bf16.mxu1 %v6817_v31  ;;  %v6884_v31 = vld [vmem:[%s7531_s30 + $0x1cc] ss:$68 sps:$4 sm:$0xff]  }
  0xf9   : > { %2747 = vmatpush2.bf16.msra.mxu0 %v6812_v32 }
  0xfa   : > { %2820 = vmatpush2.bf16.msra.mxu1 %v6815_v33  ;;  %2748 = vmatprep.subr.bf16.mxu0 %v6820_v34  ;;  %v6890_v33 = vld [vmem:[%s7531_s30 + $0x1d4] ss:$68 sps:$4 sm:$0xff]  }
  0xfb   : > { %2821 = vmatprep.subr.bf16.mxu1 %v6823_v35 }
  0xfd   : > { %2749 = vmatpush2.bf16.msra.mxu0 %v6818_v36 }
  0xfe   : > { %2822 = vmatpush2.bf16.msra.mxu1 %v6821_v37  ;;  %2750 = vmatprep.subr.bf16.mxu0 %v6826_v38  ;;  %v6881_v38 = vld [vmem:[%s9986_s2 + $0x20] ss:$8 sps:$4 sm:$0xff]  }
  0xff   : > { %2823 = vmatprep.subr.bf16.mxu1 %v6829_v39 }
 0x101   : > { %2751 = vmatpush2.bf16.msra.mxu0 %v6824_v40  ;;  %v6889_v40 = vld [vmem:[%s9986_s2 + $0x14] ss:$8 sps:$4 sm:$0xff]  }
 0x102   : > { %2824 = vmatpush2.bf16.msra.mxu1 %v6827_v41  ;;  %2752 = vmatprep.subr.bf16.mxu0 %v6832_v42 }
 0x103   : > { %2825 = vmatprep.subr.bf16.mxu1 %v6835_v43 }
 0x105   : > { %2753 = vmatpush2.bf16.msra.mxu0 %v6830_v44  ;;  %v6886_v44 = vld [vmem:[%s7531_s30 + $0x1c8] ss:$68 sps:$4 sm:$0xff]  }
 0x106   : > { %2826 = vmatpush2.bf16.msra.mxu1 %v6833_v45  ;;  %2754 = vmatprep.subr.bf16.mxu0 %v6838_v46  ;;  %v6892_v45 = vld [vmem:[%s7531_s30 + $0x1d0] ss:$68 sps:$4 sm:$0xff]  }
 0x107   : > { %2827 = vmatprep.subr.bf16.mxu1 %v6841_v47 }
 0x109   : > { %2755 = vmatpush2.bf16.msra.mxu0 %v6836_v48  ;;  %v6887_v48 = vld [vmem:[%s9986_s2 + $0x10] ss:$8 sps:$4 sm:$0xff]  }
 0x10a   : > { %2828 = vmatpush2.bf16.msra.mxu1 %v6839_v49  ;;  %2882 = vmatprep.subr.bf16.mxu0 %v6850_v50  ;;  %v6895_v50 = vld [vmem:[%s9986_s2 + $0x4] ss:$8 sps:$4 sm:$0xff]  }
 0x10b   : > { %4708 = vmatprep.subr.bf16.mxu1 %v6853_v51 }
 0x10c   : > { %v2320_v60 = vpop.f32.mrf.mxu0  ;;  %2757 = vmatmul.mubr.bf16.vlgmr.msra.gmra.mxu0 %v6842_v52 }
 0x10d   : > { %v2393_v61 = vpop.f32.mrf.mxu1  ;;  %2830 = vmatmul.mubr.bf16.vlgmr.msra.gmra.mxu1 %v6845_v53  ;;  %2883 = vmatpush1.bf16.msra.mxu0 %v6848_v54 }
 0x10e   : > { %v8244_v0 = vadd.f32 %v2393_v61, %v2320_v60  ;;  %4709 = vmatpush1.bf16.msra.mxu1 %v6851_v55  ;;  %v2322_v2 = vpop.f32.mrf.mxu0  ;;  %2766 = vmatprep.mubr.bf16.mxu0 %v6857_v57  ;;  %v6893_v55 = vld [vmem:[%s9986_s2] ss:$8 sps:$4 sm:$0xff]  }
 0x10f   : > { %v2395_v3 = vpop.f32.mrf.mxu1  ;;  %4710 = vmatprep.subr.bf16.mxu1 %v6856_v56  ;;  %2839 = vmatprep.mubr.bf16.mxu1 %v6863_v58  ;;  %v9991_v56 = vmov 0   ;;  %v6902_v58 = vld [vmem:[%s9986_s2 + $0xf4] ss:$8 sps:$4 sm:$0xff]   ;;  %v7266_v61 = vld [vmem:[%s7531_s30 + $0x4] ss:$68 sps:$4 sm:$0xff]  }
 0x110   : > { %v8252_v5 = vadd.f32 %v2395_v3, %v2322_v2  ;;  %2884 = vmatprep.subr.bf16.mxu0 %v6874_v59  ;;  %v2324_v8 = vpop.f32.mrf.mxu0  ;;  %v6900_v2 = vld [vmem:[%s9986_s2 + $0xf0] ss:$8 sps:$4 sm:$0xff]  }
 0x111   : > { %v2397_v9 = vpop.f32.mrf.mxu1  ;;  %2885 = vmatpush1.bf16.msra.mxu0 %v6872_v1  ;;  %v6899_v1 = vld [vmem:[%s7531_s30 + $0x40] ss:$68 sps:$4 sm:$0xff]  }
 0x112   : > { %v8262_v12 = vadd.f32 %v2397_v9, %v2324_v8  ;;  %4711 = vmatpush1.bf16.msra.mxu1 %v6854_v62  ;;  %v8265_v14 = vpop.f32.mrf.mxu0  ;;  %4781 = vmatprep.subr.bf16.mxu0 %v6898_v4  ;;  %v6896_v62 = vld [vmem:[%s9986_s2 + $0x170] ss:$8 sps:$4 sm:$0xff]   ;;  %v6908_v8 = vld [vmem:[%s9986_s2 + $0xe4] ss:$8 sps:$4 sm:$0xff]   ;;  %v6903_v9 = vld [vmem:[%s9986_s2 + $0x160] ss:$8 sps:$4 sm:$0xff]  }
 0x113   : > { %v8267_v15 = vpop.f32.mrf.mxu1  ;;  %4712 = vmatprep.subr.bf16.mxu1 %v6862_v63 }
 0x114   : > { %2767 = vmatmul.mubr.bf16.gmra.mxu0 %v6859_v6  ;;  %v2330_v17 = vpop.f32.mrf.mxu0  ;;  %v6905_v6 = vld [vmem:[%s9986_s2 + $0x164] ss:$8 sps:$4 sm:$0xff]  }
 0x115   : > { %2840 = vmatmul.mubr.bf16.gmra.mxu1 %v6865_v10  ;;  %v2403_v18 = vpop.f32.mrf.mxu1  ;;  %2776 = vmatprep.mubr.bf16.mxu0 %v6869_v13  ;;  %v6906_v10 = vld [vmem:[%s9986_s2 + $0xe0] ss:$8 sps:$4 sm:$0xff]   ;;  %v6915_v13 = vld [vmem:[%s9986_s2 + $0xd4] ss:$8 sps:$4 sm:$0xff]  }
 0x116   : > { %4713 = vmatpush1.bf16.msra.mxu1 %v6860_v7  ;;  %v8273_v20 = vadd.f32 %v2403_v18, %v2330_v17  ;;  %2849 = vmatprep.mubr.bf16.mxu1 %v6878_v16  ;;  %v2332_v22 = vpop.f32.mrf.mxu0  ;;  %v6909_v16 = vld [vmem:[%s9986_s2 + $0x150] ss:$8 sps:$4 sm:$0xff]   ;;  %v6912_v17 = vld [vmem:[%s7531_s30 + $0xc8] ss:$68 sps:$4 sm:$0xff]  }
 0x117   : > { %4714 = vmatprep.subr.bf16.mxu1 %v6868_v11  ;;  %v2405_v23 = vpop.f32.mrf.mxu1  ;;  %v6911_v11 = vld [vmem:[%s9986_s2 + $0x154] ss:$8 sps:$4 sm:$0xff]   ;;  %v6913_v18 = vld [vmem:[%s9986_s2 + $0xd0] ss:$8 sps:$4 sm:$0xff]  }
 0x118   : > { %v8282_v26 = vadd.f32 %v2405_v23, %v2332_v22  ;;  %v2334_v29 = vpop.f32.mrf.mxu0  ;;  %v6916_v22 = vld [vmem:[%s9986_s2 + $0x140] ss:$8 sps:$4 sm:$0xff]  }
 0x119   : > { %v2407_v30 = vpop.f32.mrf.mxu1  ;;  %v6919_v23 = vld [vmem:[%s9986_s2 + $0xc0] ss:$8 sps:$4 sm:$0xff]  }
 0x11a   : > { %4715 = vmatpush1.bf16.msra.mxu1 %v6866_v19  ;;  %v8289_v32 = vadd.f32 %v2407_v30, %v2334_v29  ;;  %v8292_v34 = vpop.f32.mrf.mxu0  ;;  %v6918_v19 = vld [vmem:[%s9986_s2 + $0x144] ss:$8 sps:$4 sm:$0xff]   ;;  %v6926_v29 = vld [vmem:[%s9986_s2 + $0xb0] ss:$8 sps:$4 sm:$0xff]  }
 0x11b   : > { %4716 = vmatprep.subr.bf16.mxu1 %v6877_v21  ;;  %v8294_v35 = vpop.f32.mrf.mxu1  ;;  %v6921_v21 = vld [vmem:[%s9986_s2 + $0xc4] ss:$8 sps:$4 sm:$0xff]  }
 0x11c   : > { %2777 = vmatmul.mubr.bf16.gmra.mxu0 %v6871_v24  ;;  %v2340_v36 = vpop.f32.mrf.mxu0  ;;  %v6924_v24 = vld [vmem:[%s9986_s2 + $0x134] ss:$8 sps:$4 sm:$0xff]   ;;  %v6931_v30 = vld [vmem:[%s9986_s2 + $0x124] ss:$8 sps:$4 sm:$0xff]  }
 0x11d   : > { %2850 = vmatmul.mubr.bf16.gmra.mxu1 %v6880_v27  ;;  %v2413_v37 = vpop.f32.mrf.mxu1  ;;  %2786 = vmatprep.mubr.bf16.mxu0 %v6884_v31  ;;  %v6922_v27 = vld [vmem:[%s9986_s2 + $0x130] ss:$8 sps:$4 sm:$0xff]   ;;  %v6934_v31 = vld [vmem:[%s9986_s2 + $0xa4] ss:$8 sps:$4 sm:$0xff]  }
 0x11e   : > { %4717 = vmatpush1.bf16.msra.mxu1 %v6875_v25  ;;  %v8299_v39 = vadd.f32 %v2413_v37, %v2340_v36  ;;  %2859 = vmatprep.mubr.bf16.mxu1 %v6890_v33  ;;  %v2342_v41 = vpop.f32.mrf.mxu0  ;;  %v6928_v25 = vld [vmem:[%s9986_s2 + $0xb4] ss:$8 sps:$4 sm:$0xff]   ;;  %v6929_v33 = vld [vmem:[%s9986_s2 + $0x120] ss:$8 sps:$4 sm:$0xff]  }
 0x11f   : > { %4718 = vmatprep.subr.bf16.mxu1 %v6883_v28  ;;  %v2415_v42 = vpop.f32.mrf.mxu1  ;;  %v6925_v28 = vld [vmem:[%s7531_s30 + $0x150] ss:$68 sps:$4 sm:$0xff]   ;;  %v6932_v36 = vld [vmem:[%s9986_s2 + $0xa0] ss:$8 sps:$4 sm:$0xff]  }
 0x120   : > { %v8304_v43 = vadd.f32 %v2415_v42, %v2342_v41  ;;  %v2344_v46 = vpop.f32.mrf.mxu0  ;;  %v6937_v37 = vld [vmem:[%s9986_s2 + $0x114] ss:$8 sps:$4 sm:$0xff]   ;;  %v6939_v42 = vld [vmem:[%s9986_s2 + $0x90] ss:$8 sps:$4 sm:$0xff]  }
 0x121   : > { %v2417_v47 = vpop.f32.mrf.mxu1  ;;  %v6938_v41 = vld [vmem:[%s7531_s30 + $0x1d8] ss:$68 sps:$4 sm:$0xff]  }
 0x122   : > { %4719 = vmatpush1.bf16.msra.mxu1 %v6881_v38  ;;  %v8311_v49 = vadd.f32 %v2417_v47, %v2344_v46  ;;  %v8316_v51 = vpop.f32.mrf.mxu0  ;;  %v6941_v38 = vld [vmem:[%s9986_s2 + $0x94] ss:$8 sps:$4 sm:$0xff]   ;;  %v6942_v46 = vld [vmem:[%s9986_s2 + $0x100] ss:$8 sps:$4 sm:$0xff]  }
 0x123   : > { %4720 = vmatprep.subr.bf16.mxu1 %v6889_v40  ;;  %v8318_v52 = vpop.f32.mrf.mxu1  ;;  %v6935_v40 = vld [vmem:[%s9986_s2 + $0x110] ss:$8 sps:$4 sm:$0xff]   ;;  %v6945_v47 = vld [vmem:[%s9986_s2 + $0x80] ss:$8 sps:$4 sm:$0xff]  }
 0x124   : > { %2787 = vmatmul.mubr.bf16.gmra.mxu0 %v6886_v44  ;;  %v2350_v53 = vpop.f32.mrf.mxu0  ;;  %v6944_v44 = vld [vmem:[%s9986_s2 + $0x104] ss:$8 sps:$4 sm:$0xff]  }
 0x125   : > { %2860 = vmatmul.mubr.bf16.gmra.mxu1 %v6892_v45  ;;  %v2423_v54 = vpop.f32.mrf.mxu1  ;;  %2902 = vmatprep.mubr.bf16.mxu0 %v9991_v56  ;;  %v6947_v45 = vld [vmem:[%s9986_s2 + $0x84] ss:$8 sps:$4 sm:$0xff]  }
 0x126   : > { %4721 = vmatpush1.bf16.msra.mxu1 %v6887_v48  ;;  %v8324_v57 = vadd.f32 %v2423_v54, %v2350_v53  ;;  %v2352_v59 = vpop.f32.mrf.mxu0  ;;  %4740 = vmatprep.mubr.bf16.mxu1 %v7266_v61  ;;  %v6950_v48 = vld [vmem:[%s9986_s2 + $0x1f4] ss:$8 sps:$4 sm:$0xff]   ;;  %v7267_v53 = vld [vmem:[%s7531_s30 + $0xc] ss:$68 sps:$4 sm:$0xff]  }
 0x127   : > { %4722 = vmatprep.subr.bf16.mxu1 %v6895_v50  ;;  %v2425_v60 = vpop.f32.mrf.mxu1  ;;  %v6953_v50 = vld [vmem:[%s9986_s2 + $0x274] ss:$8 sps:$4 sm:$0xff]   ;;  %v6948_v54 = vld [vmem:[%s9986_s2 + $0x1f0] ss:$8 sps:$4 sm:$0xff]  }
 0x128   : > { %v8333_v63 = vadd.f32 %v2425_v60, %v2352_v59  ;;  %v2354_v3 = vpop.f32.mrf.mxu0  ;;  %v6959_v60 = vld [vmem:[%s9986_s2 + $0x264] ss:$8 sps:$4 sm:$0xff]  }
 0x129   : > { %v2427_v4 = vpop.f32.mrf.mxu1 }
 0x12a   : > { %4723 = vmatpush1.bf16.msra.mxu1 %v6893_v55  ;;  %v8342_v7 = vadd.f32 %v2427_v4, %v2354_v3  ;;  %v6951_v55 = vld [vmem:[%s9986_s2 + $0x270] ss:$8 sps:$4 sm:$0xff]   ;;  %v8451_v59 = vpop.f32.mrf.mxu0  ;;  %v6962_v4 = vld [vmem:[%s9986_s2 + $0x1d4] ss:$8 sps:$4 sm:$0xff]  }
 0x12b   : > { %4724 = vmatprep.subr.bf16.mxu1 %v6902_v58  ;;  %v6956_v58 = vld [vmem:[%s9986_s2 + $0x1e4] ss:$8 sps:$4 sm:$0xff]  }
 0x12c   : > { %6067 = vmatmul.mubr.msk.bf16.vlgmr.msra.gmra.mxu0 %vm2273_vm0, %v6899_v1  ;;  %v6954_v1 = vld [vmem:[%s9986_s2 + $0x1e0] ss:$8 sps:$4 sm:$0xff]  }
 0x12d   : > { %4782 = vmatpush1.bf16.msra.mxu0 %v6896_v62  ;;  %2912 = vmatprep.mubr.bf16.mxu0 %v9991_v56  ;;  %v7268_v62 = vld [vmem:[%s7531_s30] ss:$68 sps:$4 sm:$0xff]  }
 0x12e   : > { %4725 = vmatpush2.bf16.msra.mxu1 %v6900_v2  ;;  %4783 = vmatprep.subr.bf16.mxu0 %v6905_v6  ;;  %v6957_v2 = vld [vmem:[%s9986_s2 + $0x260] ss:$8 sps:$4 sm:$0xff]  }
 0x12f   : > { %4726 = vmatprep.subr.bf16.mxu1 %v6908_v8  ;;  %v6965_v8 = vld [vmem:[%s9986_s2 + $0x254] ss:$8 sps:$4 sm:$0xff]  }
 0x131   : > { %4784 = vmatpush1.bf16.msra.mxu0 %v6903_v9 }
 0x132   : > { %4727 = vmatpush2.bf16.msra.mxu1 %v6906_v10  ;;  %4785 = vmatprep.subr.bf16.mxu0 %v6911_v11  ;;  %v7269_v10 = vld [vmem:[%s7531_s30 + $0x8c] ss:$68 sps:$4 sm:$0xff]  }
 0x133   : > { %4728 = vmatprep.subr.bf16.mxu1 %v6915_v13  ;;  %v6960_v11 = vld [vmem:[%s9986_s2 + $0x1d0] ss:$8 sps:$4 sm:$0xff]  }
 0x134   : > { %6068 = vmatmul.mubr.msk.bf16.gmra.mxu0 %vm2273_vm0, %v6912_v17  ;;  %v6963_v13 = vld [vmem:[%s9986_s2 + $0x250] ss:$8 sps:$4 sm:$0xff]   ;;  %v8488_v17 = vpop.f32.mrf.mxu1 }
 0x135   : > { %4786 = vmatpush1.bf16.msra.mxu0 %v6909_v16  ;;  %2922 = vmatprep.mubr.bf16.mxu0 %v9991_v56 }
 0x136   : > { %4729 = vmatpush2.bf16.msra.mxu1 %v6913_v18  ;;  %4787 = vmatprep.subr.bf16.mxu0 %v6918_v19  ;;  %v6971_v19 = vld [vmem:[%s9986_s2 + $0x244] ss:$8 sps:$4 sm:$0xff]  }
 0x137   : > { %4730 = vmatprep.subr.bf16.mxu1 %v6921_v21 }
 0x139   : > { %4788 = vmatpush1.bf16.msra.mxu0 %v6916_v22  ;;  %v6966_v22 = vld [vmem:[%s9986_s2 + $0x1c0] ss:$8 sps:$4 sm:$0xff]  }
 0x13a   : > { %4731 = vmatpush2.bf16.msra.mxu1 %v6919_v23  ;;  %4789 = vmatprep.subr.bf16.mxu0 %v6924_v24  ;;  %v6969_v23 = vld [vmem:[%s9986_s2 + $0x240] ss:$8 sps:$4 sm:$0xff]  }
 0x13b   : > { %4732 = vmatprep.subr.bf16.mxu1 %v6928_v25  ;;  %v7270_v24 = vld [vmem:[%s7531_s30 + $0x88] ss:$68 sps:$4 sm:$0xff]  }
 0x13c   : > { %6069 = vmatmul.mubr.msk.bf16.gmra.mxu0 %vm2273_vm0, %v6925_v28 }
 0x13d   : > { %4790 = vmatpush1.bf16.msra.mxu0 %v6922_v27  ;;  %2932 = vmatprep.mubr.bf16.mxu0 %v9991_v56  ;;  %v6974_v27 = vld [vmem:[%s9986_s2 + $0x1b4] ss:$8 sps:$4 sm:$0xff]   ;;  %v7098_v56 = vld [vmem:[%s9986_s2 + $0x560] ss:$8 sps:$4 sm:$0xff]  }
 0x13e   : > { %4733 = vmatpush2.bf16.msra.mxu1 %v6926_v29  ;;  %4791 = vmatprep.subr.bf16.mxu0 %v6931_v30  ;;  %v6977_v29 = vld [vmem:[%s9986_s2 + $0x234] ss:$8 sps:$4 sm:$0xff]  }
 0x13f   : > { %4734 = vmatprep.subr.bf16.mxu1 %v6934_v31  ;;  %v7271_v31 = vld [vmem:[%s7531_s30 + $0x114] ss:$68 sps:$4 sm:$0xff]  }
 0x141   : > { %4792 = vmatpush1.bf16.msra.mxu0 %v6929_v33 }
 0x142   : > { %4735 = vmatpush2.bf16.msra.mxu1 %v6932_v36  ;;  %4793 = vmatprep.subr.bf16.mxu0 %v6937_v37  ;;  %v6972_v36 = vld [vmem:[%s9986_s2 + $0x1b0] ss:$8 sps:$4 sm:$0xff]  }
 0x143   : > { %4736 = vmatprep.subr.bf16.mxu1 %v6941_v38  ;;  %v6975_v37 = vld [vmem:[%s9986_s2 + $0x230] ss:$8 sps:$4 sm:$0xff]  }
 0x144   : > { %6070 = vmatmul.mubr.msk.bf16.gmra.mxu0 %vm2273_vm0, %v6938_v41  ;;  %v6983_v41 = vld [vmem:[%s9986_s2 + $0x224] ss:$8 sps:$4 sm:$0xff]  }
 0x145   : > { %4794 = vmatpush1.bf16.msra.mxu0 %v6935_v40  ;;  %4813 = vmatprep.mubr.bf16.mxu0 %v7267_v53  ;;  %v6989_v53 = vld [vmem:[%s9986_s2 + $0x214] ss:$8 sps:$4 sm:$0xff]  }
 0x146   : > { %4737 = vmatpush2.bf16.msra.mxu1 %v6939_v42  ;;  %4795 = vmatprep.subr.bf16.mxu0 %v6944_v44 }
 0x147   : > { %4738 = vmatprep.subr.bf16.mxu1 %v6947_v45  ;;  %v6981_v45 = vld [vmem:[%s9986_s2 + $0x220] ss:$8 sps:$4 sm:$0xff]  }
 0x149   : > { %4796 = vmatpush1.bf16.msra.mxu0 %v6942_v46  ;;  %v7272_v46 = vld [vmem:[%s7531_s30 + $0x110] ss:$68 sps:$4 sm:$0xff]  }
 0x14a   : > { %4739 = vmatpush2.bf16.msra.mxu1 %v6945_v47  ;;  %4797 = vmatprep.subr.bf16.mxu0 %v6950_v48  ;;  %v6986_v48 = vld [vmem:[%s9986_s2 + $0x194] ss:$8 sps:$4 sm:$0xff]  }
 0x14b   : > { %4854 = vmatprep.subr.bf16.mxu1 %v6953_v50 }
 0x14c   : > { %v2466_v61 = vpop.f32.mrf.mxu0 }
 0x14d   : > { %4741 = vmatmul.mubr.bf16.vlgmr.msra.gmra.mxu1 %v7268_v62  ;;  %v8464_v3 = vadd.f32 %v2466_v61, %v8244_v0  ;;  %4798 = vmatpush2.bf16.msra.mxu0 %v6948_v54  ;;  %v8495_v21 = vpop.f32.mrf.mxu1  ;;  %v6987_v61 = vld [vmem:[%s9986_s2 + $0x210] ss:$8 sps:$4 sm:$0xff]  }
 0x14e   : > { %4855 = vmatpush1.bf16.msra.mxu1 %v6951_v55  ;;  %v2468_v6 = vpop.f32.mrf.mxu0  ;;  %4799 = vmatprep.subr.bf16.mxu0 %v6956_v58  ;;  %v7273_v55 = vld [vmem:[%s7531_s30 + $0x19c] ss:$68 sps:$4 sm:$0xff]  }
 0x14f   : > { %4856 = vmatprep.subr.bf16.mxu1 %v6959_v60  ;;  %v8473_v9 = vadd.f32 %v2468_v6, %v8252_v5  ;;  %4750 = vmatprep.mubr.bf16.mxu1 %v7269_v10  ;;  %v6968_v5 = vld [vmem:[%s9986_s2 + $0x1c4] ss:$8 sps:$4 sm:$0xff]   ;;  %v6984_v60 = vld [vmem:[%s9986_s2 + $0x190] ss:$8 sps:$4 sm:$0xff]  }
 0x150   : > { %v2470_v0 = vpop.f32.mrf.mxu0  ;;  %v7274_v10 = vld [vmem:[%s7531_s30 + $0x198] ss:$68 sps:$4 sm:$0xff]  }
 0x151   : > { %v8483_v16 = vadd.f32 %v2470_v0, %v8262_v12  ;;  %4800 = vmatpush2.bf16.msra.mxu0 %v6954_v1 }
 0x152   : > { %4857 = vmatpush1.bf16.msra.mxu1 %v6957_v2  ;;  %v8490_v18 = vpop.f32.mrf.mxu0  ;;  %4801 = vmatprep.subr.bf16.mxu0 %v6962_v4  ;;  %v6995_v4 = vld [vmem:[%s9986_s2 + $0x204] ss:$8 sps:$4 sm:$0xff]  }
 0x153   : > { %4858 = vmatprep.subr.bf16.mxu1 %v6965_v8  ;;  %v6993_v8 = vld [vmem:[%s9986_s2 + $0x200] ss:$8 sps:$4 sm:$0xff]  }
 0x154   : > { %v2476_v12 = vpop.f32.mrf.mxu0 }
 0x155   : > { %4751 = vmatmul.mubr.bf16.gmra.mxu1 %v7270_v24  ;;  %v8505_v25 = vadd.f32 %v2476_v12, %v8273_v20  ;;  %4802 = vmatpush2.bf16.msra.mxu0 %v6960_v11  ;;  %v8517_v20 = vpop.f32.mrf.mxu1  ;;  %v6998_v11 = vld [vmem:[%s9986_s2 + $0x374] ss:$8 sps:$4 sm:$0xff]   ;;  %v6999_v24 = vld [vmem:[%s9986_s2 + $0x2f0] ss:$8 sps:$4 sm:$0xff]  }
 0x156   : > { %4859 = vmatpush1.bf16.msra.mxu1 %v6963_v13  ;;  %v2478_v28 = vpop.f32.mrf.mxu0  ;;  %4803 = vmatprep.subr.bf16.mxu0 %v6968_v5 }
 0x157   : > { %4860 = vmatprep.subr.bf16.mxu1 %v6971_v19  ;;  %v8514_v30 = vadd.f32 %v2478_v28, %v8282_v26  ;;  %4760 = vmatprep.mubr.bf16.mxu1 %v7271_v31  ;;  %v6980_v26 = vld [vmem:[%s9986_s2 + $0x1a4] ss:$8 sps:$4 sm:$0xff]   ;;  %v8536_v42 = vpop.f32.mrf.mxu1  ;;  %v7001_v19 = vld [vmem:[%s9986_s2 + $0x2f4] ss:$8 sps:$4 sm:$0xff]  }
 0x158   : > { %v2480_v33 = vpop.f32.mrf.mxu0  ;;  %v7276_v31 = vld [vmem:[%s7531_s30 + $0x8] ss:$68 sps:$4 sm:$0xff]  }
 0x159   : > { %v8526_v38 = vadd.f32 %v2480_v33, %v8289_v32  ;;  %4804 = vmatpush2.bf16.msra.mxu0 %v6966_v22  ;;  %v6978_v32 = vld [vmem:[%s9986_s2 + $0x1a0] ss:$8 sps:$4 sm:$0xff]  }
 0x15a   : > { %4861 = vmatpush1.bf16.msra.mxu1 %v6969_v23  ;;  %v8531_v40 = vpop.f32.mrf.mxu0  ;;  %4805 = vmatprep.subr.bf16.mxu0 %v6974_v27  ;;  %v6996_v23 = vld [vmem:[%s9986_s2 + $0x370] ss:$8 sps:$4 sm:$0xff]   ;;  %v7005_v33 = vld [vmem:[%s9986_s2 + $0x2e0] ss:$8 sps:$4 sm:$0xff]  }
 0x15b   : > { %4862 = vmatprep.subr.bf16.mxu1 %v6977_v29  ;;  %v7007_v29 = vld [vmem:[%s9986_s2 + $0x2e4] ss:$8 sps:$4 sm:$0xff]  }
 0x15c   : > { %v2486_v44 = vpop.f32.mrf.mxu0 }
 0x15d   : > { %4761 = vmatmul.mubr.bf16.gmra.mxu1 %v7272_v46  ;;  %v8546_v47 = vadd.f32 %v2486_v44, %v8299_v39  ;;  %4806 = vmatpush2.bf16.msra.mxu0 %v6972_v36  ;;  %v8558_v39 = vpop.f32.mrf.mxu1  ;;  %v7010_v36 = vld [vmem:[%s9986_s2 + $0x354] ss:$8 sps:$4 sm:$0xff]   ;;  %v7008_v44 = vld [vmem:[%s9986_s2 + $0x350] ss:$8 sps:$4 sm:$0xff]   ;;  %v7016_v46 = vld [vmem:[%s9986_s2 + $0x344] ss:$8 sps:$4 sm:$0xff]  }
 0x15e   : > { %4863 = vmatpush1.bf16.msra.mxu1 %v6975_v37  ;;  %v2488_v50 = vpop.f32.mrf.mxu0  ;;  %4807 = vmatprep.subr.bf16.mxu0 %v6980_v26  ;;  %v7013_v26 = vld [vmem:[%s9986_s2 + $0x2d4] ss:$8 sps:$4 sm:$0xff]  }
 0x15f   : > { %4864 = vmatprep.subr.bf16.mxu1 %v6983_v41  ;;  %v8555_v54 = vadd.f32 %v2488_v50, %v8304_v43  ;;  %4770 = vmatprep.mubr.bf16.mxu1 %v7273_v55  ;;  %v6992_v43 = vld [vmem:[%s9986_s2 + $0x184] ss:$8 sps:$4 sm:$0xff]   ;;  %v8572_v1 = vpop.f32.mrf.mxu1  ;;  %v7277_v41 = vld [vmem:[%s7531_s30 + $0x94] ss:$68 sps:$4 sm:$0xff]   ;;  %v7017_v55 = vld [vmem:[%s9986_s2 + $0x2c0] ss:$8 sps:$4 sm:$0xff]  }
 0x160   : > { %v2490_v58 = vpop.f32.mrf.mxu0  ;;  %v7278_v50 = vld [vmem:[%s7531_s30 + $0x90] ss:$68 sps:$4 sm:$0xff]  }
 0x161   : > { %v8567_v62 = vadd.f32 %v2490_v58, %v8311_v49  ;;  %4808 = vmatpush2.bf16.msra.mxu0 %v6978_v32  ;;  %v6990_v49 = vld [vmem:[%s9986_s2 + $0x180] ss:$8 sps:$4 sm:$0xff]   ;;  %v8592_v13 = vpop.f32.mrf.mxu1  ;;  %v7011_v32 = vld [vmem:[%s9986_s2 + $0x2d0] ss:$8 sps:$4 sm:$0xff]  }
 0x162   : > { %4865 = vmatpush1.bf16.msra.mxu1 %v6981_v45  ;;  %v8574_v2 = vpop.f32.mrf.mxu0  ;;  %4809 = vmatprep.subr.bf16.mxu0 %v6986_v48  ;;  %v7019_v48 = vld [vmem:[%s9986_s2 + $0x2c4] ss:$8 sps:$4 sm:$0xff]  }
 0x163   : > { %4866 = vmatprep.subr.bf16.mxu1 %v6989_v53  ;;  %v8613_v28 = vpop.f32.mrf.mxu1  ;;  %v7014_v53 = vld [vmem:[%s9986_s2 + $0x340] ss:$8 sps:$4 sm:$0xff]  }
 0x164   : > { %v2496_v6 = vpop.f32.mrf.mxu0 }
 0x165   : > { %4771 = vmatmul.mubr.bf16.gmra.mxu1 %v7274_v10  ;;  %v8587_v0 = vadd.f32 %v2496_v6, %v8324_v57  ;;  %4810 = vmatpush2.bf16.msra.mxu0 %v6984_v60  ;;  %v7275_v57 = vld [vmem:[%s7531_s30 + $0x14] ss:$68 sps:$4 sm:$0xff]   ;;  %v8628_v37 = vpop.f32.mrf.mxu1  ;;  %v7031_v10 = vld [vmem:[%s9986_s2 + $0x2a4] ss:$8 sps:$4 sm:$0xff]  }
 0x166   : > { %4867 = vmatpush1.bf16.msra.mxu1 %v6987_v61  ;;  %v2498_v5 = vpop.f32.mrf.mxu0  ;;  %4811 = vmatprep.subr.bf16.mxu0 %v6992_v43  ;;  %v7022_v60 = vld [vmem:[%s9986_s2 + $0x334] ss:$8 sps:$4 sm:$0xff]   ;;  %v7023_v6 = vld [vmem:[%s9986_s2 + $0x2b0] ss:$8 sps:$4 sm:$0xff]  }
 0x167   : > { %4868 = vmatprep.subr.bf16.mxu1 %v6995_v4  ;;  %v8598_v12 = vadd.f32 %v2498_v5, %v8333_v63  ;;  %4886 = vmatprep.mubr.bf16.mxu1 %v7275_v57  ;;  %v7004_v63 = vld [vmem:[%s9986_s2 + $0x364] ss:$8 sps:$4 sm:$0xff]   ;;  %v8640_v45 = vpop.f32.mrf.mxu1  ;;  %v7025_v61 = vld [vmem:[%s9986_s2 + $0x2b4] ss:$8 sps:$4 sm:$0xff]   ;;  %v7020_v4 = vld [vmem:[%s9986_s2 + $0x330] ss:$8 sps:$4 sm:$0xff]  }
 0x168   : > { %v2500_v22 = vpop.f32.mrf.mxu0  ;;  %v7279_v43 = vld [vmem:[%s7531_s30 + $0x11c] ss:$68 sps:$4 sm:$0xff]  }
 0x169   : > { %v8608_v27 = vadd.f32 %v2500_v22, %v8342_v7  ;;  %4812 = vmatpush2.bf16.msra.mxu0 %v6990_v49  ;;  %v7002_v7 = vld [vmem:[%s9986_s2 + $0x360] ss:$8 sps:$4 sm:$0xff]   ;;  %v8655_v58 = vpop.f32.mrf.mxu1  ;;  %v7280_v5 = vld [vmem:[%s7531_s30 + $0x118] ss:$68 sps:$4 sm:$0xff]  }
 0x16a   : > { %4869 = vmatpush1.bf16.msra.mxu1 %v6993_v8  ;;  %4927 = vmatprep.subr.bf16.mxu0 %v6998_v11  ;;  %v7028_v8 = vld [vmem:[%s9986_s2 + $0x324] ss:$8 sps:$4 sm:$0xff]   ;;  %v7026_v11 = vld [vmem:[%s9986_s2 + $0x320] ss:$8 sps:$4 sm:$0xff]   ;;  %v7034_v57 = vld [vmem:[%s9986_s2 + $0x314] ss:$8 sps:$4 sm:$0xff]  }
 0x16b   : > { %9997 = vst [vmem:[#allocation2_spill] sm:$0xff] %v8608_v27  ;;  %4870 = vmatprep.subr.bf16.mxu1 %v7001_v19  ;;  %v8670_v49 = vpop.f32.mrf.mxu1  ;;  %v7029_v19 = vld [vmem:[%s9986_s2 + $0x2a0] ss:$8 sps:$4 sm:$0xff]  }
 0x16c   : > { %4814 = vmatmul.mubr.bf16.vlgmr.msra.gmra.mxu0 %v7276_v31  ;;  %v7040_v31 = vld [vmem:[%s9986_s2 + $0x304] ss:$8 sps:$4 sm:$0xff]  }
 0x16d   : > { %4928 = vmatpush1.bf16.msra.mxu0 %v6996_v23  ;;  %4823 = vmatprep.mubr.bf16.mxu0 %v7277_v41  ;;  %v8688_v22 = vpop.f32.mrf.mxu1  ;;  %v7037_v23 = vld [vmem:[%s9986_s2 + $0x294] ss:$8 sps:$4 sm:$0xff]   ;;  %v7282_v41 = vld [vmem:[%s7531_s30 + $0x1a0] ss:$68 sps:$4 sm:$0xff]  }
 0x16e   : > { %4871 = vmatpush2.bf16.msra.mxu1 %v6999_v24  ;;  %4929 = vmatprep.subr.bf16.mxu0 %v7004_v63  ;;  %v7281_v24 = vld [vmem:[%s7531_s30 + $0x1a4] ss:$68 sps:$4 sm:$0xff]   ;;  %v7032_v63 = vld [vmem:[%s9986_s2 + $0x310] ss:$8 sps:$4 sm:$0xff]  }
 0x16f   : > { %4872 = vmatprep.subr.bf16.mxu1 %v7007_v29  ;;  %v7035_v29 = vld [vmem:[%s9986_s2 + $0x290] ss:$8 sps:$4 sm:$0xff]   ;;  %v7300_v27 = vld [vmem:[%s7531_s30 + $0x20] ss:$68 sps:$4 sm:$0xff]  }
 0x171   : > { %4930 = vmatpush1.bf16.msra.mxu0 %v7002_v7  ;;  %v8703_v7 = vpop.f32.mrf.mxu1 }
 0x172   : > { %4873 = vmatpush2.bf16.msra.mxu1 %v7005_v33  ;;  %4931 = vmatprep.subr.bf16.mxu0 %v7010_v36  ;;  %v7043_v33 = vld [vmem:[%s9986_s2 + $0x284] ss:$8 sps:$4 sm:$0xff]   ;;  %v7038_v36 = vld [vmem:[%s9986_s2 + $0x300] ss:$8 sps:$4 sm:$0xff]  }
 0x173   : > { %4874 = vmatprep.subr.bf16.mxu1 %v7013_v26  ;;  %v7041_v26 = vld [vmem:[%s9986_s2 + $0x280] ss:$8 sps:$4 sm:$0xff]  }
 0x174   : > { %4824 = vmatmul.mubr.bf16.gmra.mxu0 %v7278_v50  ;;  %v7047_v50 = vld [vmem:[%s9986_s2 + $0x470] ss:$8 sps:$4 sm:$0xff]  }
 0x175   : > { %4932 = vmatpush1.bf16.msra.mxu0 %v7008_v44  ;;  %4833 = vmatprep.mubr.bf16.mxu0 %v7279_v43  ;;  %v7046_v44 = vld [vmem:[%s9986_s2 + $0x3f4] ss:$8 sps:$4 sm:$0xff]   ;;  %v8738_v43 = vpop.f32.mrf.mxu0 }
 0x176   : > { %4875 = vmatpush2.bf16.msra.mxu1 %v7011_v32  ;;  %4933 = vmatprep.subr.bf16.mxu0 %v7016_v46  ;;  %v8718_v32 = vpop.f32.mrf.mxu1  ;;  %v7049_v46 = vld [vmem:[%s9986_s2 + $0x474] ss:$8 sps:$4 sm:$0xff]   ;;  %10000 = vst [vmem:[#allocation5_spill] sm:$0xff] %v8738_v43 }
 0x177   : > { %4876 = vmatprep.subr.bf16.mxu1 %v7019_v48  ;;  %9998 = vst [vmem:[#allocation3_spill] sm:$0xff] %v8718_v32  ;;  %v7044_v48 = vld [vmem:[%s9986_s2 + $0x3f0] ss:$8 sps:$4 sm:$0xff]  }
 0x179   : > { %4934 = vmatpush1.bf16.msra.mxu0 %v7014_v53  ;;  %v7283_v53 = vld [vmem:[%s7531_s30 + $0x1c] ss:$68 sps:$4 sm:$0xff]  }
 0x17a   : > { %4877 = vmatpush2.bf16.msra.mxu1 %v7017_v55  ;;  %4935 = vmatprep.subr.bf16.mxu0 %v7022_v60  ;;  %v7052_v55 = vld [vmem:[%s9986_s2 + $0x3e4] ss:$8 sps:$4 sm:$0xff]  }
 0x17b   : > { %4878 = vmatprep.subr.bf16.mxu1 %v7025_v61  ;;  %v7055_v60 = vld [vmem:[%s9986_s2 + $0x464] ss:$8 sps:$4 sm:$0xff]   ;;  %v8736_v61 = vpop.f32.mrf.mxu1 }
 0x17c   : > { %4834 = vmatmul.mubr.bf16.gmra.mxu0 %v7280_v5  ;;  %9999 = vst [vmem:[#allocation4_spill] sm:$0xff] %v8736_v61  ;;  %v7058_v5 = vld [vmem:[%s9986_s2 + $0x3d4] ss:$8 sps:$4 sm:$0xff]  }
 0x17d   : > { %4936 = vmatpush1.bf16.msra.mxu0 %v7020_v4  ;;  %4843 = vmatprep.mubr.bf16.mxu0 %v7281_v24  ;;  %v7284_v4 = vld [vmem:[%s7531_s30 + $0x10] ss:$68 sps:$4 sm:$0xff]  }
 0x17e   : > { %4879 = vmatpush2.bf16.msra.mxu1 %v7023_v6  ;;  %4937 = vmatprep.subr.bf16.mxu0 %v7028_v8  ;;  %v7050_v6 = vld [vmem:[%s9986_s2 + $0x3e0] ss:$8 sps:$4 sm:$0xff]   ;;  %v7056_v24 = vld [vmem:[%s9986_s2 + $0x3d0] ss:$8 sps:$4 sm:$0xff]  }
 0x17f   : > { %4880 = vmatprep.subr.bf16.mxu1 %v7031_v10  ;;  %v7053_v8 = vld [vmem:[%s9986_s2 + $0x460] ss:$8 sps:$4 sm:$0xff]   ;;  %v8747_v10 = vpop.f32.mrf.mxu1 }
 0x180   : > { %10001 = vst [vmem:[#allocation6_spill] sm:$0xff] %v8747_v10 }
 0x181   : > { %4938 = vmatpush1.bf16.msra.mxu0 %v7026_v11 }
 0x182   : > { %4881 = vmatpush2.bf16.msra.mxu1 %v7029_v19  ;;  %4939 = vmatprep.subr.bf16.mxu0 %v7034_v57  ;;  %v7061_v19 = vld [vmem:[%s9986_s2 + $0x454] ss:$8 sps:$4 sm:$0xff]  }
 0x183   : > { %4882 = vmatprep.subr.bf16.mxu1 %v7037_v23  ;;  %v7285_v57 = vld [vmem:[%s7531_s30 + $0x9c] ss:$68 sps:$4 sm:$0xff]  }
 0x184   : > { %4844 = vmatmul.mubr.bf16.gmra.mxu0 %v7282_v41  ;;  %v7062_v41 = vld [vmem:[%s9986_s2 + $0x3c0] ss:$8 sps:$4 sm:$0xff]  }
 0x185   : > { %4940 = vmatpush1.bf16.msra.mxu0 %v7032_v63  ;;  %4959 = vmatprep.mubr.bf16.mxu0 %v7283_v53  ;;  %v7059_v63 = vld [vmem:[%s9986_s2 + $0x450] ss:$8 sps:$4 sm:$0xff]   ;;  %v7287_v53 = vld [vmem:[%s7531_s30 + $0x124] ss:$68 sps:$4 sm:$0xff]  }
 0x186   : > { %4883 = vmatpush2.bf16.msra.mxu1 %v7035_v29  ;;  %4941 = vmatprep.subr.bf16.mxu0 %v7040_v31  ;;  %v7064_v31 = vld [vmem:[%s9986_s2 + $0x3c4] ss:$8 sps:$4 sm:$0xff]  }
 0x187   : > { %4884 = vmatprep.subr.bf16.mxu1 %v7043_v33  ;;  %v7067_v33 = vld [vmem:[%s9986_s2 + $0x444] ss:$8 sps:$4 sm:$0xff]  }
 0x189   : > { %4942 = vmatpush1.bf16.msra.mxu0 %v7038_v36 }
 0x18a   : > { %4885 = vmatpush2.bf16.msra.mxu1 %v7041_v26  ;;  %4943 = vmatprep.subr.bf16.mxu0 %v7046_v44  ;;  %v7286_v26 = vld [vmem:[%s7531_s30 + $0x98] ss:$68 sps:$4 sm:$0xff]   ;;  %v7065_v44 = vld [vmem:[%s9986_s2 + $0x440] ss:$8 sps:$4 sm:$0xff]  }
 0x18b   : > { %5000 = vmatprep.subr.bf16.mxu1 %v7049_v46 }
 0x18c   : > { %v8749_v11 = vpop.f32.mrf.mxu0 }
 0x18d   : > { %4887 = vmatmul.mubr.bf16.vlgmr.msra.gmra.mxu1 %v7284_v4  ;;  %4944 = vmatpush2.bf16.msra.mxu0 %v7044_v48  ;;  %v8758_v23 = vpop.f32.mrf.mxu1  ;;  %v7070_v48 = vld [vmem:[%s9986_s2 + $0x3b4] ss:$8 sps:$4 sm:$0xff]   ;;  %v7071_v4 = vld [vmem:[%s9986_s2 + $0x430] ss:$8 sps:$4 sm:$0xff]  }
 0x18e   : > { %5001 = vmatpush1.bf16.msra.mxu1 %v7047_v50  ;;  %4945 = vmatprep.subr.bf16.mxu0 %v7052_v55  ;;  %v8766_v29 = vpop.f32.mrf.mxu0  ;;  %v7073_v50 = vld [vmem:[%s9986_s2 + $0x434] ss:$8 sps:$4 sm:$0xff]  }
 0x18f   : > { %5002 = vmatprep.subr.bf16.mxu1 %v7055_v60  ;;  %4896 = vmatprep.mubr.bf16.mxu1 %v7285_v57  ;;  %v8774_v36 = vpop.f32.mrf.mxu1  ;;  %v7068_v60 = vld [vmem:[%s9986_s2 + $0x3b0] ss:$8 sps:$4 sm:$0xff]   ;;  %v7288_v57 = vld [vmem:[%s7531_s30 + $0x120] ss:$68 sps:$4 sm:$0xff]  }
 0x190   : > { %v8783_v46 = vpop.f32.mrf.mxu0 }
 0x191   : > { %4946 = vmatpush2.bf16.msra.mxu0 %v7050_v6  ;;  %v8792_v55 = vpop.f32.mrf.mxu1 }
 0x192   : > { %5003 = vmatpush1.bf16.msra.mxu1 %v7053_v8  ;;  %4947 = vmatprep.subr.bf16.mxu0 %v7058_v5  ;;  %v8800_v6 = vpop.f32.mrf.mxu0  ;;  %v7076_v8 = vld [vmem:[%s9986_s2 + $0x3a4] ss:$8 sps:$4 sm:$0xff]  }
 0x193   : > { %5004 = vmatprep.subr.bf16.mxu1 %v7061_v19  ;;  %v7079_v5 = vld [vmem:[%s9986_s2 + $0x424] ss:$8 sps:$4 sm:$0xff]   ;;  %v8808_v19 = vpop.f32.mrf.mxu1 }
 0x195   : > { %4897 = vmatmul.mubr.bf16.gmra.mxu1 %v7286_v26  ;;  %4948 = vmatpush2.bf16.msra.mxu0 %v7056_v24  ;;  %v7074_v24 = vld [vmem:[%s9986_s2 + $0x3a0] ss:$8 sps:$4 sm:$0xff]   ;;  %v7082_v26 = vld [vmem:[%s9986_s2 + $0x394] ss:$8 sps:$4 sm:$0xff]  }
 0x196   : > { %5005 = vmatpush1.bf16.msra.mxu1 %v7059_v63  ;;  %4949 = vmatprep.subr.bf16.mxu0 %v7064_v31  ;;  %v7077_v63 = vld [vmem:[%s9986_s2 + $0x420] ss:$8 sps:$4 sm:$0xff]   ;;  %v8817_v31 = vpop.f32.mrf.mxu0 }
 0x197   : > { %5006 = vmatprep.subr.bf16.mxu1 %v7067_v33  ;;  %4906 = vmatprep.mubr.bf16.mxu1 %v7287_v53  ;;  %v8819_v33 = vpop.f32.mrf.mxu1 }
 0x198   : > { %v8834_v53 = vpop.f32.mrf.mxu0 }
 0x199   : > { %4950 = vmatpush2.bf16.msra.mxu0 %v7062_v41  ;;  %v7085_v41 = vld [vmem:[%s9986_s2 + $0x414] ss:$8 sps:$4 sm:$0xff]  }
 0x19a   : > { %5007 = vmatpush1.bf16.msra.mxu1 %v7065_v44  ;;  %4951 = vmatprep.subr.bf16.mxu0 %v7070_v48  ;;  %v7289_v44 = vld [vmem:[%s7531_s30 + $0x1ac] ss:$68 sps:$4 sm:$0xff]  }
 0x19b   : > { %5008 = vmatprep.subr.bf16.mxu1 %v7073_v50  ;;  %v7080_v48 = vld [vmem:[%s9986_s2 + $0x390] ss:$8 sps:$4 sm:$0xff]  }
 0x19c   : > { %v7083_v50 = vld [vmem:[%s9986_s2 + $0x410] ss:$8 sps:$4 sm:$0xff]  }
 0x19d   : > { %4907 = vmatmul.mubr.bf16.gmra.mxu1 %v7288_v57  ;;  %4952 = vmatpush2.bf16.msra.mxu0 %v7068_v60  ;;  %v8836_v60 = vpop.f32.mrf.mxu1  ;;  %v7086_v57 = vld [vmem:[%s9986_s2 + $0x380] ss:$8 sps:$4 sm:$0xff]  }
 0x19e   : > { %5009 = vmatpush1.bf16.msra.mxu1 %v7071_v4  ;;  %4953 = vmatprep.subr.bf16.mxu0 %v7076_v8  ;;  %10002 = vst [vmem:[#allocation7_spill] sm:$0xff] %v8836_v60  ;;  %v7088_v4 = vld [vmem:[%s9986_s2 + $0x384] ss:$8 sps:$4 sm:$0xff]  }
 0x19f   : > { %5010 = vmatprep.subr.bf16.mxu1 %v7079_v5  ;;  %4916 = vmatprep.mubr.bf16.mxu1 %v7289_v44  ;;  %v7091_v8 = vld [vmem:[%s9986_s2 + $0x404] ss:$8 sps:$4 sm:$0xff]   ;;  %v7097_v44 = vld [vmem:[%s9986_s2 + $0x4f4] ss:$8 sps:$4 sm:$0xff]  }
 0x1a0   : > { %v7290_v5 = vld [vmem:[%s7531_s30 + $0x1a8] ss:$68 sps:$4 sm:$0xff]  }
 0x1a1   : > { %4954 = vmatpush2.bf16.msra.mxu0 %v7074_v24  ;;  %v7089_v24 = vld [vmem:[%s9986_s2 + $0x400] ss:$8 sps:$4 sm:$0xff]  }
 0x1a2   : > { %5011 = vmatpush1.bf16.msra.mxu1 %v7077_v63  ;;  %4955 = vmatprep.subr.bf16.mxu0 %v7082_v26  ;;  %v8851_v63 = vpop.f32.mrf.mxu0  ;;  %v8853_v26 = vpop.f32.mrf.mxu1 }
 0x1a3   : > { %5012 = vmatprep.subr.bf16.mxu1 %v7085_v41  ;;  %10003 = vst [vmem:[#allocation8_spill] sm:$0xff] %v8853_v26  ;;  %v7094_v41 = vld [vmem:[%s9986_s2 + $0x574] ss:$8 sps:$4 sm:$0xff]  }
 0x1a5   : > { %4917 = vmatmul.mubr.bf16.gmra.mxu1 %v7290_v5  ;;  %4956 = vmatpush2.bf16.msra.mxu0 %v7080_v48  ;;  %v7291_v48 = vld [vmem:[%s7531_s30 + $0x24] ss:$68 sps:$4 sm:$0xff]   ;;  %v8870_v5 = vpop.f32.mrf.mxu1 }
 0x1a6   : > { %5013 = vmatpush1.bf16.msra.mxu1 %v7083_v50  ;;  %4957 = vmatprep.subr.bf16.mxu0 %v7088_v4  ;;  %v7092_v50 = vld [vmem:[%s9986_s2 + $0x570] ss:$8 sps:$4 sm:$0xff]   ;;  %10005 = vst [vmem:[#allocation10_spill] sm:$0xff] %v8870_v5 }
 0x1a7   : > { %5014 = vmatprep.subr.bf16.mxu1 %v7091_v8  ;;  %5032 = vmatprep.mubr.bf16.mxu1 %v7291_v48  ;;  %v7095_v4 = vld [vmem:[%s9986_s2 + $0x4f0] ss:$8 sps:$4 sm:$0xff]   ;;  %v8868_v8 = vpop.f32.mrf.mxu0  ;;  %v8887_v10 = vpop.f32.mrf.mxu1 }
 0x1a8   : > { %10004 = vst [vmem:[#allocation9_spill] sm:$0xff] %v8868_v8  ;;  %v7292_v48 = vld [vmem:[%s7531_s30 + $0x18] ss:$68 sps:$4 sm:$0xff]   ;;  %10007 = vst [vmem:[#allocation12_spill] sm:$0xff] %v8887_v10  ;;  %v7302_v8 = vld [vmem:[%s7531_s30 + $0xa8] ss:$68 sps:$4 sm:$0xff]  }
 0x1a9   : > { %4958 = vmatpush2.bf16.msra.mxu0 %v7086_v57  ;;  %v7100_v57 = vld [vmem:[%s9986_s2 + $0x564] ss:$8 sps:$4 sm:$0xff]   ;;  %v7104_v5 = vld [vmem:[%s9986_s2 + $0x550] ss:$8 sps:$4 sm:$0xff]   ;;  %v8904_v10 = vpop.f32.mrf.mxu1 }
 0x1aa   : > { %5015 = vmatpush1.bf16.msra.mxu1 %v7089_v24  ;;  %5073 = vmatprep.subr.bf16.mxu0 %v7094_v41  ;;  %v7103_v24 = vld [vmem:[%s9986_s2 + $0x4e4] ss:$8 sps:$4 sm:$0xff]   ;;  %v7101_v41 = vld [vmem:[%s9986_s2 + $0x4e0] ss:$8 sps:$4 sm:$0xff]   ;;  %10009 = vst [vmem:[#allocation14_spill] sm:$0xff] %v8904_v10 }
 0x1ab   : > { %5016 = vmatprep.subr.bf16.mxu1 %v7097_v44  ;;  %v8885_v44 = vpop.f32.mrf.mxu0  ;;  %v8921_v10 = vpop.f32.mrf.mxu1 }
 0x1ac   : > { %4960 = vmatmul.mubr.bf16.vlgmr.msra.gmra.mxu0 %v7292_v48  ;;  %10006 = vst [vmem:[#allocation11_spill] sm:$0xff] %v8885_v44  ;;  %v7293_v48 = vld [vmem:[%s7531_s30 + $0xa4] ss:$68 sps:$4 sm:$0xff]   ;;  %10011 = vst [vmem:[#allocation16_spill] sm:$0xff] %v8921_v10 }
 0x1ad   : > { %5074 = vmatpush1.bf16.msra.mxu0 %v7092_v50  ;;  %v7106_v50 = vld [vmem:[%s9986_s2 + $0x554] ss:$8 sps:$4 sm:$0xff]   ;;  %4969 = vmatprep.mubr.bf16.mxu0 %v7293_v48  ;;  %v7294_v48 = vld [vmem:[%s7531_s30 + $0xa0] ss:$68 sps:$4 sm:$0xff]   ;;  %v8938_v10 = vpop.f32.mrf.mxu1 }
 0x1ae   : > { %5017 = vmatpush2.bf16.msra.mxu1 %v7095_v4  ;;  %5075 = vmatprep.subr.bf16.mxu0 %v7100_v57  ;;  %v7109_v4 = vld [vmem:[%s9986_s2 + $0x4d4] ss:$8 sps:$4 sm:$0xff]   ;;  %v7107_v57 = vld [vmem:[%s9986_s2 + $0x4d0] ss:$8 sps:$4 sm:$0xff]   ;;  %10013 = vst [vmem:[#allocation18_spill] sm:$0xff] %v8938_v10 }
 0x1af   : > { %5018 = vmatprep.subr.bf16.mxu1 %v7103_v24  ;;  %v8902_v24 = vpop.f32.mrf.mxu0  ;;  %v8955_v10 = vpop.f32.mrf.mxu1 }
 0x1b0   : > { %10008 = vst [vmem:[#allocation13_spill] sm:$0xff] %v8902_v24  ;;  %v7110_v24 = vld [vmem:[%s9986_s2 + $0x540] ss:$8 sps:$4 sm:$0xff]   ;;  %10015 = vst [vmem:[#allocation20_spill] sm:$0xff] %v8955_v10 }
 0x1b1   : > { %5076 = vmatpush1.bf16.msra.mxu0 %v7098_v56  ;;  %v7112_v56 = vld [vmem:[%s9986_s2 + $0x544] ss:$8 sps:$4 sm:$0xff]   ;;  %v8972_v10 = vpop.f32.mrf.mxu1 }
 0x1b2   : > { %5019 = vmatpush2.bf16.msra.mxu1 %v7101_v41  ;;  %5077 = vmatprep.subr.bf16.mxu0 %v7106_v50  ;;  %v7115_v41 = vld [vmem:[%s9986_s2 + $0x4c4] ss:$8 sps:$4 sm:$0xff]   ;;  %v7113_v50 = vld [vmem:[%s9986_s2 + $0x4c0] ss:$8 sps:$4 sm:$0xff]   ;;  %10017 = vst [vmem:[#allocation22_spill] sm:$0xff] %v8972_v10 }
 0x1b3   : > { %5020 = vmatprep.subr.bf16.mxu1 %v7109_v4  ;;  %v8919_v4 = vpop.f32.mrf.mxu0  ;;  %v8989_v10 = vpop.f32.mrf.mxu1 }
 0x1b4   : > { %4970 = vmatmul.mubr.bf16.gmra.mxu0 %v7294_v48  ;;  %10010 = vst [vmem:[#allocation15_spill] sm:$0xff] %v8919_v4  ;;  %v7295_v48 = vld [vmem:[%s7531_s30 + $0x12c] ss:$68 sps:$4 sm:$0xff]   ;;  %10019 = vst [vmem:[#allocation24_spill] sm:$0xff] %v8989_v10 }
 0x1b5   : > { %5078 = vmatpush1.bf16.msra.mxu0 %v7104_v5  ;;  %v7118_v5 = vld [vmem:[%s9986_s2 + $0x534] ss:$8 sps:$4 sm:$0xff]   ;;  %4979 = vmatprep.mubr.bf16.mxu0 %v7295_v48  ;;  %v7116_v4 = vld [vmem:[%s9986_s2 + $0x530] ss:$8 sps:$4 sm:$0xff]   ;;  %v7296_v48 = vld [vmem:[%s7531_s30 + $0x128] ss:$68 sps:$4 sm:$0xff]   ;;  %v9006_v10 = vpop.f32.mrf.mxu1 }
 0x1b6   : > { %5021 = vmatpush2.bf16.msra.mxu1 %v7107_v57  ;;  %5079 = vmatprep.subr.bf16.mxu0 %v7112_v56  ;;  %v7121_v57 = vld [vmem:[%s9986_s2 + $0x4b4] ss:$8 sps:$4 sm:$0xff]   ;;  %v7119_v56 = vld [vmem:[%s9986_s2 + $0x4b0] ss:$8 sps:$4 sm:$0xff]   ;;  %10021 = vst [vmem:[#allocation26_spill] sm:$0xff] %v9006_v10 }
 0x1b7   : > { %5022 = vmatprep.subr.bf16.mxu1 %v7115_v41  ;;  %v8936_v41 = vpop.f32.mrf.mxu0 }
 0x1b8   : > { %10012 = vst [vmem:[#allocation17_spill] sm:$0xff] %v8936_v41  ;;  %v7122_v41 = vld [vmem:[%s9986_s2 + $0x520] ss:$8 sps:$4 sm:$0xff]  }
 0x1b9   : > { %5080 = vmatpush1.bf16.msra.mxu0 %v7110_v24  ;;  %v7124_v24 = vld [vmem:[%s9986_s2 + $0x524] ss:$8 sps:$4 sm:$0xff]  }
 0x1ba   : > { %5023 = vmatpush2.bf16.msra.mxu1 %v7113_v50  ;;  %5081 = vmatprep.subr.bf16.mxu0 %v7118_v5  ;;  %v7127_v50 = vld [vmem:[%s9986_s2 + $0x4a4] ss:$8 sps:$4 sm:$0xff]   ;;  %v7125_v5 = vld [vmem:[%s9986_s2 + $0x4a0] ss:$8 sps:$4 sm:$0xff]  }
 0x1bb   : > { %5024 = vmatprep.subr.bf16.mxu1 %v7121_v57  ;;  %v8953_v57 = vpop.f32.mrf.mxu0 }
 0x1bc   : > { %4980 = vmatmul.mubr.bf16.gmra.mxu0 %v7296_v48  ;;  %10014 = vst [vmem:[#allocation19_spill] sm:$0xff] %v8953_v57  ;;  %v7297_v48 = vld [vmem:[%s7531_s30 + $0x1b4] ss:$68 sps:$4 sm:$0xff]  }
 0x1bd   : > { %5082 = vmatpush1.bf16.msra.mxu0 %v7116_v4  ;;  %v7130_v4 = vld [vmem:[%s9986_s2 + $0x514] ss:$8 sps:$4 sm:$0xff]   ;;  %4989 = vmatprep.mubr.bf16.mxu0 %v7297_v48  ;;  %v7128_v57 = vld [vmem:[%s9986_s2 + $0x510] ss:$8 sps:$4 sm:$0xff]  }
 0x1be   : > { %5025 = vmatpush2.bf16.msra.mxu1 %v7119_v56  ;;  %5083 = vmatprep.subr.bf16.mxu0 %v7124_v24  ;;  %v7133_v56 = vld [vmem:[%s9986_s2 + $0x494] ss:$8 sps:$4 sm:$0xff]   ;;  %v7131_v24 = vld [vmem:[%s9986_s2 + $0x490] ss:$8 sps:$4 sm:$0xff]  }
 0x1bf   : > { %5026 = vmatprep.subr.bf16.mxu1 %v7127_v50  ;;  %v8970_v50 = vpop.f32.mrf.mxu0  ;;  %v7298_v48 = vld [vmem:[%s7531_s30 + $0x1b0] ss:$68 sps:$4 sm:$0xff]  }
 0x1c0   : > { %10016 = vst [vmem:[#allocation21_spill] sm:$0xff] %v8970_v50  ;;  %v7134_v50 = vld [vmem:[%s9986_s2 + $0x500] ss:$8 sps:$4 sm:$0xff]  }
 0x1c1   : > { %5084 = vmatpush1.bf16.msra.mxu0 %v7122_v41  ;;  %v7136_v41 = vld [vmem:[%s9986_s2 + $0x504] ss:$8 sps:$4 sm:$0xff]  }
 0x1c2   : > { %5027 = vmatpush2.bf16.msra.mxu1 %v7125_v5  ;;  %5085 = vmatprep.subr.bf16.mxu0 %v7130_v4  ;;  %v7139_v5 = vld [vmem:[%s9986_s2 + $0x484] ss:$8 sps:$4 sm:$0xff]   ;;  %v7137_v4 = vld [vmem:[%s9986_s2 + $0x480] ss:$8 sps:$4 sm:$0xff]  }
 0x1c3   : > { %5028 = vmatprep.subr.bf16.mxu1 %v7133_v56  ;;  %v8987_v56 = vpop.f32.mrf.mxu0 }
 0x1c4   : > { %4990 = vmatmul.mubr.bf16.gmra.mxu0 %v7298_v48  ;;  %10018 = vst [vmem:[#allocation23_spill] sm:$0xff] %v8987_v56  ;;  %v7142_v48 = vld [vmem:[%s9986_s2 + $0x5f4] ss:$8 sps:$4 sm:$0xff]   ;;  %v7140_v56 = vld [vmem:[%s9986_s2 + $0x5f0] ss:$8 sps:$4 sm:$0xff]  }
 0x1c5   : > { %5086 = vmatpush1.bf16.msra.mxu0 %v7128_v57  ;;  %v7145_v57 = vld [vmem:[%s9986_s2 + $0x674] ss:$8 sps:$4 sm:$0xff]  }
 0x1c6   : > { %5029 = vmatpush2.bf16.msra.mxu1 %v7131_v24  ;;  %5087 = vmatprep.subr.bf16.mxu0 %v7136_v41  ;;  %v7299_v24 = vld [vmem:[%s7531_s30 + $0x2c] ss:$68 sps:$4 sm:$0xff]  }
 0x1c7   : > { %5030 = vmatprep.subr.bf16.mxu1 %v7139_v5  ;;  %5105 = vmatprep.mubr.bf16.mxu0 %v7299_v24  ;;  %v7143_v41 = vld [vmem:[%s9986_s2 + $0x670] ss:$8 sps:$4 sm:$0xff]   ;;  %v9004_v5 = vpop.f32.mrf.mxu0 }
 0x1c8   : > { %10020 = vst [vmem:[#allocation25_spill] sm:$0xff] %v9004_v5  ;;  %v7154_v5 = vld [vmem:[%s9986_s2 + $0x5d4] ss:$8 sps:$4 sm:$0xff]  }
 0x1c9   : > { %5088 = vmatpush1.bf16.msra.mxu0 %v7134_v50  ;;  %v7148_v50 = vld [vmem:[%s9986_s2 + $0x5e4] ss:$8 sps:$4 sm:$0xff]  }
 0x1ca   : > { %5031 = vmatpush2.bf16.msra.mxu1 %v7137_v4  ;;  %5089 = vmatprep.subr.bf16.mxu0 %v7142_v48  ;;  %v7151_v4 = vld [vmem:[%s9986_s2 + $0x664] ss:$8 sps:$4 sm:$0xff]   ;;  %v7146_v48 = vld [vmem:[%s9986_s2 + $0x5e0] ss:$8 sps:$4 sm:$0xff]  }
 0x1cb   : > { %5146 = vmatprep.subr.bf16.mxu1 %v7145_v57  ;;  %v7149_v57 = vld [vmem:[%s9986_s2 + $0x660] ss:$8 sps:$4 sm:$0xff]  }
 0x1cc   : > { %v9014_v24 = vpop.f32.mrf.mxu0 }
 0x1cd   : > { %v9016_v61 = vpop.f32.mrf.mxu1  ;;  %5033 = vmatmul.mubr.bf16.vlgmr.msra.gmra.mxu1 %v7300_v27  ;;  %5090 = vmatpush2.bf16.msra.mxu0 %v7140_v56  ;;  %v7157_v27 = vld [vmem:[%s9986_s2 + $0x654] ss:$8 sps:$4 sm:$0xff]   ;;  %v7301_v56 = vld [vmem:[%s7531_s30 + $0xac] ss:$68 sps:$4 sm:$0xff]  }
 0x1ce   : > { %5147 = vmatpush1.bf16.msra.mxu1 %v7143_v41  ;;  %v9025_v10 = vpop.f32.mrf.mxu0  ;;  %5091 = vmatprep.subr.bf16.mxu0 %v7148_v50  ;;  %v7152_v50 = vld [vmem:[%s9986_s2 + $0x5d0] ss:$8 sps:$4 sm:$0xff]  }
 0x1cf   : > { %5148 = vmatprep.subr.bf16.mxu1 %v7151_v4  ;;  %5042 = vmatprep.mubr.bf16.mxu1 %v7301_v56  ;;  %v9034_v41 = vpop.f32.mrf.mxu1  ;;  %v7155_v4 = vld [vmem:[%s9986_s2 + $0x650] ss:$8 sps:$4 sm:$0xff]   ;;  %v7160_v56 = vld [vmem:[%s9986_s2 + $0x5c4] ss:$8 sps:$4 sm:$0xff]  }
 0x1d0   : > { %v9036_v44 = vpop.f32.mrf.mxu0 }
 0x1d1   : > { %5092 = vmatpush2.bf16.msra.mxu0 %v7146_v48  ;;  %v7163_v48 = vld [vmem:[%s9986_s2 + $0x644] ss:$8 sps:$4 sm:$0xff]  }
 0x1d2   : > { %5149 = vmatpush1.bf16.msra.mxu1 %v7149_v57  ;;  %v9044_v26 = vpop.f32.mrf.mxu0  ;;  %5093 = vmatprep.subr.bf16.mxu0 %v7154_v5  ;;  %v9052_v57 = vpop.f32.mrf.mxu1  ;;  %v7158_v5 = vld [vmem:[%s9986_s2 + $0x5c0] ss:$8 sps:$4 sm:$0xff]  }
 0x1d3   : > { %5150 = vmatprep.subr.bf16.mxu1 %v7157_v27  ;;  %10022 = vst [vmem:[#allocation27_spill] sm:$0xff] %v9052_v57  ;;  %v7161_v27 = vld [vmem:[%s9986_s2 + $0x640] ss:$8 sps:$4 sm:$0xff]  }
 0x1d4   : > { %v9054_v43 = vpop.f32.mrf.mxu0 }
 0x1d5   : > { %10023 = vst [vmem:[#allocation28_spill] sm:$0xff] %v9054_v43  ;;  %5043 = vmatmul.mubr.bf16.gmra.mxu1 %v7302_v8  ;;  %5094 = vmatpush2.bf16.msra.mxu0 %v7152_v50  ;;  %v7166_v43 = vld [vmem:[%s9986_s2 + $0x5b4] ss:$8 sps:$4 sm:$0xff]  }
 0x1d6   : > { %5151 = vmatpush1.bf16.msra.mxu1 %v7155_v4  ;;  %v9063_v60 = vpop.f32.mrf.mxu0  ;;  %5095 = vmatprep.subr.bf16.mxu0 %v7160_v56  ;;  %v7169_v8 = vld [vmem:[%s9986_s2 + $0x634] ss:$8 sps:$4 sm:$0xff]   ;;  %v9072_v4 = vpop.f32.mrf.mxu1  ;;  %v7164_v56 = vld [vmem:[%s9986_s2 + $0x5b0] ss:$8 sps:$4 sm:$0xff]  }
 0x1d7   : > { %10024 = vst [vmem:[#allocation29_spill] sm:$0xff] %v9063_v60  ;;  %5152 = vmatprep.subr.bf16.mxu1 %v7163_v48  ;;  %v7303_v50 = vld [vmem:[%s7531_s30 + $0x134] ss:$68 sps:$4 sm:$0xff]   ;;  %10025 = vst [vmem:[#allocation30_spill] sm:$0xff] %v9072_v4 }
 0x1d8   : > { %5052 = vmatprep.mubr.bf16.mxu1 %v7303_v50  ;;  %v9074_v57 = vpop.f32.mrf.mxu0  ;;  %v7167_v48 = vld [vmem:[%s9986_s2 + $0x630] ss:$8 sps:$4 sm:$0xff]   ;;  %v9082_v60 = vpop.f32.mrf.mxu1  ;;  %v7172_v50 = vld [vmem:[%s9986_s2 + $0x5a4] ss:$8 sps:$4 sm:$0xff]  }
 0x1d9   : > { %10026 = vst [vmem:[#allocation31_spill] sm:$0xff] %v9074_v57  ;;  %5096 = vmatpush2.bf16.msra.mxu0 %v7158_v5  ;;  %10027 = vst [vmem:[#allocation32_spill] sm:$0xff] %v9082_v60  ;;  %v7175_v5 = vld [vmem:[%s9986_s2 + $0x624] ss:$8 sps:$4 sm:$0xff]   ;;  %v7304_v57 = vld [vmem:[%s7531_s30 + $0x130] ss:$68 sps:$4 sm:$0xff]  }
 0x1da   : > { %5153 = vmatpush1.bf16.msra.mxu1 %v7161_v27  ;;  %v9084_v32 = vpop.f32.mrf.mxu0  ;;  %5097 = vmatprep.subr.bf16.mxu0 %v7166_v43  ;;  %v7170_v43 = vld [vmem:[%s9986_s2 + $0x5a0] ss:$8 sps:$4 sm:$0xff]  }
 0x1db   : > { %10028 = vst [vmem:[#allocation33_spill] sm:$0xff] %v9084_v32  ;;  %5154 = vmatprep.subr.bf16.mxu1 %v7169_v8  ;;  %v7173_v8 = vld [vmem:[%s9986_s2 + $0x620] ss:$8 sps:$4 sm:$0xff]   ;;  %v9101_v32 = vpop.f32.mrf.mxu1 }
 0x1dc   : > { %v9092_v27 = vpop.f32.mrf.mxu0  ;;  %10030 = vst [vmem:[#allocation35_spill] sm:$0xff] %v9101_v32  ;;  %v7176_v32 = vld [vmem:[%s9986_s2 + $0x590] ss:$8 sps:$4 sm:$0xff]  }
 0x1dd   : > { %10029 = vst [vmem:[#allocation34_spill] sm:$0xff] %v9092_v27  ;;  %5053 = vmatmul.mubr.bf16.gmra.mxu1 %v7304_v57  ;;  %5098 = vmatpush2.bf16.msra.mxu0 %v7164_v56  ;;  %v7178_v57 = vld [vmem:[%s9986_s2 + $0x594] ss:$8 sps:$4 sm:$0xff]  }
 0x1de   : > { %5155 = vmatpush1.bf16.msra.mxu1 %v7167_v48  ;;  %v9103_v60 = vpop.f32.mrf.mxu0  ;;  %5099 = vmatprep.subr.bf16.mxu0 %v7172_v50  ;;  %v7181_v56 = vld [vmem:[%s9986_s2 + $0x614] ss:$8 sps:$4 sm:$0xff]   ;;  %v2400_v48 = vadd.f32 %v8267_v15, %v8265_v14  ;;  %v2542_v50 = vadd.f32 %v8517_v20, %v8473_v9  ;;  %v7179_v14 = vld [vmem:[%s9986_s2 + $0x610] ss:$8 sps:$4 sm:$0xff]   ;;  %v2410_v15 = vadd.f32 %v8294_v35, %v8292_v34  ;;  %v7184_v9 = vld [vmem:[%s9986_s2 + $0x584] ss:$8 sps:$4 sm:$0xff]  }
 0x1df   : > { %10031 = vst [vmem:[#allocation36_spill] sm:$0xff] %v9103_v60  ;;  %5156 = vmatprep.subr.bf16.mxu1 %v7175_v5  ;;  %v7305_v27 = vld [vmem:[%s7531_s30 + $0x1bc] ss:$68 sps:$4 sm:$0xff]   ;;  %v2540_v60 = vadd.f32 %v8495_v21, %v8464_v3  ;;  %v9129_v3 = vpop.f32.mrf.mxu1  ;;  %v2544_v20 = vadd.f32 %v8536_v42, %v8483_v16  ;;  %v9159_v42 = vadd.f32 %v8488_v17, %v8451_v59 }
 0x1e0   : > { %5062 = vmatprep.mubr.bf16.mxu1 %v7305_v27  ;;  %v9114_v4 = vpop.f32.mrf.mxu0  ;;  %v2473_v5 = vadd.f32 %v8490_v18, %v2400_v48  ;;  %v7187_v18 = vld [vmem:[%s9986_s2 + $0x604] ss:$8 sps:$4 sm:$0xff]   ;;  %v2615_v34 = vadd.f32 %v8766_v29, %v2542_v50  ;;  %v2483_v35 = vadd.f32 %v8531_v40, %v2410_v15  ;;  %v7182_v16 = vld [vmem:[%s9986_s2 + $0x580] ss:$8 sps:$4 sm:$0xff]   ;;  %v7307_v29 = vld [vmem:[%s7531_s30 + $0x34] ss:$68 sps:$4 sm:$0xff]  }
 0x1e1   : > { %5100 = vmatpush2.bf16.msra.mxu0 %v7170_v43  ;;  %v2613_v27 = vadd.f32 %v8749_v11, %v2540_v60  ;;  %v2617_v48 = vadd.f32 %v8783_v46, %v2544_v20  ;;  %v7185_v40 = vld [vmem:[%s9986_s2 + $0x600] ss:$8 sps:$4 sm:$0xff]   ;;  %v7193_v11 = vld [vmem:[%s9986_s2 + $0x6f4] ss:$8 sps:$4 sm:$0xff]   ;;  %v2552_v46 = vadd.f32 %v8592_v13, %v8514_v30  ;;  %v2554_v60 = vadd.f32 %v8613_v28, %v8526_v38  ;;  %v7188_v30 = vld [vmem:[%s9986_s2 + $0x770] ss:$8 sps:$4 sm:$0xff]  }
 0x1e2   : > { %5157 = vmatpush1.bf16.msra.mxu1 %v7173_v8  ;;  %v9131_v21 = vpop.f32.mrf.mxu0  ;;  %5101 = vmatprep.subr.bf16.mxu0 %v7178_v57  ;;  %v7306_v8 = vld [vmem:[%s7531_s30 + $0x1b8] ss:$68 sps:$4 sm:$0xff]   ;;  %v2420_v57 = vadd.f32 %v8318_v52, %v8316_v51  ;;  %v2550_v51 = vadd.f32 %v8572_v1, %v8505_v25  ;;  %v9163_v52 = vpop.f32.mrf.mxu1  ;;  %v2688_v25 = vadd.f32 %v8774_v36, %v2615_v34 }
 0x1e3   : > { %5158 = vmatprep.subr.bf16.mxu1 %v7181_v56  ;;  %v2546_v56 = vadd.f32 %v8558_v39, %v2473_v5  ;;  %v2686_v17 = vadd.f32 %v8758_v23, %v2613_v27  ;;  %v2556_v50 = vadd.f32 %v8628_v37, %v2483_v35  ;;  %v7191_v38 = vld [vmem:[%s9986_s2 + $0x6f0] ss:$8 sps:$4 sm:$0xff]   ;;  %v2560_v13 = vadd.f32 %v8640_v45, %v8546_v47  ;;  %v7199_v47 = vld [vmem:[%s9986_s2 + $0x6e4] ss:$8 sps:$4 sm:$0xff]   ;;  %v7202_v27 = vld [vmem:[%s9986_s2 + $0x754] ss:$8 sps:$4 sm:$0xff]  }
 0x1e4   : > { %v9144_v43 = vpop.f32.mrf.mxu0  ;;  %v2493_v59 = vadd.f32 %v8574_v2, %v2420_v57  ;;  %v2623_v5 = vadd.f32 %v8817_v31, %v2550_v51  ;;  %v2690_v2 = vadd.f32 %v8792_v55, %v2617_v48  ;;  %v2761_v36 = vadd.f32 %v9025_v10, %v2688_v25  ;;  %v9200_v10 = vpop.f32.mrf.mxu1  ;;  %v7205_v34 = vld [vmem:[%s9986_s2 + $0x6d4] ss:$8 sps:$4 sm:$0xff]  }
 0x1e5   : > { %5063 = vmatmul.mubr.bf16.gmra.mxu1 %v7306_v8  ;;  %5102 = vmatpush2.bf16.msra.mxu0 %v7176_v32  ;;  %v7190_v32 = vld [vmem:[%s9986_s2 + $0x774] ss:$8 sps:$4 sm:$0xff]   ;;  %v2619_v1 = vadd.f32 %v8800_v6, %v2546_v56  ;;  %v2759_v23 = vadd.f32 %v9014_v24, %v2686_v17  ;;  %v2562_v28 = vadd.f32 %v8655_v58, %v8555_v54  ;;  %v7196_v6 = vld [vmem:[%s9986_s2 + $0x764] ss:$8 sps:$4 sm:$0xff]  }
 0x1e6   : > { %5159 = vmatpush1.bf16.msra.mxu1 %v7179_v14  ;;  %v9165_v39 = vpop.f32.mrf.mxu0  ;;  %5103 = vmatprep.subr.bf16.mxu0 %v7184_v9  ;;  %v2625_v37 = vadd.f32 %v8834_v53, %v2552_v46  ;;  %v9212_v45 = vadd.f32 %v8670_v49, %v8567_v62  ;;  %v9215_v54 = vadd.f32 %v8688_v22, %v2493_v59  ;;  %v7308_v9 = vld [vmem:[%s7531_s30 + $0x28] ss:$68 sps:$4 sm:$0xff]   ;;  %v10036_v8 = vld [vmem:[#allocation28_spill] sm:$0xff]  ;;  %v10040_v25 = vld [vmem:[#allocation29_spill] sm:$0xff] }
 0x1e7   : > { %5160 = vmatprep.subr.bf16.mxu1 %v7187_v18  ;;  %5178 = vmatprep.mubr.bf16.mxu1 %v7307_v29  ;;  %v2692_v58 = vadd.f32 %v8808_v19, %v2619_v1  ;;  %v2763_v31 = vadd.f32 %v9036_v44, %v2690_v2  ;;  %v9221_v53 = vadd.f32 %v8703_v7, %v8587_v0  ;;  %v7194_v0 = vld [vmem:[%s9986_s2 + $0x760] ss:$8 sps:$4 sm:$0xff]   ;;  %v9242_v18 = vpop.f32.mrf.mxu1  ;;  %v7200_v2 = vld [vmem:[%s9986_s2 + $0x750] ss:$8 sps:$4 sm:$0xff]  }
 0x1e8   : > { %v9184_v14 = vpop.f32.mrf.mxu0  ;;  %v2696_v24 = vadd.f32 %v8819_v33, %v2623_v5  ;;  %v2627_v15 = vadd.f32 %v8851_v63, %v2554_v60  ;;  %v2832_v49 = vadd.f32 %v9016_v61, %v2759_v23  ;;  %v2834_v22 = vadd.f32 %v9034_v41, %v2761_v36  ;;  %v7197_v7 = vld [vmem:[%s9986_s2 + $0x6e0] ss:$8 sps:$4 sm:$0xff]   ;;  %v7203_v23 = vld [vmem:[%s9986_s2 + $0x6d0] ss:$8 sps:$4 sm:$0xff]  }
 0x1e9   : > { %5104 = vmatpush2.bf16.msra.mxu0 %v7182_v16  ;;  %v2765_v19 = vadd.f32 %v9044_v26, %v2692_v58  ;;  %v10032_v33 = vld [vmem:[#allocation3_spill] sm:$0xff]  ;;  %v10034_v26 = vld [vmem:[#allocation9_spill] sm:$0xff]  ;;  %v10043_v46 = vld [vmem:[#allocation30_spill] sm:$0xff]  ;;  %v9294_v58 = vpop.f32.mrf.mxu1 }
 0x1ea   : > { %5161 = vmatpush1.bf16.msra.mxu1 %v7185_v40  ;;  %v9202_v55 = vpop.f32.mrf.mxu0  ;;  %5219 = vmatprep.subr.bf16.mxu0 %v7190_v32  ;;  %v9238_v61 = vadd.f32 %v10032_v33, %v8598_v12  ;;  %v10033_v63 = vld [vmem:[#allocation7_spill] sm:$0xff]  ;;  %v2629_v41 = vadd.f32 %v10034_v26, %v2556_v50  ;;  %v2769_v57 = vadd.f32 %v10036_v8, %v2696_v24  ;;  %v7309_v16 = vld [vmem:[%s7531_s30 + $0xb4] ss:$68 sps:$4 sm:$0xff]   ;;  %v10044_v36 = vld [vmem:[#allocation2_spill] sm:$0xff] }
 0x1eb   : > { %5162 = vmatprep.subr.bf16.mxu1 %v7193_v11  ;;  %v2698_v44 = vadd.f32 %v10033_v63, %v2625_v37  ;;  %v10035_v12 = vld [vmem:[#allocation27_spill] sm:$0xff]  ;;  %v10037_v40 = vld [vmem:[#allocation5_spill] sm:$0xff]  ;;  %v10038_v32 = vld [vmem:[#allocation8_spill] sm:$0xff]  ;;  %v2838_v60 = vadd.f32 %v10043_v46, %v2765_v19 }
 0x1ec   : > { %5106 = vmatmul.mubr.bf16.vlgmr.msra.gmra.mxu0 %v7308_v9  ;;  %v2904_v62 = vpop.f32.mrf.mxu0  ;;  %v2836_v35 = vadd.f32 %v10035_v12, %v2763_v31  ;;  %v9259_v51 = vadd.f32 %v10037_v40, %v9159_v42  ;;  %v2700_v11 = vadd.f32 %v10038_v32, %v2627_v15  ;;  %v10039_v59 = vld [vmem:[#allocation11_spill] sm:$0xff]  ;;  %v10048_v9 = vld [vmem:[#allocation10_spill] sm:$0xff]  ;;  %v10055_v32 = vld [vmem:[#allocation17_spill] sm:$0xff] }
 0x1ed   : > { %5220 = vmatpush1.bf16.msra.mxu0 %v7188_v30  ;;  %v9252_v56 = vadd.f32 %v2904_v62, %v2832_v49  ;;  %5115 = vmatprep.mubr.bf16.mxu0 %v7309_v16  ;;  %v2633_v17 = vadd.f32 %v10039_v59, %v2560_v13  ;;  %v2771_v1 = vadd.f32 %v10040_v25, %v2698_v44  ;;  %v10045_v30 = vld [vmem:[#allocation4_spill] sm:$0xff]  ;;  %v10046_v13 = vld [vmem:[#allocation13_spill] sm:$0xff]  ;;  %v7208_v24 = vld [vmem:[%s9986_s2 + $0x744] ss:$8 sps:$4 sm:$0xff]  }
 0x1ee   : > { %5163 = vmatpush2.bf16.msra.mxu1 %v7191_v38  ;;  %v2906_v20 = vpop.f32.mrf.mxu0  ;;  %5221 = vmatprep.subr.bf16.mxu0 %v7196_v6  ;;  %v9290_v38 = vadd.f32 %v10045_v30, %v10044_v36  ;;  %v2635_v37 = vadd.f32 %v10046_v13, %v2562_v28  ;;  %v10047_v6 = vld [vmem:[#allocation31_spill] sm:$0xff]  ;;  %v2702_v62 = vadd.f32 %v10048_v9, %v2629_v41  ;;  %v10049_v49 = vld [vmem:[#allocation32_spill] sm:$0xff]  ;;  %v10054_v16 = vld [vmem:[#allocation14_spill] sm:$0xff] }
 0x1ef   : > { %5164 = vmatprep.subr.bf16.mxu1 %v7199_v47  ;;  %v9254_v48 = vadd.f32 %v2906_v20, %v2834_v22  ;;  %v2773_v47 = vadd.f32 %v10047_v6, %v2700_v11  ;;  %v7211_v15 = vld [vmem:[%s9986_s2 + $0x6c4] ss:$8 sps:$4 sm:$0xff]   ;;  %v2842_v28 = vadd.f32 %v10049_v49, %v2769_v57  ;;  %v7310_v20 = vld [vmem:[%s7531_s30 + $0xb0] ss:$68 sps:$4 sm:$0xff]   ;;  %v7209_v57 = vld [vmem:[%s9986_s2 + $0x6c0] ss:$8 sps:$4 sm:$0xff]   ;;  %v2639_v11 = vadd.f32 %v10055_v32, %v9215_v54 }
 0x1f0   : > { %v2908_v42 = vpop.f32.mrf.mxu0  ;;  %v10051_v33 = vld [vmem:[#allocation15_spill] sm:$0xff]  ;;  %v2708_v40 = vadd.f32 %v10054_v16, %v2635_v37  ;;  %v10056_v46 = vld [vmem:[#allocation34_spill] sm:$0xff]  ;;  %v10059_v37 = vld [vmem:[#allocation36_spill] sm:$0xff] }
 0x1f1   : > { %v6359_v50 = vpack.c.bf16 %v9254_v48, %v9252_v56  ;;  %v9280_v5 = vadd.f32 %v2908_v42, %v2836_v35  ;;  %5222 = vmatpush1.bf16.msra.mxu0 %v7194_v0  ;;  %v10050_v0 = vld [vmem:[#allocation12_spill] sm:$0xff]  ;;  %v2637_v63 = vadd.f32 %v10051_v33, %v9212_v45  ;;  %v10052_v44 = vld [vmem:[#allocation35_spill] sm:$0xff]  ;;  %v2846_v59 = vadd.f32 %v9129_v3, %v2773_v47 }
 0x1f2   : > { %5165 = vmatpush2.bf16.msra.mxu1 %v7197_v7  ;;  %v2910_v31 = vpop.f32.mrf.mxu0  ;;  %5223 = vmatprep.subr.bf16.mxu0 %v7202_v27  ;;  %v2706_v7 = vadd.f32 %v10050_v0, %v2633_v17  ;;  %v2844_v26 = vadd.f32 %v10052_v44, %v2771_v1  ;;  %v10053_v27 = vld [vmem:[#allocation33_spill] sm:$0xff]  ;;  %v7206_v45 = vld [vmem:[%s9986_s2 + $0x740] ss:$8 sps:$4 sm:$0xff]   ;;  %v9333_v17 = vpop.f32.mrf.mxu1  ;;  %v3016_v54 = vsel %vm3015_vm4, %v9254_v48, 0.0  ;;  %v2781_v6 = vadd.f32 %v10059_v37, %v2708_v40  ;;  %v7220_v44 = vld [vmem:[%s9986_s2 + $0x724] ss:$8 sps:$4 sm:$0xff]  }
 0x1f3   : > { %5166 = vmatprep.subr.bf16.mxu1 %v7205_v34  ;;  %2994 = vst.msk [vmem:[%s9269_s17] sm:$0xff] %vm9273_vm3, %v6359_v50  ;;  %v3002_v22 = vadd.f32 %v9280_v5, %v9252_v56  ;;  %v9309_v19 = vadd.f32 %v2910_v31, %v2838_v60  ;;  %v2775_v34 = vadd.f32 %v10053_v27, %v2702_v62  ;;  %v7214_v1 = vld [vmem:[%s9986_s2 + $0x734] ss:$8 sps:$4 sm:$0xff]   ;;  %v10058_v30 = vld [vmem:[#allocation19_spill] sm:$0xff]  ;;  %v7215_v49 = vld [vmem:[%s9986_s2 + $0x6b0] ss:$8 sps:$4 sm:$0xff]  }
 0x1f4   : > { %5116 = vmatmul.mubr.bf16.gmra.mxu0 %v7310_v20  ;;  %v2914_v41 = vpop.f32.mrf.mxu0  ;;  %v7217_v42 = vld [vmem:[%s9986_s2 + $0x6b4] ss:$8 sps:$4 sm:$0xff]   ;;  %v2779_v60 = vadd.f32 %v10056_v46, %v2706_v7  ;;  %v2643_v13 = vadd.f32 %v10058_v30, %v9221_v53  ;;  %v7212_v53 = vld [vmem:[%s9986_s2 + $0x730] ss:$8 sps:$4 sm:$0xff]   ;;  %v2861_v7 = vpop.f32.mrf.mxu1  ;;  %v2854_v40 = vadd.f32 %v9242_v18, %v2781_v6  ;;  %v7218_v18 = vld [vmem:[%s9986_s2 + $0x720] ss:$8 sps:$4 sm:$0xff]  }
 0x1f5   : > { %v6360_v12 = vpack.c.bf16 %v9309_v19, %v9280_v5  ;;  %v3017_v35 = vsel %vm3015_vm4, %v9309_v19, 0.0  ;;  %v9321_v8 = vadd.f32 %v2914_v41, %v2842_v28  ;;  %5224 = vmatpush1.bf16.msra.mxu0 %v7200_v2  ;;  %v7311_v2 = vld [vmem:[%s7531_s30 + $0x13c] ss:$68 sps:$4 sm:$0xff]   ;;  %v10067_v37 = vld [vmem:[#allocation24_spill] sm:$0xff] }
 0x1f6   : > { %5167 = vmatpush2.bf16.msra.mxu1 %v7203_v23  ;;  %v2916_v25 = vpop.f32.mrf.mxu0  ;;  %5225 = vmatprep.subr.bf16.mxu0 %v7208_v24  ;;  %v10057_v23 = vld [vmem:[#allocation16_spill] sm:$0xff]  ;;  %v3018_v47 = vadd.f32 %v3017_v35, %v3016_v54  ;;  %v2848_v24 = vadd.f32 %v9163_v52, %v2775_v34  ;;  %v10060_v52 = vld [vmem:[#allocation18_spill] sm:$0xff]  ;;  %v2852_v20 = vadd.f32 %v9200_v10, %v2779_v60  ;;  %v7312_v10 = vld [vmem:[%s7531_s30 + $0x138] ss:$68 sps:$4 sm:$0xff]   ;;  %v2863_v46 = vpop.f32.mrf.mxu1 }
 0x1f7   : > { %5168 = vmatprep.subr.bf16.mxu1 %v7211_v15  ;;  %2995 = vst.msk [vmem:[%s9269_s17 + $0x8] sm:$0xff] %vm9273_vm3, %v6360_v12  ;;  %v3003_v3 = vadd.f32 %v3002_v22, %v9321_v8  ;;  %v9348_v50 = vadd.f32 %v2916_v25, %v2844_v26  ;;  %5125 = vmatprep.mubr.bf16.mxu0 %v7311_v2  ;;  %v10061_v22 = vld [vmem:[#allocation21_spill] sm:$0xff]  ;;  %v7223_v26 = vld [vmem:[%s9986_s2 + $0x6a4] ss:$8 sps:$4 sm:$0xff]   ;;  %v10063_v35 = vld [vmem:[#allocation20_spill] sm:$0xff] }
 0x1f8   : > { %v2710_v36 = vadd.f32 %v10057_v23, %v2637_v63  ;;  %v2918_v31 = vpop.f32.mrf.mxu0  ;;  %v2712_v28 = vadd.f32 %v10060_v52, %v2639_v11  ;;  %v2645_v0 = vadd.f32 %v10061_v22, %v9238_v61  ;;  %v10062_v34 = vld [vmem:[#allocation6_spill] sm:$0xff]  ;;  %v7226_v54 = vld [vmem:[%s9986_s2 + $0x714] ss:$8 sps:$4 sm:$0xff]   ;;  %v2865_v52 = vpop.f32.mrf.mxu1 }
 0x1f9   : > { %v6361_v15 = vpack.c.bf16 %v9348_v50, %v9321_v8  ;;  %v3019_v9 = vsel %vm3015_vm4, %v9348_v50, 0.0  ;;  %v9360_v62 = vadd.f32 %v2918_v31, %v2846_v59  ;;  %5226 = vmatpush1.bf16.msra.mxu0 %v7206_v45  ;;  %v2576_v12 = vadd.f32 %v10062_v34, %v9259_v51 }
 0x1fa   : > { %5169 = vmatpush2.bf16.msra.mxu1 %v7209_v57  ;;  %v3020_v33 = vadd.f32 %v3019_v9, %v3018_v47  ;;  %v2920_v63 = vpop.f32.mrf.mxu0  ;;  %5227 = vmatprep.subr.bf16.mxu0 %v7214_v1  ;;  %v2783_v41 = vadd.f32 %v9114_v4, %v2710_v36  ;;  %v2716_v45 = vadd.f32 %v10063_v35, %v2643_v13  ;;  %v10064_v57 = vld [vmem:[#allocation23_spill] sm:$0xff]  ;;  %v10066_v1 = vld [vmem:[#allocation25_spill] sm:$0xff] }
 0x1fb   : > { %5170 = vmatprep.subr.bf16.mxu1 %v7217_v42  ;;  %2996 = vst.msk [vmem:[%s9269_s17 + $0x10] sm:$0xff] %vm9273_vm3, %v6361_v15  ;;  %v3004_v61 = vadd.f32 %v3003_v3, %v9360_v62  ;;  %v9383_v27 = vadd.f32 %v2920_v63, %v2848_v24  ;;  %v2647_v16 = vadd.f32 %v10064_v57, %v9290_v38  ;;  %v10065_v38 = vld [vmem:[#allocation22_spill] sm:$0xff]  ;;  %v7229_v3 = vld [vmem:[%s9986_s2 + $0x694] ss:$8 sps:$4 sm:$0xff]  }
 0x1fc   : > { %5126 = vmatmul.mubr.bf16.gmra.mxu0 %v7312_v10  ;;  %v2924_v4 = vpop.f32.mrf.mxu0  ;;  %v2785_v32 = vadd.f32 %v9131_v21, %v2712_v28  ;;  %v7221_v21 = vld [vmem:[%s9986_s2 + $0x6a0] ss:$8 sps:$4 sm:$0xff]   ;;  %v2718_v25 = vadd.f32 %v10065_v38, %v2645_v0  ;;  %v2649_v42 = vadd.f32 %v10066_v1, %v2576_v12  ;;  %v2856_v2 = vadd.f32 %v9294_v58, %v2783_v41  ;;  %v7232_v0 = vld [vmem:[%s9986_s2 + $0x704] ss:$8 sps:$4 sm:$0xff]   ;;  %v7241_v10 = vld [vmem:[%s9986_s2 + $0x814] ss:$8 sps:$4 sm:$0xff]  }
 0x1fd   : > { %v6362_v11 = vpack.c.bf16 %v9383_v27, %v9360_v62  ;;  %v3021_v59 = vsel %vm3015_vm4, %v9383_v27, 0.0  ;;  %v9397_v51 = vadd.f32 %v2924_v4, %v2852_v20  ;;  %5228 = vmatpush1.bf16.msra.mxu0 %v7212_v53  ;;  %v2789_v23 = vadd.f32 %v9144_v43, %v2716_v45  ;;  %v7313_v13 = vld [vmem:[%s7531_s30 + $0x1c4] ss:$68 sps:$4 sm:$0xff]   ;;  %v7224_v53 = vld [vmem:[%s9986_s2 + $0x710] ss:$8 sps:$4 sm:$0xff]  }
 0x1fe   : > { %5171 = vmatpush2.bf16.msra.mxu1 %v7215_v49  ;;  %v2926_v60 = vpop.f32.mrf.mxu0  ;;  %5229 = vmatprep.subr.bf16.mxu0 %v7220_v44  ;;  %v2720_v6 = vadd.f32 %v10067_v37, %v2647_v16  ;;  %v2791_v47 = vadd.f32 %v9165_v39, %v2718_v25  ;;  %v3022_v31 = vadd.f32 %v3021_v59, %v3020_v33  ;;  %v7227_v39 = vld [vmem:[%s9986_s2 + $0x690] ss:$8 sps:$4 sm:$0xff]   ;;  %v7235_v33 = vld [vmem:[%s9986_s2 + $0x684] ss:$8 sps:$4 sm:$0xff]   ;;  %v7230_v45 = vld [vmem:[%s9986_s2 + $0x700] ss:$8 sps:$4 sm:$0xff]  }
 0x1ff   : > { %5172 = vmatprep.subr.bf16.mxu1 %v7223_v26  ;;  %2997 = vst.msk [vmem:[%s9269_s17 + $0x18] sm:$0xff] %vm9273_vm3, %v6362_v11  ;;  %v3005_v36 = vadd.f32 %v3004_v61, %v9397_v51  ;;  %v9419_v30 = vadd.f32 %v2926_v60, %v2854_v40  ;;  %5135 = vmatprep.mubr.bf16.mxu0 %v7313_v13  ;;  %v7314_v61 = vld [vmem:[%s7531_s30 + $0x1c0] ss:$68 sps:$4 sm:$0xff]   ;;  %v7238_v40 = vld [vmem:[%s9986_s2 + $0x7f4] ss:$8 sps:$4 sm:$0xff]  }
 0x200   : > { %v2928_v24 = vpop.f32.mrf.mxu0  ;;  %v2858_v15 = vadd.f32 %v9333_v17, %v2785_v32  ;;  %v10068_v17 = vld [vmem:[#allocation26_spill] sm:$0xff]  ;;  %v2862_v63 = vadd.f32 %v2861_v7, %v2789_v23  ;;  %v2793_v44 = vadd.f32 %v9184_v14, %v2720_v6  ;;  %v2864_v41 = vadd.f32 %v2863_v46, %v2791_v47  ;;  %v7236_v46 = vld [vmem:[%s9986_s2 + $0x7f0] ss:$8 sps:$4 sm:$0xff]  }
 0x201   : > { %v6363_v43 = vpack.c.bf16 %v9419_v30, %v9397_v51  ;;  %v3023_v58 = vsel %vm3015_vm4, %v9419_v30, 0.0  ;;  %v9429_v9 = vadd.f32 %v2928_v24, %v2856_v2  ;;  %5230 = vmatpush1.bf16.msra.mxu0 %v7218_v18  ;;  %v2722_v49 = vadd.f32 %v10068_v17, %v2649_v42  ;;  %v7233_v57 = vld [vmem:[%s9986_s2 + $0x680] ss:$8 sps:$4 sm:$0xff]   ;;  %v7239_v60 = vld [vmem:[%s9986_s2 + $0x810] ss:$8 sps:$4 sm:$0xff]  }
 0x202   : > { %5173 = vmatpush2.bf16.msra.mxu1 %v7221_v21  ;;  %v3024_v28 = vadd.f32 %v3023_v58, %v3022_v31  ;;  %v2930_v22 = vpop.f32.mrf.mxu0  ;;  %5231 = vmatprep.subr.bf16.mxu0 %v7226_v54  ;;  %v2866_v4 = vadd.f32 %v2865_v52, %v2793_v44  ;;  %v7315_v59 = vld [vmem:[%s7531_s30 + $0x3c] ss:$68 sps:$4 sm:$0xff]   ;;  %v7244_v2 = vld [vmem:[%s9986_s2 + $0x7e4] ss:$8 sps:$4 sm:$0xff]   ;;  %v7316_v37 = vld [vmem:[%s7531_s30 + $0x30] ss:$68 sps:$4 sm:$0xff]  }
 0x203   : > { %5174 = vmatprep.subr.bf16.mxu1 %v7229_v3  ;;  %2998 = vst.msk [vmem:[%s9269_s17 + $0x20] sm:$0xff] %vm9273_vm3, %v6363_v43  ;;  %v3006_v26 = vadd.f32 %v3005_v36, %v9429_v9  ;;  %v9449_v20 = vadd.f32 %v2930_v22, %v2858_v15  ;;  %v2795_v12 = vadd.f32 %v9202_v55, %v2722_v49  ;;  %v2867_v55 = vpop.f32.mrf.mxu1  ;;  %v7256_v13 = vld [vmem:[%s9986_s2 + $0x804] ss:$8 sps:$4 sm:$0xff]   ;;  %v7242_v24 = vld [vmem:[%s9986_s2 + $0x7e0] ss:$8 sps:$4 sm:$0xff]  }
 0x204   : > { %5136 = vmatmul.mubr.bf16.gmra.mxu0 %v7314_v61  ;;  %v2934_v34 = vpop.f32.mrf.mxu0  ;;  %v7254_v15 = vld [vmem:[%s9986_s2 + $0x800] ss:$8 sps:$4 sm:$0xff]  }
 0x205   : > { %v6364_v35 = vpack.c.bf16 %v9449_v20, %v9429_v9  ;;  %v3025_v14 = vsel %vm3015_vm4, %v9449_v20, 0.0  ;;  %v9457_v7 = vadd.f32 %v2934_v34, %v2862_v63  ;;  %5232 = vmatpush1.bf16.msra.mxu0 %v7224_v53  ;;  %5251 = vmatprep.mubr.bf16.mxu0 %v7315_v59  ;;  %v2868_v38 = vadd.f32 %v2867_v55, %v2795_v12  ;;  %v7317_v58 = vld [vmem:[%s7531_s30 + $0xbc] ss:$68 sps:$4 sm:$0xff]   ;;  %v7319_v34 = vld [vmem:[%s7531_s30 + $0x144] ss:$68 sps:$4 sm:$0xff]  }
 0x206   : > { %5175 = vmatpush2.bf16.msra.mxu1 %v7227_v39  ;;  %v2936_v16 = vpop.f32.mrf.mxu0  ;;  %5233 = vmatprep.subr.bf16.mxu0 %v7232_v0  ;;  %v3026_v18 = vadd.f32 %v3025_v14, %v3024_v28  ;;  %v7247_v53 = vld [vmem:[%s9986_s2 + $0x7d4] ss:$8 sps:$4 sm:$0xff]   ;;  %v7245_v28 = vld [vmem:[%s9986_s2 + $0x7d0] ss:$8 sps:$4 sm:$0xff]   ;;  %v7250_v0 = vld [vmem:[%s9986_s2 + $0x7c4] ss:$8 sps:$4 sm:$0xff]  }
 0x207   : > { %5176 = vmatprep.subr.bf16.mxu1 %v7235_v33  ;;  %2999 = vst.msk [vmem:[%s9269_s17 + $0x28] sm:$0xff] %vm9273_vm3, %v6364_v35  ;;  %v3007_v32 = vadd.f32 %v3006_v26, %v9457_v7  ;;  %v9475_v11 = vadd.f32 %v2936_v16, %v2864_v41  ;;  %v7318_v26 = vld [vmem:[%s7531_s30 + $0xb8] ss:$68 sps:$4 sm:$0xff]   ;;  %v7248_v61 = vld [vmem:[%s9986_s2 + $0x7c0] ss:$8 sps:$4 sm:$0xff]  }
 0x208   : > { %v2938_v21 = vpop.f32.mrf.mxu0  ;;  %v7343_v35 = vmov 1966171168  }
 0x209   : > { %v6365_v25 = vpack.c.bf16 %v9475_v11, %v9457_v7  ;;  %v3027_v1 = vsel %vm3015_vm4, %v9475_v11, 0.0  ;;  %v9482_v42 = vadd.f32 %v2938_v21, %v2866_v4  ;;  %5234 = vmatpush1.bf16.msra.mxu0 %v7230_v45  ;;  %v3059_v14 = vunpack.c.l.s4 %v7343_v35  ;;  %v7251_v4 = vld [vmem:[%s9986_s2 + $0x7b0] ss:$8 sps:$4 sm:$0xff]   ;;  %v7259_v21 = vld [vmem:[%s9986_s2 + $0x7a4] ss:$8 sps:$4 sm:$0xff]  }
 0x20a   : > { %5177 = vmatpush2.bf16.msra.mxu1 %v7233_v57  ;;  %v3028_v54 = vadd.f32 %v3027_v1, %v3026_v18  ;;  %v2940_v3 = vpop.f32.mrf.mxu0  ;;  %5235 = vmatprep.subr.bf16.mxu0 %v7238_v40  ;;  %v3061_v45 = vlaneseq  ;;  %v7253_v57 = vld [vmem:[%s9986_s2 + $0x7b4] ss:$8 sps:$4 sm:$0xff]  }
 0x20b   : > { %5304 = vmatprep.subr.bf16.mxu1 %v7241_v10  ;;  %3000 = vst.msk [vmem:[%s9269_s17 + $0x30] sm:$0xff] %vm9273_vm3, %v6365_v25  ;;  %v3008_v23 = vadd.f32 %v3007_v32, %v9482_v42  ;;  %v9497_v36 = vadd.f32 %v2940_v3, %v2868_v38  ;;  %v3060_v59 = vunpack.c.0.s8 %v3059_v14 }
 0x20c   : > { %v3062_v18 = vshrl.u32 %v3061_v45, 7  ;;  %vm9597_vm5 = vcmp.lt.s32.totalorder %v3061_v45, 192  ;;  %v10073_v45 = vmov 0  }
 0x20d   : > { %5179 = vmatmul.mubr.bf16.vlgmr.msra.gmra.mxu1 %v7316_v37  ;;  %v3009_v6 = vrot.slane %v3008_v23, 4  ;;  %v6366_v47 = vpack.c.bf16 %v9497_v36, %v9482_v42  ;;  %v3029_v31 = vsel %vm3015_vm4, %v9497_v36, 0.0  ;;  %5236 = vmatpush2.bf16.msra.mxu0 %v7236_v46  ;;  %v9520_v49 = vpop.f32.mrf.mxu1 }
 0x20e   : > { %5305 = vmatpush1.bf16.msra.mxu1 %v7239_v60  ;;  %v3030_v43 = vadd.f32 %v3029_v31, %v3028_v54  ;;  %5237 = vmatprep.subr.bf16.mxu0 %v7244_v2 }
 0x20f   : > { %5188 = vmatprep.mubr.bf16.mxu1 %v7317_v58  ;;  %v3010_v39 = vadd.f32 %v3009_v6, %v3008_v23  ;;  %3001 = vst.msk [vmem:[%s9269_s17 + $0x38] sm:$0xff] %vm9273_vm3, %v6366_v47  ;;  %5306 = vmatprep.subr.bf16.mxu1 %v7256_v13  ;;  %v9528_v44 = vpop.f32.mrf.mxu1  ;;  %v7320_v13 = vld [vmem:[%s7531_s30 + $0x140] ss:$68 sps:$4 sm:$0xff]   ;;  %v7321_v47 = vld [vmem:[%s7531_s30 + $0x1cc] ss:$68 sps:$4 sm:$0xff]   ;;  %s9595_s17 = scalar_lea.vmem %s9989_s5, %s6357_s25 }
 0x210   : > { %v3031_v17 = vrot.slane %v3030_v43, 4 }
 0x211   : > { %v3011_v52 = vrot.slane %v3010_v39, 2  ;;  %5238 = vmatpush2.bf16.msra.mxu0 %v7242_v24  ;;  %v9538_v40 = vpop.f32.mrf.mxu1 }
 0x212   : > { %5307 = vmatpush1.bf16.msra.mxu1 %v7254_v15  ;;  %v3032_v22 = vadd.f32 %v3031_v17, %v3030_v43  ;;  %5239 = vmatprep.subr.bf16.mxu0 %v7247_v53  ;;  %v7260_v53 = vld [vmem:[%s9986_s2 + $0x790] ss:$8 sps:$4 sm:$0xff]  }
 0x213   : > { %v3012_v33 = vadd.f32 %v3011_v52, %v3010_v39  ;;  %v9555_v23 = vpop.f32.mrf.mxu1 }
 0x214   : > { %v3033_v63 = vrot.slane %v3032_v22, 2 }
 0x215   : > { %5189 = vmatmul.mubr.bf16.gmra.mxu1 %v7318_v26  ;;  %v3013_v41 = vrot.slane %v3012_v33, 1  ;;  %5240 = vmatpush2.bf16.msra.mxu0 %v7245_v28 }
 0x216   : > { %5198 = vmatprep.mubr.bf16.mxu1 %v7319_v34  ;;  %v3034_v12 = vadd.f32 %v3033_v63, %v3032_v22  ;;  %5241 = vmatprep.subr.bf16.mxu0 %v7250_v0 }
 0x217   : > { %v3014_v55 = vadd.f32 %v3013_v41, %v3012_v33  ;;  %v7322_v33 = vld [vmem:[%s7531_s30 + $0x1c8] ss:$68 sps:$4 sm:$0xff]  }
 0x218   : > { %v3035_v16 = vrot.slane %v3034_v12, 1 }
 0x219   : > { %v3037_v10 = vmul.f32 0.015625, %v3014_v55  ;;  %5242 = vmatpush2.bf16.msra.mxu0 %v7248_v61  ;;  %v7263_v61 = vld [vmem:[%s9986_s2 + $0x780] ss:$8 sps:$4 sm:$0xff]  }
 0x21a   : > { %v3036_v32 = vadd.f32 %v3035_v16, %v3034_v12  ;;  %5243 = vmatprep.subr.bf16.mxu0 %v7253_v57 }
 0x21b   : > { %v3039_v38 = vsub.f32 %v9252_v56, %v3037_v10  ;;  %v3041_v25 = vsub.f32 %v9280_v5, %v3037_v10  ;;  %v3043_v1 = vsub.f32 %v9321_v8, %v3037_v10  ;;  %v3045_v46 = vsub.f32 %v9360_v62, %v3037_v10  ;;  %v7257_v5 = vld [vmem:[%s9986_s2 + $0x7a0] ss:$8 sps:$4 sm:$0xff]   ;;  %v7262_v62 = vld [vmem:[%s9986_s2 + $0x794] ss:$8 sps:$4 sm:$0xff]  }
 0x21c   : > { %v3047_v60 = vsub.f32 %v9397_v51, %v3037_v10  ;;  %v3049_v54 = vsub.f32 %v9429_v9, %v3037_v10  ;;  %v3051_v3 = vsub.f32 %v9457_v7, %v3037_v10  ;;  %v3053_v2 = vsub.f32 %v9482_v42, %v3037_v10  ;;  %v9571_v51 = vpop.f32.mrf.mxu1 }
 0x21d   : > { %5199 = vmatmul.mubr.bf16.gmra.mxu1 %v7320_v13  ;;  %v3078_v56 = vmul.f32 %v3039_v38, %v3039_v38  ;;  %v3080_v37 = vmul.f32 %v3041_v25, %v3041_v25  ;;  %5244 = vmatpush2.bf16.msra.mxu0 %v7251_v4  ;;  %v9566_v8 = vsub.s32 %v3060_v59, %v3062_v18  ;;  %v3038_v42 = vmul.f32 0.015625, %v3036_v32 }
 0x21e   : > { %5245 = vmatprep.subr.bf16.mxu0 %v7259_v21  ;;  %v3082_v9 = vmul.f32 %v3043_v1, %v3043_v1  ;;  %v3057_v6 = vcombine.low %v3014_v55, %v3036_v32  ;;  %5208 = vmatprep.mubr.bf16.mxu1 %v7321_v47  ;;  %v3084_v31 = vmul.f32 %v3045_v46, %v3045_v46 }
 0x21f   : > { %10069 = vst [vmem:[#allocation3_spill] sm:$0xff] %v9566_v8  ;;  %v3094_v7 = vadd.f32 %v3080_v37, %v3078_v56  ;;  %v3040_v15 = vsub.f32 %v9254_v48, %v3038_v42  ;;  %v3042_v43 = vsub.f32 %v9309_v19, %v3038_v42  ;;  %v3044_v58 = vsub.f32 %v9348_v50, %v3038_v42  ;;  %v7265_v48 = vld [vmem:[%s9986_s2 + $0x784] ss:$8 sps:$4 sm:$0xff]   ;;  %v9587_v19 = vpop.f32.mrf.mxu1  ;;  %v7323_v56 = vld [vmem:[%s7531_s30 + $0x38] ss:$68 sps:$4 sm:$0xff]  }
 0x220   : > { %v3046_v39 = vsub.f32 %v9383_v27, %v3038_v42  ;;  %v3048_v17 = vsub.f32 %v9419_v30, %v3038_v42  ;;  %v3052_v52 = vsub.f32 %v9475_v11, %v3038_v42  ;;  %v3086_v50 = vmul.f32 %v3047_v60, %v3047_v60  ;;  %v7324_v37 = vld [vmem:[%s7531_s30 + $0x40] ss:$68 sps:$4 sm:$0xff]  }
 0x221   : > { %v3095_v24 = vadd.f32 %v3094_v7, %v3082_v9  ;;  %5246 = vmatpush2.bf16.msra.mxu0 %v7257_v5  ;;  %v3064_v22 = vrot.slane %v3057_v6, %v9566_v8  ;;  %v3079_v0 = vmul.f32 %v3040_v15, %v3040_v15  ;;  %v10070_v27 = vmov 0  ;;  %v9610_v57 = vpop.f32.mrf.mxu1 }
 0x222   : > { %5247 = vmatprep.subr.bf16.mxu0 %v7262_v62  ;;  %v10071_v27 = vsel %vm9597_vm5, 4294967295, %v10070_v27  ;;  %v3081_v30 = vmul.f32 %v3042_v43, %v3042_v43  ;;  %v3083_v11 = vmul.f32 %v3044_v58, %v3044_v58  ;;  %v3088_v63 = vmul.f32 %v3049_v54, %v3049_v54  ;;  %v7325_v62 = vld [vmem:[%s7531_s30 + $0xc4] ss:$68 sps:$4 sm:$0xff]  }
 0x223   : > { %v3096_v28 = vadd.f32 %v3095_v24, %v3084_v31  ;;  %10072 = vst [vmem:[#allocation7_spill] sm:$0xff] %v10071_v27  ;;  %v3071_v41 = vrot.slane %v3064_v22, %v9566_v8  ;;  %v3050_v34 = vsub.f32 %v9449_v20, %v3038_v42  ;;  %v3085_v12 = vmul.f32 %v3046_v39, %v3046_v39  ;;  %v4758_v1 = vpop.f32.mrf.mxu1  ;;  %v7327_v22 = vld [vmem:[%s7531_s30 + $0xc8] ss:$68 sps:$4 sm:$0xff]  }
 0x224   : > { %v3107_v35 = vsel %vm3015_vm4, %v3079_v0, 0.0  ;;  %v3108_v14 = vsel %vm3015_vm4, %v3081_v30, 0.0  ;;  %v3090_v55 = vmul.f32 %v3051_v3, %v3051_v3  ;;  %v3087_v4 = vmul.f32 %v3048_v17, %v3048_v17 }
 0x225   : > { %5209 = vmatmul.mubr.bf16.gmra.mxu1 %v7322_v33  ;;  %v3097_v26 = vadd.f32 %v3096_v28, %v3086_v50  ;;  %5248 = vmatpush2.bf16.msra.mxu0 %v7260_v53  ;;  %3077 = vst.msk [vmem:[%s9595_s17] ss:$2 sm:$0x3] %vm9597_vm5, %v3071_v41  ;;  %v3109_v10 = vadd.f32 %v3108_v14, %v3107_v35  ;;  %v3110_v20 = vsel %vm3015_vm4, %v3083_v11, 0.0  ;;  %v3112_v25 = vsel %vm3015_vm4, %v3085_v12, 0.0  ;;  %v4762_v6 = vpop.f32.mrf.mxu1 }
 0x226   : > { %5249 = vmatprep.subr.bf16.mxu0 %v7265_v48  ;;  %5324 = vmatprep.mubr.bf16.mxu1 %v10073_v45  ;;  %v3092_v32 = vmul.f32 %v3053_v2, %v3053_v2  ;;  %v3054_v21 = vsub.f32 %v9497_v36, %v3038_v42  ;;  %v3089_v38 = vmul.f32 %v3050_v34, %v3050_v34  ;;  %v3114_v3 = vsel %vm3015_vm4, %v3087_v4, 0.0  ;;  %v7330_v4 = vld [vmem:[%s7531_s30 + $0x150] ss:$68 sps:$4 sm:$0xff]  }
 0x227   : > { %v3098_v16 = vadd.f32 %v3097_v26, %v3088_v63  ;;  %v3111_v18 = vadd.f32 %v3110_v20, %v3109_v10  ;;  %v3091_v54 = vmul.f32 %v3052_v52, %v3052_v52  ;;  %v4764_v17 = vpop.f32.mrf.mxu1  ;;  %v7329_v10 = vld [vmem:[%s7531_s30 + $0x148] ss:$68 sps:$4 sm:$0xff]  }
 0x228   : > { %v3093_v9 = vmul.f32 %v3054_v21, %v3054_v21  ;;  %v3116_v7 = vsel %vm3015_vm4, %v3089_v38, 0.0 }
 0x229   : > { %v3099_v59 = vadd.f32 %v3098_v16, %v3090_v55  ;;  %5250 = vmatpush2.bf16.msra.mxu0 %v7263_v61  ;;  %v3113_v60 = vadd.f32 %v3112_v25, %v3111_v18  ;;  %v3118_v15 = vsel %vm3015_vm4, %v3091_v54, 0.0  ;;  %v4766_v33 = vpop.f32.mrf.mxu1 }
 0x22a   : > { %v3120_v53 = vsel %vm3015_vm4, %v3093_v9, 0.0 }
 0x22b   : > { %v3100_v46 = vadd.f32 %v3099_v59, %v3092_v32  ;;  %v3115_v5 = vadd.f32 %v3114_v3, %v3113_v60  ;;  %v7331_v59 = vld [vmem:[%s7531_s30 + $0x1d4] ss:$68 sps:$4 sm:$0xff]  }
 0x22c   : > { %v4815_v13 = vpop.f32.mrf.mxu0  ;;  %5252 = vmatmul.mubr.bf16.vlgmr.msra.gmra.mxu0 %v7323_v56 }
 0x22d   : > { %6340 = vmatmul.mubr.msk.bf16.vlgmr.msra.gmra.mxu1 %vm2273_vm0, %v7324_v37  ;;  %v3101_v2 = vrot.slane %v3100_v46, 4  ;;  %v9623_v36 = vadd.f32 %v4815_v13, %v9520_v49  ;;  %5261 = vmatprep.mubr.bf16.mxu0 %v7325_v62  ;;  %v3117_v31 = vadd.f32 %v3116_v7, %v3115_v5  ;;  %v7332_v37 = vld [vmem:[%s7531_s30 + $0x1d0] ss:$68 sps:$4 sm:$0xff]  }
 0x22e   : > { %5334 = vmatprep.mubr.bf16.mxu1 %v10073_v45  ;;  %v4817_v42 = vpop.f32.mrf.mxu0 }
 0x22f   : > { %v3102_v47 = vadd.f32 %v3101_v2, %v3100_v46  ;;  %v9629_v24 = vadd.f32 %v4817_v42, %v9528_v44  ;;  %v3119_v43 = vadd.f32 %v3118_v15, %v3117_v31  ;;  %v7326_v44 = vld [vmem:[%s7531_s30 + $0xc0] ss:$68 sps:$4 sm:$0xff]   ;;  %v7333_v2 = vld [vmem:[%s7531_s30 + $0x1d8] ss:$68 sps:$4 sm:$0xff]  }
 0x230   : > { %v4819_v49 = vpop.f32.mrf.mxu0 }
 0x231   : > { %v9633_v58 = vadd.f32 %v4819_v49, %v9538_v40  ;;  %v3103_v52 = vrot.slane %v3102_v47, 2  ;;  %v3121_v48 = vadd.f32 %v3120_v53, %v3119_v43  ;;  %v7328_v40 = vld [vmem:[%s7531_s30 + $0x14c] ss:$68 sps:$4 sm:$0xff]  }
 0x232   : > { %v4821_v39 = vpop.f32.mrf.mxu0 }
 0x233   : > { %v9637_v50 = vadd.f32 %v4821_v39, %v9555_v23  ;;  %v3122_v0 = vrot.slane %v3121_v48, 4  ;;  %v3104_v23 = vadd.f32 %v3103_v52, %v3102_v47 }
 0x234   : > { %v4825_v28 = vpop.f32.mrf.mxu0  ;;  %5262 = vmatmul.mubr.bf16.gmra.mxu0 %v7326_v44 }
 0x235   : > { %6341 = vmatmul.mubr.msk.bf16.gmra.mxu1 %vm2273_vm0, %v7327_v22  ;;  %v9643_v30 = vadd.f32 %v4825_v28, %v9571_v51  ;;  %5271 = vmatprep.mubr.bf16.mxu0 %v7328_v40  ;;  %v3123_v63 = vadd.f32 %v3122_v0, %v3121_v48  ;;  %v4768_v51 = vpop.f32.mrf.mxu1  ;;  %v3105_v35 = vrot.slane %v3104_v23, 1 }
 0x236   : > { %5344 = vmatprep.mubr.bf16.mxu1 %v10073_v45  ;;  %v4827_v11 = vpop.f32.mrf.mxu0 }
 0x237   : > { %v4828_v26 = vadd.f32 %v4827_v11, %v9587_v19  ;;  %v3124_v61 = vrot.slane %v3123_v63, 2  ;;  %v3106_v18 = vadd.f32 %v3105_v35, %v3104_v23 }
 0x238   : > { %v4829_v41 = vpop.f32.mrf.mxu0 }
 0x239   : > { %v4830_v34 = vadd.f32 %v4829_v41, %v9610_v57  ;;  %v3125_v14 = vadd.f32 %v3124_v61, %v3123_v63  ;;  %v4772_v57 = vpop.f32.mrf.mxu1 }
 0x23a   : > { %v4831_v12 = vpop.f32.mrf.mxu0 }
 0x23b   : > { %v4832_v55 = vadd.f32 %v4831_v12, %v4758_v1  ;;  %v3126_v20 = vrot.slane %v3125_v14, 1  ;;  %v4774_v54 = vpop.f32.mrf.mxu1 }
 0x23c   : > { %v4835_v16 = vpop.f32.mrf.mxu0  ;;  %5272 = vmatmul.mubr.bf16.gmra.mxu0 %v7329_v10 }
 0x23d   : > { %6342 = vmatmul.mubr.msk.bf16.gmra.mxu1 %vm2273_vm0, %v7330_v4  ;;  %v4836_v32 = vadd.f32 %v4835_v16, %v4762_v6  ;;  %5281 = vmatprep.mubr.bf16.mxu0 %v7331_v59  ;;  %v3127_v21 = vadd.f32 %v3126_v20, %v3125_v14  ;;  %v4776_v62 = vpop.f32.mrf.mxu1 }
 0x23e   : > { %5354 = vmatprep.mubr.bf16.mxu1 %v10073_v45  ;;  %v4837_v19 = vpop.f32.mrf.mxu0 }
 0x23f   : > { %v4838_v38 = vadd.f32 %v4837_v19, %v4764_v17  ;;  %v3130_v1 = vcombine.low %v3106_v18, %v3127_v21  ;;  %v4778_v47 = vpop.f32.mrf.mxu1 }
 0x240   : > { %v4839_v25 = vpop.f32.mrf.mxu0 }
 0x241   : > { %v4840_v46 = vadd.f32 %v4839_v25, %v4766_v33  ;;  %v3137_v3 = vrot.slane %v3130_v1, %v9566_v8 }
 0x242   : > { %v4841_v60 = vpop.f32.mrf.mxu0 }
 0x243   : > { %v4842_v13 = vadd.f32 %v4841_v60, %v4768_v51  ;;  %v3144_v45 = vrot.slane %v3137_v3, %v9566_v8 }
 0x244   : > { %v4845_v56 = vpop.f32.mrf.mxu0  ;;  %5282 = vmatmul.mubr.bf16.gmra.mxu0 %v7332_v37 }
 0x245   : > { %6343 = vmatmul.mubr.msk.bf16.gmra.mxu1 %vm2273_vm0, %v7333_v2  ;;  %v4846_v5 = vadd.f32 %v4845_v56, %v4772_v57  ;;  %6079 = vst.msk [vmem:[%s9595_s17 + $0x1] ss:$2 sm:$0x3] %vm9597_vm5, %v3144_v45 }
 0x246   : > { %v4847_v9 = vpop.f32.mrf.mxu0 }
 0x247   : > { %v4848_v7 = vadd.f32 %v4847_v9, %v4774_v54 }
 0x248   : > { %v4849_v42 = vpop.f32.mrf.mxu0 }
 0x249   : > { %v4850_v6 = vadd.f32 %v4849_v42, %v4776_v62 }
 0x24a   : > { %v4851_v31 = vpop.f32.mrf.mxu0 }
 0x24b   : > { %v4852_v15 = vadd.f32 %v4851_v31, %v4778_v47 }
 0x24d   : > { %v4888_v49 = vpop.f32.mrf.mxu1 }
 0x24e   : > { %v9663_v43 = vadd.f32 %v4888_v49, %v9623_v36 }
 0x24f   : > { %v4890_v53 = vpop.f32.mrf.mxu1 }
 0x250   : > { %v9666_v39 = vadd.f32 %v4890_v53, %v9629_v24 }
 0x251   : > { %v4892_v17 = vpop.f32.mrf.mxu1 }
 0x252   : > { %v9669_v52 = vadd.f32 %v4892_v17, %v9633_v58 }
 0x253   : > { %v4894_v48 = vpop.f32.mrf.mxu1 }
 0x254   : > { %v9672_v28 = vadd.f32 %v4894_v48, %v9637_v50 }
 0x255   : > { %v4898_v44 = vpop.f32.mrf.mxu1 }
 0x256   : > { %v9675_v22 = vadd.f32 %v4898_v44, %v9643_v30 }
 0x257   : > { %v4900_v0 = vpop.f32.mrf.mxu1 }
 0x258   : > { %v9677_v40 = vadd.f32 %v4900_v0, %v4828_v26 }
 0x259   : > { %v4902_v36 = vpop.f32.mrf.mxu1 }
 0x25a   : > { %v9679_v11 = vadd.f32 %v4902_v36, %v4830_v34 }
 0x25b   : > { %v4904_v24 = vpop.f32.mrf.mxu1 }
 0x25c   : > { %v9681_v33 = vadd.f32 %v4904_v24, %v4832_v55 }
 0x25d   : > { %v4908_v23 = vpop.f32.mrf.mxu1 }
 0x25e   : > { %v9683_v58 = vadd.f32 %v4908_v23, %v4836_v32 }
 0x25f   : > { %v4910_v63 = vpop.f32.mrf.mxu1 }
 0x260   : > { %v9685_v41 = vadd.f32 %v4910_v63, %v4838_v38 }
 0x261   : > { %v4912_v50 = vpop.f32.mrf.mxu1 }
 0x262   : > { %v9687_v61 = vadd.f32 %v4912_v50, %v4840_v46 }
 0x263   : > { %v4914_v30 = vpop.f32.mrf.mxu1 }
 0x264   : > { %v9689_v12 = vadd.f32 %v4914_v30, %v4842_v13 }
 0x265   : > { %v4918_v26 = vpop.f32.mrf.mxu1 }
 0x266   : > { %v9691_v51 = vadd.f32 %v4918_v26, %v4846_v5 }
 0x267   : > { %v4920_v34 = vpop.f32.mrf.mxu1 }
 0x268   : > { %10074 = vst [vmem:[#allocation9_spill] sm:$0xff] %v9691_v51  ;;  %v9693_v35 = vadd.f32 %v4920_v34, %v4848_v7 }
 0x269   : > { %v4922_v14 = vpop.f32.mrf.mxu1 }
 0x26a   : > { %10075 = vst [vmem:[#allocation27_spill] sm:$0xff] %v9693_v35  ;;  %v9695_v55 = vadd.f32 %v4922_v14, %v4850_v6 }
 0x26b   : > { %v4924_v16 = vpop.f32.mrf.mxu1 }
 0x26c   : > { %10076 = vst [vmem:[#allocation28_spill] sm:$0xff] %v9695_v55  ;;  %v9697_v10 = vadd.f32 %v4924_v16, %v4852_v15  ;;  %v4961_v4 = vpop.f32.mrf.mxu0 }
 0x26e   : > { %10077 = vst [vmem:[#allocation5_spill] sm:$0xff] %v9697_v10  ;;  %v4963_v20 = vpop.f32.mrf.mxu0 }
 0x270   : > { %v9699_v32 = vpop.f32.mrf.mxu0 }
 0x272   : > { %v9701_v59 = vpop.f32.mrf.mxu0 }
 0x274   : > { %v9703_v19 = vpop.f32.mrf.mxu0 }
 0x276   : > { %v9705_v57 = vpop.f32.mrf.mxu0 }
 0x278   : > { %v9707_v18 = vpop.f32.mrf.mxu0 }
 0x27a   : > { %v9709_v21 = vpop.f32.mrf.mxu0 }
 0x27c   : > { %v9711_v25 = vpop.f32.mrf.mxu0 }
 0x27e   : > { %v9713_v46 = vpop.f32.mrf.mxu0 }
 0x280   : > { %v9715_v54 = vpop.f32.mrf.mxu0 }
 0x282   : > { %v9719_v13 = vpop.f32.mrf.mxu0 }
 0x284   : > { %v9723_v37 = vpop.f32.mrf.mxu0 }
 0x285   : > { %10078 = vst [vmem:[#allocation8_spill] sm:$0xff] %v9723_v37  ;;  %v4962_v37 = vadd.f32 %v4961_v4, %v9663_v43  ;;  %v4968_v43 = vadd.f32 %v9701_v59, %v9672_v28 }
 0x286   : > { %v9727_v45 = vpop.f32.mrf.mxu0 }
 0x287   : > { %10079 = vst [vmem:[#allocation11_spill] sm:$0xff] %v9727_v45 }
 0x288   : > { %v9731_v62 = vpop.f32.mrf.mxu0 }
 0x289   : > { %10080 = vst [vmem:[#allocation29_spill] sm:$0xff] %v9731_v62 }
 0x28a   : > { %v9735_v7 = vpop.f32.mrf.mxu0 }
 0x28b   : > { %10081 = vst [vmem:[#allocation30_spill] sm:$0xff] %v9735_v7 }
 0x28d   : > { %v5034_v38 = vpop.f32.mrf.mxu1 }
 0x28f   : > { %v5036_v1 = vpop.f32.mrf.mxu1 }
 0x291   : > { %v5038_v60 = vpop.f32.mrf.mxu1 }
 0x293   : > { %v9717_v3 = vpop.f32.mrf.mxu1 }
 0x295   : > { %v9721_v56 = vpop.f32.mrf.mxu1 }
 0x297   : > { %v9725_v2 = vpop.f32.mrf.mxu1 }
 0x299   : > { %v9729_v5 = vpop.f32.mrf.mxu1 }
 0x29b   : > { %v9733_v9 = vpop.f32.mrf.mxu1 }
 0x29d   : > { %v9737_v42 = vpop.f32.mrf.mxu1 }
 0x29f   : > { %v9739_v47 = vpop.f32.mrf.mxu1 }
 0x2a1   : > { %v9741_v15 = vpop.f32.mrf.mxu1 }
 0x2a2   : > { %10082 = vst [vmem:[#allocation2_spill] sm:$0xff] %v9741_v15 }
 0x2a3   : > { %v9743_v53 = vpop.f32.mrf.mxu1 }
 0x2a4   : > { %10083 = vst [vmem:[#allocation4_spill] sm:$0xff] %v9743_v53 }
 0x2a5   : > { %v9745_v48 = vpop.f32.mrf.mxu1 }
 0x2a6   : > { %10084 = vst [vmem:[#allocation13_spill] sm:$0xff] %v9745_v48 }
 0x2a7   : > { %v9747_v0 = vpop.f32.mrf.mxu1 }
 0x2a8   : > { %10085 = vst [vmem:[#allocation31_spill] sm:$0xff] %v9747_v0 }
 0x2a9   : > { %v9751_v24 = vpop.f32.mrf.mxu1 }
 0x2aa   : > { %10086 = vst [vmem:[#allocation10_spill] sm:$0xff] %v9751_v24 }
 0x2ab   : > { %v9755_v63 = vpop.f32.mrf.mxu1 }
 0x2ac   : > { %v5107_v6 = vpop.f32.mrf.mxu0  ;;  %10087 = vst [vmem:[#allocation32_spill] sm:$0xff] %v9755_v63 }
 0x2ae   : > { %v5109_v31 = vpop.f32.mrf.mxu0 }
 0x2b0   : > { %v5111_v49 = vpop.f32.mrf.mxu0 }
 0x2b2   : > { %v5113_v17 = vpop.f32.mrf.mxu0 }
 0x2b4   : > { %v5117_v44 = vpop.f32.mrf.mxu0 }
 0x2b6   : > { %v9749_v36 = vpop.f32.mrf.mxu0 }
 0x2b8   : > { %v9753_v23 = vpop.f32.mrf.mxu0 }
 0x2ba   : > { %v9757_v50 = vpop.f32.mrf.mxu0 }
 0x2bc   : > { %v9759_v26 = vpop.f32.mrf.mxu0 }
 0x2be   : > { %v9761_v16 = vpop.f32.mrf.mxu0 }
 0x2bf   : > { %10088 = vst [vmem:[#allocation12_spill] sm:$0xff] %v9761_v16  ;;  %v5035_v16 = vadd.f32 %v5034_v38, %v4962_v37  ;;  %v5041_v37 = vadd.f32 %v9717_v3, %v4968_v43 }
 0x2c0   : > { %v9763_v7 = vpop.f32.mrf.mxu0 }
 0x2c1   : > { %10089 = vst [vmem:[#allocation15_spill] sm:$0xff] %v9763_v7  ;;  %v5114_v59 = vadd.f32 %v5113_v17, %v5041_v37 }
 0x2c2   : > { %v9769_v0 = vpop.f32.mrf.mxu0 }
 0x2c3   : > { %10090 = vst [vmem:[#allocation35_spill] sm:$0xff] %v9769_v0 }
 0x2c4   : > { %v9775_v55 = vpop.f32.mrf.mxu0 }
 0x2c5   : > { %10092 = vst [vmem:[#allocation14_spill] sm:$0xff] %v9775_v55 }
 0x2c6   : > { %v9781_v35 = vpop.f32.mrf.mxu0 }
 0x2c7   : > { %10095 = vst [vmem:[#allocation16_spill] sm:$0xff] %v9781_v35  ;;  %v5108_v35 = vadd.f32 %v5107_v6, %v5035_v16 }
 0x2c8   : > { %v9788_v51 = vpop.f32.mrf.mxu0 }
 0x2c9   : > { %10097 = vst [vmem:[#allocation36_spill] sm:$0xff] %v9788_v51 }
 0x2ca   : > { %v9797_v15 = vpop.f32.mrf.mxu0 }
 0x2cd   : > { %v5180_v30 = vpop.f32.mrf.mxu1 }
 0x2cf   : > { %v5182_v34 = vpop.f32.mrf.mxu1 }
 0x2d1   : > { %v5184_v14 = vpop.f32.mrf.mxu1 }
 0x2d3   : > { %v5186_v27 = vpop.f32.mrf.mxu1 }
 0x2d5   : > { %v5190_v8 = vpop.f32.mrf.mxu1 }
 0x2d7   : > { %v9765_v10 = vpop.f32.mrf.mxu1 }
 0x2d9   : > { %v9767_v24 = vpop.f32.mrf.mxu1 }
 0x2db   : > { %v9771_v63 = vpop.f32.mrf.mxu1 }
 0x2dd   : > { %v9773_v62 = vpop.f32.mrf.mxu1 }
 0x2de   : > { %10091 = vst [vmem:[#allocation33_spill] sm:$0xff] %v9773_v62  ;;  %v4964_v62 = vadd.f32 %v4963_v20, %v9666_v39  ;;  %v4972_v39 = vadd.f32 %v9703_v19, %v9675_v22  ;;  %v4976_v22 = vadd.f32 %v9707_v18, %v9679_v11 }
 0x2df   : > { %v9777_v48 = vpop.f32.mrf.mxu1 }
 0x2e0   : > { %10093 = vst [vmem:[#allocation17_spill] sm:$0xff] %v9777_v48  ;;  %v5037_v48 = vadd.f32 %v5036_v1, %v4964_v62  ;;  %v4974_v62 = vadd.f32 %v9705_v57, %v9677_v40  ;;  %v5045_v6 = vadd.f32 %v9721_v56, %v4972_v39  ;;  %v4978_v56 = vadd.f32 %v9709_v21, %v9681_v33 }
 0x2e1   : > { %v9779_v45 = vpop.f32.mrf.mxu1  ;;  %v5049_v17 = vadd.f32 %v9729_v5, %v4976_v22  ;;  %v4982_v21 = vadd.f32 %v9711_v25, %v9683_v58  ;;  %v4984_v5 = vadd.f32 %v9713_v46, %v9685_v41 }
 0x2e2   : > { %10094 = vst [vmem:[#allocation34_spill] sm:$0xff] %v9779_v45  ;;  %v4966_v45 = vadd.f32 %v9699_v32, %v9669_v52  ;;  %v5110_v51 = vadd.f32 %v5109_v31, %v5037_v48  ;;  %v5047_v19 = vadd.f32 %v9725_v2, %v4974_v62  ;;  %v5118_v3 = vadd.f32 %v5117_v44, %v5045_v6 }
 0x2e3   : > { %v9783_v53 = vpop.f32.mrf.mxu1  ;;  %v5187_v31 = vadd.f32 %v5186_v27, %v5114_v59  ;;  %v5055_v25 = vadd.f32 %v9737_v42, %v4982_v21  ;;  %v4986_v42 = vadd.f32 %v9715_v54, %v9687_v61  ;;  %v4988_v61 = vadd.f32 %v9719_v13, %v9689_v12  ;;  %v10099_v54 = vld [vmem:[#allocation2_spill] sm:$0xff]  ;;  %v10103_v12 = vld [vmem:[#allocation8_spill] sm:$0xff] }
 0x2e4   : > { %10096 = vst [vmem:[#allocation19_spill] sm:$0xff] %v9783_v53  ;;  %v5039_v4 = vadd.f32 %v5038_v60, %v4966_v45  ;;  %v5183_v32 = vadd.f32 %v5182_v34, %v5110_v51  ;;  %v5120_v48 = vadd.f32 %v9749_v36, %v5047_v19  ;;  %v5191_v18 = vadd.f32 %v5190_v8, %v5118_v3 }
 0x2e5   : > { %v9785_v7 = vpop.f32.mrf.mxu1  ;;  %v5122_v36 = vadd.f32 %v9753_v23, %v5049_v17  ;;  %v10101_v59 = vld [vmem:[#allocation33_spill] sm:$0xff] }
 0x2e6   : > { %v5112_v52 = vadd.f32 %v5111_v49, %v5039_v4  ;;  %v5193_v8 = vadd.f32 %v9765_v10, %v5120_v48 }
 0x2e7   : > { %v9790_v0 = vpop.f32.mrf.mxu1  ;;  %v5195_v46 = vadd.f32 %v9767_v24, %v5122_v36  ;;  %v5128_v24 = vadd.f32 %v9759_v26, %v5055_v25  ;;  %v10108_v36 = vld [vmem:[#allocation11_spill] sm:$0xff] }
 0x2e8   : > { %10098 = vst [vmem:[#allocation18_spill] sm:$0xff] %v9790_v0  ;;  %v5181_v0 = vadd.f32 %v5180_v30, %v5108_v35  ;;  %v5185_v35 = vadd.f32 %v5184_v14, %v5112_v52 }
 0x2e9   : > { %v9793_v55 = vpop.f32.mrf.mxu1  ;;  %v10111_v25 = vld [vmem:[#allocation34_spill] sm:$0xff] }
 0x2eb   : > { %v9799_v53 = vpop.f32.mrf.mxu1 }
 0x2ec   : > { %v5253_v20 = vpop.f32.mrf.mxu0 }
 0x2ed   : > { %v5326_v38 = vpop.f32.mrf.mxu1  ;;  %v5254_v1 = vadd.f32 %v5253_v20, %v5181_v0  ;;  %v5051_v0 = vadd.f32 %v9733_v9, %v4978_v56  ;;  %v10105_v56 = vld [vmem:[#allocation15_spill] sm:$0xff] }
 0x2ee   : > { %v5255_v16 = vpop.f32.mrf.mxu0 }
 0x2ef   : > { %v5328_v28 = vpop.f32.mrf.mxu1  ;;  %v5256_v60 = vadd.f32 %v5255_v16, %v5183_v32  ;;  %v9812_v49 = vadd.f32 %v5326_v38, %v5254_v1  ;;  %v5124_v41 = vadd.f32 %v9757_v50, %v5051_v0  ;;  %v5057_v50 = vadd.f32 %v9739_v47, %v4984_v5  ;;  %v10107_v0 = vld [vmem:[#allocation27_spill] sm:$0xff] }
 0x2f0   : > { %v5257_v45 = vpop.f32.mrf.mxu0  ;;  %v5059_v47 = vadd.f32 %v10099_v54, %v4986_v42  ;;  %v10113_v42 = vld [vmem:[#allocation29_spill] sm:$0xff] }
 0x2f1   : > { %v5330_v51 = vpop.f32.mrf.mxu1  ;;  %v9814_v40 = vadd.f32 %v5328_v28, %v5256_v60  ;;  %v5258_v57 = vadd.f32 %v5257_v45, %v5185_v35  ;;  %v5197_v1 = vadd.f32 %v9771_v63, %v5124_v41  ;;  %v10100_v28 = vld [vmem:[#allocation12_spill] sm:$0xff]  ;;  %v5201_v35 = vadd.f32 %v10101_v59, %v5128_v24  ;;  %v10114_v24 = vld [vmem:[#allocation31_spill] sm:$0xff]  ;;  %v10117_v59 = vld [vmem:[#allocation5_spill] sm:$0xff] }
 0x2f2   : > { %v5259_v27 = vpop.f32.mrf.mxu0  ;;  %v5130_v26 = vadd.f32 %v10100_v28, %v5057_v50  ;;  %v5132_v17 = vadd.f32 %v10105_v56, %v5059_v47 }
 0x2f3   : > { %v5332_v11 = vpop.f32.mrf.mxu1  ;;  %v6367_v2 = vpack.c.bf16 %v9814_v40, %v9812_v49  ;;  %v9829_v44 = vadd.f32 %v5330_v51, %v5258_v57  ;;  %v5260_v33 = vadd.f32 %v5259_v27, %v5187_v31  ;;  %v5434_v9 = vsel %vm3015_vm4, %v9814_v40, 0.0  ;;  %v10102_v51 = vld [vmem:[#allocation9_spill] sm:$0xff]  ;;  %v10104_v31 = vld [vmem:[#allocation4_spill] sm:$0xff] }
 0x2f4   : > { %v5263_v30 = vpop.f32.mrf.mxu0  ;;  %v4992_v13 = vadd.f32 %v10103_v12, %v10102_v51  ;;  %v5061_v57 = vadd.f32 %v10104_v31, %v4988_v61  ;;  %v5205_v41 = vadd.f32 %v10111_v25, %v5132_v17  ;;  %v10116_v61 = vld [vmem:[#allocation19_spill] sm:$0xff] }
 0x2f5   : > { %v5336_v34 = vpop.f32.mrf.mxu1  ;;  %5413 = vst.msk [vmem:[%s9825_s13] sm:$0xff] %vm9273_vm3, %v6367_v2  ;;  %v5421_v14 = vadd.f32 %v9829_v44, %v9812_v49  ;;  %v9843_v43 = vadd.f32 %v5332_v11, %v5260_v33  ;;  %v5264_v58 = vadd.f32 %v5263_v30, %v5191_v18  ;;  %v10106_v18 = vld [vmem:[#allocation17_spill] sm:$0xff]  ;;  %v4994_v30 = vadd.f32 %v10108_v36, %v10107_v0  ;;  %v10123_v0 = vld [vmem:[#allocation18_spill] sm:$0xff] }
 0x2f6   : > { %v5265_v10 = vpop.f32.mrf.mxu0  ;;  %v5203_v2 = vadd.f32 %v10106_v18, %v5130_v26 }
 0x2f7   : > { %v5338_v23 = vpop.f32.mrf.mxu1  ;;  %v6368_v4 = vpack.c.bf16 %v9843_v43, %v9829_v44  ;;  %v5435_v39 = vsel %vm3015_vm4, %v9843_v43, 0.0  ;;  %v9854_v20 = vadd.f32 %v5336_v34, %v5264_v58  ;;  %v5266_v38 = vadd.f32 %v5265_v10, %v5193_v8  ;;  %v10109_v34 = vld [vmem:[#allocation13_spill] sm:$0xff] }
 0x2f8   : > { %v5436_v37 = vadd.f32 %v5435_v39, %v5434_v9  ;;  %v5267_v52 = vpop.f32.mrf.mxu0  ;;  %v5065_v8 = vadd.f32 %v10109_v34, %v4992_v13 }
 0x2f9   : > { %v5340_v32 = vpop.f32.mrf.mxu1  ;;  %5414 = vst.msk [vmem:[%s9825_s13 + $0x8] sm:$0xff] %vm9273_vm3, %v6368_v4  ;;  %v5422_v62 = vadd.f32 %v5421_v14, %v9854_v20  ;;  %v9865_v6 = vadd.f32 %v5338_v23, %v5266_v38  ;;  %v5268_v16 = vadd.f32 %v5267_v52, %v5195_v46  ;;  %v10110_v14 = vld [vmem:[#allocation35_spill] sm:$0xff]  ;;  %v10112_v38 = vld [vmem:[#allocation28_spill] sm:$0xff]  ;;  %v10115_v52 = vld [vmem:[#allocation14_spill] sm:$0xff] }
 0x2fa   : > { %v5269_v60 = vpop.f32.mrf.mxu0  ;;  %v5134_v58 = vadd.f32 %v10110_v14, %v5061_v57  ;;  %v4996_v50 = vadd.f32 %v10113_v42, %v10112_v38 }
 0x2fb   : > { %v5342_v63 = vpop.f32.mrf.mxu1  ;;  %v6369_v22 = vpack.c.bf16 %v9865_v6, %v9854_v20  ;;  %v5437_v19 = vsel %vm3015_vm4, %v9865_v6, 0.0  ;;  %v9876_v3 = vadd.f32 %v5340_v32, %v5268_v16  ;;  %v5270_v45 = vadd.f32 %v5269_v60, %v5197_v1 }
 0x2fc   : > { %v5438_v48 = vadd.f32 %v5437_v19, %v5436_v37  ;;  %v5273_v27 = vpop.f32.mrf.mxu0  ;;  %v5067_v37 = vadd.f32 %v10114_v24, %v4994_v30  ;;  %v5138_v32 = vadd.f32 %v10115_v52, %v5065_v8  ;;  %v5207_v54 = vadd.f32 %v10116_v61, %v5134_v58  ;;  %v10120_v19 = vld [vmem:[#allocation16_spill] sm:$0xff] }
 0x2fd   : > { %v5346_v11 = vpop.f32.mrf.mxu1  ;;  %5415 = vst.msk [vmem:[%s9825_s13 + $0x10] sm:$0xff] %vm9273_vm3, %v6369_v22  ;;  %v5423_v33 = vadd.f32 %v5422_v62, %v9876_v3  ;;  %v9887_v21 = vadd.f32 %v5342_v63, %v5270_v45  ;;  %v5274_v5 = vadd.f32 %v5273_v27, %v5201_v35  ;;  %v10118_v35 = vld [vmem:[#allocation30_spill] sm:$0xff] }
 0x2fe   : > { %v5275_v46 = vpop.f32.mrf.mxu0  ;;  %v4998_v60 = vadd.f32 %v10118_v35, %v10117_v59  ;;  %v10119_v63 = vld [vmem:[#allocation10_spill] sm:$0xff]  ;;  %v5140_v45 = vadd.f32 %v10120_v19, %v5067_v37  ;;  %v5211_v51 = vadd.f32 %v9785_v7, %v5138_v32 }
 0x2ff   : > { %v5348_v9 = vpop.f32.mrf.mxu1  ;;  %v6370_v10 = vpack.c.bf16 %v9887_v21, %v9876_v3  ;;  %v5439_v23 = vsel %vm3015_vm4, %v9887_v21, 0.0  ;;  %v9898_v4 = vadd.f32 %v5346_v11, %v5274_v5  ;;  %v5276_v39 = vadd.f32 %v5275_v46, %v5203_v2  ;;  %v10122_v11 = vld [vmem:[#allocation36_spill] sm:$0xff] }
 0x300   : > { %v5440_v1 = vadd.f32 %v5439_v23, %v5438_v48  ;;  %v5277_v62 = vpop.f32.mrf.mxu0  ;;  %v5069_v22 = vadd.f32 %v10119_v63, %v4996_v50  ;;  %v10121_v48 = vld [vmem:[#allocation32_spill] sm:$0xff]  ;;  %v5213_v36 = vadd.f32 %v10123_v0, %v5140_v45 }
 0x301   : > { %v5350_v16 = vpop.f32.mrf.mxu1  ;;  %5416 = vst.msk [vmem:[%s9825_s13 + $0x18] sm:$0xff] %vm9273_vm3, %v6370_v10  ;;  %v5424_v47 = vadd.f32 %v5423_v33, %v9898_v4  ;;  %v9909_v28 = vadd.f32 %v5348_v9, %v5276_v39  ;;  %v5278_v26 = vadd.f32 %v5277_v62, %v5205_v41  ;;  %v5071_v27 = vadd.f32 %v10121_v48, %v4998_v60 }
 0x302   : > { %v5279_v12 = vpop.f32.mrf.mxu0  ;;  %v5142_v18 = vadd.f32 %v10122_v11, %v5069_v22 }
 0x303   : > { %v5352_v13 = vpop.f32.mrf.mxu1  ;;  %v6371_v31 = vpack.c.bf16 %v9909_v28, %v9898_v4  ;;  %v5441_v57 = vsel %vm3015_vm4, %v9909_v28, 0.0  ;;  %v5351_v56 = vadd.f32 %v5350_v16, %v5278_v26  ;;  %v5280_v17 = vadd.f32 %v5279_v12, %v5207_v54 }
 0x304   : > { %v5442_v2 = vadd.f32 %v5441_v57, %v5440_v1  ;;  %v5283_v33 = vpop.f32.mrf.mxu0  ;;  %v5144_v8 = vadd.f32 %v9797_v15, %v5071_v27  ;;  %v5215_v14 = vadd.f32 %v9793_v55, %v5142_v18 }
 0x305   : > { %v5356_v5 = vpop.f32.mrf.mxu1  ;;  %5417 = vst.msk [vmem:[%s9825_s13 + $0x20] sm:$0xff] %vm9273_vm3, %v6371_v31  ;;  %v5425_v7 = vadd.f32 %v5424_v47, %v5351_v56  ;;  %v9926_v30 = vadd.f32 %v5352_v13, %v5280_v17  ;;  %v5284_v34 = vadd.f32 %v5283_v33, %v5211_v51 }
 0x306   : > { %v5285_v58 = vpop.f32.mrf.mxu0  ;;  %v5217_v42 = vadd.f32 %v9799_v53, %v5144_v8 }
 0x307   : > { %v5358_v25 = vpop.f32.mrf.mxu1  ;;  %v6372_v41 = vpack.c.bf16 %v9926_v30, %v5351_v56  ;;  %v5443_v46 = vsel %vm3015_vm4, %v9926_v30, 0.0  ;;  %v5357_v9 = vadd.f32 %v5356_v5, %v5284_v34  ;;  %v5286_v10 = vadd.f32 %v5285_v58, %v5213_v36 }
 0x308   : > { %v5444_v23 = vadd.f32 %v5443_v46, %v5442_v2  ;;  %v5287_v39 = vpop.f32.mrf.mxu0 }
 0x309   : > { %v5360_v38 = vpop.f32.mrf.mxu1  ;;  %5418 = vst.msk [vmem:[%s9825_s13 + $0x28] sm:$0xff] %vm9273_vm3, %v6372_v41  ;;  %v5426_v15 = vadd.f32 %v5425_v7, %v5357_v9  ;;  %v5359_v55 = vadd.f32 %v5358_v25, %v5286_v10  ;;  %v5288_v50 = vadd.f32 %v5287_v39, %v5215_v14 }
 0x30a   : > { %v5289_v24 = vpop.f32.mrf.mxu0 }
 0x30b   : > { %v5362_v37 = vpop.f32.mrf.mxu1  ;;  %v6373_v52 = vpack.c.bf16 %v5359_v55, %v5357_v9  ;;  %v5445_v32 = vsel %vm3015_vm4, %v5359_v55, 0.0  ;;  %v5361_v1 = vadd.f32 %v5360_v38, %v5288_v50  ;;  %v5290_v62 = vadd.f32 %v5289_v24, %v5217_v42 }
 0x30c   : > { %v5446_v16 = vadd.f32 %v5445_v32, %v5444_v23  ;;  %v10124_v23 = vld [vmem:[#allocation3_spill] sm:$0xff] }
 0x30d   : > { %5419 = vst.msk [vmem:[%s9825_s13 + $0x30] sm:$0xff] %vm9273_vm3, %v6373_v52  ;;  %v5427_v61 = vadd.f32 %v5426_v15, %v5361_v1  ;;  %v5363_v53 = vadd.f32 %v5362_v37, %v5290_v62 }
 0x30f   : > { %v5428_v54 = vrot.slane %v5427_v61, 4  ;;  %v6374_v47 = vpack.c.bf16 %v5363_v53, %v5361_v1  ;;  %v5447_v26 = vsel %vm3015_vm4, %v5363_v53, 0.0 }
 0x310   : > { %v5448_v59 = vadd.f32 %v5447_v26, %v5446_v16 }
 0x311   : > { %v5429_v35 = vadd.f32 %v5428_v54, %v5427_v61  ;;  %5420 = vst.msk [vmem:[%s9825_s13 + $0x38] sm:$0xff] %vm9273_vm3, %v6374_v47 }
 0x312   : > { %v5449_v60 = vrot.slane %v5448_v59, 4 }
 0x313   : > { %v5430_v63 = vrot.slane %v5429_v35, 2 }
 0x314   : > { %v5450_v22 = vadd.f32 %v5449_v60, %v5448_v59 }
 0x315   : > { %v5431_v19 = vadd.f32 %v5430_v63, %v5429_v35 }
 0x316   : > { %v5451_v45 = vrot.slane %v5450_v22, 2 }
 0x317   : > { %v5432_v51 = vrot.slane %v5431_v19, 1 }
 0x318   : > { %v5452_v12 = vadd.f32 %v5451_v45, %v5450_v22 }
 0x319   : > { %v5433_v13 = vadd.f32 %v5432_v51, %v5431_v19 }
 0x31a   : > { %v5453_v31 = vrot.slane %v5452_v12, 1 }
 0x31b   : > { %v5455_v57 = vmul.f32 0.015625, %v5433_v13 }
 0x31c   : > { %v5454_v17 = vadd.f32 %v5453_v31, %v5452_v12 }
 0x31d   : > { %v5457_v48 = vsub.f32 %v9812_v49, %v5455_v57  ;;  %v5459_v27 = vsub.f32 %v9829_v44, %v5455_v57  ;;  %v5461_v11 = vsub.f32 %v9854_v20, %v5455_v57  ;;  %v5463_v29 = vsub.f32 %v9876_v3, %v5455_v57 }
 0x31e   : > { %v5465_v18 = vsub.f32 %v9898_v4, %v5455_v57  ;;  %v5467_v2 = vsub.f32 %v5351_v56, %v5455_v57  ;;  %v5469_v33 = vsub.f32 %v5357_v9, %v5455_v57  ;;  %v5471_v5 = vsub.f32 %v5361_v1, %v5455_v57 }
 0x31f   : > { %v5492_v0 = vmul.f32 %v5457_v48, %v5457_v48  ;;  %v5494_v36 = vmul.f32 %v5459_v27, %v5459_v27  ;;  %v5496_v7 = vmul.f32 %v5461_v11, %v5461_v11  ;;  %v5456_v8 = vmul.f32 0.015625, %v5454_v17 }
 0x320   : > { %v5475_v14 = vcombine.low %v5433_v13, %v5454_v17  ;;  %v5498_v58 = vmul.f32 %v5463_v29, %v5463_v29  ;;  %v5500_v49 = vmul.f32 %v5465_v18, %v5465_v18  ;;  %v5506_v1 = vmul.f32 %v5471_v5, %v5471_v5 }
 0x321   : > { %v5508_v34 = vadd.f32 %v5494_v36, %v5492_v0  ;;  %v5458_v44 = vsub.f32 %v9814_v40, %v5456_v8  ;;  %v5460_v20 = vsub.f32 %v9843_v43, %v5456_v8  ;;  %v5462_v3 = vsub.f32 %v9865_v6, %v5456_v8 }
 0x322   : > { %v5464_v4 = vsub.f32 %v9887_v21, %v5456_v8  ;;  %v5466_v56 = vsub.f32 %v9909_v28, %v5456_v8  ;;  %v5468_v41 = vsub.f32 %v9926_v30, %v5456_v8  ;;  %v5470_v46 = vsub.f32 %v5359_v55, %v5456_v8 }
 0x323   : > { %v5509_v25 = vadd.f32 %v5508_v34, %v5496_v7  ;;  %v5472_v10 = vsub.f32 %v5363_v53, %v5456_v8  ;;  %v5482_v39 = vrot.slane %v5475_v14, %v10124_v23  ;;  %v5493_v38 = vmul.f32 %v5458_v44, %v5458_v44 }
 0x324   : > { %v5495_v40 = vmul.f32 %v5460_v20, %v5460_v20  ;;  %v5497_v43 = vmul.f32 %v5462_v3, %v5462_v3  ;;  %v5502_v6 = vmul.f32 %v5467_v2, %v5467_v2  ;;  %v5499_v30 = vmul.f32 %v5464_v4, %v5464_v4 }
 0x325   : > { %v5510_v9 = vadd.f32 %v5509_v25, %v5498_v58  ;;  %v5489_v28 = vrot.slane %v5482_v39, %v10124_v23  ;;  %v5521_v42 = vsel %vm3015_vm4, %v5493_v38, 0.0  ;;  %v5504_v55 = vmul.f32 %v5469_v33, %v5469_v33 }
 0x326   : > { %v5522_v15 = vsel %vm3015_vm4, %v5495_v40, 0.0  ;;  %v5501_v52 = vmul.f32 %v5466_v56, %v5466_v56  ;;  %v5524_v32 = vsel %vm3015_vm4, %v5497_v43, 0.0  ;;  %v5503_v61 = vmul.f32 %v5468_v41, %v5468_v41 }
 0x327   : > { %v5511_v21 = vadd.f32 %v5510_v9, %v5500_v49  ;;  %5491 = vst.msk [vmem:[%s9962_s14] ss:$2 sm:$0x3] %vm9597_vm5, %v5489_v28  ;;  %v5523_v37 = vadd.f32 %v5522_v15, %v5521_v42  ;;  %v5526_v53 = vsel %vm3015_vm4, %v5499_v30, 0.0  ;;  %v5505_v26 = vmul.f32 %v5470_v46, %v5470_v46 }
 0x328   : > { %v5528_v59 = vsel %vm3015_vm4, %v5501_v52, 0.0  ;;  %v5507_v63 = vmul.f32 %v5472_v10, %v5472_v10  ;;  %v5530_v22 = vsel %vm3015_vm4, %v5503_v61, 0.0 }
 0x329   : > { %v5512_v50 = vadd.f32 %v5511_v21, %v5502_v6  ;;  %v5525_v16 = vadd.f32 %v5524_v32, %v5523_v37  ;;  %v5532_v51 = vsel %vm3015_vm4, %v5505_v26, 0.0 }
 0x32a   : > { %v5534_v13 = vsel %vm3015_vm4, %v5507_v63, 0.0 }
 0x32b   : > { %v5513_v62 = vadd.f32 %v5512_v50, %v5504_v55  ;;  %v5527_v47 = vadd.f32 %v5526_v53, %v5525_v16 }
 0x32d   : > { %v5514_v54 = vadd.f32 %v5513_v62, %v5506_v1  ;;  %v5529_v60 = vadd.f32 %v5528_v59, %v5527_v47 }
 0x32f   : > { %v5515_v35 = vrot.slane %v5514_v54, 4  ;;  %v5531_v45 = vadd.f32 %v5530_v22, %v5529_v60 }
 0x331   : > { %v5516_v19 = vadd.f32 %v5515_v35, %v5514_v54  ;;  %v5533_v12 = vadd.f32 %v5532_v51, %v5531_v45 }
 0x333   : > { %v5517_v31 = vrot.slane %v5516_v19, 2  ;;  %v5535_v57 = vadd.f32 %v5534_v13, %v5533_v12 }
 0x335   : > { %v5536_v17 = vrot.slane %v5535_v57, 4  ;;  %v5518_v48 = vadd.f32 %v5517_v31, %v5516_v19 }
 0x337   : > { %v5537_v27 = vadd.f32 %v5536_v17, %v5535_v57  ;;  %v5519_v29 = vrot.slane %v5518_v48, 1 }
 0x339   : > { %v5538_v11 = vrot.slane %v5537_v27, 2  ;;  %v5520_v33 = vadd.f32 %v5519_v29, %v5518_v48 }
 0x33b   : > { %v5539_v18 = vadd.f32 %v5538_v11, %v5537_v27 }
 0x33d   : > { %v5540_v2 = vrot.slane %v5539_v18, 1 }
 0x33f   : > { %v5541_v5 = vadd.f32 %v5540_v2, %v5539_v18 }
 0x341   : > { %v5544_v0 = vcombine.low %v5520_v33, %v5541_v5 }
 0x343   : > { %v5551_v36 = vrot.slane %v5544_v0, %v10124_v23 }
 0x345   : > { %v5558_v7 = vrot.slane %v5551_v36, %v10124_v23 }
 0x347   : > { %6352 = vst.msk [vmem:[%s9962_s14 + $0x1] ss:$2 sm:$0x3] %vm9597_vm5, %v5558_v7 }
 0x348 PF: > { %s17_s21 = sadd.s32 1, %s7340_s21  }
 0x349   : > { %p14_p5 = scmp.ge.s32.totalorder %s17_s21, 4  }
 0x34b   :  { %16 = sbr.rel (!%p14_p5) target bundleno = 1 (0x1), region = 100 }

// kernel: block8_forward.6
= control target key start
LH: loop header
LB: loop body
LE: loop exit
PB: predicated region body
PF: predicated region fallthrough
CT: control target
= control target key end

     0   :  { %s1711_s12 = smov 0   ;;  %s2121_s0 = inlined_call_operand.vmem [shape: bf16[128,672], index: 0, kind: input, shape index: {}]   ;;  %s2122_s1 = inlined_call_operand.vmem [shape: bf16[672,256], index: 1, kind: input, shape index: {}]   ;;  %s2123_s2 = inlined_call_operand.vmem [shape: bf16[128,256], index: 2, kind: output, shape index: {0}]   ;;  %s2124_s3 = inlined_call_operand.vmem [shape: f32[2,2,256], index: 3, kind: output, shape index: {1}]  }
   0x1 LB: > { %s1717_s13 = sadd.s32 4294967295, %s1688_s12   ;;  %p1349_p0 = scmp.ge.s32.totalorder %s1688_s12, 1  ;;  %s1688_s12 = sphi %s1711_s12, %s14_s12  }
   0x2   : > { %p142_p1 = scmp.lt.s32.totalorder %s1688_s12, 3 }
   0x4   : > { %p143_p2 = pnand %p1349_p0, %p142_p1 }
   0x5   : > { %s1350_s24 = sshll.u32 (!%p143_p2), %s1717_s13, 3  ;;  %p187_p4 = scmp.lt.s32.totalorder (!%p143_p2), %s1717_s13, 1 }
   0x6   : > { %146 = sbr.rel (%p143_p2) target bundleno = 387 (0x183), region = 28  ;;  %p174_p3 = scmp.lt.s32.totalorder (!%p143_p2), %s1350_s24, 15 }
   0xb   : > { %v1520_v0 = vld [vmem:[%s2122_s1 + $0x74] ss:$8 sps:$4 sm:$0xff]   ;;  %v1524_v2 = vld [vmem:[%s2122_s1 + $0x70] ss:$8 sps:$4 sm:$0xff]   ;;  %v1526_v4 = vld [vmem:[%s2122_s1 + $0x64] ss:$8 sps:$4 sm:$0xff]  }
   0xc   : > { %v1522_v1 = vld [vmem:[%s2122_s1 + $0x174] ss:$8 sps:$4 sm:$0xff]   ;;  %850 = vmatprep.subr.bf16.mxu0 %v1520_v0  ;;  %v1525_v3 = vld [vmem:[%s2122_s1 + $0x170] ss:$8 sps:$4 sm:$0xff]   ;;  %v1528_v5 = vld [vmem:[%s2122_s1 + $0x164] ss:$8 sps:$4 sm:$0xff]  }
   0xd   : > { %923 = vmatprep.subr.bf16.mxu1 %v1522_v1  ;;  %851 = vmatpush1.bf16.msra.mxu0 %v1524_v2  ;;  %v1530_v6 = vld [vmem:[%s2122_s1 + $0x60] ss:$8 sps:$4 sm:$0xff]   ;;  %v1532_v8 = vld [vmem:[%s2122_s1 + $0x54] ss:$8 sps:$4 sm:$0xff]   ;;  %v1536_v10 = vld [vmem:[%s2122_s1 + $0x50] ss:$8 sps:$4 sm:$0xff]  }
   0xe   : > { %924 = vmatpush1.bf16.msra.mxu1 %v1525_v3  ;;  %852 = vmatprep.subr.bf16.mxu0 %v1526_v4  ;;  %v1531_v7 = vld [vmem:[%s2122_s1 + $0x160] ss:$8 sps:$4 sm:$0xff]   ;;  %v1534_v9 = vld [vmem:[%s2122_s1 + $0x154] ss:$8 sps:$4 sm:$0xff]   ;;  %v1537_v11 = vld [vmem:[%s2122_s1 + $0x150] ss:$8 sps:$4 sm:$0xff]  }
   0xf   : > { %925 = vmatprep.subr.bf16.mxu1 %v1528_v5  ;;  %v1538_v12 = vld [vmem:[%s2122_s1 + $0x44] ss:$8 sps:$4 sm:$0xff]   ;;  %v1542_v14 = vld [vmem:[%s2122_s1 + $0x40] ss:$8 sps:$4 sm:$0xff]   ;;  %v1544_v16 = vld [vmem:[%s2122_s1 + $0x34] ss:$8 sps:$4 sm:$0xff]  }
  0x10   : > { %v1540_v13 = vld [vmem:[%s2122_s1 + $0x144] ss:$8 sps:$4 sm:$0xff]   ;;  %v1543_v15 = vld [vmem:[%s2122_s1 + $0x140] ss:$8 sps:$4 sm:$0xff]   ;;  %v1546_v17 = vld [vmem:[%s2122_s1 + $0x134] ss:$8 sps:$4 sm:$0xff]  }
  0x11   : > { %853 = vmatpush1.bf16.msra.mxu0 %v1530_v6  ;;  %v1548_v18 = vld [vmem:[%s2122_s1 + $0x30] ss:$8 sps:$4 sm:$0xff]   ;;  %v1550_v20 = vld [vmem:[%s2122_s1 + $0x24] ss:$8 sps:$4 sm:$0xff]   ;;  %v1554_v22 = vld [vmem:[%s2122_s1 + $0x20] ss:$8 sps:$4 sm:$0xff]  }
  0x12   : > { %926 = vmatpush1.bf16.msra.mxu1 %v1531_v7  ;;  %854 = vmatprep.subr.bf16.mxu0 %v1532_v8  ;;  %v1549_v19 = vld [vmem:[%s2122_s1 + $0x130] ss:$8 sps:$4 sm:$0xff]   ;;  %v1552_v21 = vld [vmem:[%s2122_s1 + $0x124] ss:$8 sps:$4 sm:$0xff]   ;;  %v1555_v23 = vld [vmem:[%s2122_s1 + $0x120] ss:$8 sps:$4 sm:$0xff]  }
  0x13   : > { %927 = vmatprep.subr.bf16.mxu1 %v1534_v9  ;;  %v1556_v24 = vld [vmem:[%s2122_s1 + $0x14] ss:$8 sps:$4 sm:$0xff]   ;;  %v1560_v26 = vld [vmem:[%s2122_s1 + $0x10] ss:$8 sps:$4 sm:$0xff]   ;;  %v1562_v28 = vld [vmem:[%s2122_s1 + $0x4] ss:$8 sps:$4 sm:$0xff]  }
  0x14   : > { %v1558_v25 = vld [vmem:[%s2122_s1 + $0x114] ss:$8 sps:$4 sm:$0xff]   ;;  %v1561_v27 = vld [vmem:[%s2122_s1 + $0x110] ss:$8 sps:$4 sm:$0xff]   ;;  %v1564_v29 = vld [vmem:[%s2122_s1 + $0x104] ss:$8 sps:$4 sm:$0xff]  }
  0x15   : > { %855 = vmatpush1.bf16.msra.mxu0 %v1536_v10  ;;  %v1566_v30 = vld [vmem:[%s2122_s1] ss:$8 sps:$4 sm:$0xff]   ;;  %v1568_v32 = vld [vmem:[%s2122_s1 + $0xf4] ss:$8 sps:$4 sm:$0xff]   ;;  %v1572_v34 = vld [vmem:[%s2122_s1 + $0xf0] ss:$8 sps:$4 sm:$0xff]  }
  0x16   : > { %928 = vmatpush1.bf16.msra.mxu1 %v1537_v11  ;;  %856 = vmatprep.subr.bf16.mxu0 %v1538_v12  ;;  %v1567_v31 = vld [vmem:[%s2122_s1 + $0x100] ss:$8 sps:$4 sm:$0xff]   ;;  %v1570_v33 = vld [vmem:[%s2122_s1 + $0x1f4] ss:$8 sps:$4 sm:$0xff]   ;;  %v1573_v35 = vld [vmem:[%s2122_s1 + $0x1f0] ss:$8 sps:$4 sm:$0xff]  }
  0x17   : > { %929 = vmatprep.subr.bf16.mxu1 %v1540_v13  ;;  %v1574_v36 = vld [vmem:[%s2122_s1 + $0xe4] ss:$8 sps:$4 sm:$0xff]   ;;  %s2128_s24 = smov (!%p174_p3, %s1350_s24), 15  ;;  %v1578_v38 = vld [vmem:[%s2122_s1 + $0xe0] ss:$8 sps:$4 sm:$0xff]   ;;  %vm837_vm0 = vcmask 261120  }
  0x18   : > { %v1576_v37 = vld [vmem:[%s2122_s1 + $0x1e4] ss:$8 sps:$4 sm:$0xff]   ;;  %v1579_v39 = vld [vmem:[%s2122_s1 + $0x1e0] ss:$8 sps:$4 sm:$0xff]   ;;  %v1580_v40 = vld [vmem:[%s2122_s1 + $0xd4] ss:$8 sps:$4 sm:$0xff]  }
  0x19   : > { %857 = vmatpush1.bf16.msra.mxu0 %v1542_v14  ;;  %s1510_s22 = smul.u32 24, %s2128_s24  ;;  %v1582_v41 = vld [vmem:[%s2122_s1 + $0x1d4] ss:$8 sps:$4 sm:$0xff]   ;;  %v1584_v42 = vld [vmem:[%s2122_s1 + $0xd0] ss:$8 sps:$4 sm:$0xff]   ;;  %s2130_s13 = smov (!%p187_p4, %s1717_s13), 1 }
  0x1a   : > { %930 = vmatpush1.bf16.msra.mxu1 %v1543_v15  ;;  %858 = vmatprep.subr.bf16.mxu0 %v1544_v16  ;;  %v1585_v43 = vld [vmem:[%s2122_s1 + $0x1d0] ss:$8 sps:$4 sm:$0xff]   ;;  %v1586_v44 = vld [vmem:[%s2122_s1 + $0xc4] ss:$8 sps:$4 sm:$0xff]   ;;  %v1590_v46 = vld [vmem:[%s2122_s1 + $0xc0] ss:$8 sps:$4 sm:$0xff]  }
  0x1b   : > { %931 = vmatprep.subr.bf16.mxu1 %v1546_v17  ;;  %s1863_s7 = scalar_lea.vmem %s2121_s0, %s1510_s22  ;;  %v1588_v45 = vld [vmem:[%s2122_s1 + $0x1c4] ss:$8 sps:$4 sm:$0xff]   ;;  %v1591_v47 = vld [vmem:[%s2122_s1 + $0x1c0] ss:$8 sps:$4 sm:$0xff]   ;;  %v1592_v48 = vld [vmem:[%s2122_s1 + $0xb4] ss:$8 sps:$4 sm:$0xff]  }
  0x1c   : > { %v1618_v49 = vld [vmem:[%s1863_s7 + $0x4] ss:$24 sps:$4 sm:$0xff]   ;;  %v1596_v52 = vld [vmem:[%s2122_s1 + $0xb0] ss:$8 sps:$4 sm:$0xff]   ;;  %v1602_v56 = vld [vmem:[%s2122_s1 + $0xa0] ss:$8 sps:$4 sm:$0xff]  }
  0x1d   : > { %859 = vmatpush1.bf16.msra.mxu0 %v1548_v18  ;;  %v1594_v50 = vld [vmem:[%s2122_s1 + $0x1b4] ss:$8 sps:$4 sm:$0xff]   ;;  %v1621_v51 = vld [vmem:[%s1863_s7 + $0xc] ss:$24 sps:$4 sm:$0xff]   ;;  %882 = vmatprep.mubr.bf16.mxu0 %v1618_v49  ;;  %v1597_v53 = vld [vmem:[%s2122_s1 + $0x1b0] ss:$8 sps:$4 sm:$0xff]  }
  0x1e   : > { %932 = vmatpush1.bf16.msra.mxu1 %v1549_v19  ;;  %860 = vmatprep.subr.bf16.mxu0 %v1550_v20  ;;  %v1598_v54 = vld [vmem:[%s2122_s1 + $0xa4] ss:$8 sps:$4 sm:$0xff]   ;;  %v1603_v57 = vld [vmem:[%s2122_s1 + $0x1a0] ss:$8 sps:$4 sm:$0xff]   ;;  %v1604_v58 = vld [vmem:[%s2122_s1 + $0x94] ss:$8 sps:$4 sm:$0xff]  }
  0x1f   : > { %933 = vmatprep.subr.bf16.mxu1 %v1552_v21  ;;  %955 = vmatprep.mubr.bf16.mxu1 %v1621_v51  ;;  %v1600_v55 = vld [vmem:[%s2122_s1 + $0x1a4] ss:$8 sps:$4 sm:$0xff]   ;;  %v1606_v59 = vld [vmem:[%s2122_s1 + $0x194] ss:$8 sps:$4 sm:$0xff]   ;;  %v1608_v60 = vld [vmem:[%s2122_s1 + $0x90] ss:$8 sps:$4 sm:$0xff]  }
  0x20   : > { %v1609_v61 = vld [vmem:[%s2122_s1 + $0x190] ss:$8 sps:$4 sm:$0xff]   ;;  %v1610_v62 = vld [vmem:[%s2122_s1 + $0x84] ss:$8 sps:$4 sm:$0xff]   ;;  %v1614_v0 = vld [vmem:[%s2122_s1 + $0x80] ss:$8 sps:$4 sm:$0xff]  }
  0x21   : > { %861 = vmatpush1.bf16.msra.mxu0 %v1554_v22  ;;  %v1612_v63 = vld [vmem:[%s2122_s1 + $0x184] ss:$8 sps:$4 sm:$0xff]   ;;  %v1615_v1 = vld [vmem:[%s2122_s1 + $0x180] ss:$8 sps:$4 sm:$0xff]   ;;  %v1624_v2 = vld [vmem:[%s2122_s1 + $0x274] ss:$8 sps:$4 sm:$0xff]  }
  0x22   : > { %934 = vmatpush1.bf16.msra.mxu1 %v1555_v23  ;;  %862 = vmatprep.subr.bf16.mxu0 %v1556_v24  ;;  %v1616_v3 = vld [vmem:[%s1863_s7] ss:$24 sps:$4 sm:$0xff]   ;;  %v1627_v6 = vld [vmem:[%s2122_s1 + $0x264] ss:$8 sps:$4 sm:$0xff]   ;;  %v1633_v8 = vld [vmem:[%s1863_s7 + $0x3c] ss:$24 sps:$4 sm:$0xff]  }
  0x23   : > { %935 = vmatprep.subr.bf16.mxu1 %v1558_v25  ;;  %v1619_v4 = vld [vmem:[%s1863_s7 + $0x8] ss:$24 sps:$4 sm:$0xff]   ;;  %v1622_v5 = vld [vmem:[%s2122_s1 + $0x270] ss:$8 sps:$4 sm:$0xff]   ;;  %v1631_v7 = vld [vmem:[%s1863_s7 + $0x34] ss:$24 sps:$4 sm:$0xff]  }
  0x24   : > { %v1625_v9 = vld [vmem:[%s2122_s1 + $0x260] ss:$8 sps:$4 sm:$0xff]   ;;  %v1630_v10 = vld [vmem:[%s2122_s1 + $0x254] ss:$8 sps:$4 sm:$0xff]   ;;  %v1636_v12 = vld [vmem:[%s1863_s7 + $0x38] ss:$24 sps:$4 sm:$0xff]  }
  0x25   : > { %863 = vmatpush1.bf16.msra.mxu0 %v1560_v26  ;;  %v1635_v11 = vld [vmem:[%s1863_s7 + $0x30] ss:$24 sps:$4 sm:$0xff]   ;;  %v1639_v14 = vld [vmem:[%s2122_s1 + $0x244] ss:$8 sps:$4 sm:$0xff]   ;;  %v1642_v18 = vld [vmem:[%s2122_s1 + $0x234] ss:$8 sps:$4 sm:$0xff]  }
  0x26   : > { %936 = vmatpush1.bf16.msra.mxu1 %v1561_v27  ;;  %864 = vmatprep.subr.bf16.mxu0 %v1562_v28  ;;  %v1628_v13 = vld [vmem:[%s2122_s1 + $0x250] ss:$8 sps:$4 sm:$0xff]   ;;  %v1643_v15 = vld [vmem:[%s1863_s7 + $0x64] ss:$24 sps:$4 sm:$0xff]   ;;  %v1637_v17 = vld [vmem:[%s2122_s1 + $0x240] ss:$8 sps:$4 sm:$0xff]  }
  0x27   : > { %937 = vmatprep.subr.bf16.mxu1 %v1564_v29  ;;  %v1645_v16 = vld [vmem:[%s1863_s7 + $0x6c] ss:$24 sps:$4 sm:$0xff]   ;;  %v1647_v19 = vld [vmem:[%s1863_s7 + $0x60] ss:$24 sps:$4 sm:$0xff]   ;;  %v1657_v24 = vld [vmem:[%s1863_s7 + $0x9c] ss:$24 sps:$4 sm:$0xff]  }
  0x28   : > { %v1648_v20 = vld [vmem:[%s1863_s7 + $0x68] ss:$24 sps:$4 sm:$0xff]   ;;  %v1640_v21 = vld [vmem:[%s2122_s1 + $0x230] ss:$8 sps:$4 sm:$0xff]   ;;  %v1651_v22 = vld [vmem:[%s2122_s1 + $0x224] ss:$8 sps:$4 sm:$0xff]  }
  0x29   : > { %865 = vmatpush1.bf16.msra.mxu0 %v1566_v30  ;;  %v1655_v23 = vld [vmem:[%s1863_s7 + $0x94] ss:$24 sps:$4 sm:$0xff]   ;;  %v1649_v25 = vld [vmem:[%s2122_s1 + $0x220] ss:$8 sps:$4 sm:$0xff]   ;;  %v1660_v28 = vld [vmem:[%s1863_s7 + $0x98] ss:$24 sps:$4 sm:$0xff]  }
  0x2a   : > { %938 = vmatpush1.bf16.msra.mxu1 %v1567_v31  ;;  %866 = vmatprep.subr.bf16.mxu0 %v1568_v32  ;;  %v1654_v26 = vld [vmem:[%s2122_s1 + $0x214] ss:$8 sps:$4 sm:$0xff]   ;;  %v1659_v27 = vld [vmem:[%s1863_s7 + $0x90] ss:$24 sps:$4 sm:$0xff]   ;;  %v1663_v30 = vld [vmem:[%s2122_s1 + $0x204] ss:$8 sps:$4 sm:$0xff]  }
  0x2b   : > { %939 = vmatprep.subr.bf16.mxu1 %v1570_v33  ;;  %v1652_v29 = vld [vmem:[%s2122_s1 + $0x210] ss:$8 sps:$4 sm:$0xff]   ;;  %v1672_v31 = vld [vmem:[%s1863_s7 + $0x14] ss:$24 sps:$4 sm:$0xff]   ;;  %v1661_v33 = vld [vmem:[%s2122_s1 + $0x200] ss:$8 sps:$4 sm:$0xff]  }
  0x2c   : > { %v1675_v32 = vld [vmem:[%s1863_s7 + $0x74] ss:$24 sps:$4 sm:$0xff]  }
  0x2d   : > { %867 = vmatpush2.bf16.msra.mxu0 %v1572_v34  ;;  %v1666_v34 = vld [vmem:[%s2122_s1 + $0x294] ss:$8 sps:$4 sm:$0xff]  }
  0x2e   : > { %940 = vmatpush2.bf16.msra.mxu1 %v1573_v35  ;;  %868 = vmatprep.subr.bf16.mxu0 %v1574_v36  ;;  %v1664_v35 = vld [vmem:[%s2122_s1 + $0x290] ss:$8 sps:$4 sm:$0xff]   ;;  %v1669_v36 = vld [vmem:[%s2122_s1 + $0x284] ss:$8 sps:$4 sm:$0xff]  }
  0x2f   : > { %941 = vmatprep.subr.bf16.mxu1 %v1576_v37  ;;  %v1667_v37 = vld [vmem:[%s2122_s1 + $0x280] ss:$8 sps:$4 sm:$0xff]  }
  0x31   : > { %869 = vmatpush2.bf16.msra.mxu0 %v1578_v38  ;;  %v1670_v38 = vld [vmem:[%s1863_s7 + $0x10] ss:$24 sps:$4 sm:$0xff]  }
  0x32   : > { %942 = vmatpush2.bf16.msra.mxu1 %v1579_v39  ;;  %870 = vmatprep.subr.bf16.mxu0 %v1580_v40  ;;  %v1673_v39 = vld [vmem:[%s1863_s7 + $0x70] ss:$24 sps:$4 sm:$0xff]   ;;  %v1676_v40 = vld [vmem:[%s1863_s7 + $0x44] ss:$24 sps:$4 sm:$0xff]  }
  0x33   : > { %943 = vmatprep.subr.bf16.mxu1 %v1582_v41  ;;  %v1678_v41 = vld [vmem:[%s1863_s7 + $0xa4] ss:$24 sps:$4 sm:$0xff]  }
  0x35   : > { %871 = vmatpush2.bf16.msra.mxu0 %v1584_v42  ;;  %v1680_v42 = vld [vmem:[%s1863_s7 + $0x40] ss:$24 sps:$4 sm:$0xff]  }
  0x36   : > { %944 = vmatpush2.bf16.msra.mxu1 %v1585_v43  ;;  %872 = vmatprep.subr.bf16.mxu0 %v1586_v44  ;;  %v1681_v43 = vld [vmem:[%s1863_s7 + $0xa0] ss:$24 sps:$4 sm:$0xff]   ;;  %s1480_s7 = sshll.u32 %s2128_s24, 3  ;;  %s1481_s24 = sshll.u32 %s2130_s13, 2 }
  0x37   : > { %945 = vmatprep.subr.bf16.mxu1 %v1588_v45  ;;  %s2026_s21 = scalar_lea.vmem %s2123_s2, %s1480_s7  ;;  %s2098_s25 = scalar_lea.vmem %s2124_s3, %s1481_s24 }
  0x39   : > { %873 = vmatpush2.bf16.msra.mxu0 %v1590_v46 }
  0x3a   : > { %946 = vmatpush2.bf16.msra.mxu1 %v1591_v47  ;;  %874 = vmatprep.subr.bf16.mxu0 %v1592_v48 }
  0x3b   : > { %947 = vmatprep.subr.bf16.mxu1 %v1594_v50 }
  0x3d   : > { %875 = vmatpush2.bf16.msra.mxu0 %v1596_v52 }
  0x3e   : > { %948 = vmatpush2.bf16.msra.mxu1 %v1597_v53  ;;  %876 = vmatprep.subr.bf16.mxu0 %v1598_v54 }
  0x3f   : > { %949 = vmatprep.subr.bf16.mxu1 %v1600_v55 }
  0x41   : > { %877 = vmatpush2.bf16.msra.mxu0 %v1602_v56 }
  0x42   : > { %950 = vmatpush2.bf16.msra.mxu1 %v1603_v57  ;;  %878 = vmatprep.subr.bf16.mxu0 %v1604_v58 }
  0x43   : > { %951 = vmatprep.subr.bf16.mxu1 %v1606_v59 }
  0x45   : > { %879 = vmatpush2.bf16.msra.mxu0 %v1608_v60 }
  0x46   : > { %952 = vmatpush2.bf16.msra.mxu1 %v1609_v61  ;;  %880 = vmatprep.subr.bf16.mxu0 %v1610_v62 }
  0x47   : > { %953 = vmatprep.subr.bf16.mxu1 %v1612_v63 }
  0x49   : > { %881 = vmatpush2.bf16.msra.mxu0 %v1614_v0 }
  0x4a   : > { %954 = vmatpush2.bf16.msra.mxu1 %v1615_v1  ;;  %996 = vmatprep.subr.bf16.mxu0 %v1624_v2 }
  0x4b   : > { %1490 = vmatprep.subr.bf16.mxu1 %v1624_v2 }
  0x4c   : > { %883 = vmatmul.mubr.bf16.vlgmr.msra.gmra.mxu0 %v1616_v3 }
  0x4d   : > { %956 = vmatmul.mubr.bf16.vlgmr.msra.gmra.mxu1 %v1619_v4  ;;  %997 = vmatpush1.bf16.msra.mxu0 %v1622_v5 }
  0x4e   : > { %1500 = vmatpush1.bf16.msra.mxu1 %v1622_v5  ;;  %998 = vmatprep.subr.bf16.mxu0 %v1627_v6 }
  0x4f   : > { %1491 = vmatprep.subr.bf16.mxu1 %v1627_v6  ;;  %892 = vmatprep.mubr.bf16.mxu0 %v1631_v7 }
  0x50   : > { %965 = vmatprep.mubr.bf16.mxu1 %v1633_v8 }
  0x51   : > { %999 = vmatpush1.bf16.msra.mxu0 %v1625_v9 }
  0x52   : > { %1501 = vmatpush1.bf16.msra.mxu1 %v1625_v9  ;;  %1000 = vmatprep.subr.bf16.mxu0 %v1630_v10 }
  0x53   : > { %1492 = vmatprep.subr.bf16.mxu1 %v1630_v10 }
  0x54   : > { %893 = vmatmul.mubr.bf16.gmra.mxu0 %v1635_v11 }
  0x55   : > { %966 = vmatmul.mubr.bf16.gmra.mxu1 %v1636_v12  ;;  %1001 = vmatpush1.bf16.msra.mxu0 %v1628_v13 }
  0x56   : > { %1502 = vmatpush1.bf16.msra.mxu1 %v1628_v13  ;;  %1002 = vmatprep.subr.bf16.mxu0 %v1639_v14 }
  0x57   : > { %1493 = vmatprep.subr.bf16.mxu1 %v1639_v14  ;;  %902 = vmatprep.mubr.bf16.mxu0 %v1643_v15 }
  0x58   : > { %975 = vmatprep.mubr.bf16.mxu1 %v1645_v16 }
  0x59   : > { %1003 = vmatpush1.bf16.msra.mxu0 %v1637_v17 }
  0x5a   : > { %1503 = vmatpush1.bf16.msra.mxu1 %v1637_v17  ;;  %1004 = vmatprep.subr.bf16.mxu0 %v1642_v18 }
  0x5b   : > { %1494 = vmatprep.subr.bf16.mxu1 %v1642_v18 }
  0x5c   : > { %903 = vmatmul.mubr.bf16.gmra.mxu0 %v1647_v19 }
  0x5d   : > { %976 = vmatmul.mubr.bf16.gmra.mxu1 %v1648_v20  ;;  %1005 = vmatpush1.bf16.msra.mxu0 %v1640_v21 }
  0x5e   : > { %1504 = vmatpush1.bf16.msra.mxu1 %v1640_v21  ;;  %1006 = vmatprep.subr.bf16.mxu0 %v1651_v22 }
  0x5f   : > { %1495 = vmatprep.subr.bf16.mxu1 %v1651_v22  ;;  %912 = vmatprep.mubr.bf16.mxu0 %v1655_v23 }
  0x60   : > { %985 = vmatprep.mubr.bf16.mxu1 %v1657_v24 }
  0x61   : > { %1007 = vmatpush1.bf16.msra.mxu0 %v1649_v25 }
  0x62   : > { %1505 = vmatpush1.bf16.msra.mxu1 %v1649_v25  ;;  %1008 = vmatprep.subr.bf16.mxu0 %v1654_v26 }
  0x63   : > { %1496 = vmatprep.subr.bf16.mxu1 %v1654_v26 }
  0x64   : > { %913 = vmatmul.mubr.bf16.gmra.mxu0 %v1659_v27 }
  0x65   : > { %986 = vmatmul.mubr.bf16.gmra.mxu1 %v1660_v28  ;;  %1009 = vmatpush1.bf16.msra.mxu0 %v1652_v29 }
  0x66   : > { %1506 = vmatpush1.bf16.msra.mxu1 %v1652_v29  ;;  %1010 = vmatprep.subr.bf16.mxu0 %v1663_v30 }
  0x67   : > { %1497 = vmatprep.subr.bf16.mxu1 %v1663_v30  ;;  %1465 = vmatprep.mubr.msk.bf16.mxu0 %vm837_vm0, %v1672_v31 }
  0x68   : > { %1467 = vmatprep.mubr.msk.bf16.mxu1 %vm837_vm0, %v1675_v32 }
  0x69   : > { %1011 = vmatpush1.bf16.msra.mxu0 %v1661_v33 }
  0x6a   : > { %1507 = vmatpush1.bf16.msra.mxu1 %v1661_v33  ;;  %1024 = vmatprep.subr.bf16.mxu0 %v1666_v34 }
  0x6b   : > { %1498 = vmatprep.subr.bf16.mxu1 %v1666_v34 }
  0x6d   : > { %1025 = vmatpush2.bf16.msra.mxu0 %v1664_v35 }
  0x6e   : > { %1508 = vmatpush2.bf16.msra.mxu1 %v1664_v35  ;;  %1026 = vmatprep.subr.bf16.mxu0 %v1669_v36 }
  0x6f   : > { %1499 = vmatprep.subr.bf16.mxu1 %v1669_v36 }
  0x71   : > { %1027 = vmatpush2.bf16.msra.mxu0 %v1667_v37 }
  0x72   : > { %1509 = vmatpush2.bf16.msra.mxu1 %v1667_v37 }
  0x74   : > { %1029 = vmatmul.mubr.bf16.vlgmr.msra.gmra.mxu0 %v1670_v38 }
  0x75   : > { %1049 = vmatmul.mubr.bf16.vlgmr.msra.gmra.mxu1 %v1673_v39  ;;  %1466 = vmatprep.mubr.msk.bf16.mxu0 %vm837_vm0, %v1676_v40 }
  0x76   : > { %1468 = vmatprep.mubr.msk.bf16.mxu1 %vm837_vm0, %v1678_v41 }
  0x7c   : > { %1039 = vmatmul.mubr.bf16.gmra.mxu0 %v1680_v42 }
  0x7d   : > { %1059 = vmatmul.mubr.bf16.gmra.mxu1 %v1681_v43 }
 0x10c   : > { %v884_v44 = vpop.f32.mrf.mxu0 }
 0x10d   : > { %v957_v45 = vpop.f32.mrf.mxu1 }
 0x10e   : > { %v886_v46 = vpop.f32.mrf.mxu0  ;;  %v958_v14 = vadd.f32 %v957_v45, %v884_v44 }
 0x10f   : > { %v959_v47 = vpop.f32.mrf.mxu1 }
 0x110   : > { %v888_v48 = vpop.f32.mrf.mxu0  ;;  %v960_v15 = vadd.f32 %v959_v47, %v886_v46 }
 0x111   : > { %v961_v49 = vpop.f32.mrf.mxu1 }
 0x112   : > { %v890_v50 = vpop.f32.mrf.mxu0  ;;  %v962_v24 = vadd.f32 %v961_v49, %v888_v48 }
 0x113   : > { %v963_v51 = vpop.f32.mrf.mxu1 }
 0x114   : > { %v894_v52 = vpop.f32.mrf.mxu0  ;;  %v964_v25 = vadd.f32 %v963_v51, %v890_v50 }
 0x115   : > { %v967_v53 = vpop.f32.mrf.mxu1 }
 0x116   : > { %v896_v54 = vpop.f32.mrf.mxu0  ;;  %v968_v32 = vadd.f32 %v967_v53, %v894_v52 }
 0x117   : > { %v969_v55 = vpop.f32.mrf.mxu1 }
 0x118   : > { %v898_v56 = vpop.f32.mrf.mxu0  ;;  %v970_v39 = vadd.f32 %v969_v55, %v896_v54 }
 0x119   : > { %v971_v57 = vpop.f32.mrf.mxu1 }
 0x11a   : > { %v2010_v58 = vpop.f32.mrf.mxu0  ;;  %v972_v47 = vadd.f32 %v971_v57, %v898_v56 }
 0x11b   : > { %v2012_v59 = vpop.f32.mrf.mxu1 }
 0x11c   : > { %v904_v60 = vpop.f32.mrf.mxu0  ;;  %v974_v54 = vadd.f32 %v2012_v59, %v2010_v58 }
 0x11d   : > { %v977_v61 = vpop.f32.mrf.mxu1 }
 0x11e   : > { %v906_v62 = vpop.f32.mrf.mxu0  ;;  %v978_v16 = vadd.f32 %v977_v61, %v904_v60 }
 0x11f   : > { %v979_v63 = vpop.f32.mrf.mxu1 }
 0x120   : > { %v908_v0 = vpop.f32.mrf.mxu0  ;;  %v980_v17 = vadd.f32 %v979_v63, %v906_v62 }
 0x121   : > { %v981_v1 = vpop.f32.mrf.mxu1 }
 0x122   : > { %v910_v2 = vpop.f32.mrf.mxu0  ;;  %v982_v28 = vadd.f32 %v981_v1, %v908_v0 }
 0x123   : > { %v983_v3 = vpop.f32.mrf.mxu1 }
 0x124   : > { %v914_v4 = vpop.f32.mrf.mxu0  ;;  %v984_v29 = vadd.f32 %v983_v3, %v910_v2 }
 0x125   : > { %v987_v5 = vpop.f32.mrf.mxu1 }
 0x126   : > { %v916_v6 = vpop.f32.mrf.mxu0  ;;  %v988_v40 = vadd.f32 %v987_v5, %v914_v4 }
 0x127   : > { %v989_v7 = vpop.f32.mrf.mxu1 }
 0x128   : > { %v918_v8 = vpop.f32.mrf.mxu0  ;;  %v990_v43 = vadd.f32 %v989_v7, %v916_v6 }
 0x129   : > { %v991_v9 = vpop.f32.mrf.mxu1 }
 0x12a   : > { %v920_v10 = vpop.f32.mrf.mxu0  ;;  %v992_v55 = vadd.f32 %v991_v9, %v918_v8 }
 0x12b   : > { %v993_v11 = vpop.f32.mrf.mxu1 }
 0x12c   : > { %v994_v56 = vadd.f32 %v993_v11, %v920_v10 }
 0x134   : > { %v1030_v12 = vpop.f32.mrf.mxu0 }
 0x135   : > { %v1050_v13 = vpop.f32.mrf.mxu1  ;;  %v2015_v20 = vadd.f32 %v1030_v12, %v958_v14 }
 0x136   : > { %v1032_v18 = vpop.f32.mrf.mxu0  ;;  %v2017_v21 = vadd.f32 %v1050_v13, %v978_v16 }
 0x137   : > { %v1052_v19 = vpop.f32.mrf.mxu1  ;;  %v2019_v22 = vadd.f32 %v1032_v18, %v960_v15 }
 0x138   : > { %v2021_v23 = vadd.f32 %v1052_v19, %v980_v17  ;;  %v1034_v26 = vpop.f32.mrf.mxu0 }
 0x139   : > { %v1054_v27 = vpop.f32.mrf.mxu1  ;;  %v1482_v30 = vpack.c.bf16 %v2019_v22, %v2015_v20  ;;  %v2034_v35 = vadd.f32 %v1034_v26, %v962_v24 }
 0x13a   : > { %v1486_v31 = vpack.c.bf16 %v2021_v23, %v2017_v21  ;;  %v1036_v33 = vpop.f32.mrf.mxu0  ;;  %v2036_v36 = vadd.f32 %v1054_v27, %v982_v28 }
 0x13b   : > { %v1056_v34 = vpop.f32.mrf.mxu1  ;;  %1117 = vst [vmem:[%s2026_s21] sm:$0xff] %v1482_v30  ;;  %v2038_v37 = vadd.f32 %v1036_v33, %v964_v25  ;;  %v1125_v50 = vadd.f32 %v2034_v35, %v2015_v20  ;;  %v1175_v33 = vlaneseq }
 0x13c   : > { %1121 = vst [vmem:[%s2026_s21 + $0x20] sm:$0xff] %v1486_v31  ;;  %v2040_v38 = vadd.f32 %v1056_v34, %v984_v29  ;;  %v1040_v41 = vpop.f32.mrf.mxu0  ;;  %v1690_v31 = vmov 1966171168  }
 0x13d   : > { %v1060_v42 = vpop.f32.mrf.mxu1  ;;  %v1483_v44 = vpack.c.bf16 %v2038_v37, %v2034_v35  ;;  %v1041_v46 = vadd.f32 %v1040_v41, %v968_v32  ;;  %v1138_v57 = vadd.f32 %v2038_v37, %v2019_v22  ;;  %v1173_v32 = vunpack.c.l.s4 %v1690_v31 }
 0x13e   : > { %v1487_v45 = vpack.c.bf16 %v2040_v38, %v2036_v36  ;;  %v1042_v48 = vpop.f32.mrf.mxu0  ;;  %v2050_v51 = vadd.f32 %v1060_v42, %v988_v40  ;;  %v1176_v42 = vshrl.u32 %v1175_v33, 7  ;;  %vm2100_vm1 = vcmp.lt.s32.totalorder %v1175_v33, 256 }
 0x13f   : > { %v1062_v49 = vpop.f32.mrf.mxu1  ;;  %1118 = vst [vmem:[%s2026_s21 + $0x8] sm:$0xff] %v1483_v44  ;;  %v2052_v52 = vadd.f32 %v1042_v48, %v970_v39  ;;  %v1126_v62 = vadd.f32 %v1125_v50, %v1041_v46  ;;  %v1174_v41 = vunpack.c.0.s8 %v1173_v32 }
 0x140   : > { %1122 = vst [vmem:[%s2026_s21 + $0x28] sm:$0xff] %v1487_v45  ;;  %v2054_v53 = vadd.f32 %v1062_v49, %v990_v43  ;;  %v1044_v60 = vpop.f32.mrf.mxu0 }
 0x141   : > { %v1064_v61 = vpop.f32.mrf.mxu1  ;;  %v1484_v63 = vpack.c.bf16 %v2052_v52, %v1041_v46  ;;  %v1045_v1 = vadd.f32 %v1044_v60, %v972_v47  ;;  %v1139_v2 = vadd.f32 %v1138_v57, %v2052_v52 }
 0x142   : > { %v1488_v0 = vpack.c.bf16 %v2054_v53, %v2050_v51  ;;  %v1046_v3 = vpop.f32.mrf.mxu0  ;;  %v2066_v4 = vadd.f32 %v1064_v61, %v992_v55  ;;  %v2087_v55 = vsub.s32 %v1174_v41, %v1176_v42 }
 0x143   : > { %v1066_v58 = vpop.f32.mrf.mxu1  ;;  %1119 = vst [vmem:[%s2026_s21 + $0x10] sm:$0xff] %v1484_v63  ;;  %v1127_v59 = vadd.f32 %v1126_v62, %v1045_v1  ;;  %v1047_v5 = vadd.f32 %v1046_v3, %v974_v54 }
 0x144   : > { %1123 = vst [vmem:[%s2026_s21 + $0x30] sm:$0xff] %v1488_v0  ;;  %v2068_v6 = vadd.f32 %v1066_v58, %v994_v56 }
 0x145   : > { %v1128_v7 = vadd.f32 %v1127_v59, %v2017_v21  ;;  %v1485_v8 = vpack.c.bf16 %v1047_v5, %v1045_v1  ;;  %v1140_v9 = vadd.f32 %v1139_v2, %v1047_v5 }
 0x146   : > { %v1489_v10 = vpack.c.bf16 %v2068_v6, %v2066_v4 }
 0x147   : > { %v1129_v11 = vadd.f32 %v1128_v7, %v2036_v36  ;;  %1120 = vst [vmem:[%s2026_s21 + $0x18] sm:$0xff] %v1485_v8  ;;  %v1141_v12 = vadd.f32 %v1140_v9, %v2021_v23 }
 0x148   : > { %1124 = vst [vmem:[%s2026_s21 + $0x38] sm:$0xff] %v1489_v10 }
 0x149   : > { %v1130_v13 = vadd.f32 %v1129_v11, %v2050_v51  ;;  %v1142_v14 = vadd.f32 %v1141_v12, %v2040_v38 }
 0x14b   : > { %v1131_v15 = vadd.f32 %v1130_v13, %v2066_v4  ;;  %v1143_v16 = vadd.f32 %v1142_v14, %v2054_v53 }
 0x14d   : > { %v1132_v17 = vrot.slane %v1131_v15, 4  ;;  %v1144_v18 = vadd.f32 %v1143_v16, %v2068_v6 }
 0x14f   : > { %v1133_v19 = vadd.f32 %v1132_v17, %v1131_v15  ;;  %v1145_v24 = vrot.slane %v1144_v18, 4 }
 0x151   : > { %v1134_v25 = vrot.slane %v1133_v19, 2  ;;  %v1146_v26 = vadd.f32 %v1145_v24, %v1144_v18 }
 0x153   : > { %v1135_v27 = vadd.f32 %v1134_v25, %v1133_v19  ;;  %v1147_v28 = vrot.slane %v1146_v26, 2 }
 0x155   : > { %v1136_v29 = vrot.slane %v1135_v27, 1  ;;  %v1148_v30 = vadd.f32 %v1147_v28, %v1146_v26 }
 0x157   : > { %v1137_v34 = vadd.f32 %v1136_v29, %v1135_v27  ;;  %v1149_v39 = vrot.slane %v1148_v30, 1 }
 0x159   : > { %v1151_v40 = vmul.f32 0.015625, %v1137_v34  ;;  %v1150_v47 = vadd.f32 %v1149_v39, %v1148_v30 }
 0x15b   : > { %v1153_v43 = vsub.f32 %v2015_v20, %v1151_v40  ;;  %v1155_v44 = vsub.f32 %v2034_v35, %v1151_v40  ;;  %v1157_v45 = vsub.f32 %v1041_v46, %v1151_v40  ;;  %v1159_v48 = vsub.f32 %v1045_v1, %v1151_v40 }
 0x15c   : > { %v1161_v54 = vsub.f32 %v2017_v21, %v1151_v40  ;;  %v1152_v60 = vmul.f32 0.015625, %v1150_v47  ;;  %v1171_v61 = vcombine.low %v1137_v34, %v1150_v47  ;;  %v1163_v62 = vsub.f32 %v2036_v36, %v1151_v40 }
 0x15d   : > { %v1192_v49 = vmul.f32 %v1153_v43, %v1153_v43  ;;  %v1194_v50 = vmul.f32 %v1155_v44, %v1155_v44  ;;  %v1196_v56 = vmul.f32 %v1157_v45, %v1157_v45  ;;  %v1198_v63 = vmul.f32 %v1159_v48, %v1159_v48 }
 0x15e   : > { %v1154_v35 = vsub.f32 %v2019_v22, %v1152_v60  ;;  %v1156_v46 = vsub.f32 %v2038_v37, %v1152_v60  ;;  %v1165_v0 = vsub.f32 %v2050_v51, %v1151_v40  ;;  %v1158_v1 = vsub.f32 %v2052_v52, %v1152_v60 }
 0x15f   : > { %v1208_v57 = vadd.f32 %v1194_v50, %v1192_v49  ;;  %v1200_v21 = vmul.f32 %v1161_v54, %v1161_v54  ;;  %v1178_v3 = vrot.slane %v1171_v61, %v2087_v55  ;;  %v1160_v36 = vsub.f32 %v1047_v5, %v1152_v60 }
 0x160   : > { %v1193_v58 = vmul.f32 %v1154_v35, %v1154_v35  ;;  %v1195_v37 = vmul.f32 %v1156_v46, %v1156_v46  ;;  %v1167_v51 = vsub.f32 %v2066_v4, %v1151_v40  ;;  %v1202_v52 = vmul.f32 %v1163_v62, %v1163_v62 }
 0x161   : > { %v1209_v20 = vadd.f32 %v1208_v57, %v1196_v56  ;;  %v1185_v7 = vrot.slane %v1178_v3, %v2087_v55  ;;  %v1162_v8 = vsub.f32 %v2021_v23, %v1152_v60  ;;  %v1197_v9 = vmul.f32 %v1158_v1, %v1158_v1 }
 0x162   : > { %v1221_v10 = vadd.f32 %v1195_v37, %v1193_v58  ;;  %v1204_v11 = vmul.f32 %v1165_v0, %v1165_v0  ;;  %v1164_v5 = vsub.f32 %v2040_v38, %v1152_v60  ;;  %v1199_v13 = vmul.f32 %v1160_v36, %v1160_v36 }
 0x163   : > { %v1210_v2 = vadd.f32 %v1209_v20, %v1198_v63  ;;  %1191 = vst.msk [vmem:[%s2098_s25] ss:$2 sm:$0x3] %vm2100_vm1, %v1185_v7  ;;  %v1206_v15 = vmul.f32 %v1167_v51, %v1167_v51  ;;  %v1166_v4 = vsub.f32 %v2054_v53, %v1152_v60  ;;  %v1201_v17 = vmul.f32 %v1162_v8, %v1162_v8 }
 0x164   : > { %v1222_v14 = vadd.f32 %v1221_v10, %v1197_v9  ;;  %v1168_v23 = vsub.f32 %v2068_v6, %v1152_v60  ;;  %v1203_v24 = vmul.f32 %v1164_v5, %v1164_v5 }
 0x165   : > { %v1211_v59 = vadd.f32 %v1210_v2, %v1200_v21  ;;  %v1205_v27 = vmul.f32 %v1166_v4, %v1166_v4 }
 0x166   : > { %v1223_v18 = vadd.f32 %v1222_v14, %v1199_v13  ;;  %v1207_v30 = vmul.f32 %v1168_v23, %v1168_v23 }
 0x167   : > { %v1212_v12 = vadd.f32 %v1211_v59, %v1202_v52 }
 0x168   : > { %v1224_v25 = vadd.f32 %v1223_v18, %v1201_v17 }
 0x169   : > { %v1213_v16 = vadd.f32 %v1212_v12, %v1204_v11 }
 0x16a   : > { %v1225_v28 = vadd.f32 %v1224_v25, %v1203_v24 }
 0x16b   : > { %v1214_v19 = vadd.f32 %v1213_v16, %v1206_v15 }
 0x16c   : > { %v1226_v38 = vadd.f32 %v1225_v28, %v1205_v27 }
 0x16d   : > { %v1215_v26 = vrot.slane %v1214_v19, 4 }
 0x16e   : > { %v1227_v32 = vadd.f32 %v1226_v38, %v1207_v30 }
 0x16f   : > { %v1216_v29 = vadd.f32 %v1215_v26, %v1214_v19 }
 0x170   : > { %v1228_v33 = vrot.slane %v1227_v32, 4 }
 0x171   : > { %v1217_v31 = vrot.slane %v1216_v29, 2 }
 0x172   : > { %v1229_v39 = vadd.f32 %v1228_v33, %v1227_v32 }
 0x173   : > { %v1218_v34 = vadd.f32 %v1217_v31, %v1216_v29 }
 0x174   : > { %v1230_v53 = vrot.slane %v1229_v39, 2 }
 0x175   : > { %v1219_v40 = vrot.slane %v1218_v34, 1 }
 0x176   : > { %v1231_v41 = vadd.f32 %v1230_v53, %v1229_v39 }
 0x177   : > { %v1220_v43 = vadd.f32 %v1219_v40, %v1218_v34 }
 0x178   : > { %v1232_v42 = vrot.slane %v1231_v41, 1 }
 0x17a   : > { %v1233_v6 = vadd.f32 %v1232_v42, %v1231_v41 }
 0x17c   : > { %v1236_v44 = vcombine.low %v1220_v43, %v1233_v6 }
 0x17e   : > { %v1243_v45 = vrot.slane %v1236_v44, %v2087_v55 }
 0x180   : > { %v1250_v47 = vrot.slane %v1243_v45, %v2087_v55 }
 0x182   : > { %1477 = vst.msk [vmem:[%s2098_s25 + $0x1] ss:$2 sm:$0x3] %vm2100_vm1, %v1250_v47 }
 0x183 PF: > { %s14_s12 = sadd.s32 1, %s1688_s12  }
 0x184   : > { %p11_p5 = scmp.ge.s32.totalorder %s14_s12, 4  }
 0x186   :  { %13 = sbr.rel (!%p11_p5) target bundleno = 1 (0x1), region = 71 }

// kernel: block8_forward.7
= control target key start
LH: loop header
LB: loop body
LE: loop exit
PB: predicated region body
PF: predicated region fallthrough
CT: control target
= control target key end

     0   :  { %s8094_s0 = inlined_call_operand.vmem [shape: bf16[128,192], index: 0, kind: input, shape index: {}]   ;;  %s8095_s1 = inlined_call_operand.vmem [shape: f32[1,192], index: 1, kind: input, shape index: {}]   ;;  %s8096_s2 = inlined_call_operand.vmem [shape: f32[1,192], index: 2, kind: input, shape index: {}]   ;;  %s8097_s3 = inlined_call_operand.vmem [shape: bf16[128,256], index: 3, kind: input, shape index: {}]   ;;  %s8098_s4 = inlined_call_operand.vmem [shape: f32[1,256], index: 4, kind: input, shape index: {}]   ;;  %s8099_s5 = inlined_call_operand.vmem [shape: f32[1,256], index: 5, kind: input, shape index: {}]   ;;  %s8100_s6 = inlined_call_operand.vmem [shape: bf16[192,2080], index: 6, kind: input, shape index: {}]   ;;  %s8101_s7 = inlined_call_operand.vmem [shape: bf16[256,2080], index: 7, kind: input, shape index: {}]   ;;  %s8102_s8 = inlined_call_operand.vmem [shape: f32[1,2080], index: 8, kind: input, shape index: {}]   ;;  %s8103_s9 = inlined_call_operand.vmem [shape: bf16[128,2080], index: 9, kind: input, shape index: {}]   ;;  %s8104_s10 = inlined_call_operand.hbm [shape: f32[128,2080], index: 10, kind: output, shape index: {}]  }
   0x1   :  { %8119 = sst [smem:[#allocation22_spill]] %s8094_s0 }
   0x2   :  { %8120 = sst [smem:[#allocation23_spill]] %s8095_s1 }
   0x3   :  { %8121 = sst [smem:[#allocation24_spill]] %s8096_s2 }
   0x4   :  { %8122 = sst [smem:[#allocation25_spill]] %s8097_s3 }
   0x5   :  { %8123 = sst [smem:[#allocation26_spill]] %s8099_s5 }
   0x6   :  { %8124 = sst [smem:[#allocation27_spill]] %s8100_s6 }
   0x7   :  { %8125 = sst [smem:[#allocation28_spill]] %s8102_s8 }
   0x8   :  { %8126 = sst [smem:[#allocation29_spill]] %s8104_s10 }
   0x9   :  { %15 = vsyncpa [#allocation6], 0 }
   0xa   :  { %17 = vsyncpa [#allocation6 + $0x1], 0  ;;  %s5551_s13 = smov 0   ;;  %s5553_s14 = smov 0  }
   0xb   :  { %s5555_s15 = smov 0   ;;  %s5557_s16 = smov 0  }
   0xc   :  { %s5559_s17 = smov 0   ;;  %s5561_s18 = smov 0  }
   0xd   :  { %s5563_s19 = smov 0   ;;  %s5565_s20 = smov 0  }
   0xe   :  { %s5567_s21 = smov 0   ;;  %s5569_s22 = smov 0  }
   0xf LB: > { %8127 = sst [smem:[#allocation8_spill]] %s5289_s13  ;;  %s4123_s23 = sadd.s32 4294967295, %s5325_s22   ;;  %s5325_s22 = sphi %s5569_s22, %s23_s22   ;;  %s5321_s21 = sphi %s5567_s21, %s8254_s21   ;;  %s5317_s20 = sphi %s5565_s20, %s8253_s20   ;;  %s5313_s19 = sphi %s5563_s19, %s8252_s19   ;;  %s5309_s18 = sphi %s5561_s18, %s8251_s18   ;;  %s5305_s17 = sphi %s5559_s17, %s8250_s17   ;;  %s5301_s16 = sphi %s5557_s16, %s8249_s16   ;;  %s5297_s15 = sphi %s5555_s15, %s8248_s15   ;;  %s5293_s14 = sphi %s5553_s14, %s8247_s14   ;;  %s5289_s13 = sphi %s5551_s13, %s8242_s13  }
  0x10   : > { %8128 = sst [smem:[#allocation9_spill]] %s5293_s14  ;;  %s4124_s24 = sadd.s32 4294967294, %s5325_s22  }
  0x11   : > { %8129 = sst [smem:[#allocation10_spill]] %s5309_s18  ;;  %s32_s25 = sadd.s32 1, %s5317_s20 }
  0x12   : > { %s35_s26 = sadd.s32 1, %s5321_s21  ;;  %p33_p0 = scmp.ge.s32.totalorder %s32_s25, 5 }
  0x13   : > { %s178_s27 = sadd.s32 1, %s5305_s17  ;;  %p185_p1 = scmp.ne.s32.totalorder %s5305_s17, %s5301_s16 }
  0x14   : > { %p186_p2 = scmp.eq.s32.totalorder %s5325_s22, 0  ;;  %s8256_s25 = smov (%p33_p0, %s32_s25), 0 }
  0x15   : > { %8130 = sst [smem:[#allocation11_spill]] %s8256_s25  ;;  %s8258_s26 = smov (!%p33_p0, %s35_s26), %s5321_s21 }
  0x16   : > { %s175_s28 = ssub.s32 %s5317_s20, %s8256_s25  ;;  %p5614_p3 = por %p186_p2, %p185_p1 }
  0x17   : > { %p37_p4 = scmp.ge.s32.totalorder %s8258_s26, 2  ;;  %p176_p5 = scmp.eq.s32.totalorder %s175_s28, 0 }
  0x18   : > { %s258_s30 = sadd.s32 1, %s5297_s15  ;;  %p265_p6 = scmp.ne.s32.totalorder %s5297_s15, %s5293_s14 }
  0x19   : > { %s8260_s26 = smov (%p37_p4, %s8258_s26), 0  ;;  %p297_p8 = scmp.eq.s32.totalorder %s4123_s23, 9 }
  0x1a   : > { %8132 = sst [smem:[#allocation12_spill]] %s8260_s26  ;;  %s253_s12 = ssub.s32 %s5321_s21, %s8260_s26 }
  0x1b   : > { %s5624_s11 = scalar_select %p176_p5, %s5305_s17, %s178_s27  }
  0x1c   : > { %p5628_p7 = por %p265_p6, %p186_p2  ;;  %s255_s25 = sor.u32 %s253_s12, %s175_s28 }
  0x1d   : > { %8133 = sst [smem:[#allocation13_spill]] %s5624_s11  ;;  %p256_p9 = scmp.eq.s32.totalorder %s255_s25, 0 }
  0x1e   : > { %p302_p10 = scmp.ne.s32.totalorder %s5293_s14, %s5289_s13  ;;  %p5634_p11 = por %p297_p8, %p265_p6 }
  0x1f   : > { %p303_p12 = scmp.eq.s32.totalorder %s4124_s24, 9  ;;  %p4126_p0 = scmp.ge.s32.totalorder %s5325_s22, 10 }
  0x20   : > { %s8135_s8 = scalar_select %p5634_p11, 1, 0 }
  0x21   : > { %s5639_s18 = scalar_select %p256_p9, %s5297_s15, %s258_s30  }
  0x22   : > { %8136 = sst [smem:[#allocation14_spill]] %s8135_s8  ;;  %p5641_p13 = por %p303_p12, %p302_p10 }
  0x23   : > { %8137 = sst [smem:[#allocation15_spill]] %s5639_s18  ;;  %331 = sbr.rel (%p4126_p0) target bundleno = 579 (0x243), region = 32 }
  0x24   : > { %s8138_s2 = scalar_select %p5641_p13, 1, 0 }
  0x26   : > { %8139 = sst [smem:[#allocation16_spill]] %s8138_s2 }
  0x28   : > { %354 = sbr.rel (!%p5614_p3) target bundleno = 268 (0x10c), region = 44  ;;  %s356_s23 = sand.u32 (%p5614_p3), 1, %s5305_s17  }
  0x29   : > { %s4127_s25 = sshll.u32 (%p5614_p3), %s5317_s20, 2  ;;  %s4365_s27 = smul.u32 (%p5614_p3), 384, %s356_s23 }
  0x2a   : > { %s360_s28 = ssub.s32 (%p5614_p3), 17, %s4127_s25  ;;  %s4351_s24 = sshll.u32 (%p5614_p3), %s5317_s20, 4 }
  0x2b   : > { %p361_p1 = scmp.lt.s32.totalorder (%p5614_p3), %s360_s28, 4  ;;  %s8140_s6 = sld [smem:[#allocation27_spill]] (%p5614_p3) }
  0x2c   : > { %s5658_s2 = scalar_lea.vmem (%p5614_p3), [#allocation2], %s4365_s27  }
  0x2d   : > { %s8262_s28 = smov (!%p361_p1, %s360_s28), 4 }
  0x2e   : > { %s363_s11 = smul.u32 1536, %s8262_s28  ;;  %s5656_s18 = sshll.u32 %s8262_s28, 2 }
  0x30   : > { %p4131_p2 = scmp.eq.s32.totalorder %s363_s11, 0 }
  0x31   : > { %s5654_s26 = scalar_lea.vmem %s8140_s6, %s4351_s24   ;;  %p371_p4 = scmp.lt.u32.totalorder (!%p4131_p2), %s5656_s18, 8 }
  0x32   : > { %370 = sbr.rel (%p4131_p2) target bundleno = 268 (0x10c), region = 48 }
  0x37   : > { %374 = sbr.rel (%p371_p4) target bundleno = 237 (0xed), region = 52  ;;  %s5662_s23 = sand.u32 (!%p371_p4), 7, %s5656_s18  }
  0x38   : > { %p437_p5 = scmp.eq.s32.totalorder (!%p371_p4), %s5662_s23, 0  ;;  %p4132_p6 = scmp.ne.s32.totalorder (!%p371_p4), %s5662_s23, 0 }
  0x3c   : > { %440 = sbr.rel (%p4132_p6) target bundleno = 135 (0x87), region = 67  ;;  %s8109_s25 = sshrl.u32 (!%p4132_p6), %s5656_s18, 3 }
  0x3d   : > { %4849 = sdivrem.u32 (!%p4132_p6), %s8109_s25, 3 }
  0x46   : > { %s5669_s27 = spop.drf %4849 }
  0x47   : > { %p4133_p8 = scmp.le.s32.totalorder %s5669_s27, 0 }
  0x48   : > { %s8141_s11 = smov (!%p4133_p8), %s5658_s2  ;;  %s8142_s28 = smov (!%p4133_p8), %s5654_s26 }
  0x49   : > { %3898 = sbr.rel (%p4133_p8) target bundleno = 104 (0x68), region = 371  ;;  %s5678_s24 = smov (!%p4133_p8), 0  }
  0x4a   : > { %s5680_s30 = smov (!%p4133_p8), 0  }
  0x4e LB: >> { %v455_v0 = vld [vmem:[%s5333_s28] sm:$0xff]  ;;  %v457_v1 = vld [vmem:[%s5333_s28 + $0x8] sm:$0xff]  ;;  %v469_v5 = vld [vmem:[%s5333_s28 + $0x90] sm:$0xff]  ;;  %s599_s12 = sadd.s32 1, %s5337_s24  ;;  %s449_s30 = sadd.s32 1, %s5341_s30   ;;  %s5341_s30 = sphi %s5680_s30, %s449_s30   ;;  %s5337_s24 = sphi %s5678_s24, %s8145_s24   ;;  %s5333_s28 = sphi %s8142_s28, %s8144_s28   ;;  %s5329_s11 = sphi %s8141_s11, %s8143_s11  }
  0x4f   : >> { %v461_v2 = vld [vmem:[%s5333_s28 + $0x44] sm:$0xff]  ;;  %456 = vst [vmem:[%s5329_s11] sm:$0xff] %v455_v0  ;;  %458 = vst [vmem:[%s5329_s11 + $0x8] sm:$0xff] %v457_v1  ;;  %v463_v3 = vld [vmem:[%s5333_s28 + $0x4c] sm:$0xff]  ;;  %p600_p9 = scmp.ge.s32.totalorder %s599_s12, %s5669_s27  ;;  %p448_p10 = scmp.ge.s32.totalorder %s449_s30, %s5669_s27 }
  0x50   : >> { %462 = vst [vmem:[%s5329_s11 + $0x10] sm:$0xff] %v461_v2  ;;  %v467_v4 = vld [vmem:[%s5333_s28 + $0x88] sm:$0xff]  ;;  %464 = vst [vmem:[%s5329_s11 + $0x18] sm:$0xff] %v463_v3  ;;  %v475_v7 = vld [vmem:[%s5333_s28 + $0xd4] sm:$0xff] }
  0x51   : >> { %468 = vst [vmem:[%s5329_s11 + $0x20] sm:$0xff] %v467_v4  ;;  %470 = vst [vmem:[%s5329_s11 + $0x28] sm:$0xff] %v469_v5  ;;  %v473_v6 = vld [vmem:[%s5333_s28 + $0xcc] sm:$0xff]  ;;  %v481_v9 = vld [vmem:[%s5333_s28 + $0x118] sm:$0xff]  ;;  %s8264_s12 = smov (%p600_p9, %s599_s12), 0 }
  0x52   : >> { %v479_v8 = vld [vmem:[%s5333_s28 + $0x110] sm:$0xff]  ;;  %474 = vst [vmem:[%s5329_s11 + $0x30] sm:$0xff] %v473_v6  ;;  %476 = vst [vmem:[%s5329_s11 + $0x38] sm:$0xff] %v475_v7  ;;  %v487_v11 = vld [vmem:[%s5333_s28 + $0x15c] sm:$0xff]  ;;  %s602_s24 = smul.u32 24, %s8264_s12 }
  0x53   : >> { %480 = vst [vmem:[%s5329_s11 + $0x40] sm:$0xff] %v479_v8  ;;  %v485_v10 = vld [vmem:[%s5333_s28 + $0x154] sm:$0xff]  ;;  %482 = vst [vmem:[%s5329_s11 + $0x48] sm:$0xff] %v481_v9  ;;  %v493_v13 = vld [vmem:[%s5333_s28 + $0x1a0] sm:$0xff] }
  0x54   : >> { %486 = vst [vmem:[%s5329_s11 + $0x50] sm:$0xff] %v485_v10  ;;  %488 = vst [vmem:[%s5329_s11 + $0x58] sm:$0xff] %v487_v11  ;;  %v491_v12 = vld [vmem:[%s5333_s28 + $0x198] sm:$0xff]  ;;  %v499_v15 = vld [vmem:[%s5333_s28 + $0x1e4] sm:$0xff]  ;;  %s5757_s25 = scalar_lea.vmem %s5654_s26, %s602_s24   ;;  %s5760_s6 = scalar_lea.vmem %s5658_s2, %s602_s24 [#allocation2]  }
  0x55   : >> { %v497_v14 = vld [vmem:[%s5333_s28 + $0x1dc] sm:$0xff]  ;;  %492 = vst [vmem:[%s5329_s11 + $0x60] sm:$0xff] %v491_v12  ;;  %494 = vst [vmem:[%s5329_s11 + $0x68] sm:$0xff] %v493_v13  ;;  %v505_v17 = vld [vmem:[%s5333_s28 + $0x228] sm:$0xff]  ;;  %s8145_s24 = smov %s8264_s12 }
  0x56   : >> { %498 = vst [vmem:[%s5329_s11 + $0x70] sm:$0xff] %v497_v14  ;;  %v503_v16 = vld [vmem:[%s5333_s28 + $0x220] sm:$0xff]  ;;  %500 = vst [vmem:[%s5329_s11 + $0x78] sm:$0xff] %v499_v15  ;;  %v511_v19 = vld [vmem:[%s5333_s28 + $0x26c] sm:$0xff] }
  0x57   : >> { %504 = vst [vmem:[%s5329_s11 + $0x80] sm:$0xff] %v503_v16  ;;  %506 = vst [vmem:[%s5329_s11 + $0x88] sm:$0xff] %v505_v17  ;;  %v509_v18 = vld [vmem:[%s5333_s28 + $0x264] sm:$0xff]  ;;  %v517_v21 = vld [vmem:[%s5333_s28 + $0x2b0] sm:$0xff] }
  0x58   : >> { %v515_v20 = vld [vmem:[%s5333_s28 + $0x2a8] sm:$0xff]  ;;  %510 = vst [vmem:[%s5329_s11 + $0x90] sm:$0xff] %v509_v18  ;;  %512 = vst [vmem:[%s5329_s11 + $0x98] sm:$0xff] %v511_v19  ;;  %v523_v23 = vld [vmem:[%s5333_s28 + $0x2f4] sm:$0xff] }
  0x59   : >> { %516 = vst [vmem:[%s5329_s11 + $0xa0] sm:$0xff] %v515_v20  ;;  %v521_v22 = vld [vmem:[%s5333_s28 + $0x2ec] sm:$0xff]  ;;  %518 = vst [vmem:[%s5329_s11 + $0xa8] sm:$0xff] %v517_v21  ;;  %v529_v25 = vld [vmem:[%s5333_s28 + $0x338] sm:$0xff] }
  0x5a   : >> { %522 = vst [vmem:[%s5329_s11 + $0xb0] sm:$0xff] %v521_v22  ;;  %524 = vst [vmem:[%s5329_s11 + $0xb8] sm:$0xff] %v523_v23  ;;  %v527_v24 = vld [vmem:[%s5333_s28 + $0x330] sm:$0xff]  ;;  %v535_v27 = vld [vmem:[%s5333_s28 + $0x37c] sm:$0xff] }
  0x5b   : >> { %v533_v26 = vld [vmem:[%s5333_s28 + $0x374] sm:$0xff]  ;;  %528 = vst [vmem:[%s5329_s11 + $0xc0] sm:$0xff] %v527_v24  ;;  %530 = vst [vmem:[%s5329_s11 + $0xc8] sm:$0xff] %v529_v25  ;;  %v541_v29 = vld [vmem:[%s5333_s28 + $0x3c0] sm:$0xff] }
  0x5c   : >> { %534 = vst [vmem:[%s5329_s11 + $0xd0] sm:$0xff] %v533_v26  ;;  %v539_v28 = vld [vmem:[%s5333_s28 + $0x3b8] sm:$0xff]  ;;  %536 = vst [vmem:[%s5329_s11 + $0xd8] sm:$0xff] %v535_v27  ;;  %v547_v31 = vld [vmem:[%s5333_s28 + $0x404] sm:$0xff] }
  0x5d   : >> { %540 = vst [vmem:[%s5329_s11 + $0xe0] sm:$0xff] %v539_v28  ;;  %542 = vst [vmem:[%s5329_s11 + $0xe8] sm:$0xff] %v541_v29  ;;  %v545_v30 = vld [vmem:[%s5333_s28 + $0x3fc] sm:$0xff]  ;;  %v553_v33 = vld [vmem:[%s5333_s28 + $0x448] sm:$0xff] }
  0x5e   : >> { %v551_v32 = vld [vmem:[%s5333_s28 + $0x440] sm:$0xff]  ;;  %546 = vst [vmem:[%s5329_s11 + $0xf0] sm:$0xff] %v545_v30  ;;  %548 = vst [vmem:[%s5329_s11 + $0xf8] sm:$0xff] %v547_v31  ;;  %v559_v35 = vld [vmem:[%s5333_s28 + $0x48c] sm:$0xff] }
  0x5f   : >> { %552 = vst [vmem:[%s5329_s11 + $0x100] sm:$0xff] %v551_v32  ;;  %v557_v34 = vld [vmem:[%s5333_s28 + $0x484] sm:$0xff]  ;;  %554 = vst [vmem:[%s5329_s11 + $0x108] sm:$0xff] %v553_v33  ;;  %v565_v37 = vld [vmem:[%s5333_s28 + $0x4d0] sm:$0xff] }
  0x60   : >> { %558 = vst [vmem:[%s5329_s11 + $0x110] sm:$0xff] %v557_v34  ;;  %560 = vst [vmem:[%s5329_s11 + $0x118] sm:$0xff] %v559_v35  ;;  %v563_v36 = vld [vmem:[%s5333_s28 + $0x4c8] sm:$0xff]  ;;  %v571_v39 = vld [vmem:[%s5333_s28 + $0x514] sm:$0xff] }
  0x61   : >> { %v569_v38 = vld [vmem:[%s5333_s28 + $0x50c] sm:$0xff]  ;;  %564 = vst [vmem:[%s5329_s11 + $0x120] sm:$0xff] %v563_v36  ;;  %566 = vst [vmem:[%s5329_s11 + $0x128] sm:$0xff] %v565_v37  ;;  %v577_v41 = vld [vmem:[%s5333_s28 + $0x558] sm:$0xff] }
  0x62   : >> { %570 = vst [vmem:[%s5329_s11 + $0x130] sm:$0xff] %v569_v38  ;;  %v575_v40 = vld [vmem:[%s5333_s28 + $0x550] sm:$0xff]  ;;  %572 = vst [vmem:[%s5329_s11 + $0x138] sm:$0xff] %v571_v39  ;;  %v583_v43 = vld [vmem:[%s5333_s28 + $0x59c] sm:$0xff] }
  0x63   : >> { %576 = vst [vmem:[%s5329_s11 + $0x140] sm:$0xff] %v575_v40  ;;  %578 = vst [vmem:[%s5329_s11 + $0x148] sm:$0xff] %v577_v41  ;;  %v581_v42 = vld [vmem:[%s5333_s28 + $0x594] sm:$0xff]  ;;  %v589_v45 = vld [vmem:[%s5333_s28 + $0x5e0] sm:$0xff]  ;;  %451 = sbr.rel (!%p448_p10) target bundleno = 78 (0x4e), region = 377 }
  0x64   : >> { %v587_v44 = vld [vmem:[%s5333_s28 + $0x5d8] sm:$0xff]  ;;  %582 = vst [vmem:[%s5329_s11 + $0x150] sm:$0xff] %v581_v42  ;;  %584 = vst [vmem:[%s5329_s11 + $0x158] sm:$0xff] %v583_v43  ;;  %v595_v47 = vld [vmem:[%s5333_s28 + $0x624] sm:$0xff] }
  0x65   : >> { %588 = vst [vmem:[%s5329_s11 + $0x160] sm:$0xff] %v587_v44  ;;  %v593_v46 = vld [vmem:[%s5333_s28 + $0x61c] sm:$0xff]  ;;  %590 = vst [vmem:[%s5329_s11 + $0x168] sm:$0xff] %v589_v45  ;;  %v597_v48 = vld [vmem:[%s5333_s28 + $0x62c] sm:$0xff]  ;;  %s8144_s28 = smov %s5757_s25 }
  0x66   : >> { %594 = vst [vmem:[%s5329_s11 + $0x170] sm:$0xff] %v593_v46  ;;  %596 = vst [vmem:[%s5329_s11 + $0x178] sm:$0xff] %v595_v47 }
  0x67   : >> { %598 = vst [vmem:[%s5329_s11 + $0x180] sm:$0xff] %v597_v48  ;;  %s8143_s11 = smov %s5760_s6 }
  0x68 PF: > { %s8146_s13 = sshrl.u32 %s5656_s18, 3  ;;  %s4134_s8 = smul.u32 384, %s5669_s27 }
  0x69   : > { %4851 = sdivrem.u32 %s8146_s13, 3 }
  0x6a   : > { %s610_s14 = sshra.s32 %s4134_s8, 4 }
  0x6b   : > { %s5820_s0 = scalar_lea.vmem %s5654_s26, %s610_s14   ;;  %s5823_s1 = scalar_lea.vmem %s5658_s2, %s610_s14 [#allocation2]  }
  0x72   : > { %s5825_s6 = spop.drf %4851 }
  0x73   : > { %p4136_p12 = scmp.le.s32.totalorder %s5825_s6, 0 }
  0x74   : > { %s8147_s25 = smov (!%p4136_p12), %s5823_s1  ;;  %s8148_s11 = smov (!%p4136_p12), %s5820_s0 }
  0x75   : > { %3912 = sbr.rel (%p4136_p12) target bundleno = 135 (0x87), region = 382  ;;  %s5834_s28 = smov (!%p4136_p12), 0  }
  0x76   : > { %s5836_s13 = smov (!%p4136_p12), 0  }
  0x7a LB: >> { %v626_v49 = vld [vmem:[%s5349_s11] sm:$0xff]  ;;  %v630_v51 = vld [vmem:[%s5349_s11 + $0x88] sm:$0xff]  ;;  %s674_s8 = sadd.s32 1, %s5353_s28  ;;  %v634_v53 = vld [vmem:[%s5349_s11 + $0x110] sm:$0xff]  ;;  %s620_s13 = sadd.s32 1, %s5357_s13   ;;  %s5357_s13 = sphi %s5836_s13, %s620_s13   ;;  %s5353_s28 = sphi %s5834_s28, %s8151_s28   ;;  %s5349_s11 = sphi %s8148_s11, %s8150_s11   ;;  %s5345_s25 = sphi %s8147_s25, %s8149_s25  }
  0x7b   : >> { %v628_v50 = vld [vmem:[%s5349_s11 + $0x44] sm:$0xff]  ;;  %627 = vst [vmem:[%s5345_s25] sm:$0xff] %v626_v49  ;;  %631 = vst [vmem:[%s5345_s25 + $0x20] sm:$0xff] %v630_v51  ;;  %v632_v52 = vld [vmem:[%s5349_s11 + $0xcc] sm:$0xff]  ;;  %p675_p0 = scmp.ge.s32.totalorder %s674_s8, %s5825_s6  ;;  %p619_p1 = scmp.ge.s32.totalorder %s620_s13, %s5825_s6 }
  0x7c   : >> { %629 = vst [vmem:[%s5345_s25 + $0x10] sm:$0xff] %v628_v50  ;;  %v636_v54 = vld [vmem:[%s5349_s11 + $0x154] sm:$0xff]  ;;  %633 = vst [vmem:[%s5345_s25 + $0x30] sm:$0xff] %v632_v52  ;;  %v640_v56 = vld [vmem:[%s5349_s11 + $0x1dc] sm:$0xff] }
  0x7d   : >> { %635 = vst [vmem:[%s5345_s25 + $0x40] sm:$0xff] %v634_v53  ;;  %637 = vst [vmem:[%s5345_s25 + $0x50] sm:$0xff] %v636_v54  ;;  %v638_v55 = vld [vmem:[%s5349_s11 + $0x198] sm:$0xff]  ;;  %v642_v57 = vld [vmem:[%s5349_s11 + $0x220] sm:$0xff]  ;;  %s8266_s8 = smov (%p675_p0, %s674_s8), 0 }
  0x7e   : >> { %639 = vst [vmem:[%s5345_s25 + $0x60] sm:$0xff] %v638_v55  ;;  %641 = vst [vmem:[%s5345_s25 + $0x70] sm:$0xff] %v640_v56  ;;  %v644_v58 = vld [vmem:[%s5349_s11 + $0x264] sm:$0xff]  ;;  %v648_v60 = vld [vmem:[%s5349_s11 + $0x2ec] sm:$0xff]  ;;  %s4137_s14 = sshll.u32 %s8266_s8, 3  ;;  %s8151_s28 = smov %s8266_s8 }
  0x7f   : >> { %643 = vst [vmem:[%s5345_s25 + $0x80] sm:$0xff] %v642_v57  ;;  %v646_v59 = vld [vmem:[%s5349_s11 + $0x2a8] sm:$0xff]  ;;  %645 = vst [vmem:[%s5345_s25 + $0x90] sm:$0xff] %v644_v58  ;;  %v650_v61 = vld [vmem:[%s5349_s11 + $0x330] sm:$0xff]  ;;  %s679_s27 = scalar_lea.vmem %s5820_s0, %s4137_s14   ;;  %s680_s30 = scalar_lea.vmem %s5823_s1, %s4137_s14 [#allocation2]  }
  0x80   : >> { %647 = vst [vmem:[%s5345_s25 + $0xa0] sm:$0xff] %v646_v59  ;;  %649 = vst [vmem:[%s5345_s25 + $0xb0] sm:$0xff] %v648_v60  ;;  %v652_v62 = vld [vmem:[%s5349_s11 + $0x374] sm:$0xff]  ;;  %v656_v0 = vld [vmem:[%s5349_s11 + $0x3fc] sm:$0xff] }
  0x81   : >> { %v654_v63 = vld [vmem:[%s5349_s11 + $0x3b8] sm:$0xff]  ;;  %651 = vst [vmem:[%s5345_s25 + $0xc0] sm:$0xff] %v650_v61  ;;  %653 = vst [vmem:[%s5345_s25 + $0xd0] sm:$0xff] %v652_v62  ;;  %v658_v1 = vld [vmem:[%s5349_s11 + $0x440] sm:$0xff] }
  0x82   : >> { %655 = vst [vmem:[%s5345_s25 + $0xe0] sm:$0xff] %v654_v63  ;;  %v660_v2 = vld [vmem:[%s5349_s11 + $0x484] sm:$0xff]  ;;  %657 = vst [vmem:[%s5345_s25 + $0xf0] sm:$0xff] %v656_v0  ;;  %v664_v4 = vld [vmem:[%s5349_s11 + $0x50c] sm:$0xff]  ;;  %622 = sbr.rel (!%p619_p1) target bundleno = 122 (0x7a), region = 388 }
  0x83   : >> { %659 = vst [vmem:[%s5345_s25 + $0x100] sm:$0xff] %v658_v1  ;;  %661 = vst [vmem:[%s5345_s25 + $0x110] sm:$0xff] %v660_v2  ;;  %v662_v3 = vld [vmem:[%s5349_s11 + $0x4c8] sm:$0xff]  ;;  %v666_v5 = vld [vmem:[%s5349_s11 + $0x550] sm:$0xff] }
  0x84   : >> { %663 = vst [vmem:[%s5345_s25 + $0x120] sm:$0xff] %v662_v3  ;;  %665 = vst [vmem:[%s5345_s25 + $0x130] sm:$0xff] %v664_v4  ;;  %v668_v6 = vld [vmem:[%s5349_s11 + $0x594] sm:$0xff]  ;;  %v672_v8 = vld [vmem:[%s5349_s11 + $0x61c] sm:$0xff] }
  0x85   : >> { %667 = vst [vmem:[%s5345_s25 + $0x140] sm:$0xff] %v666_v5  ;;  %v670_v7 = vld [vmem:[%s5349_s11 + $0x5d8] sm:$0xff]  ;;  %669 = vst [vmem:[%s5345_s25 + $0x150] sm:$0xff] %v668_v6  ;;  %s8150_s11 = smov %s679_s27 }
  0x86   : >> { %671 = vst [vmem:[%s5345_s25 + $0x160] sm:$0xff] %v670_v7  ;;  %673 = vst [vmem:[%s5345_s25 + $0x170] sm:$0xff] %v672_v8  ;;  %s8149_s25 = smov %s680_s30 }
  0x87 PF: > { %683 = sbr.rel (%p437_p5) target bundleno = 237 (0xed), region = 85  ;;  %s685_s12 = ssub.s32 (!%p437_p5), %s5656_s18, %s5662_s23 }
  0x88   : > { %s689_s24 = sshrl.u32 (!%p437_p5), %s5656_s18, 3  ;;  %s5919_s14 = scalar_lea.vmem (!%p437_p5), %s5654_s26, %s685_s12 }
  0x89   : > { %s5922_s27 = scalar_lea.vmem (!%p437_p5), %s5658_s2, %s685_s12 [#allocation2]  ;;  %4853 = sdivrem.u32 (!%p437_p5), %s689_s24, 3 }
  0x92   : > { %s5926_s13 = spop.drf %4853 }
  0x93   : > { %p4139_p2 = scmp.le.s32.totalorder %s5926_s13, 0 }
  0x94   : > { %s8152_s0 = smov (!%p4139_p2), %s5658_s2  ;;  %s8153_s1 = smov (!%p4139_p2), %s5654_s26 }
  0x95   : > { %3926 = sbr.rel (%p4139_p2) target bundleno = 180 (0xb4), region = 393  ;;  %s5935_s6 = smov (!%p4139_p2), 0  }
  0x96   : > { %s5937_s25 = smov (!%p4139_p2), 0  }
  0x9a LB: >> { %v703_v9 = vld [vmem:[%s5365_s1] sm:$0xff]  ;;  %v705_v10 = vld [vmem:[%s5365_s1 + $0x8] sm:$0xff]  ;;  %v717_v14 = vld [vmem:[%s5365_s1 + $0x90] sm:$0xff]  ;;  %s847_s11 = sadd.s32 1, %s5369_s6  ;;  %s697_s25 = sadd.s32 1, %s5373_s25   ;;  %s5373_s25 = sphi %s5937_s25, %s697_s25   ;;  %s5369_s6 = sphi %s5935_s6, %s8156_s6   ;;  %s5365_s1 = sphi %s8153_s1, %s8155_s1   ;;  %s5361_s0 = sphi %s8152_s0, %s8154_s0  }
  0x9b   : >> { %v709_v11 = vld [vmem:[%s5365_s1 + $0x44] sm:$0xff]  ;;  %704 = vst [vmem:[%s5361_s0] sm:$0xff] %v703_v9  ;;  %706 = vst [vmem:[%s5361_s0 + $0x8] sm:$0xff] %v705_v10  ;;  %v711_v12 = vld [vmem:[%s5365_s1 + $0x4c] sm:$0xff]  ;;  %p848_p4 = scmp.ge.s32.totalorder %s847_s11, %s5926_s13  ;;  %p696_p5 = scmp.ge.s32.totalorder %s697_s25, %s5926_s13 }
  0x9c   : >> { %710 = vst [vmem:[%s5361_s0 + $0x10] sm:$0xff] %v709_v11  ;;  %v715_v13 = vld [vmem:[%s5365_s1 + $0x88] sm:$0xff]  ;;  %712 = vst [vmem:[%s5361_s0 + $0x18] sm:$0xff] %v711_v12  ;;  %v723_v16 = vld [vmem:[%s5365_s1 + $0xd4] sm:$0xff] }
  0x9d   : >> { %716 = vst [vmem:[%s5361_s0 + $0x20] sm:$0xff] %v715_v13  ;;  %718 = vst [vmem:[%s5361_s0 + $0x28] sm:$0xff] %v717_v14  ;;  %v721_v15 = vld [vmem:[%s5365_s1 + $0xcc] sm:$0xff]  ;;  %v729_v18 = vld [vmem:[%s5365_s1 + $0x118] sm:$0xff]  ;;  %s8268_s11 = smov (%p848_p4, %s847_s11), 0 }
  0x9e   : >> { %v727_v17 = vld [vmem:[%s5365_s1 + $0x110] sm:$0xff]  ;;  %722 = vst [vmem:[%s5361_s0 + $0x30] sm:$0xff] %v721_v15  ;;  %724 = vst [vmem:[%s5361_s0 + $0x38] sm:$0xff] %v723_v16  ;;  %v735_v20 = vld [vmem:[%s5365_s1 + $0x15c] sm:$0xff]  ;;  %s850_s28 = smul.u32 24, %s8268_s11  ;;  %s8156_s6 = smov %s8268_s11 }
  0x9f   : >> { %728 = vst [vmem:[%s5361_s0 + $0x40] sm:$0xff] %v727_v17  ;;  %v733_v19 = vld [vmem:[%s5365_s1 + $0x154] sm:$0xff]  ;;  %730 = vst [vmem:[%s5361_s0 + $0x48] sm:$0xff] %v729_v18  ;;  %v741_v22 = vld [vmem:[%s5365_s1 + $0x1a0] sm:$0xff] }
  0xa0   : >> { %734 = vst [vmem:[%s5361_s0 + $0x50] sm:$0xff] %v733_v19  ;;  %736 = vst [vmem:[%s5361_s0 + $0x58] sm:$0xff] %v735_v20  ;;  %v739_v21 = vld [vmem:[%s5365_s1 + $0x198] sm:$0xff]  ;;  %v747_v24 = vld [vmem:[%s5365_s1 + $0x1e4] sm:$0xff]  ;;  %s6014_s8 = scalar_lea.vmem %s5654_s26, %s850_s28   ;;  %s6017_s30 = scalar_lea.vmem %s5658_s2, %s850_s28 [#allocation2]  }
  0xa1   : >> { %v745_v23 = vld [vmem:[%s5365_s1 + $0x1dc] sm:$0xff]  ;;  %740 = vst [vmem:[%s5361_s0 + $0x60] sm:$0xff] %v739_v21  ;;  %742 = vst [vmem:[%s5361_s0 + $0x68] sm:$0xff] %v741_v22  ;;  %v753_v26 = vld [vmem:[%s5365_s1 + $0x228] sm:$0xff] }
  0xa2   : >> { %746 = vst [vmem:[%s5361_s0 + $0x70] sm:$0xff] %v745_v23  ;;  %v751_v25 = vld [vmem:[%s5365_s1 + $0x220] sm:$0xff]  ;;  %748 = vst [vmem:[%s5361_s0 + $0x78] sm:$0xff] %v747_v24  ;;  %v759_v28 = vld [vmem:[%s5365_s1 + $0x26c] sm:$0xff] }
  0xa3   : >> { %752 = vst [vmem:[%s5361_s0 + $0x80] sm:$0xff] %v751_v25  ;;  %754 = vst [vmem:[%s5361_s0 + $0x88] sm:$0xff] %v753_v26  ;;  %v757_v27 = vld [vmem:[%s5365_s1 + $0x264] sm:$0xff]  ;;  %v765_v30 = vld [vmem:[%s5365_s1 + $0x2b0] sm:$0xff] }
  0xa4   : >> { %v763_v29 = vld [vmem:[%s5365_s1 + $0x2a8] sm:$0xff]  ;;  %758 = vst [vmem:[%s5361_s0 + $0x90] sm:$0xff] %v757_v27  ;;  %760 = vst [vmem:[%s5361_s0 + $0x98] sm:$0xff] %v759_v28  ;;  %v771_v32 = vld [vmem:[%s5365_s1 + $0x2f4] sm:$0xff] }
  0xa5   : >> { %764 = vst [vmem:[%s5361_s0 + $0xa0] sm:$0xff] %v763_v29  ;;  %v769_v31 = vld [vmem:[%s5365_s1 + $0x2ec] sm:$0xff]  ;;  %766 = vst [vmem:[%s5361_s0 + $0xa8] sm:$0xff] %v765_v30  ;;  %v777_v34 = vld [vmem:[%s5365_s1 + $0x338] sm:$0xff] }
  0xa6   : >> { %770 = vst [vmem:[%s5361_s0 + $0xb0] sm:$0xff] %v769_v31  ;;  %772 = vst [vmem:[%s5361_s0 + $0xb8] sm:$0xff] %v771_v32  ;;  %v775_v33 = vld [vmem:[%s5365_s1 + $0x330] sm:$0xff]  ;;  %v783_v36 = vld [vmem:[%s5365_s1 + $0x37c] sm:$0xff] }
  0xa7   : >> { %v781_v35 = vld [vmem:[%s5365_s1 + $0x374] sm:$0xff]  ;;  %776 = vst [vmem:[%s5361_s0 + $0xc0] sm:$0xff] %v775_v33  ;;  %778 = vst [vmem:[%s5361_s0 + $0xc8] sm:$0xff] %v777_v34  ;;  %v789_v38 = vld [vmem:[%s5365_s1 + $0x3c0] sm:$0xff] }
  0xa8   : >> { %782 = vst [vmem:[%s5361_s0 + $0xd0] sm:$0xff] %v781_v35  ;;  %v787_v37 = vld [vmem:[%s5365_s1 + $0x3b8] sm:$0xff]  ;;  %784 = vst [vmem:[%s5361_s0 + $0xd8] sm:$0xff] %v783_v36  ;;  %v795_v40 = vld [vmem:[%s5365_s1 + $0x404] sm:$0xff] }
  0xa9   : >> { %788 = vst [vmem:[%s5361_s0 + $0xe0] sm:$0xff] %v787_v37  ;;  %790 = vst [vmem:[%s5361_s0 + $0xe8] sm:$0xff] %v789_v38  ;;  %v793_v39 = vld [vmem:[%s5365_s1 + $0x3fc] sm:$0xff]  ;;  %v801_v42 = vld [vmem:[%s5365_s1 + $0x448] sm:$0xff] }
  0xaa   : >> { %v799_v41 = vld [vmem:[%s5365_s1 + $0x440] sm:$0xff]  ;;  %794 = vst [vmem:[%s5361_s0 + $0xf0] sm:$0xff] %v793_v39  ;;  %796 = vst [vmem:[%s5361_s0 + $0xf8] sm:$0xff] %v795_v40  ;;  %v807_v44 = vld [vmem:[%s5365_s1 + $0x48c] sm:$0xff] }
  0xab   : >> { %800 = vst [vmem:[%s5361_s0 + $0x100] sm:$0xff] %v799_v41  ;;  %v805_v43 = vld [vmem:[%s5365_s1 + $0x484] sm:$0xff]  ;;  %802 = vst [vmem:[%s5361_s0 + $0x108] sm:$0xff] %v801_v42  ;;  %v813_v46 = vld [vmem:[%s5365_s1 + $0x4d0] sm:$0xff] }
  0xac   : >> { %806 = vst [vmem:[%s5361_s0 + $0x110] sm:$0xff] %v805_v43  ;;  %808 = vst [vmem:[%s5361_s0 + $0x118] sm:$0xff] %v807_v44  ;;  %v811_v45 = vld [vmem:[%s5365_s1 + $0x4c8] sm:$0xff]  ;;  %v819_v48 = vld [vmem:[%s5365_s1 + $0x514] sm:$0xff] }
  0xad   : >> { %v817_v47 = vld [vmem:[%s5365_s1 + $0x50c] sm:$0xff]  ;;  %812 = vst [vmem:[%s5361_s0 + $0x120] sm:$0xff] %v811_v45  ;;  %814 = vst [vmem:[%s5361_s0 + $0x128] sm:$0xff] %v813_v46  ;;  %v825_v50 = vld [vmem:[%s5365_s1 + $0x558] sm:$0xff] }
  0xae   : >> { %818 = vst [vmem:[%s5361_s0 + $0x130] sm:$0xff] %v817_v47  ;;  %v823_v49 = vld [vmem:[%s5365_s1 + $0x550] sm:$0xff]  ;;  %820 = vst [vmem:[%s5361_s0 + $0x138] sm:$0xff] %v819_v48  ;;  %v831_v52 = vld [vmem:[%s5365_s1 + $0x59c] sm:$0xff] }
  0xaf   : >> { %824 = vst [vmem:[%s5361_s0 + $0x140] sm:$0xff] %v823_v49  ;;  %826 = vst [vmem:[%s5361_s0 + $0x148] sm:$0xff] %v825_v50  ;;  %v829_v51 = vld [vmem:[%s5365_s1 + $0x594] sm:$0xff]  ;;  %v837_v54 = vld [vmem:[%s5365_s1 + $0x5e0] sm:$0xff]  ;;  %699 = sbr.rel (!%p696_p5) target bundleno = 154 (0x9a), region = 399 }
  0xb0   : >> { %v835_v53 = vld [vmem:[%s5365_s1 + $0x5d8] sm:$0xff]  ;;  %830 = vst [vmem:[%s5361_s0 + $0x150] sm:$0xff] %v829_v51  ;;  %832 = vst [vmem:[%s5361_s0 + $0x158] sm:$0xff] %v831_v52  ;;  %v843_v56 = vld [vmem:[%s5365_s1 + $0x624] sm:$0xff] }
  0xb1   : >> { %836 = vst [vmem:[%s5361_s0 + $0x160] sm:$0xff] %v835_v53  ;;  %v841_v55 = vld [vmem:[%s5365_s1 + $0x61c] sm:$0xff]  ;;  %838 = vst [vmem:[%s5361_s0 + $0x168] sm:$0xff] %v837_v54  ;;  %v845_v57 = vld [vmem:[%s5365_s1 + $0x62c] sm:$0xff]  ;;  %s8155_s1 = smov %s6014_s8 }
  0xb2   : >> { %842 = vst [vmem:[%s5361_s0 + $0x170] sm:$0xff] %v841_v55  ;;  %844 = vst [vmem:[%s5361_s0 + $0x178] sm:$0xff] %v843_v56 }
  0xb3   : >> { %846 = vst [vmem:[%s5361_s0 + $0x180] sm:$0xff] %v845_v57  ;;  %s8154_s0 = smov %s6017_s30 }
  0xb4 PF: > { %4855 = sdivrem.u32 %s689_s24, 3 }
  0xb5   : > { %s4140_s12 = smul.u32 384, %s5926_s13 }
  0xb7   : > { %s858_s28 = sshra.s32 %s4140_s12, 4 }
  0xb8   : > { %s6077_s5 = scalar_lea.vmem %s5654_s26, %s858_s28   ;;  %s6080_s3 = scalar_lea.vmem %s5658_s2, %s858_s28 [#allocation2]  }
  0xbd   : > { %s6082_s30 = spop.drf %4855 }
  0xbe   : > { %p4142_p6 = scmp.le.s32.totalorder %s6082_s30, 0 }
  0xbf   : > { %s8157_s0 = smov (!%p4142_p6), %s6080_s3  ;;  %s8158_s1 = smov (!%p4142_p6), %s6077_s5 }
  0xc0   : > { %3940 = sbr.rel (%p4142_p6) target bundleno = 210 (0xd2), region = 404  ;;  %s6091_s6 = smov (!%p4142_p6), 0  }
  0xc1   : > { %s6093_s24 = smov (!%p4142_p6), 0  }
  0xc5 LB: >> { %v874_v58 = vld [vmem:[%s5381_s1] sm:$0xff]  ;;  %v878_v60 = vld [vmem:[%s5381_s1 + $0x88] sm:$0xff]  ;;  %s922_s13 = sadd.s32 1, %s5385_s6  ;;  %v882_v62 = vld [vmem:[%s5381_s1 + $0x110] sm:$0xff]  ;;  %s868_s24 = sadd.s32 1, %s5389_s24   ;;  %s5389_s24 = sphi %s6093_s24, %s868_s24   ;;  %s5385_s6 = sphi %s6091_s6, %s8161_s6   ;;  %s5381_s1 = sphi %s8158_s1, %s8160_s1   ;;  %s5377_s0 = sphi %s8157_s0, %s8159_s0  }
  0xc6   : >> { %v876_v59 = vld [vmem:[%s5381_s1 + $0x44] sm:$0xff]  ;;  %875 = vst [vmem:[%s5377_s0] sm:$0xff] %v874_v58  ;;  %879 = vst [vmem:[%s5377_s0 + $0x20] sm:$0xff] %v878_v60  ;;  %v880_v61 = vld [vmem:[%s5381_s1 + $0xcc] sm:$0xff]  ;;  %p923_p8 = scmp.ge.s32.totalorder %s922_s13, %s6082_s30  ;;  %p867_p9 = scmp.ge.s32.totalorder %s868_s24, %s6082_s30 }
  0xc7   : >> { %877 = vst [vmem:[%s5377_s0 + $0x10] sm:$0xff] %v876_v59  ;;  %v884_v63 = vld [vmem:[%s5381_s1 + $0x154] sm:$0xff]  ;;  %881 = vst [vmem:[%s5377_s0 + $0x30] sm:$0xff] %v880_v61  ;;  %v888_v1 = vld [vmem:[%s5381_s1 + $0x1dc] sm:$0xff] }
  0xc8   : >> { %883 = vst [vmem:[%s5377_s0 + $0x40] sm:$0xff] %v882_v62  ;;  %885 = vst [vmem:[%s5377_s0 + $0x50] sm:$0xff] %v884_v63  ;;  %v886_v0 = vld [vmem:[%s5381_s1 + $0x198] sm:$0xff]  ;;  %v890_v2 = vld [vmem:[%s5381_s1 + $0x220] sm:$0xff]  ;;  %s8270_s13 = smov (%p923_p8, %s922_s13), 0 }
  0xc9   : >> { %887 = vst [vmem:[%s5377_s0 + $0x60] sm:$0xff] %v886_v0  ;;  %889 = vst [vmem:[%s5377_s0 + $0x70] sm:$0xff] %v888_v1  ;;  %v892_v3 = vld [vmem:[%s5381_s1 + $0x264] sm:$0xff]  ;;  %v896_v5 = vld [vmem:[%s5381_s1 + $0x2ec] sm:$0xff]  ;;  %s4143_s25 = sshll.u32 %s8270_s13, 3  ;;  %s8161_s6 = smov %s8270_s13 }
  0xca   : >> { %891 = vst [vmem:[%s5377_s0 + $0x80] sm:$0xff] %v890_v2  ;;  %v894_v4 = vld [vmem:[%s5381_s1 + $0x2a8] sm:$0xff]  ;;  %893 = vst [vmem:[%s5377_s0 + $0x90] sm:$0xff] %v892_v3  ;;  %v898_v6 = vld [vmem:[%s5381_s1 + $0x330] sm:$0xff]  ;;  %s927_s11 = scalar_lea.vmem %s6077_s5, %s4143_s25   ;;  %s928_s8 = scalar_lea.vmem %s6080_s3, %s4143_s25 [#allocation2]  }
  0xcb   : >> { %895 = vst [vmem:[%s5377_s0 + $0xa0] sm:$0xff] %v894_v4  ;;  %897 = vst [vmem:[%s5377_s0 + $0xb0] sm:$0xff] %v896_v5  ;;  %v900_v7 = vld [vmem:[%s5381_s1 + $0x374] sm:$0xff]  ;;  %v904_v9 = vld [vmem:[%s5381_s1 + $0x3fc] sm:$0xff] }
  0xcc   : >> { %v902_v8 = vld [vmem:[%s5381_s1 + $0x3b8] sm:$0xff]  ;;  %899 = vst [vmem:[%s5377_s0 + $0xc0] sm:$0xff] %v898_v6  ;;  %901 = vst [vmem:[%s5377_s0 + $0xd0] sm:$0xff] %v900_v7  ;;  %v906_v10 = vld [vmem:[%s5381_s1 + $0x440] sm:$0xff] }
  0xcd   : >> { %903 = vst [vmem:[%s5377_s0 + $0xe0] sm:$0xff] %v902_v8  ;;  %v908_v11 = vld [vmem:[%s5381_s1 + $0x484] sm:$0xff]  ;;  %905 = vst [vmem:[%s5377_s0 + $0xf0] sm:$0xff] %v904_v9  ;;  %v912_v13 = vld [vmem:[%s5381_s1 + $0x50c] sm:$0xff]  ;;  %870 = sbr.rel (!%p867_p9) target bundleno = 197 (0xc5), region = 410 }
  0xce   : >> { %907 = vst [vmem:[%s5377_s0 + $0x100] sm:$0xff] %v906_v10  ;;  %909 = vst [vmem:[%s5377_s0 + $0x110] sm:$0xff] %v908_v11  ;;  %v910_v12 = vld [vmem:[%s5381_s1 + $0x4c8] sm:$0xff]  ;;  %v914_v14 = vld [vmem:[%s5381_s1 + $0x550] sm:$0xff] }
  0xcf   : >> { %911 = vst [vmem:[%s5377_s0 + $0x120] sm:$0xff] %v910_v12  ;;  %913 = vst [vmem:[%s5377_s0 + $0x130] sm:$0xff] %v912_v13  ;;  %v916_v15 = vld [vmem:[%s5381_s1 + $0x594] sm:$0xff]  ;;  %v920_v17 = vld [vmem:[%s5381_s1 + $0x61c] sm:$0xff] }
  0xd0   : >> { %915 = vst [vmem:[%s5377_s0 + $0x140] sm:$0xff] %v914_v14  ;;  %v918_v16 = vld [vmem:[%s5381_s1 + $0x5d8] sm:$0xff]  ;;  %917 = vst [vmem:[%s5377_s0 + $0x150] sm:$0xff] %v916_v15  ;;  %s8160_s1 = smov %s927_s11 }
  0xd1   : >> { %919 = vst [vmem:[%s5377_s0 + $0x160] sm:$0xff] %v918_v16  ;;  %921 = vst [vmem:[%s5377_s0 + $0x170] sm:$0xff] %v920_v17  ;;  %s8159_s0 = smov %s928_s8 }
  0xd2 PF: > { %s5487_s12 = smov 1  }
  0xd3   : > { %s929_s28 = sshll.u32 %s5487_s12, %s5662_s23 }
  0xd4   : > { %s6171_s24 = sadd.s32 4294967295, %s929_s28 }
  0xd5   : > { %v939_v18 = vld [vmem:[%s5919_s14] sm:%s6171_s24]  ;;  %v943_v20 = vld [vmem:[%s5919_s14 + $0x88] sm:%s6171_s24] }
  0xd6   : > { %v941_v19 = vld [vmem:[%s5919_s14 + $0x44] sm:%s6171_s24]  ;;  %940 = vst [vmem:[%s5922_s27] sm:%s6171_s24] %v939_v18 }
  0xd7   : > { %942 = vst [vmem:[%s5922_s27 + $0x10] sm:%s6171_s24] %v941_v19  ;;  %v945_v21 = vld [vmem:[%s5919_s14 + $0xcc] sm:%s6171_s24] }
  0xd8   : > { %944 = vst [vmem:[%s5922_s27 + $0x20] sm:%s6171_s24] %v943_v20  ;;  %946 = vst [vmem:[%s5922_s27 + $0x30] sm:%s6171_s24] %v945_v21 }
  0xd9   : > { %v947_v22 = vld [vmem:[%s5919_s14 + $0x110] sm:%s6171_s24]  ;;  %v951_v24 = vld [vmem:[%s5919_s14 + $0x198] sm:%s6171_s24] }
  0xda   : > { %v949_v23 = vld [vmem:[%s5919_s14 + $0x154] sm:%s6171_s24]  ;;  %948 = vst [vmem:[%s5922_s27 + $0x40] sm:%s6171_s24] %v947_v22 }
  0xdb   : > { %950 = vst [vmem:[%s5922_s27 + $0x50] sm:%s6171_s24] %v949_v23  ;;  %v953_v25 = vld [vmem:[%s5919_s14 + $0x1dc] sm:%s6171_s24] }
  0xdc   : > { %952 = vst [vmem:[%s5922_s27 + $0x60] sm:%s6171_s24] %v951_v24  ;;  %954 = vst [vmem:[%s5922_s27 + $0x70] sm:%s6171_s24] %v953_v25 }
  0xdd   : > { %v955_v26 = vld [vmem:[%s5919_s14 + $0x220] sm:%s6171_s24]  ;;  %v959_v28 = vld [vmem:[%s5919_s14 + $0x2a8] sm:%s6171_s24] }
  0xde   : > { %v957_v27 = vld [vmem:[%s5919_s14 + $0x264] sm:%s6171_s24]  ;;  %956 = vst [vmem:[%s5922_s27 + $0x80] sm:%s6171_s24] %v955_v26 }
  0xdf   : > { %958 = vst [vmem:[%s5922_s27 + $0x90] sm:%s6171_s24] %v957_v27  ;;  %v961_v29 = vld [vmem:[%s5919_s14 + $0x2ec] sm:%s6171_s24] }
  0xe0   : > { %960 = vst [vmem:[%s5922_s27 + $0xa0] sm:%s6171_s24] %v959_v28  ;;  %962 = vst [vmem:[%s5922_s27 + $0xb0] sm:%s6171_s24] %v961_v29 }
  0xe1   : > { %v963_v30 = vld [vmem:[%s5919_s14 + $0x330] sm:%s6171_s24]  ;;  %v967_v32 = vld [vmem:[%s5919_s14 + $0x3b8] sm:%s6171_s24] }
  0xe2   : > { %v965_v31 = vld [vmem:[%s5919_s14 + $0x374] sm:%s6171_s24]  ;;  %964 = vst [vmem:[%s5922_s27 + $0xc0] sm:%s6171_s24] %v963_v30 }
  0xe3   : > { %966 = vst [vmem:[%s5922_s27 + $0xd0] sm:%s6171_s24] %v965_v31  ;;  %v969_v33 = vld [vmem:[%s5919_s14 + $0x3fc] sm:%s6171_s24] }
  0xe4   : > { %968 = vst [vmem:[%s5922_s27 + $0xe0] sm:%s6171_s24] %v967_v32  ;;  %970 = vst [vmem:[%s5922_s27 + $0xf0] sm:%s6171_s24] %v969_v33 }
  0xe5   : > { %v971_v34 = vld [vmem:[%s5919_s14 + $0x440] sm:%s6171_s24]  ;;  %v975_v36 = vld [vmem:[%s5919_s14 + $0x4c8] sm:%s6171_s24] }
  0xe6   : > { %v973_v35 = vld [vmem:[%s5919_s14 + $0x484] sm:%s6171_s24]  ;;  %972 = vst [vmem:[%s5922_s27 + $0x100] sm:%s6171_s24] %v971_v34 }
  0xe7   : > { %974 = vst [vmem:[%s5922_s27 + $0x110] sm:%s6171_s24] %v973_v35  ;;  %v977_v37 = vld [vmem:[%s5919_s14 + $0x50c] sm:%s6171_s24] }
  0xe8   : > { %976 = vst [vmem:[%s5922_s27 + $0x120] sm:%s6171_s24] %v975_v36  ;;  %978 = vst [vmem:[%s5922_s27 + $0x130] sm:%s6171_s24] %v977_v37 }
  0xe9   : > { %v979_v38 = vld [vmem:[%s5919_s14 + $0x550] sm:%s6171_s24]  ;;  %v983_v40 = vld [vmem:[%s5919_s14 + $0x5d8] sm:%s6171_s24] }
  0xea   : > { %v981_v39 = vld [vmem:[%s5919_s14 + $0x594] sm:%s6171_s24]  ;;  %980 = vst [vmem:[%s5922_s27 + $0x140] sm:%s6171_s24] %v979_v38 }
  0xeb   : > { %982 = vst [vmem:[%s5922_s27 + $0x150] sm:%s6171_s24] %v981_v39  ;;  %v985_v41 = vld [vmem:[%s5919_s14 + $0x61c] sm:%s6171_s24] }
  0xec   : > { %984 = vst [vmem:[%s5922_s27 + $0x160] sm:%s6171_s24] %v983_v40  ;;  %986 = vst [vmem:[%s5922_s27 + $0x170] sm:%s6171_s24] %v985_v41 }
  0xed PF: > { %p4146_p10 = scmp.ge.u32.totalorder %s5656_s18, 8 }
  0xee   : > { %s5488_s3 = smov (!%p4146_p10), 1  }
  0xef   : > { %377 = sbr.rel (%p4146_p10) target bundleno = 268 (0x10c), region = 56  ;;  %s378_s5 = sshll.u32 (!%p4146_p10), %s5488_s3, %s5656_s18 }
  0xf0   : > { %s6271_s23 = sadd.s32 (!%p4146_p10), 4294967295, %s378_s5 }
  0xf4   : > { %v388_v42 = vld [vmem:[%s5654_s26] sm:%s6271_s23]  ;;  %v392_v44 = vld [vmem:[%s5654_s26 + $0x88] sm:%s6271_s23] }
  0xf5   : > { %v390_v43 = vld [vmem:[%s5654_s26 + $0x44] sm:%s6271_s23]  ;;  %389 = vst [vmem:[%s5658_s2] sm:%s6271_s23] %v388_v42 }
  0xf6   : > { %391 = vst [vmem:[%s5658_s2 + $0x10] sm:%s6271_s23] %v390_v43  ;;  %v394_v45 = vld [vmem:[%s5654_s26 + $0xcc] sm:%s6271_s23] }
  0xf7   : > { %393 = vst [vmem:[%s5658_s2 + $0x20] sm:%s6271_s23] %v392_v44  ;;  %395 = vst [vmem:[%s5658_s2 + $0x30] sm:%s6271_s23] %v394_v45 }
  0xf8   : > { %v396_v46 = vld [vmem:[%s5654_s26 + $0x110] sm:%s6271_s23]  ;;  %v400_v48 = vld [vmem:[%s5654_s26 + $0x198] sm:%s6271_s23] }
  0xf9   : > { %v398_v47 = vld [vmem:[%s5654_s26 + $0x154] sm:%s6271_s23]  ;;  %397 = vst [vmem:[%s5658_s2 + $0x40] sm:%s6271_s23] %v396_v46 }
  0xfa   : > { %399 = vst [vmem:[%s5658_s2 + $0x50] sm:%s6271_s23] %v398_v47  ;;  %v402_v49 = vld [vmem:[%s5654_s26 + $0x1dc] sm:%s6271_s23] }
  0xfb   : > { %401 = vst [vmem:[%s5658_s2 + $0x60] sm:%s6271_s23] %v400_v48  ;;  %403 = vst [vmem:[%s5658_s2 + $0x70] sm:%s6271_s23] %v402_v49 }
  0xfc   : > { %v404_v50 = vld [vmem:[%s5654_s26 + $0x220] sm:%s6271_s23]  ;;  %v408_v52 = vld [vmem:[%s5654_s26 + $0x2a8] sm:%s6271_s23] }
  0xfd   : > { %v406_v51 = vld [vmem:[%s5654_s26 + $0x264] sm:%s6271_s23]  ;;  %405 = vst [vmem:[%s5658_s2 + $0x80] sm:%s6271_s23] %v404_v50 }
  0xfe   : > { %407 = vst [vmem:[%s5658_s2 + $0x90] sm:%s6271_s23] %v406_v51  ;;  %v410_v53 = vld [vmem:[%s5654_s26 + $0x2ec] sm:%s6271_s23] }
  0xff   : > { %409 = vst [vmem:[%s5658_s2 + $0xa0] sm:%s6271_s23] %v408_v52  ;;  %411 = vst [vmem:[%s5658_s2 + $0xb0] sm:%s6271_s23] %v410_v53 }
 0x100   : > { %v412_v54 = vld [vmem:[%s5654_s26 + $0x330] sm:%s6271_s23]  ;;  %v416_v56 = vld [vmem:[%s5654_s26 + $0x3b8] sm:%s6271_s23] }
 0x101   : > { %v414_v55 = vld [vmem:[%s5654_s26 + $0x374] sm:%s6271_s23]  ;;  %413 = vst [vmem:[%s5658_s2 + $0xc0] sm:%s6271_s23] %v412_v54 }
 0x102   : > { %415 = vst [vmem:[%s5658_s2 + $0xd0] sm:%s6271_s23] %v414_v55  ;;  %v418_v57 = vld [vmem:[%s5654_s26 + $0x3fc] sm:%s6271_s23] }
 0x103   : > { %417 = vst [vmem:[%s5658_s2 + $0xe0] sm:%s6271_s23] %v416_v56  ;;  %419 = vst [vmem:[%s5658_s2 + $0xf0] sm:%s6271_s23] %v418_v57 }
 0x104   : > { %v420_v58 = vld [vmem:[%s5654_s26 + $0x440] sm:%s6271_s23]  ;;  %v424_v60 = vld [vmem:[%s5654_s26 + $0x4c8] sm:%s6271_s23] }
 0x105   : > { %v422_v59 = vld [vmem:[%s5654_s26 + $0x484] sm:%s6271_s23]  ;;  %421 = vst [vmem:[%s5658_s2 + $0x100] sm:%s6271_s23] %v420_v58 }
 0x106   : > { %423 = vst [vmem:[%s5658_s2 + $0x110] sm:%s6271_s23] %v422_v59  ;;  %v426_v61 = vld [vmem:[%s5654_s26 + $0x50c] sm:%s6271_s23] }
 0x107   : > { %425 = vst [vmem:[%s5658_s2 + $0x120] sm:%s6271_s23] %v424_v60  ;;  %427 = vst [vmem:[%s5658_s2 + $0x130] sm:%s6271_s23] %v426_v61 }
 0x108   : > { %v428_v62 = vld [vmem:[%s5654_s26 + $0x550] sm:%s6271_s23]  ;;  %v432_v0 = vld [vmem:[%s5654_s26 + $0x5d8] sm:%s6271_s23] }
 0x109   : > { %v430_v63 = vld [vmem:[%s5654_s26 + $0x594] sm:%s6271_s23]  ;;  %429 = vst [vmem:[%s5658_s2 + $0x140] sm:%s6271_s23] %v428_v62 }
 0x10a   : > { %431 = vst [vmem:[%s5658_s2 + $0x150] sm:%s6271_s23] %v430_v63  ;;  %v434_v1 = vld [vmem:[%s5654_s26 + $0x61c] sm:%s6271_s23] }
 0x10b   : > { %433 = vst [vmem:[%s5658_s2 + $0x160] sm:%s6271_s23] %v432_v0  ;;  %435 = vst [vmem:[%s5658_s2 + $0x170] sm:%s6271_s23] %v434_v1 }
 0x10c PF: > { %990 = sbr.rel (!%p5614_p3) target bundleno = 497 (0x1f1), region = 110  ;;  %s992_s18 = sand.u32 (%p5614_p3), 1, %s5305_s17  }
 0x10d   : > { %s4149_s14 = sshll.u32 (%p5614_p3), %s5317_s20, 2  ;;  %s4148_s27 = sshll.u32 (%p5614_p3), %s992_s18, 9 }
 0x10e   : > { %s996_s30 = ssub.s32 (%p5614_p3), 17, %s4149_s14  ;;  %s4352_s0 = sshll.u32 (%p5614_p3), %s5317_s20, 4 }
 0x10f   : > { %p997_p12 = scmp.lt.s32.totalorder (%p5614_p3), %s996_s30, 4  ;;  %s6377_s2 = scalar_lea.vmem (%p5614_p3), %s8101_s7, %s4352_s0  }
 0x110   : > { %s6381_s29 = scalar_lea.vmem (%p5614_p3), [#allocation3], %s4148_s27  }
 0x111   : > { %s8272_s30 = smov (!%p997_p12, %s996_s30), 4 }
 0x112   : > { %s4150_s6 = sshll.u32 %s8272_s30, 11  ;;  %s6379_s13 = sshll.u32 %s8272_s30, 2 }
 0x113   : > { %p4154_p3 = scmp.eq.s32.totalorder %s4150_s6, 0 }
 0x114   : > { %p1007_p0 = scmp.lt.u32.totalorder (!%p4154_p3), %s6379_s13, 8 }
 0x115   : > { %1006 = sbr.rel (%p4154_p3) target bundleno = 497 (0x1f1), region = 114 }
 0x11a   : > { %1010 = sbr.rel (%p1007_p0) target bundleno = 458 (0x1ca), region = 118  ;;  %s6385_s25 = sand.u32 (!%p1007_p0), 7, %s6379_s13  }
 0x11b   : > { %p1089_p1 = scmp.eq.s32.totalorder (!%p1007_p0), %s6385_s25, 0  ;;  %p4155_p2 = scmp.ne.s32.totalorder (!%p1007_p0), %s6385_s25, 0 }
 0x11f   : > { %1092 = sbr.rel (%p4155_p2) target bundleno = 355 (0x163), region = 133  ;;  %s1093_s11 = sshrl.u32 (!%p4155_p2), %s6379_s13, 3 }
 0x120   : > { %s6392_s8 = sshrl.u32 (!%p4155_p2), %s1093_s11, 1 }
 0x121   : > { %p4156_p4 = scmp.le.s32.totalorder (!%p4155_p2), %s6392_s8, 0 }
 0x124   : > { %3954 = sbr.rel (%p4156_p4) target bundleno = 330 (0x14a), region = 415  ;;  %s8162_s12 = smov (!%p4156_p4), %s6381_s29 }
 0x125   : > { %s8163_s28 = smov (!%p4156_p4), %s6377_s2  ;;  %s6401_s24 = smov (!%p4156_p4), 0  }
 0x126   : > { %s6403_s3 = smov (!%p4156_p4), 0  }
 0x129 LB: >> { %v1106_v2 = vld [vmem:[%s5397_s28] sm:$0xff]  ;;  %v1108_v3 = vld [vmem:[%s5397_s28 + $0x8] sm:$0xff]  ;;  %s1234_s5 = sadd.s32 1, %s5401_s24  ;;  %v1116_v7 = vld [vmem:[%s5397_s28 + $0x90] sm:$0xff]  ;;  %s1100_s3 = sadd.s32 1, %s5405_s3   ;;  %s5405_s3 = sphi %s6403_s3, %s1100_s3   ;;  %s5401_s24 = sphi %s6401_s24, %s8166_s24   ;;  %s5397_s28 = sphi %s8163_s28, %s8165_s28   ;;  %s5393_s12 = sphi %s8162_s12, %s8164_s12  }
 0x12a   : >> { %v1110_v4 = vld [vmem:[%s5397_s28 + $0x44] sm:$0xff]  ;;  %1107 = vst [vmem:[%s5393_s12] sm:$0xff] %v1106_v2  ;;  %1109 = vst [vmem:[%s5393_s12 + $0x8] sm:$0xff] %v1108_v3  ;;  %v1112_v5 = vld [vmem:[%s5397_s28 + $0x4c] sm:$0xff]  ;;  %p1235_p5 = scmp.ge.s32.totalorder %s1234_s5, %s6392_s8  ;;  %p1099_p6 = scmp.ge.s32.totalorder %s1100_s3, %s6392_s8 }
 0x12b   : >> { %1111 = vst [vmem:[%s5393_s12 + $0x10] sm:$0xff] %v1110_v4  ;;  %v1114_v6 = vld [vmem:[%s5397_s28 + $0x88] sm:$0xff]  ;;  %1113 = vst [vmem:[%s5393_s12 + $0x18] sm:$0xff] %v1112_v5  ;;  %v1120_v9 = vld [vmem:[%s5397_s28 + $0xd4] sm:$0xff] }
 0x12c   : >> { %1115 = vst [vmem:[%s5393_s12 + $0x20] sm:$0xff] %v1114_v6  ;;  %1117 = vst [vmem:[%s5393_s12 + $0x28] sm:$0xff] %v1116_v7  ;;  %v1118_v8 = vld [vmem:[%s5397_s28 + $0xcc] sm:$0xff]  ;;  %v1124_v11 = vld [vmem:[%s5397_s28 + $0x118] sm:$0xff]  ;;  %s8274_s5 = smov (%p1235_p5, %s1234_s5), 0 }
 0x12d   : >> { %v1122_v10 = vld [vmem:[%s5397_s28 + $0x110] sm:$0xff]  ;;  %1119 = vst [vmem:[%s5393_s12 + $0x30] sm:$0xff] %v1118_v8  ;;  %1121 = vst [vmem:[%s5393_s12 + $0x38] sm:$0xff] %v1120_v9  ;;  %v1128_v13 = vld [vmem:[%s5397_s28 + $0x15c] sm:$0xff]  ;;  %s4157_s23 = sshll.u32 %s8274_s5, 4  ;;  %s8166_s24 = smov %s8274_s5 }
 0x12e   : >> { %1123 = vst [vmem:[%s5393_s12 + $0x40] sm:$0xff] %v1122_v10  ;;  %v1126_v12 = vld [vmem:[%s5397_s28 + $0x154] sm:$0xff]  ;;  %1125 = vst [vmem:[%s5393_s12 + $0x48] sm:$0xff] %v1124_v11  ;;  %v1132_v15 = vld [vmem:[%s5397_s28 + $0x1a0] sm:$0xff]  ;;  %s6459_s18 = scalar_lea.vmem %s6377_s2, %s4157_s23   ;;  %s6462_s14 = scalar_lea.vmem %s6381_s29, %s4157_s23 [#allocation3]  }
 0x12f   : >> { %1127 = vst [vmem:[%s5393_s12 + $0x50] sm:$0xff] %v1126_v12  ;;  %1129 = vst [vmem:[%s5393_s12 + $0x58] sm:$0xff] %v1128_v13  ;;  %v1130_v14 = vld [vmem:[%s5397_s28 + $0x198] sm:$0xff]  ;;  %v1136_v17 = vld [vmem:[%s5397_s28 + $0x1e4] sm:$0xff] }
 0x130   : >> { %v1134_v16 = vld [vmem:[%s5397_s28 + $0x1dc] sm:$0xff]  ;;  %1131 = vst [vmem:[%s5393_s12 + $0x60] sm:$0xff] %v1130_v14  ;;  %1133 = vst [vmem:[%s5393_s12 + $0x68] sm:$0xff] %v1132_v15  ;;  %v1140_v19 = vld [vmem:[%s5397_s28 + $0x228] sm:$0xff] }
 0x131   : >> { %1135 = vst [vmem:[%s5393_s12 + $0x70] sm:$0xff] %v1134_v16  ;;  %v1138_v18 = vld [vmem:[%s5397_s28 + $0x220] sm:$0xff]  ;;  %1137 = vst [vmem:[%s5393_s12 + $0x78] sm:$0xff] %v1136_v17  ;;  %v1144_v21 = vld [vmem:[%s5397_s28 + $0x26c] sm:$0xff] }
 0x132   : >> { %1139 = vst [vmem:[%s5393_s12 + $0x80] sm:$0xff] %v1138_v18  ;;  %1141 = vst [vmem:[%s5393_s12 + $0x88] sm:$0xff] %v1140_v19  ;;  %v1142_v20 = vld [vmem:[%s5397_s28 + $0x264] sm:$0xff]  ;;  %v1148_v23 = vld [vmem:[%s5397_s28 + $0x2b0] sm:$0xff] }
 0x133   : >> { %v1146_v22 = vld [vmem:[%s5397_s28 + $0x2a8] sm:$0xff]  ;;  %1143 = vst [vmem:[%s5393_s12 + $0x90] sm:$0xff] %v1142_v20  ;;  %1145 = vst [vmem:[%s5393_s12 + $0x98] sm:$0xff] %v1144_v21  ;;  %v1152_v25 = vld [vmem:[%s5397_s28 + $0x2f4] sm:$0xff] }
 0x134   : >> { %1147 = vst [vmem:[%s5393_s12 + $0xa0] sm:$0xff] %v1146_v22  ;;  %v1150_v24 = vld [vmem:[%s5397_s28 + $0x2ec] sm:$0xff]  ;;  %1149 = vst [vmem:[%s5393_s12 + $0xa8] sm:$0xff] %v1148_v23  ;;  %v1156_v27 = vld [vmem:[%s5397_s28 + $0x338] sm:$0xff] }
 0x135   : >> { %1151 = vst [vmem:[%s5393_s12 + $0xb0] sm:$0xff] %v1150_v24  ;;  %1153 = vst [vmem:[%s5393_s12 + $0xb8] sm:$0xff] %v1152_v25  ;;  %v1154_v26 = vld [vmem:[%s5397_s28 + $0x330] sm:$0xff]  ;;  %v1160_v29 = vld [vmem:[%s5397_s28 + $0x37c] sm:$0xff] }
 0x136   : >> { %v1158_v28 = vld [vmem:[%s5397_s28 + $0x374] sm:$0xff]  ;;  %1155 = vst [vmem:[%s5393_s12 + $0xc0] sm:$0xff] %v1154_v26  ;;  %1157 = vst [vmem:[%s5393_s12 + $0xc8] sm:$0xff] %v1156_v27  ;;  %v1164_v31 = vld [vmem:[%s5397_s28 + $0x3c0] sm:$0xff] }
 0x137   : >> { %1159 = vst [vmem:[%s5393_s12 + $0xd0] sm:$0xff] %v1158_v28  ;;  %v1162_v30 = vld [vmem:[%s5397_s28 + $0x3b8] sm:$0xff]  ;;  %1161 = vst [vmem:[%s5393_s12 + $0xd8] sm:$0xff] %v1160_v29  ;;  %v1168_v33 = vld [vmem:[%s5397_s28 + $0x404] sm:$0xff] }
 0x138   : >> { %1163 = vst [vmem:[%s5393_s12 + $0xe0] sm:$0xff] %v1162_v30  ;;  %1165 = vst [vmem:[%s5393_s12 + $0xe8] sm:$0xff] %v1164_v31  ;;  %v1166_v32 = vld [vmem:[%s5397_s28 + $0x3fc] sm:$0xff]  ;;  %v1172_v35 = vld [vmem:[%s5397_s28 + $0x448] sm:$0xff] }
 0x139   : >> { %v1170_v34 = vld [vmem:[%s5397_s28 + $0x440] sm:$0xff]  ;;  %1167 = vst [vmem:[%s5393_s12 + $0xf0] sm:$0xff] %v1166_v32  ;;  %1169 = vst [vmem:[%s5393_s12 + $0xf8] sm:$0xff] %v1168_v33  ;;  %v1176_v37 = vld [vmem:[%s5397_s28 + $0x48c] sm:$0xff] }
 0x13a   : >> { %1171 = vst [vmem:[%s5393_s12 + $0x100] sm:$0xff] %v1170_v34  ;;  %v1174_v36 = vld [vmem:[%s5397_s28 + $0x484] sm:$0xff]  ;;  %1173 = vst [vmem:[%s5393_s12 + $0x108] sm:$0xff] %v1172_v35  ;;  %v1180_v39 = vld [vmem:[%s5397_s28 + $0x4d0] sm:$0xff] }
 0x13b   : >> { %1175 = vst [vmem:[%s5393_s12 + $0x110] sm:$0xff] %v1174_v36  ;;  %1177 = vst [vmem:[%s5393_s12 + $0x118] sm:$0xff] %v1176_v37  ;;  %v1178_v38 = vld [vmem:[%s5397_s28 + $0x4c8] sm:$0xff]  ;;  %v1184_v41 = vld [vmem:[%s5397_s28 + $0x514] sm:$0xff] }
 0x13c   : >> { %v1182_v40 = vld [vmem:[%s5397_s28 + $0x50c] sm:$0xff]  ;;  %1179 = vst [vmem:[%s5393_s12 + $0x120] sm:$0xff] %v1178_v38  ;;  %1181 = vst [vmem:[%s5393_s12 + $0x128] sm:$0xff] %v1180_v39  ;;  %v1188_v43 = vld [vmem:[%s5397_s28 + $0x558] sm:$0xff] }
 0x13d   : >> { %1183 = vst [vmem:[%s5393_s12 + $0x130] sm:$0xff] %v1182_v40  ;;  %v1186_v42 = vld [vmem:[%s5397_s28 + $0x550] sm:$0xff]  ;;  %1185 = vst [vmem:[%s5393_s12 + $0x138] sm:$0xff] %v1184_v41  ;;  %v1192_v45 = vld [vmem:[%s5397_s28 + $0x59c] sm:$0xff] }
 0x13e   : >> { %1187 = vst [vmem:[%s5393_s12 + $0x140] sm:$0xff] %v1186_v42  ;;  %1189 = vst [vmem:[%s5393_s12 + $0x148] sm:$0xff] %v1188_v43  ;;  %v1190_v44 = vld [vmem:[%s5397_s28 + $0x594] sm:$0xff]  ;;  %v1196_v47 = vld [vmem:[%s5397_s28 + $0x5e0] sm:$0xff] }
 0x13f   : >> { %v1194_v46 = vld [vmem:[%s5397_s28 + $0x5d8] sm:$0xff]  ;;  %1191 = vst [vmem:[%s5393_s12 + $0x150] sm:$0xff] %v1190_v44  ;;  %1193 = vst [vmem:[%s5393_s12 + $0x158] sm:$0xff] %v1192_v45  ;;  %v1200_v49 = vld [vmem:[%s5397_s28 + $0x624] sm:$0xff] }
 0x140   : >> { %1195 = vst [vmem:[%s5393_s12 + $0x160] sm:$0xff] %v1194_v46  ;;  %v1198_v48 = vld [vmem:[%s5397_s28 + $0x61c] sm:$0xff]  ;;  %1197 = vst [vmem:[%s5393_s12 + $0x168] sm:$0xff] %v1196_v47  ;;  %v1204_v51 = vld [vmem:[%s5397_s28 + $0x668] sm:$0xff] }
 0x141   : >> { %1199 = vst [vmem:[%s5393_s12 + $0x170] sm:$0xff] %v1198_v48  ;;  %1201 = vst [vmem:[%s5393_s12 + $0x178] sm:$0xff] %v1200_v49  ;;  %v1202_v50 = vld [vmem:[%s5397_s28 + $0x660] sm:$0xff]  ;;  %v1208_v53 = vld [vmem:[%s5397_s28 + $0x6ac] sm:$0xff] }
 0x142   : >> { %v1206_v52 = vld [vmem:[%s5397_s28 + $0x6a4] sm:$0xff]  ;;  %1203 = vst [vmem:[%s5393_s12 + $0x180] sm:$0xff] %v1202_v50  ;;  %1205 = vst [vmem:[%s5393_s12 + $0x188] sm:$0xff] %v1204_v51  ;;  %v1212_v55 = vld [vmem:[%s5397_s28 + $0x6f0] sm:$0xff] }
 0x143   : >> { %1207 = vst [vmem:[%s5393_s12 + $0x190] sm:$0xff] %v1206_v52  ;;  %v1210_v54 = vld [vmem:[%s5397_s28 + $0x6e8] sm:$0xff]  ;;  %1209 = vst [vmem:[%s5393_s12 + $0x198] sm:$0xff] %v1208_v53  ;;  %v1216_v57 = vld [vmem:[%s5397_s28 + $0x734] sm:$0xff] }
 0x144   : >> { %1211 = vst [vmem:[%s5393_s12 + $0x1a0] sm:$0xff] %v1210_v54  ;;  %1213 = vst [vmem:[%s5393_s12 + $0x1a8] sm:$0xff] %v1212_v55  ;;  %v1214_v56 = vld [vmem:[%s5397_s28 + $0x72c] sm:$0xff]  ;;  %v1220_v59 = vld [vmem:[%s5397_s28 + $0x778] sm:$0xff] }
 0x145   : >> { %v1218_v58 = vld [vmem:[%s5397_s28 + $0x770] sm:$0xff]  ;;  %1215 = vst [vmem:[%s5393_s12 + $0x1b0] sm:$0xff] %v1214_v56  ;;  %1217 = vst [vmem:[%s5393_s12 + $0x1b8] sm:$0xff] %v1216_v57  ;;  %v1224_v61 = vld [vmem:[%s5397_s28 + $0x7bc] sm:$0xff]  ;;  %1102 = sbr.rel (!%p1099_p6) target bundleno = 297 (0x129), region = 421 }
 0x146   : >> { %1219 = vst [vmem:[%s5393_s12 + $0x1c0] sm:$0xff] %v1218_v58  ;;  %v1222_v60 = vld [vmem:[%s5397_s28 + $0x7b4] sm:$0xff]  ;;  %1221 = vst [vmem:[%s5393_s12 + $0x1c8] sm:$0xff] %v1220_v59  ;;  %v1228_v63 = vld [vmem:[%s5397_s28 + $0x800] sm:$0xff] }
 0x147   : >> { %1223 = vst [vmem:[%s5393_s12 + $0x1d0] sm:$0xff] %v1222_v60  ;;  %1225 = vst [vmem:[%s5393_s12 + $0x1d8] sm:$0xff] %v1224_v61  ;;  %v1226_v62 = vld [vmem:[%s5397_s28 + $0x7f8] sm:$0xff]  ;;  %v1232_v1 = vld [vmem:[%s5397_s28 + $0x844] sm:$0xff] }
 0x148   : >> { %v1230_v0 = vld [vmem:[%s5397_s28 + $0x83c] sm:$0xff]  ;;  %1227 = vst [vmem:[%s5393_s12 + $0x1e0] sm:$0xff] %v1226_v62  ;;  %1229 = vst [vmem:[%s5393_s12 + $0x1e8] sm:$0xff] %v1228_v63  ;;  %s8165_s28 = smov %s6459_s18 }
 0x149   : >> { %1231 = vst [vmem:[%s5393_s12 + $0x1f0] sm:$0xff] %v1230_v0  ;;  %1233 = vst [vmem:[%s5393_s12 + $0x1f8] sm:$0xff] %v1232_v1  ;;  %s8164_s12 = smov %s6462_s14 }
 0x14a PF: > { %s6568_s27 = sand.u32 1, %s1093_s11   ;;  %s4353_s30 = sshll.u32 %s6392_s8, 8 }
 0x14b   : > { %s1245_s0 = sshra.s32 %s4353_s30, 4  ;;  %p4162_p8 = scmp.le.s32.totalorder %s6568_s27, 0 }
 0x14c   : > { %s6572_s1 = scalar_lea.vmem %s6377_s2, %s1245_s0   ;;  %s6575_s26 = scalar_lea.vmem %s6381_s29, %s1245_s0 [#allocation3]  }
 0x14d   : > { %3968 = sbr.rel (%p4162_p8) target bundleno = 355 (0x163), region = 426  ;;  %s8167_s6 = smov (!%p4162_p8), %s6575_s26 }
 0x14e   : > { %s8168_s12 = smov (!%p4162_p8), %s6572_s1  ;;  %s6584_s28 = smov (!%p4162_p8), 0  }
 0x14f   : > { %s6586_s24 = smov (!%p4162_p8), 0  }
 0x152 LB: >> { %v1261_v2 = vld [vmem:[%s5413_s12] sm:$0xff]  ;;  %v1265_v4 = vld [vmem:[%s5413_s12 + $0x88] sm:$0xff]  ;;  %s1325_s11 = sadd.s32 1, %s5417_s28  ;;  %v1269_v6 = vld [vmem:[%s5413_s12 + $0x110] sm:$0xff]  ;;  %s1255_s24 = sadd.s32 1, %s5421_s24   ;;  %s5421_s24 = sphi %s6586_s24, %s1255_s24   ;;  %s5417_s28 = sphi %s6584_s28, %s8171_s28   ;;  %s5413_s12 = sphi %s8168_s12, %s8170_s12   ;;  %s5409_s6 = sphi %s8167_s6, %s8169_s6  }
 0x153   : >> { %v1263_v3 = vld [vmem:[%s5413_s12 + $0x44] sm:$0xff]  ;;  %1262 = vst [vmem:[%s5409_s6] sm:$0xff] %v1261_v2  ;;  %1266 = vst [vmem:[%s5409_s6 + $0x20] sm:$0xff] %v1265_v4  ;;  %v1267_v5 = vld [vmem:[%s5413_s12 + $0xcc] sm:$0xff]  ;;  %p1326_p9 = scmp.ge.s32.totalorder %s1325_s11, %s6568_s27  ;;  %p1254_p10 = scmp.ge.s32.totalorder %s1255_s24, %s6568_s27 }
 0x154   : >> { %1264 = vst [vmem:[%s5409_s6 + $0x10] sm:$0xff] %v1263_v3  ;;  %v1271_v7 = vld [vmem:[%s5413_s12 + $0x154] sm:$0xff]  ;;  %1268 = vst [vmem:[%s5409_s6 + $0x30] sm:$0xff] %v1267_v5  ;;  %v1275_v9 = vld [vmem:[%s5413_s12 + $0x1dc] sm:$0xff] }
 0x155   : >> { %1270 = vst [vmem:[%s5409_s6 + $0x40] sm:$0xff] %v1269_v6  ;;  %1272 = vst [vmem:[%s5409_s6 + $0x50] sm:$0xff] %v1271_v7  ;;  %v1273_v8 = vld [vmem:[%s5413_s12 + $0x198] sm:$0xff]  ;;  %v1277_v10 = vld [vmem:[%s5413_s12 + $0x220] sm:$0xff]  ;;  %s8276_s11 = smov (%p1326_p9, %s1325_s11), 0 }
 0x156   : >> { %1274 = vst [vmem:[%s5409_s6 + $0x60] sm:$0xff] %v1273_v8  ;;  %1276 = vst [vmem:[%s5409_s6 + $0x70] sm:$0xff] %v1275_v9  ;;  %v1279_v11 = vld [vmem:[%s5413_s12 + $0x264] sm:$0xff]  ;;  %v1283_v13 = vld [vmem:[%s5413_s12 + $0x2ec] sm:$0xff]  ;;  %s4163_s8 = sshll.u32 %s8276_s11, 3  ;;  %s8171_s28 = smov %s8276_s11 }
 0x157   : >> { %1278 = vst [vmem:[%s5409_s6 + $0x80] sm:$0xff] %v1277_v10  ;;  %v1281_v12 = vld [vmem:[%s5413_s12 + $0x2a8] sm:$0xff]  ;;  %1280 = vst [vmem:[%s5409_s6 + $0x90] sm:$0xff] %v1279_v11  ;;  %v1285_v14 = vld [vmem:[%s5413_s12 + $0x330] sm:$0xff]  ;;  %s6642_s3 = scalar_lea.vmem %s6572_s1, %s4163_s8   ;;  %s1331_s5 = scalar_lea.vmem %s6575_s26, %s4163_s8 [#allocation3]  }
 0x158   : >> { %1282 = vst [vmem:[%s5409_s6 + $0xa0] sm:$0xff] %v1281_v12  ;;  %1284 = vst [vmem:[%s5409_s6 + $0xb0] sm:$0xff] %v1283_v13  ;;  %v1287_v15 = vld [vmem:[%s5413_s12 + $0x374] sm:$0xff]  ;;  %v1291_v17 = vld [vmem:[%s5413_s12 + $0x3fc] sm:$0xff] }
 0x159   : >> { %v1289_v16 = vld [vmem:[%s5413_s12 + $0x3b8] sm:$0xff]  ;;  %1286 = vst [vmem:[%s5409_s6 + $0xc0] sm:$0xff] %v1285_v14  ;;  %1288 = vst [vmem:[%s5409_s6 + $0xd0] sm:$0xff] %v1287_v15  ;;  %v1293_v18 = vld [vmem:[%s5413_s12 + $0x440] sm:$0xff] }
 0x15a   : >> { %1290 = vst [vmem:[%s5409_s6 + $0xe0] sm:$0xff] %v1289_v16  ;;  %v1295_v19 = vld [vmem:[%s5413_s12 + $0x484] sm:$0xff]  ;;  %1292 = vst [vmem:[%s5409_s6 + $0xf0] sm:$0xff] %v1291_v17  ;;  %v1299_v21 = vld [vmem:[%s5413_s12 + $0x50c] sm:$0xff] }
 0x15b   : >> { %1294 = vst [vmem:[%s5409_s6 + $0x100] sm:$0xff] %v1293_v18  ;;  %1296 = vst [vmem:[%s5409_s6 + $0x110] sm:$0xff] %v1295_v19  ;;  %v1297_v20 = vld [vmem:[%s5413_s12 + $0x4c8] sm:$0xff]  ;;  %v1301_v22 = vld [vmem:[%s5413_s12 + $0x550] sm:$0xff] }
 0x15c   : >> { %1298 = vst [vmem:[%s5409_s6 + $0x120] sm:$0xff] %v1297_v20  ;;  %1300 = vst [vmem:[%s5409_s6 + $0x130] sm:$0xff] %v1299_v21  ;;  %v1303_v23 = vld [vmem:[%s5413_s12 + $0x594] sm:$0xff]  ;;  %v1307_v25 = vld [vmem:[%s5413_s12 + $0x61c] sm:$0xff] }
 0x15d   : >> { %1302 = vst [vmem:[%s5409_s6 + $0x140] sm:$0xff] %v1301_v22  ;;  %v1305_v24 = vld [vmem:[%s5413_s12 + $0x5d8] sm:$0xff]  ;;  %1304 = vst [vmem:[%s5409_s6 + $0x150] sm:$0xff] %v1303_v23  ;;  %v1309_v26 = vld [vmem:[%s5413_s12 + $0x660] sm:$0xff] }
 0x15e   : >> { %1306 = vst [vmem:[%s5409_s6 + $0x160] sm:$0xff] %v1305_v24  ;;  %1308 = vst [vmem:[%s5409_s6 + $0x170] sm:$0xff] %v1307_v25  ;;  %v1311_v27 = vld [vmem:[%s5413_s12 + $0x6a4] sm:$0xff]  ;;  %v1315_v29 = vld [vmem:[%s5413_s12 + $0x72c] sm:$0xff]  ;;  %1257 = sbr.rel (!%p1254_p10) target bundleno = 338 (0x152), region = 432 }
 0x15f   : >> { %v1313_v28 = vld [vmem:[%s5413_s12 + $0x6e8] sm:$0xff]  ;;  %1310 = vst [vmem:[%s5409_s6 + $0x180] sm:$0xff] %v1309_v26  ;;  %1312 = vst [vmem:[%s5409_s6 + $0x190] sm:$0xff] %v1311_v27  ;;  %v1317_v30 = vld [vmem:[%s5413_s12 + $0x770] sm:$0xff] }
 0x160   : >> { %1314 = vst [vmem:[%s5409_s6 + $0x1a0] sm:$0xff] %v1313_v28  ;;  %v1319_v31 = vld [vmem:[%s5413_s12 + $0x7b4] sm:$0xff]  ;;  %1316 = vst [vmem:[%s5409_s6 + $0x1b0] sm:$0xff] %v1315_v29  ;;  %v1323_v33 = vld [vmem:[%s5413_s12 + $0x83c] sm:$0xff] }
 0x161   : >> { %1318 = vst [vmem:[%s5409_s6 + $0x1c0] sm:$0xff] %v1317_v30  ;;  %1320 = vst [vmem:[%s5409_s6 + $0x1d0] sm:$0xff] %v1319_v31  ;;  %v1321_v32 = vld [vmem:[%s5413_s12 + $0x7f8] sm:$0xff]  ;;  %s8170_s12 = smov %s6642_s3 }
 0x162   : >> { %1322 = vst [vmem:[%s5409_s6 + $0x1e0] sm:$0xff] %v1321_v32  ;;  %1324 = vst [vmem:[%s5409_s6 + $0x1f0] sm:$0xff] %v1323_v33  ;;  %s8169_s6 = smov %s1331_s5 }
 0x163 PF: > { %1334 = sbr.rel (%p1089_p1) target bundleno = 458 (0x1ca), region = 151  ;;  %s1336_s23 = ssub.s32 (!%p1089_p1), %s6379_s13, %s6385_s25 }
 0x164   : > { %s1340_s18 = sshrl.u32 (!%p1089_p1), %s6379_s13, 3  ;;  %s6688_s14 = scalar_lea.vmem (!%p1089_p1), %s6377_s2, %s1336_s23 }
 0x165   : > { %s6691_s30 = scalar_lea.vmem (!%p1089_p1), %s6381_s29, %s1336_s23 [#allocation3]  ;;  %s6695_s0 = sshrl.u32 (!%p1089_p1), %s1340_s18, 1 }
 0x166   : > { %p4165_p12 = scmp.le.s32.totalorder (!%p1089_p1), %s6695_s0, 0 }
 0x168   : > { %3982 = sbr.rel (%p4165_p12) target bundleno = 398 (0x18e), region = 437  ;;  %s8172_s27 = smov (!%p4165_p12), %s6381_s29 }
 0x169   : > { %s8173_s1 = smov (!%p4165_p12), %s6377_s2  ;;  %s6704_s26 = smov (!%p4165_p12), 0  }
 0x16a   : > { %s6706_s6 = smov (!%p4165_p12), 0  }
 0x16d LB: >> { %v1353_v34 = vld [vmem:[%s5429_s1] sm:$0xff]  ;;  %v1355_v35 = vld [vmem:[%s5429_s1 + $0x8] sm:$0xff]  ;;  %s1481_s12 = sadd.s32 1, %s5433_s26  ;;  %v1363_v39 = vld [vmem:[%s5429_s1 + $0x90] sm:$0xff]  ;;  %s1347_s6 = sadd.s32 1, %s5437_s6   ;;  %s5437_s6 = sphi %s6706_s6, %s1347_s6   ;;  %s5433_s26 = sphi %s6704_s26, %s8176_s26   ;;  %s5429_s1 = sphi %s8173_s1, %s8175_s1   ;;  %s5425_s27 = sphi %s8172_s27, %s8174_s27  }
 0x16e   : >> { %v1357_v36 = vld [vmem:[%s5429_s1 + $0x44] sm:$0xff]  ;;  %1354 = vst [vmem:[%s5425_s27] sm:$0xff] %v1353_v34  ;;  %1356 = vst [vmem:[%s5425_s27 + $0x8] sm:$0xff] %v1355_v35  ;;  %v1359_v37 = vld [vmem:[%s5429_s1 + $0x4c] sm:$0xff]  ;;  %p1482_p3 = scmp.ge.s32.totalorder %s1481_s12, %s6695_s0  ;;  %p1346_p0 = scmp.ge.s32.totalorder %s1347_s6, %s6695_s0 }
 0x16f   : >> { %1358 = vst [vmem:[%s5425_s27 + $0x10] sm:$0xff] %v1357_v36  ;;  %v1361_v38 = vld [vmem:[%s5429_s1 + $0x88] sm:$0xff]  ;;  %1360 = vst [vmem:[%s5425_s27 + $0x18] sm:$0xff] %v1359_v37  ;;  %v1367_v41 = vld [vmem:[%s5429_s1 + $0xd4] sm:$0xff] }
 0x170   : >> { %1362 = vst [vmem:[%s5425_s27 + $0x20] sm:$0xff] %v1361_v38  ;;  %1364 = vst [vmem:[%s5425_s27 + $0x28] sm:$0xff] %v1363_v39  ;;  %v1365_v40 = vld [vmem:[%s5429_s1 + $0xcc] sm:$0xff]  ;;  %v1371_v43 = vld [vmem:[%s5429_s1 + $0x118] sm:$0xff]  ;;  %s8278_s12 = smov (%p1482_p3, %s1481_s12), 0 }
 0x171   : >> { %v1369_v42 = vld [vmem:[%s5429_s1 + $0x110] sm:$0xff]  ;;  %1366 = vst [vmem:[%s5425_s27 + $0x30] sm:$0xff] %v1365_v40  ;;  %1368 = vst [vmem:[%s5425_s27 + $0x38] sm:$0xff] %v1367_v41  ;;  %v1375_v45 = vld [vmem:[%s5429_s1 + $0x15c] sm:$0xff]  ;;  %s4166_s28 = sshll.u32 %s8278_s12, 4  ;;  %s8176_s26 = smov %s8278_s12 }
 0x172   : >> { %1370 = vst [vmem:[%s5425_s27 + $0x40] sm:$0xff] %v1369_v42  ;;  %v1373_v44 = vld [vmem:[%s5429_s1 + $0x154] sm:$0xff]  ;;  %1372 = vst [vmem:[%s5425_s27 + $0x48] sm:$0xff] %v1371_v43  ;;  %v1379_v47 = vld [vmem:[%s5429_s1 + $0x1a0] sm:$0xff]  ;;  %s6762_s24 = scalar_lea.vmem %s6377_s2, %s4166_s28   ;;  %s6765_s11 = scalar_lea.vmem %s6381_s29, %s4166_s28 [#allocation3]  }
 0x173   : >> { %1374 = vst [vmem:[%s5425_s27 + $0x50] sm:$0xff] %v1373_v44  ;;  %1376 = vst [vmem:[%s5425_s27 + $0x58] sm:$0xff] %v1375_v45  ;;  %v1377_v46 = vld [vmem:[%s5429_s1 + $0x198] sm:$0xff]  ;;  %v1383_v49 = vld [vmem:[%s5429_s1 + $0x1e4] sm:$0xff] }
 0x174   : >> { %v1381_v48 = vld [vmem:[%s5429_s1 + $0x1dc] sm:$0xff]  ;;  %1378 = vst [vmem:[%s5425_s27 + $0x60] sm:$0xff] %v1377_v46  ;;  %1380 = vst [vmem:[%s5425_s27 + $0x68] sm:$0xff] %v1379_v47  ;;  %v1387_v51 = vld [vmem:[%s5429_s1 + $0x228] sm:$0xff] }
 0x175   : >> { %1382 = vst [vmem:[%s5425_s27 + $0x70] sm:$0xff] %v1381_v48  ;;  %v1385_v50 = vld [vmem:[%s5429_s1 + $0x220] sm:$0xff]  ;;  %1384 = vst [vmem:[%s5425_s27 + $0x78] sm:$0xff] %v1383_v49  ;;  %v1391_v53 = vld [vmem:[%s5429_s1 + $0x26c] sm:$0xff] }
 0x176   : >> { %1386 = vst [vmem:[%s5425_s27 + $0x80] sm:$0xff] %v1385_v50  ;;  %1388 = vst [vmem:[%s5425_s27 + $0x88] sm:$0xff] %v1387_v51  ;;  %v1389_v52 = vld [vmem:[%s5429_s1 + $0x264] sm:$0xff]  ;;  %v1395_v55 = vld [vmem:[%s5429_s1 + $0x2b0] sm:$0xff] }
 0x177   : >> { %v1393_v54 = vld [vmem:[%s5429_s1 + $0x2a8] sm:$0xff]  ;;  %1390 = vst [vmem:[%s5425_s27 + $0x90] sm:$0xff] %v1389_v52  ;;  %1392 = vst [vmem:[%s5425_s27 + $0x98] sm:$0xff] %v1391_v53  ;;  %v1399_v57 = vld [vmem:[%s5429_s1 + $0x2f4] sm:$0xff] }
 0x178   : >> { %1394 = vst [vmem:[%s5425_s27 + $0xa0] sm:$0xff] %v1393_v54  ;;  %v1397_v56 = vld [vmem:[%s5429_s1 + $0x2ec] sm:$0xff]  ;;  %1396 = vst [vmem:[%s5425_s27 + $0xa8] sm:$0xff] %v1395_v55  ;;  %v1403_v59 = vld [vmem:[%s5429_s1 + $0x338] sm:$0xff] }
 0x179   : >> { %1398 = vst [vmem:[%s5425_s27 + $0xb0] sm:$0xff] %v1397_v56  ;;  %1400 = vst [vmem:[%s5425_s27 + $0xb8] sm:$0xff] %v1399_v57  ;;  %v1401_v58 = vld [vmem:[%s5429_s1 + $0x330] sm:$0xff]  ;;  %v1407_v61 = vld [vmem:[%s5429_s1 + $0x37c] sm:$0xff] }
 0x17a   : >> { %v1405_v60 = vld [vmem:[%s5429_s1 + $0x374] sm:$0xff]  ;;  %1402 = vst [vmem:[%s5425_s27 + $0xc0] sm:$0xff] %v1401_v58  ;;  %1404 = vst [vmem:[%s5425_s27 + $0xc8] sm:$0xff] %v1403_v59  ;;  %v1411_v63 = vld [vmem:[%s5429_s1 + $0x3c0] sm:$0xff] }
 0x17b   : >> { %1406 = vst [vmem:[%s5425_s27 + $0xd0] sm:$0xff] %v1405_v60  ;;  %v1409_v62 = vld [vmem:[%s5429_s1 + $0x3b8] sm:$0xff]  ;;  %1408 = vst [vmem:[%s5425_s27 + $0xd8] sm:$0xff] %v1407_v61  ;;  %v1415_v1 = vld [vmem:[%s5429_s1 + $0x404] sm:$0xff] }
 0x17c   : >> { %1410 = vst [vmem:[%s5425_s27 + $0xe0] sm:$0xff] %v1409_v62  ;;  %1412 = vst [vmem:[%s5425_s27 + $0xe8] sm:$0xff] %v1411_v63  ;;  %v1413_v0 = vld [vmem:[%s5429_s1 + $0x3fc] sm:$0xff]  ;;  %v1419_v3 = vld [vmem:[%s5429_s1 + $0x448] sm:$0xff] }
 0x17d   : >> { %v1417_v2 = vld [vmem:[%s5429_s1 + $0x440] sm:$0xff]  ;;  %1414 = vst [vmem:[%s5425_s27 + $0xf0] sm:$0xff] %v1413_v0  ;;  %1416 = vst [vmem:[%s5425_s27 + $0xf8] sm:$0xff] %v1415_v1  ;;  %v1423_v5 = vld [vmem:[%s5429_s1 + $0x48c] sm:$0xff] }
 0x17e   : >> { %1418 = vst [vmem:[%s5425_s27 + $0x100] sm:$0xff] %v1417_v2  ;;  %v1421_v4 = vld [vmem:[%s5429_s1 + $0x484] sm:$0xff]  ;;  %1420 = vst [vmem:[%s5425_s27 + $0x108] sm:$0xff] %v1419_v3  ;;  %v1427_v7 = vld [vmem:[%s5429_s1 + $0x4d0] sm:$0xff] }
 0x17f   : >> { %1422 = vst [vmem:[%s5425_s27 + $0x110] sm:$0xff] %v1421_v4  ;;  %1424 = vst [vmem:[%s5425_s27 + $0x118] sm:$0xff] %v1423_v5  ;;  %v1425_v6 = vld [vmem:[%s5429_s1 + $0x4c8] sm:$0xff]  ;;  %v1431_v9 = vld [vmem:[%s5429_s1 + $0x514] sm:$0xff] }
 0x180   : >> { %v1429_v8 = vld [vmem:[%s5429_s1 + $0x50c] sm:$0xff]  ;;  %1426 = vst [vmem:[%s5425_s27 + $0x120] sm:$0xff] %v1425_v6  ;;  %1428 = vst [vmem:[%s5425_s27 + $0x128] sm:$0xff] %v1427_v7  ;;  %v1435_v11 = vld [vmem:[%s5429_s1 + $0x558] sm:$0xff] }
 0x181   : >> { %1430 = vst [vmem:[%s5425_s27 + $0x130] sm:$0xff] %v1429_v8  ;;  %v1433_v10 = vld [vmem:[%s5429_s1 + $0x550] sm:$0xff]  ;;  %1432 = vst [vmem:[%s5425_s27 + $0x138] sm:$0xff] %v1431_v9  ;;  %v1439_v13 = vld [vmem:[%s5429_s1 + $0x59c] sm:$0xff] }
 0x182   : >> { %1434 = vst [vmem:[%s5425_s27 + $0x140] sm:$0xff] %v1433_v10  ;;  %1436 = vst [vmem:[%s5425_s27 + $0x148] sm:$0xff] %v1435_v11  ;;  %v1437_v12 = vld [vmem:[%s5429_s1 + $0x594] sm:$0xff]  ;;  %v1443_v15 = vld [vmem:[%s5429_s1 + $0x5e0] sm:$0xff] }
 0x183   : >> { %v1441_v14 = vld [vmem:[%s5429_s1 + $0x5d8] sm:$0xff]  ;;  %1438 = vst [vmem:[%s5425_s27 + $0x150] sm:$0xff] %v1437_v12  ;;  %1440 = vst [vmem:[%s5425_s27 + $0x158] sm:$0xff] %v1439_v13  ;;  %v1447_v17 = vld [vmem:[%s5429_s1 + $0x624] sm:$0xff] }
 0x184   : >> { %1442 = vst [vmem:[%s5425_s27 + $0x160] sm:$0xff] %v1441_v14  ;;  %v1445_v16 = vld [vmem:[%s5429_s1 + $0x61c] sm:$0xff]  ;;  %1444 = vst [vmem:[%s5425_s27 + $0x168] sm:$0xff] %v1443_v15  ;;  %v1451_v19 = vld [vmem:[%s5429_s1 + $0x668] sm:$0xff] }
 0x185   : >> { %1446 = vst [vmem:[%s5425_s27 + $0x170] sm:$0xff] %v1445_v16  ;;  %1448 = vst [vmem:[%s5425_s27 + $0x178] sm:$0xff] %v1447_v17  ;;  %v1449_v18 = vld [vmem:[%s5429_s1 + $0x660] sm:$0xff]  ;;  %v1455_v21 = vld [vmem:[%s5429_s1 + $0x6ac] sm:$0xff] }
 0x186   : >> { %v1453_v20 = vld [vmem:[%s5429_s1 + $0x6a4] sm:$0xff]  ;;  %1450 = vst [vmem:[%s5425_s27 + $0x180] sm:$0xff] %v1449_v18  ;;  %1452 = vst [vmem:[%s5425_s27 + $0x188] sm:$0xff] %v1451_v19  ;;  %v1459_v23 = vld [vmem:[%s5429_s1 + $0x6f0] sm:$0xff] }
 0x187   : >> { %1454 = vst [vmem:[%s5425_s27 + $0x190] sm:$0xff] %v1453_v20  ;;  %v1457_v22 = vld [vmem:[%s5429_s1 + $0x6e8] sm:$0xff]  ;;  %1456 = vst [vmem:[%s5425_s27 + $0x198] sm:$0xff] %v1455_v21  ;;  %v1463_v25 = vld [vmem:[%s5429_s1 + $0x734] sm:$0xff] }
 0x188   : >> { %1458 = vst [vmem:[%s5425_s27 + $0x1a0] sm:$0xff] %v1457_v22  ;;  %1460 = vst [vmem:[%s5425_s27 + $0x1a8] sm:$0xff] %v1459_v23  ;;  %v1461_v24 = vld [vmem:[%s5429_s1 + $0x72c] sm:$0xff]  ;;  %v1467_v27 = vld [vmem:[%s5429_s1 + $0x778] sm:$0xff] }
 0x189   : >> { %v1465_v26 = vld [vmem:[%s5429_s1 + $0x770] sm:$0xff]  ;;  %1462 = vst [vmem:[%s5425_s27 + $0x1b0] sm:$0xff] %v1461_v24  ;;  %1464 = vst [vmem:[%s5425_s27 + $0x1b8] sm:$0xff] %v1463_v25  ;;  %v1471_v29 = vld [vmem:[%s5429_s1 + $0x7bc] sm:$0xff]  ;;  %1349 = sbr.rel (!%p1346_p0) target bundleno = 365 (0x16d), region = 443 }
 0x18a   : >> { %1466 = vst [vmem:[%s5425_s27 + $0x1c0] sm:$0xff] %v1465_v26  ;;  %v1469_v28 = vld [vmem:[%s5429_s1 + $0x7b4] sm:$0xff]  ;;  %1468 = vst [vmem:[%s5425_s27 + $0x1c8] sm:$0xff] %v1467_v27  ;;  %v1475_v31 = vld [vmem:[%s5429_s1 + $0x800] sm:$0xff] }
 0x18b   : >> { %1470 = vst [vmem:[%s5425_s27 + $0x1d0] sm:$0xff] %v1469_v28  ;;  %1472 = vst [vmem:[%s5425_s27 + $0x1d8] sm:$0xff] %v1471_v29  ;;  %v1473_v30 = vld [vmem:[%s5429_s1 + $0x7f8] sm:$0xff]  ;;  %v1479_v33 = vld [vmem:[%s5429_s1 + $0x844] sm:$0xff] }
 0x18c   : >> { %v1477_v32 = vld [vmem:[%s5429_s1 + $0x83c] sm:$0xff]  ;;  %1474 = vst [vmem:[%s5425_s27 + $0x1e0] sm:$0xff] %v1473_v30  ;;  %1476 = vst [vmem:[%s5425_s27 + $0x1e8] sm:$0xff] %v1475_v31  ;;  %s8175_s1 = smov %s6762_s24 }
 0x18d   : >> { %1478 = vst [vmem:[%s5425_s27 + $0x1f0] sm:$0xff] %v1477_v32  ;;  %1480 = vst [vmem:[%s5425_s27 + $0x1f8] sm:$0xff] %v1479_v33  ;;  %s8174_s27 = smov %s6765_s11 }
 0x18e PF: > { %s6871_s8 = sand.u32 1, %s1340_s18   ;;  %s4355_s3 = sshll.u32 %s6695_s0, 8 }
 0x18f   : > { %s1492_s5 = sshra.s32 %s4355_s3, 4  ;;  %p4171_p1 = scmp.le.s32.totalorder %s6871_s8, 0 }
 0x190   : > { %s6875_s23 = scalar_lea.vmem %s6377_s2, %s1492_s5   ;;  %s6878_s28 = scalar_lea.vmem %s6381_s29, %s1492_s5 [#allocation3]  }
 0x191   : > { %3996 = sbr.rel (%p4171_p1) target bundleno = 423 (0x1a7), region = 448  ;;  %s8177_s27 = smov (!%p4171_p1), %s6878_s28 }
 0x192   : > { %s8178_s1 = smov (!%p4171_p1), %s6875_s23  ;;  %s6887_s26 = smov (!%p4171_p1), 0  }
 0x193   : > { %s6889_s6 = smov (!%p4171_p1), 0  }
 0x196 LB: >> { %v1508_v34 = vld [vmem:[%s5445_s1] sm:$0xff]  ;;  %v1512_v36 = vld [vmem:[%s5445_s1 + $0x88] sm:$0xff]  ;;  %s1572_s18 = sadd.s32 1, %s5449_s26  ;;  %v1516_v38 = vld [vmem:[%s5445_s1 + $0x110] sm:$0xff]  ;;  %s1502_s6 = sadd.s32 1, %s5453_s6   ;;  %s5453_s6 = sphi %s6889_s6, %s1502_s6   ;;  %s5449_s26 = sphi %s6887_s26, %s8181_s26   ;;  %s5445_s1 = sphi %s8178_s1, %s8180_s1   ;;  %s5441_s27 = sphi %s8177_s27, %s8179_s27  }
 0x197   : >> { %v1510_v35 = vld [vmem:[%s5445_s1 + $0x44] sm:$0xff]  ;;  %1509 = vst [vmem:[%s5441_s27] sm:$0xff] %v1508_v34  ;;  %1513 = vst [vmem:[%s5441_s27 + $0x20] sm:$0xff] %v1512_v36  ;;  %v1514_v37 = vld [vmem:[%s5445_s1 + $0xcc] sm:$0xff]  ;;  %p1573_p2 = scmp.ge.s32.totalorder %s1572_s18, %s6871_s8  ;;  %p1501_p4 = scmp.ge.s32.totalorder %s1502_s6, %s6871_s8 }
 0x198   : >> { %1511 = vst [vmem:[%s5441_s27 + $0x10] sm:$0xff] %v1510_v35  ;;  %v1518_v39 = vld [vmem:[%s5445_s1 + $0x154] sm:$0xff]  ;;  %1515 = vst [vmem:[%s5441_s27 + $0x30] sm:$0xff] %v1514_v37  ;;  %v1522_v41 = vld [vmem:[%s5445_s1 + $0x1dc] sm:$0xff] }
 0x199   : >> { %1517 = vst [vmem:[%s5441_s27 + $0x40] sm:$0xff] %v1516_v38  ;;  %1519 = vst [vmem:[%s5441_s27 + $0x50] sm:$0xff] %v1518_v39  ;;  %v1520_v40 = vld [vmem:[%s5445_s1 + $0x198] sm:$0xff]  ;;  %v1524_v42 = vld [vmem:[%s5445_s1 + $0x220] sm:$0xff]  ;;  %s8280_s18 = smov (%p1573_p2, %s1572_s18), 0 }
 0x19a   : >> { %1521 = vst [vmem:[%s5441_s27 + $0x60] sm:$0xff] %v1520_v40  ;;  %1523 = vst [vmem:[%s5441_s27 + $0x70] sm:$0xff] %v1522_v41  ;;  %v1526_v43 = vld [vmem:[%s5445_s1 + $0x264] sm:$0xff]  ;;  %v1530_v45 = vld [vmem:[%s5445_s1 + $0x2ec] sm:$0xff]  ;;  %s4172_s0 = sshll.u32 %s8280_s18, 3  ;;  %s8181_s26 = smov %s8280_s18 }
 0x19b   : >> { %1525 = vst [vmem:[%s5441_s27 + $0x80] sm:$0xff] %v1524_v42  ;;  %v1528_v44 = vld [vmem:[%s5445_s1 + $0x2a8] sm:$0xff]  ;;  %1527 = vst [vmem:[%s5441_s27 + $0x90] sm:$0xff] %v1526_v43  ;;  %v1532_v46 = vld [vmem:[%s5445_s1 + $0x330] sm:$0xff]  ;;  %s6945_s12 = scalar_lea.vmem %s6875_s23, %s4172_s0   ;;  %s1578_s24 = scalar_lea.vmem %s6878_s28, %s4172_s0 [#allocation3]  }
 0x19c   : >> { %1529 = vst [vmem:[%s5441_s27 + $0xa0] sm:$0xff] %v1528_v44  ;;  %1531 = vst [vmem:[%s5441_s27 + $0xb0] sm:$0xff] %v1530_v45  ;;  %v1534_v47 = vld [vmem:[%s5445_s1 + $0x374] sm:$0xff]  ;;  %v1538_v49 = vld [vmem:[%s5445_s1 + $0x3fc] sm:$0xff] }
 0x19d   : >> { %v1536_v48 = vld [vmem:[%s5445_s1 + $0x3b8] sm:$0xff]  ;;  %1533 = vst [vmem:[%s5441_s27 + $0xc0] sm:$0xff] %v1532_v46  ;;  %1535 = vst [vmem:[%s5441_s27 + $0xd0] sm:$0xff] %v1534_v47  ;;  %v1540_v50 = vld [vmem:[%s5445_s1 + $0x440] sm:$0xff] }
 0x19e   : >> { %1537 = vst [vmem:[%s5441_s27 + $0xe0] sm:$0xff] %v1536_v48  ;;  %v1542_v51 = vld [vmem:[%s5445_s1 + $0x484] sm:$0xff]  ;;  %1539 = vst [vmem:[%s5441_s27 + $0xf0] sm:$0xff] %v1538_v49  ;;  %v1546_v53 = vld [vmem:[%s5445_s1 + $0x50c] sm:$0xff] }
 0x19f   : >> { %1541 = vst [vmem:[%s5441_s27 + $0x100] sm:$0xff] %v1540_v50  ;;  %1543 = vst [vmem:[%s5441_s27 + $0x110] sm:$0xff] %v1542_v51  ;;  %v1544_v52 = vld [vmem:[%s5445_s1 + $0x4c8] sm:$0xff]  ;;  %v1548_v54 = vld [vmem:[%s5445_s1 + $0x550] sm:$0xff] }
 0x1a0   : >> { %1545 = vst [vmem:[%s5441_s27 + $0x120] sm:$0xff] %v1544_v52  ;;  %1547 = vst [vmem:[%s5441_s27 + $0x130] sm:$0xff] %v1546_v53  ;;  %v1550_v55 = vld [vmem:[%s5445_s1 + $0x594] sm:$0xff]  ;;  %v1554_v57 = vld [vmem:[%s5445_s1 + $0x61c] sm:$0xff] }
 0x1a1   : >> { %1549 = vst [vmem:[%s5441_s27 + $0x140] sm:$0xff] %v1548_v54  ;;  %v1552_v56 = vld [vmem:[%s5445_s1 + $0x5d8] sm:$0xff]  ;;  %1551 = vst [vmem:[%s5441_s27 + $0x150] sm:$0xff] %v1550_v55  ;;  %v1556_v58 = vld [vmem:[%s5445_s1 + $0x660] sm:$0xff] }
 0x1a2   : >> { %1553 = vst [vmem:[%s5441_s27 + $0x160] sm:$0xff] %v1552_v56  ;;  %1555 = vst [vmem:[%s5441_s27 + $0x170] sm:$0xff] %v1554_v57  ;;  %v1558_v59 = vld [vmem:[%s5445_s1 + $0x6a4] sm:$0xff]  ;;  %v1562_v61 = vld [vmem:[%s5445_s1 + $0x72c] sm:$0xff]  ;;  %1504 = sbr.rel (!%p1501_p4) target bundleno = 406 (0x196), region = 454 }
 0x1a3   : >> { %v1560_v60 = vld [vmem:[%s5445_s1 + $0x6e8] sm:$0xff]  ;;  %1557 = vst [vmem:[%s5441_s27 + $0x180] sm:$0xff] %v1556_v58  ;;  %1559 = vst [vmem:[%s5441_s27 + $0x190] sm:$0xff] %v1558_v59  ;;  %v1564_v62 = vld [vmem:[%s5445_s1 + $0x770] sm:$0xff] }
 0x1a4   : >> { %1561 = vst [vmem:[%s5441_s27 + $0x1a0] sm:$0xff] %v1560_v60  ;;  %v1566_v63 = vld [vmem:[%s5445_s1 + $0x7b4] sm:$0xff]  ;;  %1563 = vst [vmem:[%s5441_s27 + $0x1b0] sm:$0xff] %v1562_v61  ;;  %v1570_v1 = vld [vmem:[%s5445_s1 + $0x83c] sm:$0xff] }
 0x1a5   : >> { %1565 = vst [vmem:[%s5441_s27 + $0x1c0] sm:$0xff] %v1564_v62  ;;  %1567 = vst [vmem:[%s5441_s27 + $0x1d0] sm:$0xff] %v1566_v63  ;;  %v1568_v0 = vld [vmem:[%s5445_s1 + $0x7f8] sm:$0xff]  ;;  %s8180_s1 = smov %s6945_s12 }
 0x1a6   : >> { %1569 = vst [vmem:[%s5441_s27 + $0x1e0] sm:$0xff] %v1568_v0  ;;  %1571 = vst [vmem:[%s5441_s27 + $0x1f0] sm:$0xff] %v1570_v1  ;;  %s8179_s27 = smov %s1578_s24 }
 0x1a7 PF: > { %s5489_s11 = smov 1  }
 0x1a8   : > { %s1579_s3 = sshll.u32 %s5489_s11, %s6385_s25 }
 0x1a9   : > { %s6986_s5 = sadd.s32 4294967295, %s1579_s3 }
 0x1aa   : > { %v1589_v2 = vld [vmem:[%s6688_s14] sm:%s6986_s5]  ;;  %v1593_v4 = vld [vmem:[%s6688_s14 + $0x88] sm:%s6986_s5] }
 0x1ab   : > { %v1591_v3 = vld [vmem:[%s6688_s14 + $0x44] sm:%s6986_s5]  ;;  %1590 = vst [vmem:[%s6691_s30] sm:%s6986_s5] %v1589_v2 }
 0x1ac   : > { %1592 = vst [vmem:[%s6691_s30 + $0x10] sm:%s6986_s5] %v1591_v3  ;;  %v1595_v5 = vld [vmem:[%s6688_s14 + $0xcc] sm:%s6986_s5] }
 0x1ad   : > { %1594 = vst [vmem:[%s6691_s30 + $0x20] sm:%s6986_s5] %v1593_v4  ;;  %1596 = vst [vmem:[%s6691_s30 + $0x30] sm:%s6986_s5] %v1595_v5 }
 0x1ae   : > { %v1597_v6 = vld [vmem:[%s6688_s14 + $0x110] sm:%s6986_s5]  ;;  %v1601_v8 = vld [vmem:[%s6688_s14 + $0x198] sm:%s6986_s5] }
 0x1af   : > { %v1599_v7 = vld [vmem:[%s6688_s14 + $0x154] sm:%s6986_s5]  ;;  %1598 = vst [vmem:[%s6691_s30 + $0x40] sm:%s6986_s5] %v1597_v6 }
 0x1b0   : > { %1600 = vst [vmem:[%s6691_s30 + $0x50] sm:%s6986_s5] %v1599_v7  ;;  %v1603_v9 = vld [vmem:[%s6688_s14 + $0x1dc] sm:%s6986_s5] }
 0x1b1   : > { %1602 = vst [vmem:[%s6691_s30 + $0x60] sm:%s6986_s5] %v1601_v8  ;;  %1604 = vst [vmem:[%s6691_s30 + $0x70] sm:%s6986_s5] %v1603_v9 }
 0x1b2   : > { %v1605_v10 = vld [vmem:[%s6688_s14 + $0x220] sm:%s6986_s5]  ;;  %v1609_v12 = vld [vmem:[%s6688_s14 + $0x2a8] sm:%s6986_s5] }
 0x1b3   : > { %v1607_v11 = vld [vmem:[%s6688_s14 + $0x264] sm:%s6986_s5]  ;;  %1606 = vst [vmem:[%s6691_s30 + $0x80] sm:%s6986_s5] %v1605_v10 }
 0x1b4   : > { %1608 = vst [vmem:[%s6691_s30 + $0x90] sm:%s6986_s5] %v1607_v11  ;;  %v1611_v13 = vld [vmem:[%s6688_s14 + $0x2ec] sm:%s6986_s5] }
 0x1b5   : > { %1610 = vst [vmem:[%s6691_s30 + $0xa0] sm:%s6986_s5] %v1609_v12  ;;  %1612 = vst [vmem:[%s6691_s30 + $0xb0] sm:%s6986_s5] %v1611_v13 }
 0x1b6   : > { %v1613_v14 = vld [vmem:[%s6688_s14 + $0x330] sm:%s6986_s5]  ;;  %v1617_v16 = vld [vmem:[%s6688_s14 + $0x3b8] sm:%s6986_s5] }
 0x1b7   : > { %v1615_v15 = vld [vmem:[%s6688_s14 + $0x374] sm:%s6986_s5]  ;;  %1614 = vst [vmem:[%s6691_s30 + $0xc0] sm:%s6986_s5] %v1613_v14 }
 0x1b8   : > { %1616 = vst [vmem:[%s6691_s30 + $0xd0] sm:%s6986_s5] %v1615_v15  ;;  %v1619_v17 = vld [vmem:[%s6688_s14 + $0x3fc] sm:%s6986_s5] }
 0x1b9   : > { %1618 = vst [vmem:[%s6691_s30 + $0xe0] sm:%s6986_s5] %v1617_v16  ;;  %1620 = vst [vmem:[%s6691_s30 + $0xf0] sm:%s6986_s5] %v1619_v17 }
 0x1ba   : > { %v1621_v18 = vld [vmem:[%s6688_s14 + $0x440] sm:%s6986_s5]  ;;  %v1625_v20 = vld [vmem:[%s6688_s14 + $0x4c8] sm:%s6986_s5] }
 0x1bb   : > { %v1623_v19 = vld [vmem:[%s6688_s14 + $0x484] sm:%s6986_s5]  ;;  %1622 = vst [vmem:[%s6691_s30 + $0x100] sm:%s6986_s5] %v1621_v18 }
 0x1bc   : > { %1624 = vst [vmem:[%s6691_s30 + $0x110] sm:%s6986_s5] %v1623_v19  ;;  %v1627_v21 = vld [vmem:[%s6688_s14 + $0x50c] sm:%s6986_s5] }
 0x1bd   : > { %1626 = vst [vmem:[%s6691_s30 + $0x120] sm:%s6986_s5] %v1625_v20  ;;  %1628 = vst [vmem:[%s6691_s30 + $0x130] sm:%s6986_s5] %v1627_v21 }
 0x1be   : > { %v1629_v22 = vld [vmem:[%s6688_s14 + $0x550] sm:%s6986_s5]  ;;  %v1633_v24 = vld [vmem:[%s6688_s14 + $0x5d8] sm:%s6986_s5] }
 0x1bf   : > { %v1631_v23 = vld [vmem:[%s6688_s14 + $0x594] sm:%s6986_s5]  ;;  %1630 = vst [vmem:[%s6691_s30 + $0x140] sm:%s6986_s5] %v1629_v22 }
 0x1c0   : > { %1632 = vst [vmem:[%s6691_s30 + $0x150] sm:%s6986_s5] %v1631_v23  ;;  %v1635_v25 = vld [vmem:[%s6688_s14 + $0x61c] sm:%s6986_s5] }
 0x1c1   : > { %1634 = vst [vmem:[%s6691_s30 + $0x160] sm:%s6986_s5] %v1633_v24  ;;  %1636 = vst [vmem:[%s6691_s30 + $0x170] sm:%s6986_s5] %v1635_v25 }
 0x1c2   : > { %v1637_v26 = vld [vmem:[%s6688_s14 + $0x660] sm:%s6986_s5]  ;;  %v1641_v28 = vld [vmem:[%s6688_s14 + $0x6e8] sm:%s6986_s5] }
 0x1c3   : > { %v1639_v27 = vld [vmem:[%s6688_s14 + $0x6a4] sm:%s6986_s5]  ;;  %1638 = vst [vmem:[%s6691_s30 + $0x180] sm:%s6986_s5] %v1637_v26 }
 0x1c4   : > { %1640 = vst [vmem:[%s6691_s30 + $0x190] sm:%s6986_s5] %v1639_v27  ;;  %v1643_v29 = vld [vmem:[%s6688_s14 + $0x72c] sm:%s6986_s5] }
 0x1c5   : > { %1642 = vst [vmem:[%s6691_s30 + $0x1a0] sm:%s6986_s5] %v1641_v28  ;;  %1644 = vst [vmem:[%s6691_s30 + $0x1b0] sm:%s6986_s5] %v1643_v29 }
 0x1c6   : > { %v1645_v30 = vld [vmem:[%s6688_s14 + $0x770] sm:%s6986_s5]  ;;  %v1649_v32 = vld [vmem:[%s6688_s14 + $0x7f8] sm:%s6986_s5] }
 0x1c7   : > { %v1647_v31 = vld [vmem:[%s6688_s14 + $0x7b4] sm:%s6986_s5]  ;;  %1646 = vst [vmem:[%s6691_s30 + $0x1c0] sm:%s6986_s5] %v1645_v30 }
 0x1c8   : > { %1648 = vst [vmem:[%s6691_s30 + $0x1d0] sm:%s6986_s5] %v1647_v31  ;;  %v1651_v33 = vld [vmem:[%s6688_s14 + $0x83c] sm:%s6986_s5] }
 0x1c9   : > { %1650 = vst [vmem:[%s6691_s30 + $0x1e0] sm:%s6986_s5] %v1649_v32  ;;  %1652 = vst [vmem:[%s6691_s30 + $0x1f0] sm:%s6986_s5] %v1651_v33 }
 0x1ca PF: > { %p4175_p5 = scmp.ge.u32.totalorder %s6379_s13, 8 }
 0x1cb   : > { %s5490_s25 = smov (!%p4175_p5), 1  }
 0x1cc   : > { %1013 = sbr.rel (%p4175_p5) target bundleno = 497 (0x1f1), region = 122  ;;  %s1014_s14 = sshll.u32 (!%p4175_p5), %s5490_s25, %s6379_s13 }
 0x1cd   : > { %s7118_s30 = sadd.s32 (!%p4175_p5), 4294967295, %s1014_s14 }
 0x1d1   : > { %v1024_v34 = vld [vmem:[%s6377_s2] sm:%s7118_s30]  ;;  %v1028_v36 = vld [vmem:[%s6377_s2 + $0x88] sm:%s7118_s30] }
 0x1d2   : > { %v1026_v35 = vld [vmem:[%s6377_s2 + $0x44] sm:%s7118_s30]  ;;  %1025 = vst [vmem:[%s6381_s29] sm:%s7118_s30] %v1024_v34 }
 0x1d3   : > { %1027 = vst [vmem:[%s6381_s29 + $0x10] sm:%s7118_s30] %v1026_v35  ;;  %v1030_v37 = vld [vmem:[%s6377_s2 + $0xcc] sm:%s7118_s30] }
 0x1d4   : > { %1029 = vst [vmem:[%s6381_s29 + $0x20] sm:%s7118_s30] %v1028_v36  ;;  %1031 = vst [vmem:[%s6381_s29 + $0x30] sm:%s7118_s30] %v1030_v37 }
 0x1d5   : > { %v1032_v38 = vld [vmem:[%s6377_s2 + $0x110] sm:%s7118_s30]  ;;  %v1036_v40 = vld [vmem:[%s6377_s2 + $0x198] sm:%s7118_s30] }
 0x1d6   : > { %v1034_v39 = vld [vmem:[%s6377_s2 + $0x154] sm:%s7118_s30]  ;;  %1033 = vst [vmem:[%s6381_s29 + $0x40] sm:%s7118_s30] %v1032_v38 }
 0x1d7   : > { %1035 = vst [vmem:[%s6381_s29 + $0x50] sm:%s7118_s30] %v1034_v39  ;;  %v1038_v41 = vld [vmem:[%s6377_s2 + $0x1dc] sm:%s7118_s30] }
 0x1d8   : > { %1037 = vst [vmem:[%s6381_s29 + $0x60] sm:%s7118_s30] %v1036_v40  ;;  %1039 = vst [vmem:[%s6381_s29 + $0x70] sm:%s7118_s30] %v1038_v41 }
 0x1d9   : > { %v1040_v42 = vld [vmem:[%s6377_s2 + $0x220] sm:%s7118_s30]  ;;  %v1044_v44 = vld [vmem:[%s6377_s2 + $0x2a8] sm:%s7118_s30] }
 0x1da   : > { %v1042_v43 = vld [vmem:[%s6377_s2 + $0x264] sm:%s7118_s30]  ;;  %1041 = vst [vmem:[%s6381_s29 + $0x80] sm:%s7118_s30] %v1040_v42 }
 0x1db   : > { %1043 = vst [vmem:[%s6381_s29 + $0x90] sm:%s7118_s30] %v1042_v43  ;;  %v1046_v45 = vld [vmem:[%s6377_s2 + $0x2ec] sm:%s7118_s30] }
 0x1dc   : > { %1045 = vst [vmem:[%s6381_s29 + $0xa0] sm:%s7118_s30] %v1044_v44  ;;  %1047 = vst [vmem:[%s6381_s29 + $0xb0] sm:%s7118_s30] %v1046_v45 }
 0x1dd   : > { %v1048_v46 = vld [vmem:[%s6377_s2 + $0x330] sm:%s7118_s30]  ;;  %v1052_v48 = vld [vmem:[%s6377_s2 + $0x3b8] sm:%s7118_s30] }
 0x1de   : > { %v1050_v47 = vld [vmem:[%s6377_s2 + $0x374] sm:%s7118_s30]  ;;  %1049 = vst [vmem:[%s6381_s29 + $0xc0] sm:%s7118_s30] %v1048_v46 }
 0x1df   : > { %1051 = vst [vmem:[%s6381_s29 + $0xd0] sm:%s7118_s30] %v1050_v47  ;;  %v1054_v49 = vld [vmem:[%s6377_s2 + $0x3fc] sm:%s7118_s30] }
 0x1e0   : > { %1053 = vst [vmem:[%s6381_s29 + $0xe0] sm:%s7118_s30] %v1052_v48  ;;  %1055 = vst [vmem:[%s6381_s29 + $0xf0] sm:%s7118_s30] %v1054_v49 }
 0x1e1   : > { %v1056_v50 = vld [vmem:[%s6377_s2 + $0x440] sm:%s7118_s30]  ;;  %v1060_v52 = vld [vmem:[%s6377_s2 + $0x4c8] sm:%s7118_s30] }
 0x1e2   : > { %v1058_v51 = vld [vmem:[%s6377_s2 + $0x484] sm:%s7118_s30]  ;;  %1057 = vst [vmem:[%s6381_s29 + $0x100] sm:%s7118_s30] %v1056_v50 }
 0x1e3   : > { %1059 = vst [vmem:[%s6381_s29 + $0x110] sm:%s7118_s30] %v1058_v51  ;;  %v1062_v53 = vld [vmem:[%s6377_s2 + $0x50c] sm:%s7118_s30] }
 0x1e4   : > { %1061 = vst [vmem:[%s6381_s29 + $0x120] sm:%s7118_s30] %v1060_v52  ;;  %1063 = vst [vmem:[%s6381_s29 + $0x130] sm:%s7118_s30] %v1062_v53 }
 0x1e5   : > { %v1064_v54 = vld [vmem:[%s6377_s2 + $0x550] sm:%s7118_s30]  ;;  %v1068_v56 = vld [vmem:[%s6377_s2 + $0x5d8] sm:%s7118_s30] }
 0x1e6   : > { %v1066_v55 = vld [vmem:[%s6377_s2 + $0x594] sm:%s7118_s30]  ;;  %1065 = vst [vmem:[%s6381_s29 + $0x140] sm:%s7118_s30] %v1064_v54 }
 0x1e7   : > { %1067 = vst [vmem:[%s6381_s29 + $0x150] sm:%s7118_s30] %v1066_v55  ;;  %v1070_v57 = vld [vmem:[%s6377_s2 + $0x61c] sm:%s7118_s30] }
 0x1e8   : > { %1069 = vst [vmem:[%s6381_s29 + $0x160] sm:%s7118_s30] %v1068_v56  ;;  %1071 = vst [vmem:[%s6381_s29 + $0x170] sm:%s7118_s30] %v1070_v57 }
 0x1e9   : > { %v1072_v58 = vld [vmem:[%s6377_s2 + $0x660] sm:%s7118_s30]  ;;  %v1076_v60 = vld [vmem:[%s6377_s2 + $0x6e8] sm:%s7118_s30] }
 0x1ea   : > { %v1074_v59 = vld [vmem:[%s6377_s2 + $0x6a4] sm:%s7118_s30]  ;;  %1073 = vst [vmem:[%s6381_s29 + $0x180] sm:%s7118_s30] %v1072_v58 }
 0x1eb   : > { %1075 = vst [vmem:[%s6381_s29 + $0x190] sm:%s7118_s30] %v1074_v59  ;;  %v1078_v61 = vld [vmem:[%s6377_s2 + $0x72c] sm:%s7118_s30] }
 0x1ec   : > { %1077 = vst [vmem:[%s6381_s29 + $0x1a0] sm:%s7118_s30] %v1076_v60  ;;  %1079 = vst [vmem:[%s6381_s29 + $0x1b0] sm:%s7118_s30] %v1078_v61 }
 0x1ed   : > { %v1080_v62 = vld [vmem:[%s6377_s2 + $0x770] sm:%s7118_s30]  ;;  %v1084_v0 = vld [vmem:[%s6377_s2 + $0x7f8] sm:%s7118_s30] }
 0x1ee   : > { %v1082_v63 = vld [vmem:[%s6377_s2 + $0x7b4] sm:%s7118_s30]  ;;  %1081 = vst [vmem:[%s6381_s29 + $0x1c0] sm:%s7118_s30] %v1080_v62 }
 0x1ef   : > { %1083 = vst [vmem:[%s6381_s29 + $0x1d0] sm:%s7118_s30] %v1082_v63  ;;  %v1086_v1 = vld [vmem:[%s6377_s2 + $0x83c] sm:%s7118_s30] }
 0x1f0   : > { %1085 = vst [vmem:[%s6381_s29 + $0x1e0] sm:%s7118_s30] %v1084_v0  ;;  %1087 = vst [vmem:[%s6381_s29 + $0x1f0] sm:%s7118_s30] %v1086_v1 }
 0x1f1 PF: > { %1672 = sbr.rel (!%p5628_p7) target bundleno = 579 (0x243), region = 180  ;;  %s1674_s13 = sand.u32 (%p5628_p7), 1, %s5297_s15  }
 0x1f2   : > { %s4179_s8 = sshll.u32 (%p5628_p7), %s5317_s20, 2  ;;  %s4177_s23 = sshll.u32 (%p5628_p7), %s1674_s13, 7 }
 0x1f3   : > { %s1679_s28 = ssub.s32 (%p5628_p7), 17, %s4179_s8  ;;  %s4366_s27 = smul.u32 (%p5628_p7), 136, %s5321_s21 }
 0x1f4   : > { %p1680_p6 = scmp.lt.s32.totalorder (%p5628_p7), %s1679_s28, 4  ;;  %s7260_s0 = scalar_lea.vmem (%p5628_p7), [#allocation4], %s4177_s23  }
 0x1f5   : > { %s1685_s1 = sadd.s32 (%p5628_p7), %s4366_s27, %s4179_s8 }
 0x1f6   : > { %s8282_s28 = smov (!%p1680_p6, %s1679_s28), 4  ;;  %s4183_s26 = sshll.u32 %s1685_s1, 2 }
 0x1f7   : > { %s4180_s2 = sshll.u32 %s8282_s28, 9  ;;  %s7256_s18 = scalar_lea.vmem %s8103_s9, %s4183_s26  }
 0x1f8   : > { %s7258_s10 = sshll.u32 %s8282_s28, 2  ;;  %p4185_p7 = scmp.eq.s32.totalorder %s4180_s2, 0 }
 0x1f9   : > { %p1692_p8 = scmp.lt.u32.totalorder (!%p4185_p7), %s7258_s10, 8 }
 0x1fa   : > { %1691 = sbr.rel (%p4185_p7) target bundleno = 579 (0x243), region = 184 }
 0x1ff   : > { %1695 = sbr.rel (%p1692_p8) target bundleno = 564 (0x234), region = 188  ;;  %s7264_s12 = sand.u32 (!%p1692_p8), 7, %s7258_s10  }
 0x200   : > { %p1726_p9 = scmp.eq.s32.totalorder (!%p1692_p8), %s7264_s12, 0  ;;  %p4186_p10 = scmp.ne.s32.totalorder (!%p1692_p8), %s7264_s12, 0 }
 0x204   : > { %1729 = sbr.rel (%p4186_p10) target bundleno = 534 (0x216), region = 203  ;;  %s1730_s24 = sshrl.u32 (!%p4186_p10), %s7258_s10, 3 }
 0x205   : > { %s1731_s11 = sshrl.u32 (!%p4186_p10), %s1730_s24, 3  ;;  %s7269_s3 = sand.u32 (!%p4186_p10), 7, %s1730_s24  }
 0x206   : > { %s4357_s5 = sshll.u32 (!%p4186_p10), %s1731_s11, 10  ;;  %p4193_p12 = scmp.le.s32.totalorder (!%p4186_p10), %s7269_s3, 0 }
 0x207   : > { %s1882_s25 = sshra.s32 (!%p4186_p10), %s4357_s5, 4 }
 0x208   : > { %s7272_s14 = scalar_lea.vmem (!%p4186_p10), %s7256_s18, %s1882_s25   ;;  %s7275_s30 = scalar_lea.vmem (!%p4186_p10), %s7260_s0, %s1882_s25 [#allocation4]  }
 0x209   : > { %4024 = sbr.rel (%p4193_p12) target bundleno = 534 (0x216), region = 470  ;;  %s8182_s13 = smov (!%p4193_p12), %s7275_s30 }
 0x20a   : > { %s8183_s8 = smov (!%p4193_p12), %s7272_s14  ;;  %s7284_s23 = smov (!%p4193_p12), 0  }
 0x20b   : > { %s7286_s28 = smov (!%p4193_p12), 0  }
 0x20e LB: >> { %v1898_v2 = vld [vmem:[%s5461_s8] sm:$0xff]  ;;  %v1902_v4 = vld [vmem:[%s5461_s8 + $0x88] sm:$0xff]  ;;  %s1914_s27 = sadd.s32 1, %s5465_s23  ;;  %v1906_v6 = vld [vmem:[%s5461_s8 + $0x110] sm:$0xff]  ;;  %s1892_s28 = sadd.s32 1, %s5469_s28   ;;  %s5469_s28 = sphi %s7286_s28, %s1892_s28   ;;  %s5465_s23 = sphi %s7284_s23, %s8184_s23   ;;  %s5461_s8 = sphi %s8183_s8, %s1919_s8   ;;  %s5457_s13 = sphi %s8182_s13, %s1920_s13  }
 0x20f   : >> { %v1900_v3 = vld [vmem:[%s5461_s8 + $0x44] sm:$0xff]  ;;  %1899 = vst [vmem:[%s5457_s13] sm:$0xff] %v1898_v2  ;;  %1903 = vst [vmem:[%s5457_s13 + $0x20] sm:$0xff] %v1902_v4  ;;  %v1904_v5 = vld [vmem:[%s5461_s8 + $0xcc] sm:$0xff]  ;;  %p1915_p3 = scmp.ge.s32.totalorder %s1914_s27, %s7269_s3  ;;  %p1891_p0 = scmp.ge.s32.totalorder %s1892_s28, %s7269_s3 }
 0x210   : >> { %1901 = vst [vmem:[%s5457_s13 + $0x10] sm:$0xff] %v1900_v3  ;;  %v1908_v7 = vld [vmem:[%s5461_s8 + $0x154] sm:$0xff]  ;;  %1905 = vst [vmem:[%s5457_s13 + $0x30] sm:$0xff] %v1904_v5  ;;  %v1912_v9 = vld [vmem:[%s5461_s8 + $0x1dc] sm:$0xff] }
 0x211   : >> { %1907 = vst [vmem:[%s5457_s13 + $0x40] sm:$0xff] %v1906_v6  ;;  %1909 = vst [vmem:[%s5457_s13 + $0x50] sm:$0xff] %v1908_v7  ;;  %v1910_v8 = vld [vmem:[%s5461_s8 + $0x198] sm:$0xff]  ;;  %s8284_s27 = smov (%p1915_p3, %s1914_s27), 0  ;;  %1894 = sbr.rel (!%p1891_p0) target bundleno = 526 (0x20e), region = 476 }
 0x212   : >> { %1911 = vst [vmem:[%s5457_s13 + $0x60] sm:$0xff] %v1910_v8  ;;  %1913 = vst [vmem:[%s5457_s13 + $0x70] sm:$0xff] %v1912_v9  ;;  %s4194_s1 = sshll.u32 %s8284_s27, 3  ;;  %s8184_s23 = smov %s8284_s27 }
 0x213   : >> { %s1919_s8 = scalar_lea.vmem %s7272_s14, %s4194_s1   ;;  %s1920_s13 = scalar_lea.vmem %s7275_s30, %s4194_s1 [#allocation4]  }
 0x216 PF: > { %1923 = sbr.rel (%p1726_p9) target bundleno = 564 (0x234), region = 221  ;;  %s1925_s2 = ssub.s32 (!%p1726_p9), %s7258_s10, %s7264_s12 }
 0x217   : > { %s1929_s26 = sshrl.u32 (!%p1726_p9), %s7258_s10, 3  ;;  %s7310_s29 = scalar_lea.vmem (!%p1726_p9), %s7256_s18, %s1925_s2 }
 0x218   : > { %s7313_s6 = scalar_lea.vmem (!%p1726_p9), %s7260_s0, %s1925_s2 [#allocation4]  ;;  %s1930_s24 = sshrl.u32 (!%p1726_p9), %s1929_s26, 3 }
 0x219   : > { %s7315_s11 = sand.u32 (!%p1726_p9), 7, %s1929_s26   ;;  %s4359_s3 = sshll.u32 (!%p1726_p9), %s1930_s24, 10 }
 0x21a   : > { %s2081_s5 = sshra.s32 (!%p1726_p9), %s4359_s3, 4  ;;  %p4202_p1 = scmp.le.s32.totalorder (!%p1726_p9), %s7315_s11, 0 }
 0x21b   : > { %s7318_s25 = scalar_lea.vmem %s7256_s18, %s2081_s5   ;;  %s7321_s14 = scalar_lea.vmem %s7260_s0, %s2081_s5 [#allocation4]  }
 0x21c   : > { %4052 = sbr.rel (%p4202_p1) target bundleno = 553 (0x229), region = 492  ;;  %s8185_s30 = smov (!%p4202_p1), %s7321_s14 }
 0x21d   : > { %s8186_s13 = smov (!%p4202_p1), %s7318_s25  ;;  %s7330_s8 = smov (!%p4202_p1), 0  }
 0x21e   : > { %s7332_s23 = smov (!%p4202_p1), 0  }
 0x221 LB: >> { %v2097_v10 = vld [vmem:[%s5477_s13] sm:$0xff]  ;;  %v2101_v12 = vld [vmem:[%s5477_s13 + $0x88] sm:$0xff]  ;;  %s2113_s28 = sadd.s32 1, %s5481_s8  ;;  %v2105_v14 = vld [vmem:[%s5477_s13 + $0x110] sm:$0xff]  ;;  %s2091_s23 = sadd.s32 1, %s5485_s23   ;;  %s5485_s23 = sphi %s7332_s23, %s2091_s23   ;;  %s5481_s8 = sphi %s7330_s8, %s8187_s8   ;;  %s5477_s13 = sphi %s8186_s13, %s2118_s13   ;;  %s5473_s30 = sphi %s8185_s30, %s2119_s30  }
 0x222   : >> { %v2099_v11 = vld [vmem:[%s5477_s13 + $0x44] sm:$0xff]  ;;  %2098 = vst [vmem:[%s5473_s30] sm:$0xff] %v2097_v10  ;;  %2102 = vst [vmem:[%s5473_s30 + $0x20] sm:$0xff] %v2101_v12  ;;  %v2103_v13 = vld [vmem:[%s5477_s13 + $0xcc] sm:$0xff]  ;;  %p2114_p2 = scmp.ge.s32.totalorder %s2113_s28, %s7315_s11  ;;  %p2090_p4 = scmp.ge.s32.totalorder %s2091_s23, %s7315_s11 }
 0x223   : >> { %2100 = vst [vmem:[%s5473_s30 + $0x10] sm:$0xff] %v2099_v11  ;;  %v2107_v15 = vld [vmem:[%s5477_s13 + $0x154] sm:$0xff]  ;;  %2104 = vst [vmem:[%s5473_s30 + $0x30] sm:$0xff] %v2103_v13  ;;  %v2111_v17 = vld [vmem:[%s5477_s13 + $0x1dc] sm:$0xff] }
 0x224   : >> { %2106 = vst [vmem:[%s5473_s30 + $0x40] sm:$0xff] %v2105_v14  ;;  %2108 = vst [vmem:[%s5473_s30 + $0x50] sm:$0xff] %v2107_v15  ;;  %v2109_v16 = vld [vmem:[%s5477_s13 + $0x198] sm:$0xff]  ;;  %s8286_s28 = smov (%p2114_p2, %s2113_s28), 0  ;;  %2093 = sbr.rel (!%p2090_p4) target bundleno = 545 (0x221), region = 498 }
 0x225   : >> { %2110 = vst [vmem:[%s5473_s30 + $0x60] sm:$0xff] %v2109_v16  ;;  %2112 = vst [vmem:[%s5473_s30 + $0x70] sm:$0xff] %v2111_v17  ;;  %s4203_s27 = sshll.u32 %s8286_s28, 3  ;;  %s8187_s8 = smov %s8286_s28 }
 0x226   : >> { %s2118_s13 = scalar_lea.vmem %s7318_s25, %s4203_s27   ;;  %s2119_s30 = scalar_lea.vmem %s7321_s14, %s4203_s27 [#allocation4]  }
 0x229 PF: > { %s5491_s1 = smov 1  }
 0x22a   : > { %s2120_s2 = sshll.u32 %s5491_s1, %s7264_s12 }
 0x22b   : > { %s4205_s26 = sadd.s32 4294967295, %s2120_s2 }
 0x22c   : > { %v2130_v18 = vld [vmem:[%s7310_s29] sm:%s4205_s26]  ;;  %v2134_v20 = vld [vmem:[%s7310_s29 + $0x88] sm:%s4205_s26] }
 0x22d   : > { %v2132_v19 = vld [vmem:[%s7310_s29 + $0x44] sm:%s4205_s26]  ;;  %2131 = vst [vmem:[%s7313_s6] sm:%s4205_s26] %v2130_v18 }
 0x22e   : > { %2133 = vst [vmem:[%s7313_s6 + $0x10] sm:%s4205_s26] %v2132_v19  ;;  %v2136_v21 = vld [vmem:[%s7310_s29 + $0xcc] sm:%s4205_s26] }
 0x22f   : > { %2135 = vst [vmem:[%s7313_s6 + $0x20] sm:%s4205_s26] %v2134_v20  ;;  %2137 = vst [vmem:[%s7313_s6 + $0x30] sm:%s4205_s26] %v2136_v21 }
 0x230   : > { %v2138_v22 = vld [vmem:[%s7310_s29 + $0x110] sm:%s4205_s26]  ;;  %v2142_v24 = vld [vmem:[%s7310_s29 + $0x198] sm:%s4205_s26] }
 0x231   : > { %v2140_v23 = vld [vmem:[%s7310_s29 + $0x154] sm:%s4205_s26]  ;;  %2139 = vst [vmem:[%s7313_s6 + $0x40] sm:%s4205_s26] %v2138_v22 }
 0x232   : > { %2141 = vst [vmem:[%s7313_s6 + $0x50] sm:%s4205_s26] %v2140_v23  ;;  %v2144_v25 = vld [vmem:[%s7310_s29 + $0x1dc] sm:%s4205_s26] }
 0x233   : > { %2143 = vst [vmem:[%s7313_s6 + $0x60] sm:%s4205_s26] %v2142_v24  ;;  %2145 = vst [vmem:[%s7313_s6 + $0x70] sm:%s4205_s26] %v2144_v25 }
 0x234 PF: > { %p4206_p5 = scmp.ge.u32.totalorder %s7258_s10, 8 }
 0x235   : > { %s5492_s12 = smov (!%p4206_p5), 1  }
 0x236   : > { %1698 = sbr.rel (%p4206_p5) target bundleno = 579 (0x243), region = 192  ;;  %s1699_s29 = sshll.u32 (!%p4206_p5), %s5492_s12, %s7258_s10 }
 0x237   : > { %s4207_s6 = sadd.s32 (!%p4206_p5), 4294967295, %s1699_s29 }
 0x23b   : > { %v1709_v26 = vld [vmem:[%s7256_s18] sm:%s4207_s6]  ;;  %v1713_v28 = vld [vmem:[%s7256_s18 + $0x88] sm:%s4207_s6] }
 0x23c   : > { %v1711_v27 = vld [vmem:[%s7256_s18 + $0x44] sm:%s4207_s6]  ;;  %1710 = vst [vmem:[%s7260_s0] sm:%s4207_s6] %v1709_v26 }
 0x23d   : > { %1712 = vst [vmem:[%s7260_s0 + $0x10] sm:%s4207_s6] %v1711_v27  ;;  %v1715_v29 = vld [vmem:[%s7256_s18 + $0xcc] sm:%s4207_s6] }
 0x23e   : > { %1714 = vst [vmem:[%s7260_s0 + $0x20] sm:%s4207_s6] %v1713_v28  ;;  %1716 = vst [vmem:[%s7260_s0 + $0x30] sm:%s4207_s6] %v1715_v29 }
 0x23f   : > { %v1717_v30 = vld [vmem:[%s7256_s18 + $0x110] sm:%s4207_s6]  ;;  %v1721_v32 = vld [vmem:[%s7256_s18 + $0x198] sm:%s4207_s6] }
 0x240   : > { %v1719_v31 = vld [vmem:[%s7256_s18 + $0x154] sm:%s4207_s6]  ;;  %1718 = vst [vmem:[%s7260_s0 + $0x40] sm:%s4207_s6] %v1717_v30 }
 0x241   : > { %1720 = vst [vmem:[%s7260_s0 + $0x50] sm:%s4207_s6] %v1719_v31  ;;  %v1723_v33 = vld [vmem:[%s7256_s18 + $0x1dc] sm:%s4207_s6] }
 0x242   : > { %1722 = vst [vmem:[%s7260_s0 + $0x60] sm:%s4207_s6] %v1721_v32  ;;  %1724 = vst [vmem:[%s7260_s0 + $0x70] sm:%s4207_s6] %v1723_v33 }
 0x243 PF: > { %p4208_p6 = scmp.ge.s32.totalorder %s5325_s22, 1  ;;  %p2148_p7 = scmp.lt.s32.totalorder %s5325_s22, 11 }
 0x245   : > { %p2149_p8 = pnand %p4208_p6, %p2148_p7 }
 0x247   : > { %2152 = sbr.rel (%p2149_p8) target bundleno = 980 (0x3d4), region = 246 }
 0x24c   : > { %s2155_s10 = sand.u32 1, %s5301_s16   ;;  %s4212_s18 = sshll.u32 %s5313_s19, 3  ;;  %v2310_v4 = vlaneseq  ;;  %v2404_v15 = vld [vmem:[%s8098_s4] sm:$0x3]  ;;  %vm3310_vm0 = vcmask 523264  }
 0x24d   : > { %s4209_s24 = sshll.u32 %s2155_s10, 9  ;;  %p2235_p9 = scmp.lt.s32.totalorder %s4212_s18, 15 }
 0x24e   : > { %s7390_s11 = scalar_lea.vmem [#allocation3], %s4209_s24  ;;  %v7433_v9 = vshrl.u32 %v2310_v4, 7  ;;  %s4367_s25 = smul.u32 384, %s2155_s10 }
 0x24f   : > { %v4857_v34 = vld [vmem:[%s7390_s11 + $0xe4] ss:$16 sps:$4 sm:$0xff]   ;;  %v4859_v35 = vld [vmem:[%s7390_s11 + $0xec] ss:$16 sps:$4 sm:$0xff]   ;;  %v4861_v36 = vld [vmem:[%s7390_s11 + $0xe0] ss:$16 sps:$4 sm:$0xff]  }
 0x250   : > { %2924 = vmatprep.subr.bf16.mxu0 %v4857_v34  ;;  %v4862_v37 = vld [vmem:[%s7390_s11 + $0xe8] ss:$16 sps:$4 sm:$0xff]   ;;  %2997 = vmatprep.subr.bf16.mxu1 %v4859_v35  ;;  %v4863_v38 = vld [vmem:[%s7390_s11 + $0xc4] ss:$16 sps:$4 sm:$0xff]   ;;  %v4865_v39 = vld [vmem:[%s7390_s11 + $0xcc] ss:$16 sps:$4 sm:$0xff]  }
 0x251   : > { %2925 = vmatpush1.bf16.msra.mxu0 %v4861_v36  ;;  %2998 = vmatpush1.bf16.msra.mxu1 %v4862_v37  ;;  %v4867_v40 = vld [vmem:[%s7390_s11 + $0xc0] ss:$16 sps:$4 sm:$0xff]   ;;  %v4868_v41 = vld [vmem:[%s7390_s11 + $0xc8] ss:$16 sps:$4 sm:$0xff]   ;;  %v4869_v42 = vld [vmem:[%s7390_s11 + $0xa4] ss:$16 sps:$4 sm:$0xff]  }
 0x252   : > { %2926 = vmatprep.subr.bf16.mxu0 %v4863_v38  ;;  %2999 = vmatprep.subr.bf16.mxu1 %v4865_v39  ;;  %v4871_v43 = vld [vmem:[%s7390_s11 + $0xac] ss:$16 sps:$4 sm:$0xff]   ;;  %v4873_v44 = vld [vmem:[%s7390_s11 + $0xa0] ss:$16 sps:$4 sm:$0xff]   ;;  %v4874_v45 = vld [vmem:[%s7390_s11 + $0xa8] ss:$16 sps:$4 sm:$0xff]  }
 0x253   : > { %v4875_v46 = vld [vmem:[%s7390_s11 + $0x84] ss:$16 sps:$4 sm:$0xff]   ;;  %v4877_v47 = vld [vmem:[%s7390_s11 + $0x8c] ss:$16 sps:$4 sm:$0xff]   ;;  %v4879_v48 = vld [vmem:[%s7390_s11 + $0x80] ss:$16 sps:$4 sm:$0xff]  }
 0x254   : > { %v4880_v49 = vld [vmem:[%s7390_s11 + $0x88] ss:$16 sps:$4 sm:$0xff]   ;;  %v4881_v50 = vld [vmem:[%s7390_s11 + $0x64] ss:$16 sps:$4 sm:$0xff]   ;;  %v4883_v51 = vld [vmem:[%s7390_s11 + $0x6c] ss:$16 sps:$4 sm:$0xff]  }
 0x255   : > { %2927 = vmatpush1.bf16.msra.mxu0 %v4867_v40  ;;  %3000 = vmatpush1.bf16.msra.mxu1 %v4868_v41  ;;  %v4885_v52 = vld [vmem:[%s7390_s11 + $0x60] ss:$16 sps:$4 sm:$0xff]   ;;  %v4886_v53 = vld [vmem:[%s7390_s11 + $0x68] ss:$16 sps:$4 sm:$0xff]   ;;  %v4887_v54 = vld [vmem:[%s7390_s11 + $0x44] ss:$16 sps:$4 sm:$0xff]  }
 0x256   : > { %2928 = vmatprep.subr.bf16.mxu0 %v4869_v42  ;;  %3001 = vmatprep.subr.bf16.mxu1 %v4871_v43  ;;  %v4889_v55 = vld [vmem:[%s7390_s11 + $0x4c] ss:$16 sps:$4 sm:$0xff]   ;;  %v4891_v56 = vld [vmem:[%s7390_s11 + $0x40] ss:$16 sps:$4 sm:$0xff]   ;;  %v4892_v57 = vld [vmem:[%s7390_s11 + $0x48] ss:$16 sps:$4 sm:$0xff]  }
 0x257   : > { %v4893_v58 = vld [vmem:[%s7390_s11 + $0x24] ss:$16 sps:$4 sm:$0xff]   ;;  %v4895_v59 = vld [vmem:[%s7390_s11 + $0x2c] ss:$16 sps:$4 sm:$0xff]   ;;  %v4897_v60 = vld [vmem:[%s7390_s11 + $0x20] ss:$16 sps:$4 sm:$0xff]  }
 0x258   : > { %v4898_v61 = vld [vmem:[%s7390_s11 + $0x28] ss:$16 sps:$4 sm:$0xff]   ;;  %v4899_v62 = vld [vmem:[%s7390_s11 + $0x4] ss:$16 sps:$4 sm:$0xff]   ;;  %v4901_v63 = vld [vmem:[%s7390_s11 + $0xc] ss:$16 sps:$4 sm:$0xff]  }
 0x259   : > { %2929 = vmatpush1.bf16.msra.mxu0 %v4873_v44  ;;  %3002 = vmatpush1.bf16.msra.mxu1 %v4874_v45  ;;  %v4903_v0 = vld [vmem:[%s7390_s11] ss:$16 sps:$4 sm:$0xff]   ;;  %v4904_v1 = vld [vmem:[%s7390_s11 + $0x8] ss:$16 sps:$4 sm:$0xff]   ;;  %v4905_v2 = vld [vmem:[%s7390_s11 + $0x1e4] ss:$16 sps:$4 sm:$0xff]  }
 0x25a   : > { %2930 = vmatprep.subr.bf16.mxu0 %v4875_v46  ;;  %3003 = vmatprep.subr.bf16.mxu1 %v4877_v47  ;;  %v4907_v3 = vld [vmem:[%s7390_s11 + $0x1ec] ss:$16 sps:$4 sm:$0xff]   ;;  %v4909_v5 = vld [vmem:[%s7390_s11 + $0x1e0] ss:$16 sps:$4 sm:$0xff]   ;;  %v4910_v6 = vld [vmem:[%s7390_s11 + $0x1e8] ss:$16 sps:$4 sm:$0xff]  }
 0x25b   : > { %v4911_v7 = vld [vmem:[%s7390_s11 + $0x1c4] ss:$16 sps:$4 sm:$0xff]   ;;  %s8288_s18 = smov (!%p2235_p9, %s4212_s18), 15  ;;  %v4913_v8 = vld [vmem:[%s7390_s11 + $0x1cc] ss:$16 sps:$4 sm:$0xff]   ;;  %v7441_v14 = vsub.s32 1, %v7433_v9 }
 0x25c   : > { %v4915_v10 = vld [vmem:[%s7390_s11 + $0x1c0] ss:$16 sps:$4 sm:$0xff]   ;;  %v4916_v11 = vld [vmem:[%s7390_s11 + $0x1c8] ss:$16 sps:$4 sm:$0xff]   ;;  %v4917_v12 = vld [vmem:[%s7390_s11 + $0x1a4] ss:$16 sps:$4 sm:$0xff]  }
 0x25d   : > { %2931 = vmatpush1.bf16.msra.mxu0 %v4879_v48  ;;  %3004 = vmatpush1.bf16.msra.mxu1 %v4880_v49  ;;  %s4361_s0 = sshll.u32 %s8288_s18, 3  ;;  %v4919_v13 = vld [vmem:[%s7390_s11 + $0x1ac] ss:$16 sps:$4 sm:$0xff]   ;;  %v4921_v16 = vld [vmem:[%s7390_s11 + $0x1a0] ss:$16 sps:$4 sm:$0xff]   ;;  %s8188_s13 = sld [smem:[#allocation25_spill]]  ;;  %v7463_v21 = vrot.slane %v2404_v15, %v7441_v14 }
 0x25e   : > { %2932 = vmatprep.subr.bf16.mxu0 %v4881_v50  ;;  %3005 = vmatprep.subr.bf16.mxu1 %v4883_v51  ;;  %v4922_v17 = vld [vmem:[%s7390_s11 + $0x1a8] ss:$16 sps:$4 sm:$0xff]   ;;  %s8189_s27 = sld [smem:[#allocation26_spill]]  ;;  %v4923_v19 = vld [vmem:[%s7390_s11 + $0x184] ss:$16 sps:$4 sm:$0xff]   ;;  %v7466_v22 = vsub.s32 0, %v7433_v9 }
 0x25f   : > { %v4925_v20 = vld [vmem:[%s7390_s11 + $0x18c] ss:$16 sps:$4 sm:$0xff]   ;;  %s7473_s16 = scalar_lea.vmem [#allocation2], %s4367_s25  ;;  %v4927_v27 = vld [vmem:[%s7390_s11 + $0x180] ss:$16 sps:$4 sm:$0xff]   ;;  %s8190_s26 = sld [smem:[#allocation23_spill]] }
 0x260   : > { %v4928_v28 = vld [vmem:[%s7390_s11 + $0x188] ss:$16 sps:$4 sm:$0xff]   ;;  %v4929_v30 = vld [vmem:[%s7390_s11 + $0x164] ss:$16 sps:$4 sm:$0xff]   ;;  %v4931_v31 = vld [vmem:[%s7390_s11 + $0x16c] ss:$16 sps:$4 sm:$0xff]   ;;  %v7481_v35 = vrot.slane %v2404_v15, %v7466_v22 }
 0x261   : > { %2933 = vmatpush1.bf16.msra.mxu0 %v4885_v52  ;;  %3006 = vmatpush1.bf16.msra.mxu1 %v4886_v53  ;;  %v4933_v37 = vld [vmem:[%s7390_s11 + $0x160] ss:$16 sps:$4 sm:$0xff]   ;;  %v4934_v39 = vld [vmem:[%s7390_s11 + $0x168] ss:$16 sps:$4 sm:$0xff]   ;;  %v4935_v40 = vld [vmem:[%s7390_s11 + $0x144] ss:$16 sps:$4 sm:$0xff]  }
 0x262   : > { %2934 = vmatprep.subr.bf16.mxu0 %v4887_v54  ;;  %3007 = vmatprep.subr.bf16.mxu1 %v4889_v55  ;;  %v4937_v42 = vld [vmem:[%s7390_s11 + $0x14c] ss:$16 sps:$4 sm:$0xff]   ;;  %v4939_v48 = vld [vmem:[%s7390_s11 + $0x140] ss:$16 sps:$4 sm:$0xff]   ;;  %v4940_v49 = vld [vmem:[%s7390_s11 + $0x148] ss:$16 sps:$4 sm:$0xff]  }
 0x263   : > { %s7455_s8 = scalar_lea.vmem %s8188_s13, %s4361_s0  ;;  %v4941_v51 = vld [vmem:[%s7390_s11 + $0x124] ss:$16 sps:$4 sm:$0xff]   ;;  %v4943_v52 = vld [vmem:[%s7390_s11 + $0x12c] ss:$16 sps:$4 sm:$0xff]   ;;  %v4945_v53 = vld [vmem:[%s7390_s11 + $0x120] ss:$16 sps:$4 sm:$0xff]  }
 0x264   : > { %v2432_v18 = vld [vmem:[%s8189_s27] sm:$0x3]  ;;  %v2381_v24 = vld [vmem:[%s7455_s8 + $0x8] sm:$0xff]  ;;  %s8191_s6 = sld [smem:[#allocation22_spill]] }
 0x265   : > { %2935 = vmatpush1.bf16.msra.mxu0 %v4891_v56  ;;  %3008 = vmatpush1.bf16.msra.mxu1 %v4892_v57  ;;  %v2380_v23 = vld [vmem:[%s7455_s8] sm:$0xff]  ;;  %v7471_v26 = vrot.slane %v2432_v18, %v7441_v14  ;;  %v2391_v29 = vunpack.c.h.bf16 %v2381_v24  ;;  %v2390_v34 = vunpack.c.l.bf16 %v2381_v24  ;;  %v7491_v44 = vrot.slane %v2432_v18, %v7466_v22  ;;  %v4946_v56 = vld [vmem:[%s7390_s11 + $0x128] ss:$16 sps:$4 sm:$0xff]   ;;  %s8192_s3 = sld [smem:[#allocation24_spill]] }
 0x266   : > { %2936 = vmatprep.subr.bf16.mxu0 %v4893_v58  ;;  %3009 = vmatprep.subr.bf16.mxu1 %v4895_v59  ;;  %v2389_v25 = vunpack.c.h.bf16 %v2380_v23  ;;  %v2388_v33 = vunpack.c.l.bf16 %v2380_v23  ;;  %v4947_v57 = vld [vmem:[%s7390_s11 + $0x104] ss:$16 sps:$4 sm:$0xff]   ;;  %v4949_v58 = vld [vmem:[%s7390_s11 + $0x10c] ss:$16 sps:$4 sm:$0xff]   ;;  %v4952_v4 = vld [vmem:[%s7390_s11 + $0x108] ss:$16 sps:$4 sm:$0xff]  }
 0x267   : > { %v2419_v36 = vmul.f32 %v7463_v21, %v2391_v29  ;;  %v2418_v47 = vmul.f32 %v7481_v35, %v2390_v34  ;;  %v2382_v59 = vld [vmem:[%s7455_s8 + $0x10] sm:$0xff]  ;;  %v2384_v18 = vld [vmem:[%s7455_s8 + $0x20] sm:$0xff]  ;;  %v2385_v23 = vld [vmem:[%s7455_s8 + $0x28] sm:$0xff]  ;;  %s8193_s18 = sld [smem:[#allocation9_spill]] }
 0x268   : > { %v2417_v32 = vmul.f32 %v7463_v21, %v2389_v25  ;;  %v2416_v46 = vmul.f32 %v7481_v35, %v2388_v33  ;;  %v4953_v15 = vld [vmem:[%s7473_s16 + $0xe0] ss:$16 sps:$4 sm:$0xff]   ;;  %v2397_v24 = vunpack.c.h.bf16 %v2384_v18  ;;  %v2396_v25 = vunpack.c.l.bf16 %v2384_v18  ;;  %s8194_s5 = sld [smem:[#allocation10_spill]] }
 0x269   : > { %2937 = vmatpush1.bf16.msra.mxu0 %v4897_v60  ;;  %3010 = vmatpush1.bf16.msra.mxu1 %v4898_v61  ;;  %v2447_v41 = vadd.f32 %v7471_v26, %v2419_v36  ;;  %v2446_v55 = vadd.f32 %v7491_v44, %v2418_v47  ;;  %v2383_v60 = vld [vmem:[%s7455_s8 + $0x18] sm:$0xff]  ;;  %v2393_v61 = vunpack.c.h.bf16 %v2382_v59  ;;  %v4959_v36 = vld [vmem:[%s7473_s16 + $0xc0] ss:$16 sps:$4 sm:$0xff]   ;;  %s8195_s23 = sld [smem:[#allocation28_spill]] }
 0x26a   : > { %2938 = vmatprep.subr.bf16.mxu0 %v4899_v62  ;;  %3011 = vmatprep.subr.bf16.mxu1 %v4901_v63  ;;  %v2445_v38 = vadd.f32 %v7471_v26, %v2417_v32  ;;  %v2444_v54 = vadd.f32 %v7491_v44, %v2416_v46  ;;  %v2392_v62 = vunpack.c.l.bf16 %v2382_v59  ;;  %v4964_v32 = vld [vmem:[%s7473_s16 + $0xcc] ss:$16 sps:$4 sm:$0xff]   ;;  %v2425_v33 = vmul.f32 %v7463_v21, %v2397_v24  ;;  %s7555_s10 = scalar_lea.vmem %s8191_s6, %s4361_s0 }
 0x26b   : > { %v2463_v45 = vmax.f32 %v2447_v41, 0.0  ;;  %v2424_v34 = vmul.f32 %v7481_v35, %v2396_v25  ;;  %v4970_v46 = vld [vmem:[%s7473_s16 + $0xac] ss:$16 sps:$4 sm:$0xff]  }
 0x26c   : > { %v2461_v43 = vmax.f32 %v2445_v38, 0.0  ;;  %v2460_v63 = vmax.f32 %v2444_v54, 0.0 }
 0x26d   : > { %2939 = vmatpush1.bf16.msra.mxu0 %v4903_v0  ;;  %3012 = vmatpush1.bf16.msra.mxu1 %v4904_v1  ;;  %v2462_v0 = vmax.f32 %v2446_v55, 0.0  ;;  %v2395_v1 = vunpack.c.h.bf16 %v2383_v60  ;;  %v4965_v55 = vld [vmem:[%s7473_s16 + $0xa0] ss:$16 sps:$4 sm:$0xff]   ;;  %s7675_s0 = sand.u32 1, %s8193_s18  }
 0x26e   : > { %2940 = vmatprep.subr.bf16.mxu0 %v4905_v2  ;;  %3013 = vmatprep.subr.bf16.mxu1 %v4907_v3  ;;  %v2533_v50 = vpack.c.bf16 %v2463_v45, %v2461_v43  ;;  %v2394_v2 = vunpack.c.l.bf16 %v2383_v60  ;;  %v4951_v3 = vld [vmem:[%s7390_s11 + $0x100] ss:$16 sps:$4 sm:$0xff]   ;;  %v4967_v45 = vld [vmem:[%s7473_s16 + $0xa4] ss:$16 sps:$4 sm:$0xff]   ;;  %s7722_s25 = sshll.u32 %s8194_s5, 2  ;;  %s4210_s30 = sshll.u32 %s7675_s0, 7 }
 0x26f   : > { %v7543_v60 = vld [vmem:[%s8190_s26] sm:$0x3]  ;;  %p2263_p10 = scmp.lt.s32.totalorder %s7722_s25, 16  ;;  %s7744_s27 = scalar_lea.vmem [#allocation4], %s4210_s30 }
 0x270   : > { %2956 = vmatprep.mubr.bf16.mxu0 %v2533_v50  ;;  %3029 = vmatprep.mubr.bf16.mxu1 %v2533_v50  ;;  %v2387_v50 = vld [vmem:[%s7455_s8 + $0x38] sm:$0xff]  ;;  %s3700_s2 = scalar_lea.sflag [#allocation6], %s7675_s0  ;;  %s3709_s12 = ssub.s32 (%p5634_p11), 17, %s7722_s25 }
 0x271   : > { %2941 = vmatpush2.bf16.msra.mxu0 %v4909_v5  ;;  %3014 = vmatpush2.bf16.msra.mxu1 %v4910_v6  ;;  %v2421_v5 = vmul.f32 %v7463_v21, %v2393_v61  ;;  %v2420_v6 = vmul.f32 %v7481_v35, %v2392_v62  ;;  %v2403_v54 = vunpack.c.h.bf16 %v2387_v50  ;;  %v2402_v59 = vunpack.c.l.bf16 %v2387_v50  ;;  %v4968_v61 = vld [vmem:[%s7473_s16 + $0xa8] ss:$16 sps:$4 sm:$0xff]   ;;  %s2264_s14 = scalar_select %p2263_p10, %s7722_s25, 16 }
 0x272   : > { %2942 = vmatprep.subr.bf16.mxu0 %v4911_v7  ;;  %3015 = vmatprep.subr.bf16.mxu1 %v4913_v8  ;;  %v4955_v7 = vld [vmem:[%s7473_s16 + $0xe4] ss:$16 sps:$4 sm:$0xff]   ;;  %v2423_v8 = vmul.f32 %v7463_v21, %v2395_v1  ;;  %p3710_p12 = scmp.lt.s32.totalorder (%p5634_p11), %s3709_s12, 4 }
 0x273   : > { %v2431_v1 = vmul.f32 %v7463_v21, %v2403_v54  ;;  %v2287_v54 = vld [vmem:[%s7555_s10 + $0x18] sm:$0xff]  ;;  %s2265_s28 = scalar_lea.vmem %s8195_s23, %s2264_s14 }
 0x275   : > { %2943 = vmatpush2.bf16.msra.mxu0 %v4915_v10  ;;  %3016 = vmatpush2.bf16.msra.mxu1 %v4916_v11  ;;  %v2422_v10 = vmul.f32 %v7481_v35, %v2394_v2  ;;  %v4958_v11 = vld [vmem:[%s7473_s16 + $0xec] ss:$16 sps:$4 sm:$0xff]  }
 0x276   : > { %2944 = vmatprep.subr.bf16.mxu0 %v4917_v12  ;;  %3017 = vmatprep.subr.bf16.mxu1 %v4919_v13  ;;  %v2449_v12 = vadd.f32 %v7471_v26, %v2421_v5  ;;  %v2532_v13 = vpack.c.bf16 %v2462_v0, %v2460_v63  ;;  %v4973_v63 = vld [vmem:[%s7473_s16 + $0x84] ss:$16 sps:$4 sm:$0xff]   ;;  %v4976_v0 = vld [vmem:[%s7473_s16 + $0x8c] ss:$16 sps:$4 sm:$0xff]   ;;  %v7561_v5 = vld [vmem:[%s8192_s3] sm:$0x3] }
 0x279   : > { %2945 = vmatpush2.bf16.msra.mxu0 %v4921_v16  ;;  %3018 = vmatpush2.bf16.msra.mxu1 %v4922_v17  ;;  %v2451_v16 = vadd.f32 %v7471_v26, %v2423_v8  ;;  %v2448_v17 = vadd.f32 %v7491_v44, %v2420_v6  ;;  %v4971_v6 = vld [vmem:[%s7473_s16 + $0x80] ss:$16 sps:$4 sm:$0xff]  }
 0x27a   : > { %2946 = vmatprep.subr.bf16.mxu0 %v4923_v19  ;;  %3019 = vmatprep.subr.bf16.mxu1 %v4925_v20  ;;  %v2465_v19 = vmax.f32 %v2449_v12, 0.0  ;;  %v2450_v20 = vadd.f32 %v7491_v44, %v2422_v10  ;;  %v2430_v10 = vmul.f32 %v7481_v35, %v2402_v59  ;;  %v7570_v12 = vrot.slane %v7543_v60, %v7441_v14 }
 0x27b   : > { %v2467_v29 = vmax.f32 %v2451_v16, 0.0  ;;  %v7575_v16 = vld [vmem:[%s7555_s10] sm:$0xff]  ;;  %v7614_v59 = vrot.slane %v7543_v60, %v7466_v22  ;;  %v5012_v60 = vld [vmem:[%s7473_s16 + $0x14c] ss:$16 sps:$4 sm:$0xff]  }
 0x27c   : > { %v2466_v41 = vmax.f32 %v2450_v20, 0.0  ;;  %v2293_v18 = vunpack.c.h.bf16 %v7575_v16  ;;  %v2458_v24 = vadd.f32 %v7491_v44, %v2430_v10  ;;  %v5015_v10 = vld [vmem:[%s7473_s16 + $0x124] ss:$16 sps:$4 sm:$0xff]  }
 0x27d   : > { %2947 = vmatpush2.bf16.msra.mxu0 %v4927_v27  ;;  %3020 = vmatpush2.bf16.msra.mxu1 %v4928_v28  ;;  %v4956_v27 = vld [vmem:[%s7473_s16 + $0xe8] ss:$16 sps:$4 sm:$0xff]   ;;  %v4961_v28 = vld [vmem:[%s7473_s16 + $0xc4] ss:$16 sps:$4 sm:$0xff]  }
 0x27e   : > { %2948 = vmatprep.subr.bf16.mxu0 %v4929_v30  ;;  %3021 = vmatprep.subr.bf16.mxu1 %v4931_v31  ;;  %v2399_v30 = vunpack.c.h.bf16 %v2385_v23  ;;  %v2398_v31 = vunpack.c.l.bf16 %v2385_v23 }
 0x280   : > { %v2427_v38 = vmul.f32 %v7463_v21, %v2399_v30  ;;  %v2426_v43 = vmul.f32 %v7481_v35, %v2398_v31  ;;  %v4985_v30 = vld [vmem:[%s7473_s16 + $0x44] ss:$16 sps:$4 sm:$0xff]   ;;  %v4988_v31 = vld [vmem:[%s7473_s16 + $0x4c] ss:$16 sps:$4 sm:$0xff]  }
 0x281   : > { %2949 = vmatpush2.bf16.msra.mxu0 %v4933_v37  ;;  %3022 = vmatpush2.bf16.msra.mxu1 %v4934_v39  ;;  %v2535_v37 = vpack.c.bf16 %v2467_v29, %v2465_v19  ;;  %v4962_v39 = vld [vmem:[%s7473_s16 + $0xc8] ss:$16 sps:$4 sm:$0xff]   ;;  %v7583_v19 = vrot.slane %v7561_v5, %v7441_v14  ;;  %v2321_v29 = vmul.f32 %v7570_v12, %v2293_v18  ;;  %v2298_v18 = vunpack.c.l.bf16 %v2287_v54 }
 0x282   : > { %2950 = vmatprep.subr.bf16.mxu0 %v4935_v40  ;;  %3023 = vmatprep.subr.bf16.mxu1 %v4937_v42  ;;  %v2464_v40 = vmax.f32 %v2448_v17, 0.0  ;;  %v2453_v42 = vadd.f32 %v7471_v26, %v2425_v33  ;;  %v2455_v47 = vadd.f32 %v7471_v26, %v2427_v38  ;;  %v7578_v17 = vld [vmem:[%s7555_s10 + $0x8] sm:$0xff]  ;;  %v4983_v38 = vld [vmem:[%s7473_s16 + $0x40] ss:$16 sps:$4 sm:$0xff]  }
 0x283   : > { %v2295_v25 = vunpack.c.h.bf16 %v7578_v17 }
 0x285   : > { %2951 = vmatpush2.bf16.msra.mxu0 %v4939_v48  ;;  %3024 = vmatpush2.bf16.msra.mxu1 %v4940_v49  ;;  %v2452_v48 = vadd.f32 %v7491_v44, %v2424_v34  ;;  %v2386_v49 = vld [vmem:[%s7455_s8 + $0x30] sm:$0xff] }
 0x286   : > { %2952 = vmatprep.subr.bf16.mxu0 %v4941_v51  ;;  %3025 = vmatprep.subr.bf16.mxu1 %v4943_v52  ;;  %v2469_v51 = vmax.f32 %v2453_v42, 0.0  ;;  %v2471_v52 = vmax.f32 %v2455_v47, 0.0  ;;  %v4992_v47 = vld [vmem:[%s7473_s16 + $0x28] ss:$16 sps:$4 sm:$0xff]  }
 0x288   : > { %v2537_v2 = vpack.c.bf16 %v2471_v52, %v2469_v51  ;;  %v4995_v51 = vld [vmem:[%s7473_s16] ss:$16 sps:$4 sm:$0xff]   ;;  %v4998_v52 = vld [vmem:[%s7473_s16 + $0x8] ss:$16 sps:$4 sm:$0xff]  }
 0x289   : > { %2953 = vmatpush2.bf16.msra.mxu0 %v4945_v53  ;;  %3026 = vmatpush2.bf16.msra.mxu1 %v4946_v56  ;;  %v2401_v53 = vunpack.c.h.bf16 %v2386_v49  ;;  %v2534_v56 = vpack.c.bf16 %v2466_v41, %v2464_v40  ;;  %v4991_v40 = vld [vmem:[%s7473_s16 + $0x24] ss:$16 sps:$4 sm:$0xff]   ;;  %v4994_v41 = vld [vmem:[%s7473_s16 + $0x2c] ss:$16 sps:$4 sm:$0xff]  }
 0x28a   : > { %2954 = vmatprep.subr.bf16.mxu0 %v4947_v57  ;;  %3027 = vmatprep.subr.bf16.mxu1 %v4949_v58  ;;  %v2454_v57 = vadd.f32 %v7491_v44, %v2426_v43  ;;  %v2400_v58 = vunpack.c.l.bf16 %v2386_v49  ;;  %v5000_v49 = vld [vmem:[%s7473_s16 + $0xc] ss:$16 sps:$4 sm:$0xff]  }
 0x28b   : > { %v2429_v62 = vmul.f32 %v7463_v21, %v2401_v53  ;;  %v2286_v53 = vld [vmem:[%s7555_s10 + $0x10] sm:$0xff] }
 0x28c   : > { %v2470_v21 = vmax.f32 %v2454_v57, 0.0  ;;  %v2428_v8 = vmul.f32 %v7481_v35, %v2400_v58  ;;  %v2292_v57 = vunpack.c.l.bf16 %v7575_v16  ;;  %v2294_v58 = vunpack.c.l.bf16 %v7578_v17 }
 0x28d   : > { %2955 = vmatpush2.bf16.msra.mxu0 %v4951_v3  ;;  %3028 = vmatpush2.bf16.msra.mxu1 %v4952_v4  ;;  %v2468_v3 = vmax.f32 %v2452_v48, 0.0  ;;  %v2457_v4 = vadd.f32 %v7471_v26, %v2429_v62  ;;  %v4997_v48 = vld [vmem:[%s7473_s16 + $0x4] ss:$16 sps:$4 sm:$0xff]   ;;  %v2299_v62 = vunpack.c.h.bf16 %v2287_v54 }
 0x28e   : > { %3323 = vmatprep.subr.bf16.mxu0 %v4955_v7  ;;  %3396 = vmatprep.subr.bf16.mxu1 %v4958_v11  ;;  %v2459_v7 = vadd.f32 %v7471_v26, %v2431_v1  ;;  %v4974_v11 = vld [vmem:[%s7473_s16 + $0x88] ss:$16 sps:$4 sm:$0xff]   ;;  %v2456_v23 = vadd.f32 %v7491_v44, %v2428_v8  ;;  %v2349_v44 = vadd.f32 %v7583_v19, %v2321_v29  ;;  %v5009_v1 = vld [vmem:[%s7473_s16 + $0x144] ss:$16 sps:$4 sm:$0xff]  }
 0x28f   : > { %v2473_v26 = vmax.f32 %v2457_v4, 0.0  ;;  %v2536_v20 = vpack.c.bf16 %v2470_v21, %v2468_v3  ;;  %v2320_v3 = vmul.f32 %v7614_v59, %v2292_v57  ;;  %v2322_v4 = vmul.f32 %v7614_v59, %v2294_v58  ;;  %v5010_v8 = vld [vmem:[%s7473_s16 + $0x148] ss:$16 sps:$4 sm:$0xff]  }
 0x290   : > { %2957 = vmatmul.mubr.bf16.vlgmr.msra.gmra.mxu0 %v2532_v13  ;;  %3030 = vmatmul.mubr.bf16.vlgmr.msra.gmra.mxu1 %v2532_v13  ;;  %v4979_v13 = vld [vmem:[%s7473_s16 + $0x64] ss:$16 sps:$4 sm:$0xff]   ;;  %v2475_v35 = vmax.f32 %v2459_v7, 0.0  ;;  %v2472_v34 = vmax.f32 %v2456_v23, 0.0  ;;  %v2365_v42 = vmax.f32 %v2349_v44, 0.0  ;;  %v2327_v21 = vmul.f32 %v7570_v12, %v2299_v62 }
 0x291   : > { %3324 = vmatpush1.bf16.msra.mxu0 %v4953_v15  ;;  %3397 = vmatpush1.bf16.msra.mxu1 %v4956_v27  ;;  %v4982_v15 = vld [vmem:[%s7473_s16 + $0x6c] ss:$16 sps:$4 sm:$0xff]   ;;  %v4977_v27 = vld [vmem:[%s7473_s16 + $0x60] ss:$16 sps:$4 sm:$0xff]   ;;  %v5016_v23 = vld [vmem:[%s7473_s16 + $0x128] ss:$16 sps:$4 sm:$0xff]   ;;  %v2326_v44 = vmul.f32 %v7614_v59, %v2298_v18 }
 0x292   : > { %3325 = vmatprep.subr.bf16.mxu0 %v4961_v28  ;;  %3398 = vmatprep.subr.bf16.mxu1 %v4964_v32  ;;  %v4980_v28 = vld [vmem:[%s7473_s16 + $0x68] ss:$16 sps:$4 sm:$0xff]   ;;  %v2323_v32 = vmul.f32 %v7570_v12, %v2295_v25  ;;  %v2539_v33 = vpack.c.bf16 %v2475_v35, %v2473_v26  ;;  %v5007_v7 = vld [vmem:[%s7473_s16 + $0x140] ss:$16 sps:$4 sm:$0xff]   ;;  %v2296_v26 = vunpack.c.l.bf16 %v2286_v53  ;;  %v2355_v17 = vadd.f32 %v7583_v19, %v2327_v21 }
 0x293   : > { %2966 = vmatprep.mubr.bf16.mxu0 %v2535_v37  ;;  %3039 = vmatprep.mubr.bf16.mxu1 %v2535_v37 }
 0x294   : > { %v2351_v37 = vadd.f32 %v7583_v19, %v2323_v32 }
 0x295   : > { %3326 = vmatpush1.bf16.msra.mxu0 %v4959_v36  ;;  %3399 = vmatpush1.bf16.msra.mxu1 %v4962_v39  ;;  %v2474_v36 = vmax.f32 %v2458_v24, 0.0  ;;  %v4986_v39 = vld [vmem:[%s7473_s16 + $0x48] ss:$16 sps:$4 sm:$0xff]  }
 0x296   : > { %3327 = vmatprep.subr.bf16.mxu0 %v4967_v45  ;;  %3400 = vmatprep.subr.bf16.mxu1 %v4970_v46  ;;  %v2367_v43 = vmax.f32 %v2351_v37, 0.0  ;;  %v4989_v46 = vld [vmem:[%s7473_s16 + $0x20] ss:$16 sps:$4 sm:$0xff]  }
 0x297   : > { %v2538_v45 = vpack.c.bf16 %v2474_v36, %v2472_v34  ;;  %v5019_v34 = vld [vmem:[%s7473_s16 + $0x100] ss:$16 sps:$4 sm:$0xff]   ;;  %v5022_v36 = vld [vmem:[%s7473_s16 + $0x108] ss:$16 sps:$4 sm:$0xff]  }
 0x298   : > { %2967 = vmatmul.mubr.bf16.gmra.mxu0 %v2534_v56  ;;  %3040 = vmatmul.mubr.bf16.gmra.mxu1 %v2534_v56  ;;  %v2477_v50 = vpack.c.bf16 %v2367_v43, %v2365_v42  ;;  %v5006_v56 = vld [vmem:[%s7473_s16 + $0x16c] ss:$16 sps:$4 sm:$0xff]  }
 0x299   : > { %3328 = vmatpush1.bf16.msra.mxu0 %v4965_v55  ;;  %3401 = vmatpush1.bf16.msra.mxu1 %v4968_v61  ;;  %v5003_v55 = vld [vmem:[%s7473_s16 + $0x164] ss:$16 sps:$4 sm:$0xff]   ;;  %v2297_v61 = vunpack.c.h.bf16 %v2286_v53 }
 0x29a   : > { %3329 = vmatprep.subr.bf16.mxu0 %v4973_v63  ;;  %3402 = vmatprep.subr.bf16.mxu1 %v4976_v0  ;;  %v5001_v63 = vld [vmem:[%s7473_s16 + $0x160] ss:$16 sps:$4 sm:$0xff]   ;;  %v5004_v0 = vld [vmem:[%s7473_s16 + $0x168] ss:$16 sps:$4 sm:$0xff]  }
 0x29b   : > { %2976 = vmatprep.mubr.bf16.mxu0 %v2537_v2  ;;  %3049 = vmatprep.mubr.bf16.mxu1 %v2537_v2  ;;  %v7624_v2 = vrot.slane %v7561_v5, %v7466_v22  ;;  %v2288_v5 = vld [vmem:[%s7555_s10 + $0x20] sm:$0xff] }
 0x29c   : > { %v2301_v24 = vunpack.c.h.bf16 %v2288_v5 }
 0x29d   : > { %3330 = vmatpush1.bf16.msra.mxu0 %v4971_v6  ;;  %3403 = vmatpush1.bf16.msra.mxu1 %v4974_v11  ;;  %v2325_v6 = vmul.f32 %v7570_v12, %v2297_v61  ;;  %v5018_v11 = vld [vmem:[%s7473_s16 + $0x12c] ss:$16 sps:$4 sm:$0xff]   ;;  %v2350_v16 = vadd.f32 %v7624_v2, %v2322_v4 }
 0x29e   : > { %3331 = vmatprep.subr.bf16.mxu0 %v4979_v13  ;;  %3404 = vmatprep.subr.bf16.mxu1 %v4982_v15  ;;  %v2289_v13 = vld [vmem:[%s7555_s10 + $0x28] sm:$0xff]  ;;  %v2348_v15 = vadd.f32 %v7624_v2, %v2320_v3  ;;  %v2329_v37 = vmul.f32 %v7570_v12, %v2301_v24 }
 0x29f   : > { %v2353_v35 = vadd.f32 %v7583_v19, %v2325_v6  ;;  %v2303_v25 = vunpack.c.h.bf16 %v2289_v13 }
 0x2a0   : > { %2977 = vmatmul.mubr.bf16.gmra.mxu0 %v2536_v20  ;;  %3050 = vmatmul.mubr.bf16.gmra.mxu1 %v2536_v20  ;;  %v5013_v20 = vld [vmem:[%s7473_s16 + $0x120] ss:$16 sps:$4 sm:$0xff]   ;;  %v2364_v29 = vmax.f32 %v2348_v15, 0.0 }
 0x2a1   : > { %3332 = vmatpush1.bf16.msra.mxu0 %v4977_v27  ;;  %3405 = vmatpush1.bf16.msra.mxu1 %v4980_v28  ;;  %v5021_v27 = vld [vmem:[%s7473_s16 + $0x104] ss:$16 sps:$4 sm:$0xff]   ;;  %v5024_v28 = vld [vmem:[%s7473_s16 + $0x10c] ss:$16 sps:$4 sm:$0xff]   ;;  %v2369_v32 = vmax.f32 %v2353_v35, 0.0  ;;  %s4211_s16 = sshll.u32 %s7675_s0, 8 }
 0x2a2   : > { %3333 = vmatprep.subr.bf16.mxu0 %v4985_v30  ;;  %3406 = vmatprep.subr.bf16.mxu1 %v4988_v31  ;;  %v2366_v30 = vmax.f32 %v2350_v16, 0.0  ;;  %v2324_v31 = vmul.f32 %v7614_v59, %v2296_v26  ;;  %s7871_s1 = scalar_lea.vmem [#allocation5], %s4211_s16 }
 0x2a3   : > { %2986 = vmatprep.mubr.bf16.mxu0 %v2539_v33  ;;  %3059 = vmatprep.mubr.bf16.mxu1 %v2539_v33  ;;  %v2371_v33 = vmax.f32 %v2355_v17, 0.0 }
 0x2a4   : > { %v2352_v42 = vadd.f32 %v7624_v2, %v2324_v31 }
 0x2a5   : > { %3334 = vmatpush1.bf16.msra.mxu0 %v4983_v38  ;;  %3407 = vmatpush1.bf16.msra.mxu1 %v4986_v39  ;;  %v2331_v38 = vmul.f32 %v7570_v12, %v2303_v25  ;;  %v2290_v39 = vld [vmem:[%s7555_s10 + $0x30] sm:$0xff]  ;;  %v2479_v43 = vpack.c.bf16 %v2371_v33, %v2369_v32 }
 0x2a6   : > { %3335 = vmatprep.subr.bf16.mxu0 %v4991_v40  ;;  %3408 = vmatprep.subr.bf16.mxu1 %v4994_v41  ;;  %v2291_v40 = vld [vmem:[%s7555_s10 + $0x38] sm:$0xff]  ;;  %v2476_v41 = vpack.c.bf16 %v2366_v30, %v2364_v29  ;;  %v2304_v62 = vunpack.c.l.bf16 %v2290_v39 }
 0x2a8   : > { %2987 = vmatmul.mubr.bf16.gmra.mxu0 %v2538_v45  ;;  %3060 = vmatmul.mubr.bf16.gmra.mxu1 %v2538_v45  ;;  %v2354_v45 = vadd.f32 %v7624_v2, %v2326_v44 }
 0x2a9   : > { %3336 = vmatpush1.bf16.msra.mxu0 %v4989_v46  ;;  %3409 = vmatpush1.bf16.msra.mxu1 %v4992_v47  ;;  %v2300_v46 = vunpack.c.l.bf16 %v2288_v5  ;;  %v2302_v47 = vunpack.c.l.bf16 %v2289_v13 }
 0x2aa   : > { %3337 = vmatprep.subr.bf16.mxu0 %v4997_v48  ;;  %3410 = vmatprep.subr.bf16.mxu1 %v5000_v49  ;;  %v2357_v48 = vadd.f32 %v7583_v19, %v2329_v37  ;;  %v2359_v49 = vadd.f32 %v7583_v19, %v2331_v38  ;;  %v2370_v53 = vmax.f32 %v2354_v45, 0.0 }
 0x2ab   : > { %4331 = vmatprep.mubr.msk.bf16.mxu0 %vm3310_vm0, %v2477_v50  ;;  %4335 = vmatprep.mubr.msk.bf16.mxu1 %vm3310_vm0, %v2477_v50  ;;  %v2305_v50 = vunpack.c.h.bf16 %v2290_v39  ;;  %v2328_v54 = vmul.f32 %v7614_v59, %v2300_v46 }
 0x2ac   : > { %v2375_v57 = vmax.f32 %v2359_v49, 0.0  ;;  %v3485_v49 = vsub.s32 3, %v7433_v9 }
 0x2ad   : > { %3338 = vmatpush1.bf16.msra.mxu0 %v4995_v51  ;;  %3411 = vmatpush1.bf16.msra.mxu1 %v4998_v52  ;;  %v2307_v51 = vunpack.c.h.bf16 %v2291_v40  ;;  %v2368_v52 = vmax.f32 %v2352_v42, 0.0  ;;  %v2333_v58 = vmul.f32 %v7570_v12, %v2305_v50  ;;  %v3469_v50 = vld [vmem:[%s2265_s28] sm:$0xf] }
 0x2ae   : > { %3347 = vmatprep.subr.bf16.mxu0 %v5003_v55  ;;  %3420 = vmatprep.subr.bf16.mxu1 %v5006_v56  ;;  %v2330_v55 = vmul.f32 %v7614_v59, %v2302_v47  ;;  %v2373_v56 = vmax.f32 %v2357_v48, 0.0  ;;  %v3481_v48 = vsub.s32 2, %v7433_v9  ;;  %v7757_v9 = vld [vmem:[%s7744_s27 + $0x10] sm:$0xff] }
 0x2af   : > { %v2335_v61 = vmul.f32 %v7570_v12, %v2307_v51  ;;  %v2361_v4 = vadd.f32 %v7583_v19, %v2333_v58  ;;  %v7747_v51 = vld [vmem:[%s7744_s27] sm:$0xff]  ;;  %v7768_v58 = vrot.slane %v3469_v50, %v7441_v14  ;;  %v7786_v14 = vld [vmem:[%s7744_s27 + $0x38] sm:$0xff] }
 0x2b0   : > { %v2481_v3 = vpack.c.bf16 %v2375_v57, %v2373_v56  ;;  %v7763_v56 = vrot.slane %v3469_v50, %v7466_v22  ;;  %v7765_v57 = vrot.slane %v3469_v50, %v3481_v48  ;;  %v7834_v22 = vld [vmem:[%s7744_s27 + $0x78] sm:$0xff] }
 0x2b1   : > { %3348 = vmatpush2.bf16.msra.mxu0 %v5001_v63  ;;  %3421 = vmatpush2.bf16.msra.mxu1 %v5004_v0  ;;  %v2478_v63 = vpack.c.bf16 %v2370_v53, %v2368_v52  ;;  %v2356_v0 = vadd.f32 %v7624_v2, %v2328_v54  ;;  %v2363_v6 = vadd.f32 %v7583_v19, %v2335_v61  ;;  %v7750_v52 = vld [vmem:[%s7744_s27 + $0x8] sm:$0xff] }
 0x2b2   : > { %3349 = vmatprep.subr.bf16.mxu0 %v5009_v1  ;;  %3422 = vmatprep.subr.bf16.mxu1 %v5012_v60  ;;  %v2358_v1 = vadd.f32 %v7624_v2, %v2330_v55  ;;  %v2306_v60 = vunpack.c.l.bf16 %v2291_v40  ;;  %v7760_v55 = vld [vmem:[%s7744_s27 + $0x18] sm:$0xff]  ;;  %v7770_v61 = vrot.slane %v3469_v50, %v3485_v49  ;;  %8200 = vst [vmem:[#allocation21_spill] sm:$0xff] %v7834_v22 }
 0x2b3   : > { %v2372_v21 = vmax.f32 %v2356_v0, 0.0 }
 0x2b4   : > { %v2334_v12 = vmul.f32 %v7614_v59, %v2306_v60  ;;  %v7831_v60 = vld [vmem:[%s7744_s27 + $0x70] sm:$0xff] }
 0x2b5   : > { %3350 = vmatpush2.bf16.msra.mxu0 %v5007_v7  ;;  %3423 = vmatpush2.bf16.msra.mxu1 %v5010_v8  ;;  %v2374_v7 = vmax.f32 %v2358_v1, 0.0  ;;  %v2332_v8 = vmul.f32 %v7614_v59, %v2304_v62  ;;  %v7773_v62 = vld [vmem:[%s7744_s27 + $0x20] sm:$0xff]  ;;  %8199 = vst [vmem:[#allocation20_spill] sm:$0xff] %v7831_v60 }
 0x2b6   : > { %3351 = vmatprep.subr.bf16.mxu0 %v5015_v10  ;;  %3424 = vmatprep.subr.bf16.mxu1 %v5018_v11  ;;  %v2377_v10 = vmax.f32 %v2361_v4, 0.0  ;;  %v2379_v11 = vmax.f32 %v2363_v6, 0.0  ;;  %v2362_v19 = vadd.f32 %v7624_v2, %v2334_v12  ;;  %v7796_v12 = vld [vmem:[%s7744_s27 + $0x48] sm:$0xff] }
 0x2b7   : > { %v2480_v5 = vpack.c.bf16 %v2374_v7, %v2372_v21  ;;  %v2360_v13 = vadd.f32 %v7624_v2, %v2332_v8  ;;  %v7793_v8 = vld [vmem:[%s7744_s27 + $0x40] sm:$0xff] }
 0x2b8   : > { %v2483_v15 = vpack.c.bf16 %v2379_v11, %v2377_v10  ;;  %v2378_v26 = vmax.f32 %v2362_v19, 0.0 }
 0x2b9   : > { %3352 = vmatpush2.bf16.msra.mxu0 %v5013_v20  ;;  %3425 = vmatpush2.bf16.msra.mxu1 %v5016_v23  ;;  %v2376_v16 = vmax.f32 %v2360_v13, 0.0  ;;  %v7820_v13 = vld [vmem:[%s7744_s27 + $0x68] sm:$0xff] }
 0x2ba   : > { %3353 = vmatprep.subr.bf16.mxu0 %v5021_v27  ;;  %3426 = vmatprep.subr.bf16.mxu1 %v5024_v28  ;;  %8198 = vst [vmem:[#allocation19_spill] sm:$0xff] %v7820_v13 }
 0x2bb   : > { %v2482_v59 = vpack.c.bf16 %v2378_v26, %v2376_v16  ;;  %v7807_v16 = vld [vmem:[%s7744_s27 + $0x50] sm:$0xff]  ;;  %v7810_v26 = vld [vmem:[%s7744_s27 + $0x58] sm:$0xff] }
 0x2bd   : > { %3354 = vmatpush2.bf16.msra.mxu0 %v5019_v34  ;;  %3427 = vmatpush2.bf16.msra.mxu1 %v5022_v36 }
 0x2c0   : > { %3356 = vmatmul.mubr.bf16.vlgmr.msra.gmra.mxu0 %v2476_v41  ;;  %3429 = vmatmul.mubr.bf16.vlgmr.msra.gmra.mxu1 %v2476_v41 }
 0x2c1   : > { %4332 = vmatprep.mubr.msk.bf16.mxu0 %vm3310_vm0, %v2479_v43  ;;  %4336 = vmatprep.mubr.msk.bf16.mxu1 %vm3310_vm0, %v2479_v43 }
 0x2c8   : > { %3366 = vmatmul.mubr.bf16.gmra.mxu0 %v2478_v63  ;;  %3439 = vmatmul.mubr.bf16.gmra.mxu1 %v2478_v63  ;;  %v7776_v63 = vld [vmem:[%s7744_s27 + $0x28] sm:$0xff] }
 0x2c9   : > { %4333 = vmatprep.mubr.msk.bf16.mxu0 %vm3310_vm0, %v2481_v3  ;;  %4337 = vmatprep.mubr.msk.bf16.mxu1 %vm3310_vm0, %v2481_v3  ;;  %v7783_v3 = vld [vmem:[%s7744_s27 + $0x30] sm:$0xff] }
 0x2d0   : > { %3376 = vmatmul.mubr.bf16.gmra.mxu0 %v2480_v5  ;;  %3449 = vmatmul.mubr.bf16.gmra.mxu1 %v2480_v5  ;;  %v7817_v5 = vld [vmem:[%s7744_s27 + $0x60] sm:$0xff] }
 0x2d1   : > { %4334 = vmatprep.mubr.msk.bf16.mxu0 %vm3310_vm0, %v2483_v15  ;;  %4338 = vmatprep.mubr.msk.bf16.mxu1 %vm3310_vm0, %v2483_v15 }
 0x2d8   : > { %3386 = vmatmul.mubr.bf16.gmra.mxu0 %v2482_v59  ;;  %3459 = vmatmul.mubr.bf16.gmra.mxu1 %v2482_v59  ;;  %v8201_v59 = vunpack.c.l.bf16 %v7747_v51 }
 0x350   : > { %v7677_v35 = vpop.f32.mrf.mxu0  ;;  %v7679_v17 = vpop.f32.mrf.mxu1 }
 0x352   : > { %v7681_v18 = vpop.f32.mrf.mxu0  ;;  %v7683_v2 = vpop.f32.mrf.mxu1 }
 0x354   : > { %v7685_v20 = vpop.f32.mrf.mxu0  ;;  %v7687_v23 = vpop.f32.mrf.mxu1 }
 0x356   : > { %v7689_v24 = vpop.f32.mrf.mxu0  ;;  %v7691_v25 = vpop.f32.mrf.mxu1 }
 0x358   : > { %v7693_v27 = vpop.f32.mrf.mxu0  ;;  %v7695_v28 = vpop.f32.mrf.mxu1 }
 0x35a   : > { %v7697_v29 = vpop.f32.mrf.mxu0  ;;  %v7699_v30 = vpop.f32.mrf.mxu1 }
 0x35c   : > { %v7701_v31 = vpop.f32.mrf.mxu0  ;;  %v7703_v32 = vpop.f32.mrf.mxu1 }
 0x35e   : > { %v7705_v33 = vpop.f32.mrf.mxu0  ;;  %v7707_v44 = vpop.f32.mrf.mxu1 }
 0x360   : > { %v7709_v34 = vpop.f32.mrf.mxu0  ;;  %v7711_v36 = vpop.f32.mrf.mxu1 }
 0x362   : > { %v7713_v37 = vpop.f32.mrf.mxu0  ;;  %v7715_v38 = vpop.f32.mrf.mxu1 }
 0x364   : > { %v7717_v39 = vpop.f32.mrf.mxu0  ;;  %v7719_v40 = vpop.f32.mrf.mxu1 }
 0x366   : > { %v7725_v41 = vpop.f32.mrf.mxu0  ;;  %v7727_v42 = vpop.f32.mrf.mxu1 }
 0x368   : > { %v7730_v43 = vpop.f32.mrf.mxu0  ;;  %v7732_v45 = vpop.f32.mrf.mxu1 }
 0x36a   : > { %v7738_v46 = vpop.f32.mrf.mxu0  ;;  %v7740_v47 = vpop.f32.mrf.mxu1 }
 0x36c   : > { %v7752_v53 = vpop.f32.mrf.mxu0  ;;  %v7754_v54 = vpop.f32.mrf.mxu1 }
 0x36e   : > { %v7798_v10 = vpop.f32.mrf.mxu0  ;;  %v7800_v11 = vpop.f32.mrf.mxu1 }
 0x36f   : > { %8196 = vst [vmem:[#allocation17_spill] sm:$0xff] %v7798_v10  ;;  %8197 = vst [vmem:[#allocation18_spill] sm:$0xff] %v7800_v11 }
 0x380   : > { %v3357_v19 = vpop.f32.mrf.mxu0  ;;  %v3430_v15 = vpop.f32.mrf.mxu1 }
 0x381   : > { %v3358_v48 = vadd.f32 %v3357_v19, %v7677_v35  ;;  %v3431_v49 = vadd.f32 %v3430_v15, %v7679_v17 }
 0x382   : > { %v3359_v1 = vpop.f32.mrf.mxu0  ;;  %v3432_v7 = vpop.f32.mrf.mxu1 }
 0x383   : > { %v3491_v17 = vadd.f32 %v7763_v56, %v3358_v48  ;;  %v3493_v19 = vadd.f32 %v7765_v57, %v3431_v49  ;;  %v3360_v15 = vadd.f32 %v3359_v1, %v7681_v18  ;;  %v3433_v4 = vadd.f32 %v3432_v7, %v7683_v2 }
 0x384   : > { %v3361_v50 = vpop.f32.mrf.mxu0  ;;  %v3434_v0 = vpop.f32.mrf.mxu1 }
 0x385   : > { %v3523_v35 = vmul.f32 0.2, %v3491_v17  ;;  %v3525_v10 = vmul.f32 0.2, %v3493_v19  ;;  %v3492_v48 = vadd.f32 %v7768_v58, %v3360_v15  ;;  %v3494_v49 = vadd.f32 %v7770_v61, %v3433_v4 }
 0x386   : > { %v3362_v18 = vadd.f32 %v3361_v50, %v7685_v20  ;;  %v3435_v2 = vadd.f32 %v3434_v0, %v7687_v23  ;;  %v3363_v1 = vpop.f32.mrf.mxu0  ;;  %v3436_v7 = vpop.f32.mrf.mxu1  ;;  %v8202_v17 = vunpack.c.l.bf16 %v7750_v52 }
 0x387   : > { %v3603_v6 = vadd.f32 %v8201_v59, %v3523_v35  ;;  %v3524_v13 = vmul.f32 0.2, %v3492_v48  ;;  %v3526_v15 = vmul.f32 0.2, %v3494_v49  ;;  %v3364_v23 = vadd.f32 %v3363_v1, %v7689_v24 }
 0x388   : > { %v3605_v19 = vadd.f32 %v8202_v17, %v3525_v10  ;;  %v3495_v4 = vadd.f32 %v7763_v56, %v3362_v18  ;;  %v3497_v20 = vadd.f32 %v7765_v57, %v3435_v2  ;;  %v3437_v0 = vadd.f32 %v3436_v7, %v7691_v25  ;;  %v3367_v50 = vpop.f32.mrf.mxu0  ;;  %v3440_v11 = vpop.f32.mrf.mxu1 }
 0x389   : > { %v3635_v21 = vmax.f32 %v3603_v6, 0.0  ;;  %v8203_v59 = vunpack.c.h.bf16 %v7747_v51  ;;  %v8204_v10 = vunpack.c.h.bf16 %v7750_v52  ;;  %v3496_v18 = vadd.f32 %v7768_v58, %v3364_v23 }
 0x38a   : > { %v3637_v22 = vmax.f32 %v3605_v19, 0.0  ;;  %v3527_v49 = vmul.f32 0.2, %v3495_v4  ;;  %v3529_v17 = vmul.f32 0.2, %v3497_v20  ;;  %v3498_v2 = vadd.f32 %v7770_v61, %v3437_v0  ;;  %v3369_v60 = vpop.f32.mrf.mxu0  ;;  %v3442_v24 = vpop.f32.mrf.mxu1 }
 0x38b   : > { %v3604_v35 = vadd.f32 %v8203_v59, %v3524_v13  ;;  %v3606_v48 = vadd.f32 %v8204_v10, %v3526_v15  ;;  %3667 = vst [vmem:[%s7871_s1] sm:$0xff] %v3635_v21  ;;  %v3368_v52 = vadd.f32 %v3367_v50, %v7693_v27  ;;  %v3441_v6 = vadd.f32 %v3440_v11, %v7695_v28 }
 0x38c   : > { %3669 = vst [vmem:[%s7871_s1 + $0x10] sm:$0xff] %v3637_v22  ;;  %v8205_v13 = vunpack.c.l.bf16 %v7757_v9  ;;  %v8206_v7 = vunpack.c.l.bf16 %v7760_v55  ;;  %v3528_v15 = vmul.f32 0.2, %v3496_v18  ;;  %v3530_v4 = vmul.f32 0.2, %v3498_v2  ;;  %v3371_v20 = vpop.f32.mrf.mxu0  ;;  %v3444_v23 = vpop.f32.mrf.mxu1 }
 0x38d   : > { %v3636_v25 = vmax.f32 %v3604_v35, 0.0  ;;  %v3638_v51 = vmax.f32 %v3606_v48, 0.0  ;;  %v3499_v22 = vadd.f32 %v7763_v56, %v3368_v52  ;;  %v3501_v27 = vadd.f32 %v7765_v57, %v3441_v6 }
 0x38e   : > { %v3607_v1 = vadd.f32 %v8205_v13, %v3527_v49  ;;  %v3609_v19 = vadd.f32 %v8206_v7, %v3529_v17  ;;  %v3370_v28 = vadd.f32 %v3369_v60, %v7697_v29  ;;  %v3443_v21 = vadd.f32 %v3442_v24, %v7699_v30  ;;  %v3373_v48 = vpop.f32.mrf.mxu0  ;;  %v3446_v49 = vpop.f32.mrf.mxu1 }
 0x38f   : > { %3668 = vst [vmem:[%s7871_s1 + $0x8] sm:$0xff] %v3636_v25  ;;  %3670 = vst [vmem:[%s7871_s1 + $0x18] sm:$0xff] %v3638_v51  ;;  %v8207_v50 = vunpack.c.h.bf16 %v7757_v9  ;;  %v8208_v35 = vunpack.c.h.bf16 %v7760_v55  ;;  %v3531_v17 = vmul.f32 0.2, %v3499_v22  ;;  %v3533_v18 = vmul.f32 0.2, %v3501_v27 }
 0x390   : > { %v3639_v11 = vmax.f32 %v3607_v1, 0.0  ;;  %v3641_v0 = vmax.f32 %v3609_v19, 0.0  ;;  %v3500_v2 = vadd.f32 %v7768_v58, %v3370_v28  ;;  %v3502_v29 = vadd.f32 %v7770_v61, %v3443_v21  ;;  %v3377_v55 = vpop.f32.mrf.mxu0  ;;  %v3450_v25 = vpop.f32.mrf.mxu1 }
 0x391   : > { %v3608_v59 = vadd.f32 %v8207_v50, %v3528_v15  ;;  %v3610_v10 = vadd.f32 %v8208_v35, %v3530_v4  ;;  %v3372_v9 = vadd.f32 %v3371_v20, %v7701_v31  ;;  %v3445_v24 = vadd.f32 %v3444_v23, %v7703_v32 }
 0x392   : > { %3671 = vst [vmem:[%s7871_s1 + $0x20] sm:$0xff] %v3639_v11  ;;  %3673 = vst [vmem:[%s7871_s1 + $0x30] sm:$0xff] %v3641_v0  ;;  %v8209_v51 = vunpack.c.l.bf16 %v7773_v62  ;;  %v8210_v6 = vunpack.c.l.bf16 %v7776_v63  ;;  %v3532_v1 = vmul.f32 0.2, %v3500_v2  ;;  %v3534_v7 = vmul.f32 0.2, %v3502_v29  ;;  %v3379_v4 = vpop.f32.mrf.mxu0  ;;  %v3452_v20 = vpop.f32.mrf.mxu1 }
 0x393   : > { %v3640_v30 = vmax.f32 %v3608_v59, 0.0  ;;  %v3642_v60 = vmax.f32 %v3610_v10, 0.0  ;;  %v3503_v19 = vadd.f32 %v7763_v56, %v3372_v9  ;;  %v3505_v15 = vadd.f32 %v7765_v57, %v3445_v24 }
 0x394   : > { %v3611_v52 = vadd.f32 %v8209_v51, %v3531_v17  ;;  %v3613_v13 = vadd.f32 %v8210_v6, %v3533_v18  ;;  %v3374_v31 = vadd.f32 %v3373_v48, %v7705_v33  ;;  %v3447_v32 = vadd.f32 %v3446_v49, %v7707_v44  ;;  %v3381_v33 = vpop.f32.mrf.mxu0  ;;  %v3454_v44 = vpop.f32.mrf.mxu1 }
 0x395   : > { %3672 = vst [vmem:[%s7871_s1 + $0x28] sm:$0xff] %v3640_v30  ;;  %3674 = vst [vmem:[%s7871_s1 + $0x38] sm:$0xff] %v3642_v60  ;;  %v8211_v27 = vunpack.c.h.bf16 %v7773_v62  ;;  %v8212_v21 = vunpack.c.h.bf16 %v7776_v63  ;;  %v3535_v0 = vmul.f32 0.2, %v3503_v19  ;;  %v3537_v50 = vmul.f32 0.2, %v3505_v15 }
 0x396   : > { %v3643_v23 = vmax.f32 %v3611_v52, 0.0  ;;  %v3645_v22 = vmax.f32 %v3613_v13, 0.0  ;;  %v3504_v59 = vadd.f32 %v7768_v58, %v3374_v31  ;;  %v3506_v35 = vadd.f32 %v7770_v61, %v3447_v32  ;;  %v3383_v60 = vpop.f32.mrf.mxu0  ;;  %v3456_v9 = vpop.f32.mrf.mxu1 }
 0x397   : > { %v3612_v28 = vadd.f32 %v8211_v27, %v3532_v1  ;;  %v3614_v11 = vadd.f32 %v8212_v21, %v3534_v7  ;;  %v3378_v62 = vadd.f32 %v3377_v55, %v7709_v34  ;;  %v3451_v49 = vadd.f32 %v3450_v25, %v7711_v36 }
 0x398   : > { %3675 = vst [vmem:[%s7871_s1 + $0x40] sm:$0xff] %v3643_v23  ;;  %3677 = vst [vmem:[%s7871_s1 + $0x50] sm:$0xff] %v3645_v22  ;;  %v8213_v63 = vunpack.c.l.bf16 %v7783_v3  ;;  %v8214_v18 = vunpack.c.l.bf16 %v7786_v14  ;;  %v3536_v29 = vmul.f32 0.2, %v3504_v59  ;;  %v3538_v30 = vmul.f32 0.2, %v3506_v35  ;;  %v3387_v7 = vpop.f32.mrf.mxu0  ;;  %v3460_v19 = vpop.f32.mrf.mxu1 }
 0x399   : > { %v3644_v10 = vmax.f32 %v3612_v28, 0.0  ;;  %v3646_v48 = vmax.f32 %v3614_v11, 0.0  ;;  %v3507_v24 = vadd.f32 %v7763_v56, %v3378_v62  ;;  %v3509_v34 = vadd.f32 %v7765_v57, %v3451_v49 }
 0x39a   : > { %v3615_v17 = vadd.f32 %v8213_v63, %v3535_v0  ;;  %v3617_v2 = vadd.f32 %v8214_v18, %v3537_v50  ;;  %v3380_v36 = vadd.f32 %v3379_v4, %v7713_v37  ;;  %v3453_v55 = vadd.f32 %v3452_v20, %v7715_v38  ;;  %v3389_v11 = vpop.f32.mrf.mxu0  ;;  %v3462_v0 = vpop.f32.mrf.mxu1 }
 0x39b   : > { %3676 = vst [vmem:[%s7871_s1 + $0x48] sm:$0xff] %v3644_v10  ;;  %3678 = vst [vmem:[%s7871_s1 + $0x58] sm:$0xff] %v3646_v48  ;;  %v8215_v52 = vunpack.c.h.bf16 %v7783_v3  ;;  %v8216_v13 = vunpack.c.h.bf16 %v7786_v14  ;;  %v3539_v15 = vmul.f32 0.2, %v3507_v24  ;;  %v3541_v31 = vmul.f32 0.2, %v3509_v34 }
 0x39c   : > { %v3647_v25 = vmax.f32 %v3615_v17, 0.0  ;;  %v3649_v51 = vmax.f32 %v3617_v2, 0.0  ;;  %v3508_v32 = vadd.f32 %v7768_v58, %v3380_v36  ;;  %v3510_v37 = vadd.f32 %v7770_v61, %v3453_v55 }
 0x39d   : > { %v3616_v6 = vadd.f32 %v8215_v52, %v3536_v29  ;;  %v3618_v1 = vadd.f32 %v8216_v13, %v3538_v30  ;;  %v3382_v3 = vadd.f32 %v3381_v33, %v7717_v39  ;;  %v3455_v20 = vadd.f32 %v3454_v44, %v7719_v40  ;;  %v3391_v29 = vpop.f32.mrf.mxu0  ;;  %v3464_v30 = vpop.f32.mrf.mxu1 }
 0x39e   : > { %3679 = vst [vmem:[%s7871_s1 + $0x60] sm:$0xff] %v3647_v25  ;;  %3681 = vst [vmem:[%s7871_s1 + $0x70] sm:$0xff] %v3649_v51  ;;  %v8217_v14 = vunpack.c.l.bf16 %v7793_v8  ;;  %v8218_v22 = vunpack.c.l.bf16 %v7796_v12  ;;  %v3540_v28 = vmul.f32 0.2, %v3508_v32  ;;  %v3542_v21 = vmul.f32 0.2, %v3510_v37 }
 0x39f   : > { %v3648_v38 = vmax.f32 %v3616_v6, 0.0  ;;  %v3650_v4 = vmax.f32 %v3618_v1, 0.0  ;;  %v3511_v50 = vadd.f32 %v7763_v56, %v3382_v3  ;;  %v3513_v39 = vadd.f32 %v7765_v57, %v3455_v20  ;;  %v3393_v37 = vpop.f32.mrf.mxu0  ;;  %v8226_v20 = vld [vmem:[#allocation19_spill] sm:$0xff] }
 0x3a0   : > { %v3619_v23 = vadd.f32 %v8217_v14, %v3539_v15  ;;  %v3621_v27 = vadd.f32 %v8218_v22, %v3541_v31  ;;  %v3384_v40 = vadd.f32 %v3383_v60, %v7725_v41  ;;  %v3457_v59 = vadd.f32 %v3456_v9, %v7727_v42 }
 0x3a1   : > { %3680 = vst [vmem:[%s7871_s1 + $0x68] sm:$0xff] %v3648_v38  ;;  %3682 = vst [vmem:[%s7871_s1 + $0x78] sm:$0xff] %v3650_v4  ;;  %v8219_v44 = vunpack.c.h.bf16 %v7793_v8  ;;  %v8220_v48 = vunpack.c.h.bf16 %v7796_v12  ;;  %v3543_v49 = vmul.f32 0.2, %v3511_v50  ;;  %v3545_v63 = vmul.f32 0.2, %v3513_v39 }
 0x3a2   : > { %v3651_v35 = vmax.f32 %v3619_v23, 0.0  ;;  %v3653_v33 = vmax.f32 %v3621_v27, 0.0  ;;  %v3512_v17 = vadd.f32 %v7768_v58, %v3384_v40  ;;  %v3514_v18 = vadd.f32 %v7770_v61, %v3457_v59 }
 0x3a3   : > { %v3620_v10 = vadd.f32 %v8219_v44, %v3540_v28  ;;  %v3622_v62 = vadd.f32 %v8220_v48, %v3542_v21  ;;  %v3388_v2 = vadd.f32 %v3387_v7, %v7730_v43  ;;  %v3461_v8 = vadd.f32 %v3460_v19, %v7732_v45 }
 0x3a4   : > { %3683 = vst [vmem:[%s7871_s1 + $0x80] sm:$0xff] %v3651_v35  ;;  %3685 = vst [vmem:[%s7871_s1 + $0x90] sm:$0xff] %v3653_v33  ;;  %v8221_v12 = vunpack.c.l.bf16 %v7807_v16  ;;  %v8222_v9 = vunpack.c.l.bf16 %v7810_v26  ;;  %v3544_v34 = vmul.f32 0.2, %v3512_v17  ;;  %v3546_v36 = vmul.f32 0.2, %v3514_v18 }
 0x3a5   : > { %v3652_v41 = vmax.f32 %v3620_v10, 0.0  ;;  %v3654_v42 = vmax.f32 %v3622_v62, 0.0  ;;  %v3515_v55 = vadd.f32 %v7763_v56, %v3388_v2  ;;  %v3517_v43 = vadd.f32 %v7765_v57, %v3461_v8  ;;  %v8234_v17 = vld [vmem:[#allocation21_spill] sm:$0xff] }
 0x3a6   : > { %v3623_v60 = vadd.f32 %v8221_v12, %v3543_v49  ;;  %v3625_v24 = vadd.f32 %v8222_v9, %v3545_v63  ;;  %v3390_v45 = vadd.f32 %v3389_v11, %v7738_v46  ;;  %v3463_v25 = vadd.f32 %v3462_v0, %v7740_v47  ;;  %v3466_v46 = vpop.f32.mrf.mxu1  ;;  %v8228_v11 = vld [vmem:[#allocation17_spill] sm:$0xff]  ;;  %v8229_v0 = vld [vmem:[#allocation18_spill] sm:$0xff]  ;;  %v8232_v49 = vld [vmem:[#allocation20_spill] sm:$0xff] }
 0x3a7   : > { %3684 = vst [vmem:[%s7871_s1 + $0x88] sm:$0xff] %v3652_v41  ;;  %3686 = vst [vmem:[%s7871_s1 + $0x98] sm:$0xff] %v3654_v42  ;;  %v8223_v6 = vunpack.c.h.bf16 %v7807_v16  ;;  %v8224_v1 = vunpack.c.h.bf16 %v7810_v26  ;;  %v3547_v19 = vmul.f32 0.2, %v3515_v55  ;;  %v3549_v15 = vmul.f32 0.2, %v3517_v43 }
 0x3a8   : > { %v3655_v51 = vmax.f32 %v3623_v60, 0.0  ;;  %v3657_v52 = vmax.f32 %v3625_v24, 0.0  ;;  %v3516_v31 = vadd.f32 %v7768_v58, %v3390_v45  ;;  %v3518_v32 = vadd.f32 %v7770_v61, %v3463_v25 }
 0x3a9   : > { %v3624_v13 = vadd.f32 %v8223_v6, %v3544_v34  ;;  %v3626_v7 = vadd.f32 %v8224_v1, %v3546_v36  ;;  %v3392_v16 = vadd.f32 %v3391_v29, %v7752_v53  ;;  %v3465_v4 = vadd.f32 %v3464_v30, %v7754_v54 }
 0x3aa   : > { %3687 = vst [vmem:[%s7871_s1 + $0xa0] sm:$0xff] %v3655_v51  ;;  %3689 = vst [vmem:[%s7871_s1 + $0xb0] sm:$0xff] %v3657_v52  ;;  %v8225_v26 = vunpack.c.l.bf16 %v7817_v5  ;;  %v8227_v14 = vunpack.c.l.bf16 %v8226_v20  ;;  %v3548_v22 = vmul.f32 0.2, %v3516_v31  ;;  %v3550_v27 = vmul.f32 0.2, %v3518_v32 }
 0x3ab   : > { %v3656_v47 = vmax.f32 %v3624_v13, 0.0  ;;  %v3658_v38 = vmax.f32 %v3626_v7, 0.0  ;;  %v3519_v28 = vadd.f32 %v7763_v56, %v3392_v16  ;;  %v3521_v21 = vadd.f32 %v7765_v57, %v3465_v4 }
 0x3ac   : > { %v3627_v3 = vadd.f32 %v8225_v26, %v3547_v19  ;;  %v3629_v23 = vadd.f32 %v8227_v14, %v3549_v15  ;;  %v3394_v53 = vadd.f32 %v3393_v37, %v8228_v11  ;;  %v3467_v54 = vadd.f32 %v3466_v46, %v8229_v0 }
 0x3ad   : > { %3688 = vst [vmem:[%s7871_s1 + $0xa8] sm:$0xff] %v3656_v47  ;;  %3690 = vst [vmem:[%s7871_s1 + $0xb8] sm:$0xff] %v3658_v38  ;;  %v8230_v40 = vunpack.c.h.bf16 %v7817_v5  ;;  %v8231_v35 = vunpack.c.h.bf16 %v8226_v20  ;;  %v3551_v44 = vmul.f32 0.2, %v3519_v28  ;;  %v3553_v10 = vmul.f32 0.2, %v3521_v21 }
 0x3ae   : > { %v3659_v50 = vmax.f32 %v3627_v3, 0.0  ;;  %v3661_v39 = vmax.f32 %v3629_v23, 0.0  ;;  %v3520_v56 = vadd.f32 %v7768_v58, %v3394_v53  ;;  %v3522_v57 = vadd.f32 %v7770_v61, %v3467_v54 }
 0x3af   : > { %v3628_v59 = vadd.f32 %v8230_v40, %v3548_v22  ;;  %v3630_v33 = vadd.f32 %v8231_v35, %v3550_v27  ;;  %v8233_v5 = vunpack.c.l.bf16 %v8232_v49  ;;  %v8235_v18 = vunpack.c.l.bf16 %v8234_v17 }
 0x3b0   : > { %3691 = vst [vmem:[%s7871_s1 + $0xc0] sm:$0xff] %v3659_v50  ;;  %3693 = vst [vmem:[%s7871_s1 + $0xd0] sm:$0xff] %v3661_v39  ;;  %v3552_v42 = vmul.f32 0.2, %v3520_v56  ;;  %v3554_v2 = vmul.f32 0.2, %v3522_v57  ;;  %v8236_v8 = vunpack.c.h.bf16 %v8232_v49  ;;  %v8237_v30 = vunpack.c.h.bf16 %v8234_v17 }
 0x3b1   : > { %v3660_v48 = vmax.f32 %v3628_v59, 0.0  ;;  %v3662_v62 = vmax.f32 %v3630_v33, 0.0  ;;  %v3631_v63 = vadd.f32 %v8233_v5, %v3551_v44  ;;  %v3633_v41 = vadd.f32 %v8235_v18, %v3553_v10 }
 0x3b2   : > { %v3632_v29 = vadd.f32 %v8236_v8, %v3552_v42  ;;  %v3634_v12 = vadd.f32 %v8237_v30, %v3554_v2  ;;  %3706 = sbr.rel (!%p5634_p11) target bundleno = 980 (0x3d4), region = 262 }
 0x3b3   : > { %3692 = vst [vmem:[%s7871_s1 + $0xc8] sm:$0xff] %v3660_v48  ;;  %3694 = vst [vmem:[%s7871_s1 + $0xd8] sm:$0xff] %v3662_v62  ;;  %v3663_v58 = vmax.f32 %v3631_v63, 0.0  ;;  %v3665_v61 = vmax.f32 %v3633_v41, 0.0 }
 0x3b4   : > { %v3664_v60 = vmax.f32 %v3632_v29, 0.0  ;;  %v3666_v9 = vmax.f32 %v3634_v12, 0.0 }
 0x3b5   : > { %3695 = vst [vmem:[%s7871_s1 + $0xe0] sm:$0xff] %v3663_v58  ;;  %3697 = vst [vmem:[%s7871_s1 + $0xf0] sm:$0xff] %v3665_v61 }
 0x3b6   : > { %3696 = vst [vmem:[%s7871_s1 + $0xe8] sm:$0xff] %v3664_v60  ;;  %3698 = vst [vmem:[%s7871_s1 + $0xf8] sm:$0xff] %v3666_v9 }
 0x3b7   : > { %s8290_s12 = smov (!%p3710_p12, %s3709_s12), 4 }
 0x3b8   : > { %s8016_s29 = sshll.u32 %s8290_s12, 10 }
 0x3b9   : > { %s3714_s6 = ssub.s32 4096, %s8016_s29 }
 0x3ba   : > { %3715 = vsyncadd %s3700_s2, %s3714_s6  ;;  %p4343_p11 = scmp.ne.s32.totalorder %s8016_s29, 0  ;;  %s4368_s10 = smul.u32 136, %s5313_s19 }
 0x3bb   : > { %s4346_s24 = sshll.u32 %s8290_s12, 3  ;;  %s3723_s11 = sshll.u32 %s7871_s1, 4  ;;  %s8026_s11 = int_to_ptr.vmem [resolvable:$true] %s3723_s11 }
 0x3bc   : > { %s3718_s3 = sadd.s32 %s4368_s10, %s7722_s25  ;;  %s8239_s30 = sld [smem:[#allocation29_spill]] }
 0x3bd   : > { %s4345_s18 = sshll.u32 %s3718_s3, 7  ;;  %s5025_s8 = scalar_lea.vmem %s8026_s11, %s8016_s29 }
 0x3be   : > { %p5026_p3 = scmp.ne.s32.totalorder %s8026_s11, %s5025_s8  ;;  %s5493_s19 = smov [#allocation5]  }
 0x3bf   : > { %s5029_s23 = sshll.u32 %s5493_s19, 4  ;;  %s5030_s23 = int_to_ptr.vmem [resolvable:$false] %s5029_s23 }
 0x3c0   : > { %p5027_p0 = pnand %p5026_p3, %p4343_p11  ;;  %s5031_s25 = scalar_lea.vmem %s5030_s23, 8192 }
 0x3c1   : > { %p5032_p2 = scmp.lt.s32.totalorder %s8026_s11, %s5030_s23  ;;  %p5033_p4 = scmp.lt.s32.totalorder %s5031_s25, %s5025_s8 }
 0x3c2   : > { %s8031_s13 = scalar_lea.hbm %s8239_s30, %s4345_s18  ;;  %p5028_p1 = pneg %p5027_p0 }
 0x3c3   : > { %p5034_p5 = por %p5033_p4, %p5032_p2 }
 0x3c5   : > { %p5035_p6 = pnand %p5034_p5, %p5028_p1 }
 0x3c7   : > { %5038 = shalt.err (!%p5035_p6)
}
 0x3c8   : > { %s5039_s28 = scalar_lea.hbm %s8031_s13, %s8016_s29  ;;  %s5043_s1 = scalar_lea.hbm %s8239_s30, 34816 }
 0x3c9   : > { %p5040_p7 = scmp.ne.s32.totalorder %s8031_s13, %s5039_s28  ;;  %p5044_p10 = scmp.lt.s32.totalorder %s8031_s13, %s8239_s30 }
 0x3ca   : > { %p5045_p12 = scmp.lt.s32.totalorder %s5043_s1, %s5039_s28 }
 0x3cb   : > { %p5041_p8 = pnand %p5040_p7, %p4343_p11 }
 0x3cc   : > { %p5046_p3 = por %p5045_p12, %p5044_p10 }
 0x3cd   : > { %p5042_p9 = pneg %p5041_p8 }
 0x3cf   : > { %p5047_p0 = pnand %p5046_p3, %p5042_p9 }
 0x3d1   : > { %5050 = shalt.err (!%p5047_p0)
}
 0x3d2   : > { %s5494_s10 = smov 512   ;;  %s5495_s3 = smov 2176  }
 0x3d3   : > { %3729 = dma.vmem_to_hbm [thread:$0]  (%p4343_p11), %s8026_s11, %s8016_s29, %s8031_s13, %s3700_s2, %s5494_s10, %s5495_s3, %s4346_s24  }
 0x3d4 PF: > { %s8240_s18 = sld [smem:[#allocation8_spill]]  ;;  %p4374_p1 = scmp.ge.s32.totalorder %s5325_s22, 2 }
 0x3d6   : > { %p4371_p2 = pnand %p4374_p1, %p5641_p13 }
 0x3d8   : > { %p4372_p4 = pneg %p4371_p2 }
 0x3da   : > { %s3738_s14 = sand.u32 1, %s8240_s18  }
 0x3db   : > { %s3739_s8 = scalar_lea.sflag [#allocation6], %s3738_s14 }
 0x3dc   : > { %5284 = dma.done.wait (%p4372_p4), %s3739_s8, 4096  }
 0x3dd   : > { %5286 = vsyncadd (%p4372_p4), %s3739_s8, 4294963200  ;;  %s23_s22 = sadd.s32 1, %s5325_s22   ;;  %s8242_s13 = sld [smem:[#allocation9_spill]] }
 0x3de   : > { %p20_p5 = scmp.ge.s32.totalorder %s23_s22, 12   ;;  %s8243_s0 = sld [smem:[#allocation15_spill]] }
 0x3df   : > { %s8244_s2 = sld [smem:[#allocation13_spill]]  ;;  %s8247_s14 = smov %s5297_s15 }
 0x3e0   : > { %s8245_s12 = sld [smem:[#allocation11_spill]]  ;;  %s8249_s16 = smov %s5305_s17 }
 0x3e1   : > { %s8246_s29 = sld [smem:[#allocation12_spill]]  ;;  %s8251_s18 = smov %s5317_s20 }
 0x3e2   : > { %s8252_s19 = smov %s5321_s21 }
 0x3e3   :  { %22 = sbr.rel (!%p20_p5) target bundleno = 15 (0xf), region = 509 }
 0x3e4   : > { %s8248_s15 = smov %s8243_s0 }
 0x3e5   : > { %s8250_s17 = smov %s8244_s2 }
 0x3e6   : > { %s8253_s20 = smov %s8245_s12 }
 0x3e7   : > { %s8254_s21 = smov %s8246_s29 }
 0x3e8   :  { %3744 = vsyncpa [#allocation6], 1 }
 0x3e9   :  { %3746 = vsyncpa [#allocation6 + $0x1], 1 }

</bundles_post_ra>
